<compile_context>
chip_gen: v7x
topology: tpu7x:2x2x1
jax: 0.10.0
libtpu: 0.0.40
codegen_flags: <defaults>
</compile_context>

<pallas_src>
import math
import functools

import jax
import jax.numpy as jnp
from jax import lax
from jax.experimental import pallas as pl
from jax.experimental.pallas import tpu as pltpu


def _round_up(v, m):
    return (v + m - 1) // m * m


def _vmem_capacity_bytes():
    try:
        return int(pltpu.get_tpu_info().vmem_capacity_bytes)
    except Exception:
        return 64 * 1024 * 1024          # v7x-safe fallback


def _working_set_bytes(tho, w_out, wp1, cpad, in_bytes, out_bytes):
    xc = 2 * tho * wp1 * cpad * in_bytes            # center block (double-buffered)
    halo = 2 * 2 * wp1 * cpad * in_bytes            # two 1-row halo blocks
    wgt = 2 * 16 * cpad * cpad * in_bytes           # parity weights
    bias = 2 * cpad * 4
    out = 2 * tho * 2 * w_out * (2 * cpad) * out_bytes
    slab = ((tho + 2) * wp1 + 8) * cpad * in_bytes
    headroom = 512 * 1024                           # acc spill / compiler temps
    return xc + halo + wgt + bias + out + slab + headroom


def _pick_row_tile(h, w_out, wp1, cpad, in_bytes, out_bytes, budget):
    best = 1
    for cand in range(1, min(h, 32) + 1):
        if h % cand:
            continue
        if _working_set_bytes(cand, w_out, wp1, cpad, in_bytes,
                              out_bytes) <= budget:
            best = cand
    return best


def _pick_chunk(tho, wp1, cpad):
    """Original-image rows per accumulation chunk (always divides tho)."""
    target = max(1, (64 * 1024) // (4 * cpad * wp1))   # ~64 KiB f32 accumulator
    g = min(tho, max(target, (tho + 7) // 8))          # also bounds the unroll
    while tho % g:
        g += 1
    return g


def _upsample_conv_kernel(xc_ref, xt_ref, xb_ref, w_ref, b_ref, o_ref, slab_ref,
                          *, tho, wp1, w_out, cpad, gchunk):
    """One grid step = one (batch, row-tile).

    xc_ref : (1, tho, Wp1, Cpad)  original-res rows, W pre-padded, bf16
    xt_ref : (1, 1,  Wp1, Cpad)   row above the tile (clamped at borders)
    xb_ref : (1, 1,  Wp1, Cpad)   row below the tile (clamped at borders)
    w_ref  : (16, Cpad, Cpad)     parity-combined 2x2 weights, k=((p*2+q)*2+a)*2+b
    b_ref  : (1, Cpad)            bias (f32)
    o_ref  : (1, tho, 2, W, 2*Cpad)  output; dim2 = H parity, lane half = W parity
    slab_ref: ((tho+2)*Wp1 + 8, Cpad)  flat original-res rows + halos + zero tail
    """
    t = pl.program_id(1)
    nt = pl.num_programs(1)
    dt = slab_ref.dtype

    # Halo rows: zero them when the tile touches the image border.
    top = xt_ref[0, 0] * (t > 0).astype(dt)
    bot = xb_ref[0, 0] * (t < nt - 1).astype(dt)

    # Build the flat slab: [halo_above, tho center rows, halo_below, zero tail].
    slab_ref[pl.ds(0, wp1), :] = top
    slab_ref[pl.ds(wp1, tho * wp1), :] = xc_ref[0].reshape(tho * wp1, cpad)
    slab_ref[pl.ds((tho + 1) * wp1, wp1), :] = bot
    slab_ref[pl.ds((tho + 2) * wp1, 8), :] = jnp.zeros((8, cpad), dt)

    bias = b_ref[...]                          # (1, Cpad) f32, hoisted

    m = gchunk * wp1
    rowbase = ((0, 1), (1, 2))                 # [p][a] slab-row offset
    colbase = ((0, 1), (1, 2))                 # [q][bb] slab-col offset

    for ci in range(tho // gchunk):
        u0 = ci * gchunk
        for p in (0, 1):                       # output-row parity
            for q in (0, 1):                   # output-col parity
                acc = None                     # value-chained f32 accumulation
                for a in (0, 1):               # H tap
                    for bb in (0, 1):          # W tap
                        k = ((p * 2 + q) * 2 + a) * 2 + bb
                        start = (u0 + rowbase[p][a]) * wp1 + colbase[q][bb]
                        lhs = slab_ref[pl.ds(start, m), :]
                        d = jnp.dot(lhs, w_ref[k],
                                    preferred_element_type=jnp.float32)
                        acc = d if acc is None else acc + d
                res = (acc + bias).astype(o_ref.dtype)
                res = res.reshape(gchunk, wp1, cpad)[:, :w_out, :]
                o_ref[0, pl.ds(u0, gchunk), p, :,
                      pl.ds(q * cpad, cpad)] = res


def upsample_conv_pallas(x_pad, wcomb, bias_row, *, w_out):
    """x_pad: (N, H, Wp1, Cpad) bf16 (W and C pre-padded).

    Returns (N, H, 2, w_out, 2*Cpad): memory layout == (N, 2H, 2*w_out, Cpad).
    """
    n, h, wp1, cpad = x_pad.shape
    in_bytes = x_pad.dtype.itemsize
    out_dtype = x_pad.dtype
    out_bytes = in_bytes

    cap = _vmem_capacity_bytes()
    budget = int(cap * 0.45)
    tho = _pick_row_tile(h, w_out, wp1, cpad, in_bytes, out_bytes, budget)
    t_tiles = h // tho
    gchunk = _pick_chunk(tho, wp1, cpad)

    need = _working_set_bytes(tho, w_out, wp1, cpad, in_bytes, out_bytes)
    vmem_limit = int(min(cap * 0.8, max(need * 1.5, 32 * 1024 * 1024)))

    kernel = functools.partial(_upsample_conv_kernel, tho=tho, wp1=wp1,
                               w_out=w_out, cpad=cpad, gchunk=gchunk)

    grid_spec = pltpu.PrefetchScalarGridSpec(
        num_scalar_prefetch=0,
        grid=(n, t_tiles),
        in_specs=[
            # center rows of this tile (original resolution, W pre-padded)
            pl.BlockSpec((1, tho, wp1, cpad), lambda b, t: (b, t, 0, 0)),
            # halo row above / below (clamped at the borders; zeroed in-kernel)
            pl.BlockSpec((1, 1, wp1, cpad),
                         lambda b, t: (b, jnp.maximum(t * tho - 1, 0), 0, 0)),
            pl.BlockSpec((1, 1, wp1, cpad),
                         lambda b, t: (b, jnp.minimum(t * tho + tho, h - 1),
                                       0, 0)),
            # resident across the whole grid (constant index maps):
            pl.BlockSpec((16, cpad, cpad), lambda b, t: (0, 0, 0)),   # weights
            pl.BlockSpec((1, cpad), lambda b, t: (0, 0)),             # bias
        ],
        out_specs=pl.BlockSpec((1, tho, 2, w_out, 2 * cpad),
                               lambda b, t: (b, t, 0, 0, 0)),
        scratch_shapes=[
            pltpu.VMEM(((tho + 2) * wp1 + 8, cpad), x_pad.dtype),    # row slab
        ],
    )

    return pl.pallas_call(
        kernel,
        out_shape=jax.ShapeDtypeStruct((n, h, 2, w_out, 2 * cpad), out_dtype),
        grid_spec=grid_spec,
        compiler_params=pltpu.CompilerParams(
            dimension_semantics=("parallel", "parallel"),
            vmem_limit_bytes=vmem_limit,
        ),
    )(x_pad, x_pad, x_pad, wcomb, bias_row)


def upsample_forward(x_nchw, temb, weight_oihw, bias,
                     compute_dtype=jnp.bfloat16):
    """Matches UpSample.forward(x, temb): nearest 2x upsample + Conv2d(3x3, pad=1).

    x_nchw: (N, C, H, W); temb accepted but unused (as in the reference module).
    weight_oihw: (C, C, 3, 3) PyTorch-layout weight; bias: (C,).
    Returns (N, C, 2H, 2W) in x's dtype.
    """
    del temb  # unused by the reference forward
    n, c, h, w = x_nchw.shape
    o, i, kh, kw = weight_oihw.shape
    assert o == c and i == c and kh == 3 and kw == 3, "UpSample expects CxCx3x3"

    cpad = max(128, _round_up(c, 128))       # lane-dense channels
    wp1 = _round_up(w + 2, 8)                # conv halo + sublane alignment

    # NCHW -> NHWC; zero-pad channels to a 128 multiple and W (1 left,
    # wp1-w-1 right); cast to the MXU-native compute dtype.
    x = jnp.transpose(x_nchw, (0, 2, 3, 1))
    x = jnp.pad(x, ((0, 0), (0, 0), (1, wp1 - w - 1), (0, cpad - c)))
    x = x.astype(compute_dtype)

    # Parity-combined 2x2 weights (combined in f32, then cast):
    # K[p,q,a,b] sums the 3x3 HWIO taps feeding output parity (p,q) from the
    # original-image offset selected by (a,b).
    w_hwio = jnp.transpose(weight_oihw, (2, 3, 1, 0)).astype(jnp.float32)
    w_hwio = jnp.pad(w_hwio, ((0, 0), (0, 0), (0, cpad - c), (0, cpad - c)))
    hsets = (((0,), (1, 2)), ((0, 1), (2,)))   # [p][a] -> dh taps
    wsets = (((0,), (1, 2)), ((0, 1), (2,)))   # [q][b] -> dw taps
    taps = []
    for p in range(2):
        for q in range(2):
            for a in range(2):
                for b in range(2):
                    kk = jnp.zeros((cpad, cpad), jnp.float32)
                    for dh in hsets[p][a]:
                        for dw in wsets[q][b]:
                            kk = kk + w_hwio[dh, dw]
                    taps.append(kk)
    wcomb = jnp.stack(taps, axis=0).astype(compute_dtype)   # (16, Cpad, Cpad)

    bias_row = jnp.pad(bias, (0, cpad - c)).reshape(1, cpad).astype(jnp.float32)

    out = upsample_conv_pallas(x, wcomb, bias_row, w_out=w)  # (N,H,2,W,2*Cpad)
    out = out.reshape(n, 2 * h, 2 * w, cpad)[..., :c]        # free reshape
    out = out.astype(x_nchw.dtype)
    return jnp.transpose(out, (0, 3, 1, 2))                  # NHWC -> NCHW


def init_params(in_ch, key):
    """Deterministic xavier_uniform_ weight + zero bias (PyTorch Conv2d shapes)."""
    fan_in = in_ch * 3 * 3
    fan_out = in_ch * 3 * 3
    bound = math.sqrt(6.0 / (fan_in + fan_out))
    weight = jax.random.uniform(key, (in_ch, in_ch, 3, 3),
                                minval=-bound, maxval=bound,
                                dtype=jnp.float32)
    bias = jnp.zeros((in_ch,), jnp.float32)
    return weight, bias


if __name__ == "__main__":
    key = jax.random.PRNGKey(0)
    kx, kw_, kt = jax.random.split(key, 3)

    N, C, H, W = 2, 4, 16, 16
    x = jax.random.normal(kx, (N, C, H, W), dtype=jnp.float32)
    temb = jax.random.normal(kt, (N, 32), dtype=jnp.float32)  # unused, as in ref
    weight, bias = init_params(C, kw_)

    fwd = jax.jit(upsample_forward)
    out = fwd(x, temb, weight, bias)
    out = jax.block_until_ready(out)
    assert out.shape == (N, C, 2 * H, 2 * W), out.shape

    # Reference: XLA conv on the nearest-upsampled input (NCHW).  The kernel
    # computes in bf16 with f32 accumulation, so quantize the reference inputs
    # the same way and use a bf16-level tolerance.
    xq = x.astype(jnp.bfloat16).astype(jnp.float32)
    wq = weight.astype(jnp.bfloat16).astype(jnp.float32)
    x_up = jnp.repeat(jnp.repeat(xq, 2, axis=2), 2, axis=3)
    ref = lax.conv_general_dilated(
        x_up, wq, window_strides=(1, 1), padding=((1, 1), (1, 1)),
        dimension_numbers=("NCHW", "OIHW", "NCHW"))
    ref = ref + bias.reshape(1, C, 1, 1)
    err = jnp.max(jnp.abs(out - ref))
    assert jnp.allclose(out, ref, atol=5e-2, rtol=5e-2), float(err)

    print("KERNEL_OK")
</pallas_src>

<mosaic_0001>
module attributes {stable_mosaic.version = 11 : i64} {
  func.func @_upsample_conv_kernel(%arg0: i32, %arg1: i32, %arg2: memref<1x16x24x128xbf16, #tpu.memory_space<vmem>>, %arg3: memref<1x1x24x128xbf16, #tpu.memory_space<vmem>>, %arg4: memref<1x1x24x128xbf16, #tpu.memory_space<vmem>>, %arg5: memref<16x128x128xbf16, #tpu.memory_space<vmem>>, %arg6: memref<1x128xf32, #tpu.memory_space<vmem>>, %arg7: memref<1x16x2x16x256xbf16, #tpu.memory_space<vmem>>, %arg8: memref<440x128xbf16, #tpu.memory_space<vmem>>) attributes {dimension_semantics = [#tpu.dimension_semantics<parallel>, #tpu.dimension_semantics<parallel>], iteration_bounds = array<i64: 2, 1>, scalar_prefetch = 0 : i64, scratch_operands = 1 : i64, tpu.core_type = #tpu.core_type<tc>, window_params = [{transform_indices = @transform_0, window_bounds = array<i64: 1, 16, 24, 128>}, {transform_indices = @transform_1, window_bounds = array<i64: 1, 1, 24, 128>}, {transform_indices = @transform_2, window_bounds = array<i64: 1, 1, 24, 128>}, {pipeline_mode = #tpu.pipeline_mode<synchronous>, transform_indices = @transform_3, window_bounds = array<i64: 16, 128, 128>}, {pipeline_mode = #tpu.pipeline_mode<synchronous>, transform_indices = @transform_4, window_bounds = array<i64: 1, 128>}, {transform_indices = @transform_5, window_bounds = array<i64: 1, 16, 2, 16, 256>}]} {
    %c0 = arith.constant 0 : index
    %c0_0 = arith.constant 0 : index
    %c0_1 = arith.constant 0 : index
    %c0_2 = arith.constant 0 : index
    %0 = vector.load %arg3[%c0, %c0_0, %c0_1, %c0_2] : memref<1x1x24x128xbf16, #tpu.memory_space<vmem>>, vector<1x1x24x128xbf16>
    %1 = vector.shape_cast %0 : vector<1x1x24x128xbf16> to vector<24x128xbf16>
    %c0_i32 = arith.constant 0 : i32
    %2 = arith.cmpi sgt, %arg1, %c0_i32 : i32
    %3 = arith.extui %2 : i1 to i32
    %4 = arith.sitofp %3 : i32 to f32
    %5 = arith.truncf %4 : f32 to bf16
    %6 = vector.broadcast %5 : bf16 to vector<24x128xbf16>
    %7 = arith.mulf %1, %6 : vector<24x128xbf16>
    %c0_3 = arith.constant 0 : index
    %c0_4 = arith.constant 0 : index
    %c0_5 = arith.constant 0 : index
    %c0_6 = arith.constant 0 : index
    %8 = vector.load %arg4[%c0_3, %c0_4, %c0_5, %c0_6] : memref<1x1x24x128xbf16, #tpu.memory_space<vmem>>, vector<1x1x24x128xbf16>
    %9 = vector.shape_cast %8 : vector<1x1x24x128xbf16> to vector<24x128xbf16>
    %c0_i32_7 = arith.constant 0 : i32
    %10 = arith.cmpi slt, %arg1, %c0_i32_7 : i32
    %11 = arith.extui %10 : i1 to i32
    %12 = arith.sitofp %11 : i32 to f32
    %13 = arith.truncf %12 : f32 to bf16
    %14 = vector.broadcast %13 : bf16 to vector<24x128xbf16>
    %15 = arith.mulf %9, %14 : vector<24x128xbf16>
    %c0_8 = arith.constant 0 : index
    %c0_9 = arith.constant 0 : index
    %16 = vector.load %arg8[%c0_8, %c0_9] : memref<440x128xbf16, #tpu.memory_space<vmem>>, vector<24x128xbf16>
    tpu.vector_store %arg8[%c0_8, %c0_9], %7 {strides = array<i32>} : memref<440x128xbf16, #tpu.memory_space<vmem>>, vector<24x128xbf16>,
    %c0_10 = arith.constant 0 : index
    %c0_11 = arith.constant 0 : index
    %c0_12 = arith.constant 0 : index
    %c0_13 = arith.constant 0 : index
    %17 = vector.load %arg2[%c0_10, %c0_11, %c0_12, %c0_13] : memref<1x16x24x128xbf16, #tpu.memory_space<vmem>>, vector<1x16x24x128xbf16>
    %18 = vector.shape_cast %17 : vector<1x16x24x128xbf16> to vector<16x24x128xbf16>
    %19 = vector.shape_cast %18 : vector<16x24x128xbf16> to vector<384x128xbf16>
    %c24 = arith.constant 24 : index
    %c0_14 = arith.constant 0 : index
    %20 = vector.load %arg8[%c24, %c0_14] : memref<440x128xbf16, #tpu.memory_space<vmem>>, vector<384x128xbf16>
    tpu.vector_store %arg8[%c24, %c0_14], %19 {strides = array<i32>} : memref<440x128xbf16, #tpu.memory_space<vmem>>, vector<384x128xbf16>,
    %c408 = arith.constant 408 : index
    %c0_15 = arith.constant 0 : index
    %21 = vector.load %arg8[%c408, %c0_15] : memref<440x128xbf16, #tpu.memory_space<vmem>>, vector<24x128xbf16>
    tpu.vector_store %arg8[%c408, %c0_15], %15 {strides = array<i32>} : memref<440x128xbf16, #tpu.memory_space<vmem>>, vector<24x128xbf16>,
    %cst = arith.constant 0.000000e+00 : bf16
    %22 = vector.broadcast %cst : bf16 to vector<8x128xbf16>
    %c432 = arith.constant 432 : index
    %c0_16 = arith.constant 0 : index
    %23 = vector.load %arg8[%c432, %c0_16] : memref<440x128xbf16, #tpu.memory_space<vmem>>, vector<8x128xbf16>
    tpu.vector_store %arg8[%c432, %c0_16], %22 {strides = array<i32>} : memref<440x128xbf16, #tpu.memory_space<vmem>>, vector<8x128xbf16>,
    %c0_17 = arith.constant 0 : index
    %c0_18 = arith.constant 0 : index
    %24 = vector.load %arg6[%c0_17, %c0_18] : memref<1x128xf32, #tpu.memory_space<vmem>>, vector<1x128xf32>
    %c0_19 = arith.constant 0 : index
    %c0_20 = arith.constant 0 : index
    %25 = vector.load %arg8[%c0_19, %c0_20] : memref<440x128xbf16, #tpu.memory_space<vmem>>, vector<192x128xbf16>
    %c0_21 = arith.constant 0 : index
    %c0_22 = arith.constant 0 : index
    %c0_23 = arith.constant 0 : index
    %26 = vector.load %arg5[%c0_21, %c0_22, %c0_23] : memref<16x128x128xbf16, #tpu.memory_space<vmem>>, vector<1x128x128xbf16>
    %27 = vector.shape_cast %26 : vector<1x128x128xbf16> to vector<128x128xbf16>
    %cst_24 = arith.constant dense<0.000000e+00> : vector<192x128xf32>
    %28 = tpu.matmul %25, %27, %cst_24 {dimension_numbers = #tpu.dot_dimension_numbers<[1], [0], [0], [1], [0, 0, 1, 1], [], []>} : vector<192x128xbf16>, vector<128x128xbf16>, vector<192x128xf32> -> vector<192x128xf32>
    %c1 = arith.constant 1 : index
    %c0_25 = arith.constant 0 : index
    %29 = vector.load %arg8[%c1, %c0_25] : memref<440x128xbf16, #tpu.memory_space<vmem>>, vector<192x128xbf16>
    %c1_26 = arith.constant 1 : index
    %c0_27 = arith.constant 0 : index
    %c0_28 = arith.constant 0 : index
    %30 = vector.load %arg5[%c1_26, %c0_27, %c0_28] : memref<16x128x128xbf16, #tpu.memory_space<vmem>>, vector<1x128x128xbf16>
    %31 = vector.shape_cast %30 : vector<1x128x128xbf16> to vector<128x128xbf16>
    %cst_29 = arith.constant dense<0.000000e+00> : vector<192x128xf32>
    %32 = tpu.matmul %29, %31, %cst_29 {dimension_numbers = #tpu.dot_dimension_numbers<[1], [0], [0], [1], [0, 0, 1, 1], [], []>} : vector<192x128xbf16>, vector<128x128xbf16>, vector<192x128xf32> -> vector<192x128xf32>
    %33 = arith.addf %28, %32 : vector<192x128xf32>
    %c24_30 = arith.constant 24 : index
    %c0_31 = arith.constant 0 : index
    %34 = vector.load %arg8[%c24_30, %c0_31] : memref<440x128xbf16, #tpu.memory_space<vmem>>, vector<192x128xbf16>
    %c2 = arith.constant 2 : index
    %c0_32 = arith.constant 0 : index
    %c0_33 = arith.constant 0 : index
    %35 = vector.load %arg5[%c2, %c0_32, %c0_33] : memref<16x128x128xbf16, #tpu.memory_space<vmem>>, vector<1x128x128xbf16>
    %36 = vector.shape_cast %35 : vector<1x128x128xbf16> to vector<128x128xbf16>
    %cst_34 = arith.constant dense<0.000000e+00> : vector<192x128xf32>
    %37 = tpu.matmul %34, %36, %cst_34 {dimension_numbers = #tpu.dot_dimension_numbers<[1], [0], [0], [1], [0, 0, 1, 1], [], []>} : vector<192x128xbf16>, vector<128x128xbf16>, vector<192x128xf32> -> vector<192x128xf32>
    %38 = arith.addf %33, %37 : vector<192x128xf32>
    %c25 = arith.constant 25 : index
    %c0_35 = arith.constant 0 : index
    %39 = vector.load %arg8[%c25, %c0_35] : memref<440x128xbf16, #tpu.memory_space<vmem>>, vector<192x128xbf16>
    %c3 = arith.constant 3 : index
    %c0_36 = arith.constant 0 : index
    %c0_37 = arith.constant 0 : index
    %40 = vector.load %arg5[%c3, %c0_36, %c0_37] : memref<16x128x128xbf16, #tpu.memory_space<vmem>>, vector<1x128x128xbf16>
    %41 = vector.shape_cast %40 : vector<1x128x128xbf16> to vector<128x128xbf16>
    %cst_38 = arith.constant dense<0.000000e+00> : vector<192x128xf32>
    %42 = tpu.matmul %39, %41, %cst_38 {dimension_numbers = #tpu.dot_dimension_numbers<[1], [0], [0], [1], [0, 0, 1, 1], [], []>} : vector<192x128xbf16>, vector<128x128xbf16>, vector<192x128xf32> -> vector<192x128xf32>
    %43 = arith.addf %38, %42 : vector<192x128xf32>
    %44 = vector.broadcast %24 : vector<1x128xf32> to vector<192x128xf32>
    %45 = arith.addf %43, %44 : vector<192x128xf32>
    %46 = arith.truncf %45 : vector<192x128xf32> to vector<192x128xbf16>
    %47 = vector.shape_cast %46 : vector<192x128xbf16> to vector<8x24x128xbf16>
    %48 = vector.extract_strided_slice %47 {offsets = [0, 0, 0], sizes = [8, 16, 128], strides = [1, 1, 1]} : vector<8x24x128xbf16> to vector<8x16x128xbf16>
    %c0_39 = arith.constant 0 : index
    %c0_40 = arith.constant 0 : index
    %c0_41 = arith.constant 0 : index
    %c0_42 = arith.constant 0 : index
    %c0_43 = arith.constant 0 : index
    %49 = vector.load %arg7[%c0_39, %c0_40, %c0_41, %c0_42, %c0_43] : memref<1x16x2x16x256xbf16, #tpu.memory_space<vmem>>, vector<1x8x1x16x128xbf16>
    %50 = vector.shape_cast %49 : vector<1x8x1x16x128xbf16> to vector<8x16x128xbf16>
    %51 = vector.shape_cast %48 : vector<8x16x128xbf16> to vector<1x8x1x16x128xbf16>
    tpu.vector_store %arg7[%c0_39, %c0_40, %c0_41, %c0_42, %c0_43], %51 {strides = array<i32>} : memref<1x16x2x16x256xbf16, #tpu.memory_space<vmem>>, vector<1x8x1x16x128xbf16>,
    %c1_44 = arith.constant 1 : index
    %c0_45 = arith.constant 0 : index
    %52 = vector.load %arg8[%c1_44, %c0_45] : memref<440x128xbf16, #tpu.memory_space<vmem>>, vector<192x128xbf16>
    %c4 = arith.constant 4 : index
    %c0_46 = arith.constant 0 : index
    %c0_47 = arith.constant 0 : index
    %53 = vector.load %arg5[%c4, %c0_46, %c0_47] : memref<16x128x128xbf16, #tpu.memory_space<vmem>>, vector<1x128x128xbf16>
    %54 = vector.shape_cast %53 : vector<1x128x128xbf16> to vector<128x128xbf16>
    %cst_48 = arith.constant dense<0.000000e+00> : vector<192x128xf32>
    %55 = tpu.matmul %52, %54, %cst_48 {dimension_numbers = #tpu.dot_dimension_numbers<[1], [0], [0], [1], [0, 0, 1, 1], [], []>} : vector<192x128xbf16>, vector<128x128xbf16>, vector<192x128xf32> -> vector<192x128xf32>
    %c2_49 = arith.constant 2 : index
    %c0_50 = arith.constant 0 : index
    %56 = vector.load %arg8[%c2_49, %c0_50] : memref<440x128xbf16, #tpu.memory_space<vmem>>, vector<192x128xbf16>
    %c5 = arith.constant 5 : index
    %c0_51 = arith.constant 0 : index
    %c0_52 = arith.constant 0 : index
    %57 = vector.load %arg5[%c5, %c0_51, %c0_52] : memref<16x128x128xbf16, #tpu.memory_space<vmem>>, vector<1x128x128xbf16>
    %58 = vector.shape_cast %57 : vector<1x128x128xbf16> to vector<128x128xbf16>
    %cst_53 = arith.constant dense<0.000000e+00> : vector<192x128xf32>
    %59 = tpu.matmul %56, %58, %cst_53 {dimension_numbers = #tpu.dot_dimension_numbers<[1], [0], [0], [1], [0, 0, 1, 1], [], []>} : vector<192x128xbf16>, vector<128x128xbf16>, vector<192x128xf32> -> vector<192x128xf32>
    %60 = arith.addf %55, %59 : vector<192x128xf32>
    %c25_54 = arith.constant 25 : index
    %c0_55 = arith.constant 0 : index
    %61 = vector.load %arg8[%c25_54, %c0_55] : memref<440x128xbf16, #tpu.memory_space<vmem>>, vector<192x128xbf16>
    %c6 = arith.constant 6 : index
    %c0_56 = arith.constant 0 : index
    %c0_57 = arith.constant 0 : index
    %62 = vector.load %arg5[%c6, %c0_56, %c0_57] : memref<16x128x128xbf16, #tpu.memory_space<vmem>>, vector<1x128x128xbf16>
    %63 = vector.shape_cast %62 : vector<1x128x128xbf16> to vector<128x128xbf16>
    %cst_58 = arith.constant dense<0.000000e+00> : vector<192x128xf32>
    %64 = tpu.matmul %61, %63, %cst_58 {dimension_numbers = #tpu.dot_dimension_numbers<[1], [0], [0], [1], [0, 0, 1, 1], [], []>} : vector<192x128xbf16>, vector<128x128xbf16>, vector<192x128xf32> -> vector<192x128xf32>
    %65 = arith.addf %60, %64 : vector<192x128xf32>
    %c26 = arith.constant 26 : index
    %c0_59 = arith.constant 0 : index
    %66 = vector.load %arg8[%c26, %c0_59] : memref<440x128xbf16, #tpu.memory_space<vmem>>, vector<192x128xbf16>
    %c7 = arith.constant 7 : index
    %c0_60 = arith.constant 0 : index
    %c0_61 = arith.constant 0 : index
    %67 = vector.load %arg5[%c7, %c0_60, %c0_61] : memref<16x128x128xbf16, #tpu.memory_space<vmem>>, vector<1x128x128xbf16>
    %68 = vector.shape_cast %67 : vector<1x128x128xbf16> to vector<128x128xbf16>
    %cst_62 = arith.constant dense<0.000000e+00> : vector<192x128xf32>
    %69 = tpu.matmul %66, %68, %cst_62 {dimension_numbers = #tpu.dot_dimension_numbers<[1], [0], [0], [1], [0, 0, 1, 1], [], []>} : vector<192x128xbf16>, vector<128x128xbf16>, vector<192x128xf32> -> vector<192x128xf32>
    %70 = arith.addf %65, %69 : vector<192x128xf32>
    %71 = vector.broadcast %24 : vector<1x128xf32> to vector<192x128xf32>
    %72 = arith.addf %70, %71 : vector<192x128xf32>
    %73 = arith.truncf %72 : vector<192x128xf32> to vector<192x128xbf16>
    %74 = vector.shape_cast %73 : vector<192x128xbf16> to vector<8x24x128xbf16>
    %75 = vector.extract_strided_slice %74 {offsets = [0, 0, 0], sizes = [8, 16, 128], strides = [1, 1, 1]} : vector<8x24x128xbf16> to vector<8x16x128xbf16>
    %c0_63 = arith.constant 0 : index
    %c0_64 = arith.constant 0 : index
    %c0_65 = arith.constant 0 : index
    %c0_66 = arith.constant 0 : index
    %c128 = arith.constant 128 : index
    %76 = vector.load %arg7[%c0_63, %c0_64, %c0_65, %c0_66, %c128] : memref<1x16x2x16x256xbf16, #tpu.memory_space<vmem>>, vector<1x8x1x16x128xbf16>
    %77 = vector.shape_cast %76 : vector<1x8x1x16x128xbf16> to vector<8x16x128xbf16>
    %78 = vector.shape_cast %75 : vector<8x16x128xbf16> to vector<1x8x1x16x128xbf16>
    tpu.vector_store %arg7[%c0_63, %c0_64, %c0_65, %c0_66, %c128], %78 {strides = array<i32>} : memref<1x16x2x16x256xbf16, #tpu.memory_space<vmem>>, vector<1x8x1x16x128xbf16>,
    %c24_67 = arith.constant 24 : index
    %c0_68 = arith.constant 0 : index
    %79 = vector.load %arg8[%c24_67, %c0_68] : memref<440x128xbf16, #tpu.memory_space<vmem>>, vector<192x128xbf16>
    %c8 = arith.constant 8 : index
    %c0_69 = arith.constant 0 : index
    %c0_70 = arith.constant 0 : index
    %80 = vector.load %arg5[%c8, %c0_69, %c0_70] : memref<16x128x128xbf16, #tpu.memory_space<vmem>>, vector<1x128x128xbf16>
    %81 = vector.shape_cast %80 : vector<1x128x128xbf16> to vector<128x128xbf16>
    %cst_71 = arith.constant dense<0.000000e+00> : vector<192x128xf32>
    %82 = tpu.matmul %79, %81, %cst_71 {dimension_numbers = #tpu.dot_dimension_numbers<[1], [0], [0], [1], [0, 0, 1, 1], [], []>} : vector<192x128xbf16>, vector<128x128xbf16>, vector<192x128xf32> -> vector<192x128xf32>
    %c25_72 = arith.constant 25 : index
    %c0_73 = arith.constant 0 : index
    %83 = vector.load %arg8[%c25_72, %c0_73] : memref<440x128xbf16, #tpu.memory_space<vmem>>, vector<192x128xbf16>
    %c9 = arith.constant 9 : index
    %c0_74 = arith.constant 0 : index
    %c0_75 = arith.constant 0 : index
    %84 = vector.load %arg5[%c9, %c0_74, %c0_75] : memref<16x128x128xbf16, #tpu.memory_space<vmem>>, vector<1x128x128xbf16>
    %85 = vector.shape_cast %84 : vector<1x128x128xbf16> to vector<128x128xbf16>
    %cst_76 = arith.constant dense<0.000000e+00> : vector<192x128xf32>
    %86 = tpu.matmul %83, %85, %cst_76 {dimension_numbers = #tpu.dot_dimension_numbers<[1], [0], [0], [1], [0, 0, 1, 1], [], []>} : vector<192x128xbf16>, vector<128x128xbf16>, vector<192x128xf32> -> vector<192x128xf32>
    %87 = arith.addf %82, %86 : vector<192x128xf32>
    %c48 = arith.constant 48 : index
    %c0_77 = arith.constant 0 : index
    %88 = vector.load %arg8[%c48, %c0_77] : memref<440x128xbf16, #tpu.memory_space<vmem>>, vector<192x128xbf16>
    %c10 = arith.constant 10 : index
    %c0_78 = arith.constant 0 : index
    %c0_79 = arith.constant 0 : index
    %89 = vector.load %arg5[%c10, %c0_78, %c0_79] : memref<16x128x128xbf16, #tpu.memory_space<vmem>>, vector<1x128x128xbf16>
    %90 = vector.shape_cast %89 : vector<1x128x128xbf16> to vector<128x128xbf16>
    %cst_80 = arith.constant dense<0.000000e+00> : vector<192x128xf32>
    %91 = tpu.matmul %88, %90, %cst_80 {dimension_numbers = #tpu.dot_dimension_numbers<[1], [0], [0], [1], [0, 0, 1, 1], [], []>} : vector<192x128xbf16>, vector<128x128xbf16>, vector<192x128xf32> -> vector<192x128xf32>
    %92 = arith.addf %87, %91 : vector<192x128xf32>
    %c49 = arith.constant 49 : index
    %c0_81 = arith.constant 0 : index
    %93 = vector.load %arg8[%c49, %c0_81] : memref<440x128xbf16, #tpu.memory_space<vmem>>, vector<192x128xbf16>
    %c11 = arith.constant 11 : index
    %c0_82 = arith.constant 0 : index
    %c0_83 = arith.constant 0 : index
    %94 = vector.load %arg5[%c11, %c0_82, %c0_83] : memref<16x128x128xbf16, #tpu.memory_space<vmem>>, vector<1x128x128xbf16>
    %95 = vector.shape_cast %94 : vector<1x128x128xbf16> to vector<128x128xbf16>
    %cst_84 = arith.constant dense<0.000000e+00> : vector<192x128xf32>
    %96 = tpu.matmul %93, %95, %cst_84 {dimension_numbers = #tpu.dot_dimension_numbers<[1], [0], [0], [1], [0, 0, 1, 1], [], []>} : vector<192x128xbf16>, vector<128x128xbf16>, vector<192x128xf32> -> vector<192x128xf32>
    %97 = arith.addf %92, %96 : vector<192x128xf32>
    %98 = vector.broadcast %24 : vector<1x128xf32> to vector<192x128xf32>
    %99 = arith.addf %97, %98 : vector<192x128xf32>
    %100 = arith.truncf %99 : vector<192x128xf32> to vector<192x128xbf16>
    %101 = vector.shape_cast %100 : vector<192x128xbf16> to vector<8x24x128xbf16>
    %102 = vector.extract_strided_slice %101 {offsets = [0, 0, 0], sizes = [8, 16, 128], strides = [1, 1, 1]} : vector<8x24x128xbf16> to vector<8x16x128xbf16>
    %c0_85 = arith.constant 0 : index
    %c0_86 = arith.constant 0 : index
    %c1_87 = arith.constant 1 : index
    %c0_88 = arith.constant 0 : index
    %c0_89 = arith.constant 0 : index
    %103 = vector.load %arg7[%c0_85, %c0_86, %c1_87, %c0_88, %c0_89] : memref<1x16x2x16x256xbf16, #tpu.memory_space<vmem>>, vector<1x8x1x16x128xbf16>
    %104 = vector.shape_cast %103 : vector<1x8x1x16x128xbf16> to vector<8x16x128xbf16>
    %105 = vector.shape_cast %102 : vector<8x16x128xbf16> to vector<1x8x1x16x128xbf16>
    tpu.vector_store %arg7[%c0_85, %c0_86, %c1_87, %c0_88, %c0_89], %105 {strides = array<i32>} : memref<1x16x2x16x256xbf16, #tpu.memory_space<vmem>>, vector<1x8x1x16x128xbf16>,
    %c25_90 = arith.constant 25 : index
    %c0_91 = arith.constant 0 : index
    %106 = vector.load %arg8[%c25_90, %c0_91] : memref<440x128xbf16, #tpu.memory_space<vmem>>, vector<192x128xbf16>
    %c12 = arith.constant 12 : index
    %c0_92 = arith.constant 0 : index
    %c0_93 = arith.constant 0 : index
    %107 = vector.load %arg5[%c12, %c0_92, %c0_93] : memref<16x128x128xbf16, #tpu.memory_space<vmem>>, vector<1x128x128xbf16>
    %108 = vector.shape_cast %107 : vector<1x128x128xbf16> to vector<128x128xbf16>
    %cst_94 = arith.constant dense<0.000000e+00> : vector<192x128xf32>
    %109 = tpu.matmul %106, %108, %cst_94 {dimension_numbers = #tpu.dot_dimension_numbers<[1], [0], [0], [1], [0, 0, 1, 1], [], []>} : vector<192x128xbf16>, vector<128x128xbf16>, vector<192x128xf32> -> vector<192x128xf32>
    %c26_95 = arith.constant 26 : index
    %c0_96 = arith.constant 0 : index
    %110 = vector.load %arg8[%c26_95, %c0_96] : memref<440x128xbf16, #tpu.memory_space<vmem>>, vector<192x128xbf16>
    %c13 = arith.constant 13 : index
    %c0_97 = arith.constant 0 : index
    %c0_98 = arith.constant 0 : index
    %111 = vector.load %arg5[%c13, %c0_97, %c0_98] : memref<16x128x128xbf16, #tpu.memory_space<vmem>>, vector<1x128x128xbf16>
    %112 = vector.shape_cast %111 : vector<1x128x128xbf16> to vector<128x128xbf16>
    %cst_99 = arith.constant dense<0.000000e+00> : vector<192x128xf32>
    %113 = tpu.matmul %110, %112, %cst_99 {dimension_numbers = #tpu.dot_dimension_numbers<[1], [0], [0], [1], [0, 0, 1, 1], [], []>} : vector<192x128xbf16>, vector<128x128xbf16>, vector<192x128xf32> -> vector<192x128xf32>
    %114 = arith.addf %109, %113 : vector<192x128xf32>
    %c49_100 = arith.constant 49 : index
    %c0_101 = arith.constant 0 : index
    %115 = vector.load %arg8[%c49_100, %c0_101] : memref<440x128xbf16, #tpu.memory_space<vmem>>, vector<192x128xbf16>
    %c14 = arith.constant 14 : index
    %c0_102 = arith.constant 0 : index
    %c0_103 = arith.constant 0 : index
    %116 = vector.load %arg5[%c14, %c0_102, %c0_103] : memref<16x128x128xbf16, #tpu.memory_space<vmem>>, vector<1x128x128xbf16>
    %117 = vector.shape_cast %116 : vector<1x128x128xbf16> to vector<128x128xbf16>
    %cst_104 = arith.constant dense<0.000000e+00> : vector<192x128xf32>
    %118 = tpu.matmul %115, %117, %cst_104 {dimension_numbers = #tpu.dot_dimension_numbers<[1], [0], [0], [1], [0, 0, 1, 1], [], []>} : vector<192x128xbf16>, vector<128x128xbf16>, vector<192x128xf32> -> vector<192x128xf32>
    %119 = arith.addf %114, %118 : vector<192x128xf32>
    %c50 = arith.constant 50 : index
    %c0_105 = arith.constant 0 : index
    %120 = vector.load %arg8[%c50, %c0_105] : memref<440x128xbf16, #tpu.memory_space<vmem>>, vector<192x128xbf16>
    %c15 = arith.constant 15 : index
    %c0_106 = arith.constant 0 : index
    %c0_107 = arith.constant 0 : index
    %121 = vector.load %arg5[%c15, %c0_106, %c0_107] : memref<16x128x128xbf16, #tpu.memory_space<vmem>>, vector<1x128x128xbf16>
    %122 = vector.shape_cast %121 : vector<1x128x128xbf16> to vector<128x128xbf16>
    %cst_108 = arith.constant dense<0.000000e+00> : vector<192x128xf32>
    %123 = tpu.matmul %120, %122, %cst_108 {dimension_numbers = #tpu.dot_dimension_numbers<[1], [0], [0], [1], [0, 0, 1, 1], [], []>} : vector<192x128xbf16>, vector<128x128xbf16>, vector<192x128xf32> -> vector<192x128xf32>
    %124 = arith.addf %119, %123 : vector<192x128xf32>
    %125 = vector.broadcast %24 : vector<1x128xf32> to vector<192x128xf32>
    %126 = arith.addf %124, %125 : vector<192x128xf32>
    %127 = arith.truncf %126 : vector<192x128xf32> to vector<192x128xbf16>
    %128 = vector.shape_cast %127 : vector<192x128xbf16> to vector<8x24x128xbf16>
    %129 = vector.extract_strided_slice %128 {offsets = [0, 0, 0], sizes = [8, 16, 128], strides = [1, 1, 1]} : vector<8x24x128xbf16> to vector<8x16x128xbf16>
    %c0_109 = arith.constant 0 : index
    %c0_110 = arith.constant 0 : index
    %c1_111 = arith.constant 1 : index
    %c0_112 = arith.constant 0 : index
    %c128_113 = arith.constant 128 : index
    %130 = vector.load %arg7[%c0_109, %c0_110, %c1_111, %c0_112, %c128_113] : memref<1x16x2x16x256xbf16, #tpu.memory_space<vmem>>, vector<1x8x1x16x128xbf16>
    %131 = vector.shape_cast %130 : vector<1x8x1x16x128xbf16> to vector<8x16x128xbf16>
    %132 = vector.shape_cast %129 : vector<8x16x128xbf16> to vector<1x8x1x16x128xbf16>
    tpu.vector_store %arg7[%c0_109, %c0_110, %c1_111, %c0_112, %c128_113], %132 {strides = array<i32>} : memref<1x16x2x16x256xbf16, #tpu.memory_space<vmem>>, vector<1x8x1x16x128xbf16>,
    %c192 = arith.constant 192 : index
    %c0_114 = arith.constant 0 : index
    %133 = vector.load %arg8[%c192, %c0_114] : memref<440x128xbf16, #tpu.memory_space<vmem>>, vector<192x128xbf16>
    %c0_115 = arith.constant 0 : index
    %c0_116 = arith.constant 0 : index
    %c0_117 = arith.constant 0 : index
    %134 = vector.load %arg5[%c0_115, %c0_116, %c0_117] : memref<16x128x128xbf16, #tpu.memory_space<vmem>>, vector<1x128x128xbf16>
    %135 = vector.shape_cast %134 : vector<1x128x128xbf16> to vector<128x128xbf16>
    %cst_118 = arith.constant dense<0.000000e+00> : vector<192x128xf32>
    %136 = tpu.matmul %133, %135, %cst_118 {dimension_numbers = #tpu.dot_dimension_numbers<[1], [0], [0], [1], [0, 0, 1, 1], [], []>} : vector<192x128xbf16>, vector<128x128xbf16>, vector<192x128xf32> -> vector<192x128xf32>
    %c193 = arith.constant 193 : index
    %c0_119 = arith.constant 0 : index
    %137 = vector.load %arg8[%c193, %c0_119] : memref<440x128xbf16, #tpu.memory_space<vmem>>, vector<192x128xbf16>
    %c1_120 = arith.constant 1 : index
    %c0_121 = arith.constant 0 : index
    %c0_122 = arith.constant 0 : index
    %138 = vector.load %arg5[%c1_120, %c0_121, %c0_122] : memref<16x128x128xbf16, #tpu.memory_space<vmem>>, vector<1x128x128xbf16>
    %139 = vector.shape_cast %138 : vector<1x128x128xbf16> to vector<128x128xbf16>
    %cst_123 = arith.constant dense<0.000000e+00> : vector<192x128xf32>
    %140 = tpu.matmul %137, %139, %cst_123 {dimension_numbers = #tpu.dot_dimension_numbers<[1], [0], [0], [1], [0, 0, 1, 1], [], []>} : vector<192x128xbf16>, vector<128x128xbf16>, vector<192x128xf32> -> vector<192x128xf32>
    %141 = arith.addf %136, %140 : vector<192x128xf32>
    %c216 = arith.constant 216 : index
    %c0_124 = arith.constant 0 : index
    %142 = vector.load %arg8[%c216, %c0_124] : memref<440x128xbf16, #tpu.memory_space<vmem>>, vector<192x128xbf16>
    %c2_125 = arith.constant 2 : index
    %c0_126 = arith.constant 0 : index
    %c0_127 = arith.constant 0 : index
    %143 = vector.load %arg5[%c2_125, %c0_126, %c0_127] : memref<16x128x128xbf16, #tpu.memory_space<vmem>>, vector<1x128x128xbf16>
    %144 = vector.shape_cast %143 : vector<1x128x128xbf16> to vector<128x128xbf16>
    %cst_128 = arith.constant dense<0.000000e+00> : vector<192x128xf32>
    %145 = tpu.matmul %142, %144, %cst_128 {dimension_numbers = #tpu.dot_dimension_numbers<[1], [0], [0], [1], [0, 0, 1, 1], [], []>} : vector<192x128xbf16>, vector<128x128xbf16>, vector<192x128xf32> -> vector<192x128xf32>
    %146 = arith.addf %141, %145 : vector<192x128xf32>
    %c217 = arith.constant 217 : index
    %c0_129 = arith.constant 0 : index
    %147 = vector.load %arg8[%c217, %c0_129] : memref<440x128xbf16, #tpu.memory_space<vmem>>, vector<192x128xbf16>
    %c3_130 = arith.constant 3 : index
    %c0_131 = arith.constant 0 : index
    %c0_132 = arith.constant 0 : index
    %148 = vector.load %arg5[%c3_130, %c0_131, %c0_132] : memref<16x128x128xbf16, #tpu.memory_space<vmem>>, vector<1x128x128xbf16>
    %149 = vector.shape_cast %148 : vector<1x128x128xbf16> to vector<128x128xbf16>
    %cst_133 = arith.constant dense<0.000000e+00> : vector<192x128xf32>
    %150 = tpu.matmul %147, %149, %cst_133 {dimension_numbers = #tpu.dot_dimension_numbers<[1], [0], [0], [1], [0, 0, 1, 1], [], []>} : vector<192x128xbf16>, vector<128x128xbf16>, vector<192x128xf32> -> vector<192x128xf32>
    %151 = arith.addf %146, %150 : vector<192x128xf32>
    %152 = vector.broadcast %24 : vector<1x128xf32> to vector<192x128xf32>
    %153 = arith.addf %151, %152 : vector<192x128xf32>
    %154 = arith.truncf %153 : vector<192x128xf32> to vector<192x128xbf16>
    %155 = vector.shape_cast %154 : vector<192x128xbf16> to vector<8x24x128xbf16>
    %156 = vector.extract_strided_slice %155 {offsets = [0, 0, 0], sizes = [8, 16, 128], strides = [1, 1, 1]} : vector<8x24x128xbf16> to vector<8x16x128xbf16>
    %c0_134 = arith.constant 0 : index
    %c8_135 = arith.constant 8 : index
    %c0_136 = arith.constant 0 : index
    %c0_137 = arith.constant 0 : index
    %c0_138 = arith.constant 0 : index
    %157 = vector.load %arg7[%c0_134, %c8_135, %c0_136, %c0_137, %c0_138] : memref<1x16x2x16x256xbf16, #tpu.memory_space<vmem>>, vector<1x8x1x16x128xbf16>
    %158 = vector.shape_cast %157 : vector<1x8x1x16x128xbf16> to vector<8x16x128xbf16>
    %159 = vector.shape_cast %156 : vector<8x16x128xbf16> to vector<1x8x1x16x128xbf16>
    tpu.vector_store %arg7[%c0_134, %c8_135, %c0_136, %c0_137, %c0_138], %159 {strides = array<i32>} : memref<1x16x2x16x256xbf16, #tpu.memory_space<vmem>>, vector<1x8x1x16x128xbf16>,
    %c193_139 = arith.constant 193 : index
    %c0_140 = arith.constant 0 : index
    %160 = vector.load %arg8[%c193_139, %c0_140] : memref<440x128xbf16, #tpu.memory_space<vmem>>, vector<192x128xbf16>
    %c4_141 = arith.constant 4 : index
    %c0_142 = arith.constant 0 : index
    %c0_143 = arith.constant 0 : index
    %161 = vector.load %arg5[%c4_141, %c0_142, %c0_143] : memref<16x128x128xbf16, #tpu.memory_space<vmem>>, vector<1x128x128xbf16>
    %162 = vector.shape_cast %161 : vector<1x128x128xbf16> to vector<128x128xbf16>
    %cst_144 = arith.constant dense<0.000000e+00> : vector<192x128xf32>
    %163 = tpu.matmul %160, %162, %cst_144 {dimension_numbers = #tpu.dot_dimension_numbers<[1], [0], [0], [1], [0, 0, 1, 1], [], []>} : vector<192x128xbf16>, vector<128x128xbf16>, vector<192x128xf32> -> vector<192x128xf32>
    %c194 = arith.constant 194 : index
    %c0_145 = arith.constant 0 : index
    %164 = vector.load %arg8[%c194, %c0_145] : memref<440x128xbf16, #tpu.memory_space<vmem>>, vector<192x128xbf16>
    %c5_146 = arith.constant 5 : index
    %c0_147 = arith.constant 0 : index
    %c0_148 = arith.constant 0 : index
    %165 = vector.load %arg5[%c5_146, %c0_147, %c0_148] : memref<16x128x128xbf16, #tpu.memory_space<vmem>>, vector<1x128x128xbf16>
    %166 = vector.shape_cast %165 : vector<1x128x128xbf16> to vector<128x128xbf16>
    %cst_149 = arith.constant dense<0.000000e+00> : vector<192x128xf32>
    %167 = tpu.matmul %164, %166, %cst_149 {dimension_numbers = #tpu.dot_dimension_numbers<[1], [0], [0], [1], [0, 0, 1, 1], [], []>} : vector<192x128xbf16>, vector<128x128xbf16>, vector<192x128xf32> -> vector<192x128xf32>
    %168 = arith.addf %163, %167 : vector<192x128xf32>
    %c217_150 = arith.constant 217 : index
    %c0_151 = arith.constant 0 : index
    %169 = vector.load %arg8[%c217_150, %c0_151] : memref<440x128xbf16, #tpu.memory_space<vmem>>, vector<192x128xbf16>
    %c6_152 = arith.constant 6 : index
    %c0_153 = arith.constant 0 : index
    %c0_154 = arith.constant 0 : index
    %170 = vector.load %arg5[%c6_152, %c0_153, %c0_154] : memref<16x128x128xbf16, #tpu.memory_space<vmem>>, vector<1x128x128xbf16>
    %171 = vector.shape_cast %170 : vector<1x128x128xbf16> to vector<128x128xbf16>
    %cst_155 = arith.constant dense<0.000000e+00> : vector<192x128xf32>
    %172 = tpu.matmul %169, %171, %cst_155 {dimension_numbers = #tpu.dot_dimension_numbers<[1], [0], [0], [1], [0, 0, 1, 1], [], []>} : vector<192x128xbf16>, vector<128x128xbf16>, vector<192x128xf32> -> vector<192x128xf32>
    %173 = arith.addf %168, %172 : vector<192x128xf32>
    %c218 = arith.constant 218 : index
    %c0_156 = arith.constant 0 : index
    %174 = vector.load %arg8[%c218, %c0_156] : memref<440x128xbf16, #tpu.memory_space<vmem>>, vector<192x128xbf16>
    %c7_157 = arith.constant 7 : index
    %c0_158 = arith.constant 0 : index
    %c0_159 = arith.constant 0 : index
    %175 = vector.load %arg5[%c7_157, %c0_158, %c0_159] : memref<16x128x128xbf16, #tpu.memory_space<vmem>>, vector<1x128x128xbf16>
    %176 = vector.shape_cast %175 : vector<1x128x128xbf16> to vector<128x128xbf16>
    %cst_160 = arith.constant dense<0.000000e+00> : vector<192x128xf32>
    %177 = tpu.matmul %174, %176, %cst_160 {dimension_numbers = #tpu.dot_dimension_numbers<[1], [0], [0], [1], [0, 0, 1, 1], [], []>} : vector<192x128xbf16>, vector<128x128xbf16>, vector<192x128xf32> -> vector<192x128xf32>
    %178 = arith.addf %173, %177 : vector<192x128xf32>
    %179 = vector.broadcast %24 : vector<1x128xf32> to vector<192x128xf32>
    %180 = arith.addf %178, %179 : vector<192x128xf32>
    %181 = arith.truncf %180 : vector<192x128xf32> to vector<192x128xbf16>
    %182 = vector.shape_cast %181 : vector<192x128xbf16> to vector<8x24x128xbf16>
    %183 = vector.extract_strided_slice %182 {offsets = [0, 0, 0], sizes = [8, 16, 128], strides = [1, 1, 1]} : vector<8x24x128xbf16> to vector<8x16x128xbf16>
    %c0_161 = arith.constant 0 : index
    %c8_162 = arith.constant 8 : index
    %c0_163 = arith.constant 0 : index
    %c0_164 = arith.constant 0 : index
    %c128_165 = arith.constant 128 : index
    %184 = vector.load %arg7[%c0_161, %c8_162, %c0_163, %c0_164, %c128_165] : memref<1x16x2x16x256xbf16, #tpu.memory_space<vmem>>, vector<1x8x1x16x128xbf16>
    %185 = vector.shape_cast %184 : vector<1x8x1x16x128xbf16> to vector<8x16x128xbf16>
    %186 = vector.shape_cast %183 : vector<8x16x128xbf16> to vector<1x8x1x16x128xbf16>
    tpu.vector_store %arg7[%c0_161, %c8_162, %c0_163, %c0_164, %c128_165], %186 {strides = array<i32>} : memref<1x16x2x16x256xbf16, #tpu.memory_space<vmem>>, vector<1x8x1x16x128xbf16>,
    %c216_166 = arith.constant 216 : index
    %c0_167 = arith.constant 0 : index
    %187 = vector.load %arg8[%c216_166, %c0_167] : memref<440x128xbf16, #tpu.memory_space<vmem>>, vector<192x128xbf16>
    %c8_168 = arith.constant 8 : index
    %c0_169 = arith.constant 0 : index
    %c0_170 = arith.constant 0 : index
    %188 = vector.load %arg5[%c8_168, %c0_169, %c0_170] : memref<16x128x128xbf16, #tpu.memory_space<vmem>>, vector<1x128x128xbf16>
    %189 = vector.shape_cast %188 : vector<1x128x128xbf16> to vector<128x128xbf16>
    %cst_171 = arith.constant dense<0.000000e+00> : vector<192x128xf32>
    %190 = tpu.matmul %187, %189, %cst_171 {dimension_numbers = #tpu.dot_dimension_numbers<[1], [0], [0], [1], [0, 0, 1, 1], [], []>} : vector<192x128xbf16>, vector<128x128xbf16>, vector<192x128xf32> -> vector<192x128xf32>
    %c217_172 = arith.constant 217 : index
    %c0_173 = arith.constant 0 : index
    %191 = vector.load %arg8[%c217_172, %c0_173] : memref<440x128xbf16, #tpu.memory_space<vmem>>, vector<192x128xbf16>
    %c9_174 = arith.constant 9 : index
    %c0_175 = arith.constant 0 : index
    %c0_176 = arith.constant 0 : index
    %192 = vector.load %arg5[%c9_174, %c0_175, %c0_176] : memref<16x128x128xbf16, #tpu.memory_space<vmem>>, vector<1x128x128xbf16>
    %193 = vector.shape_cast %192 : vector<1x128x128xbf16> to vector<128x128xbf16>
    %cst_177 = arith.constant dense<0.000000e+00> : vector<192x128xf32>
    %194 = tpu.matmul %191, %193, %cst_177 {dimension_numbers = #tpu.dot_dimension_numbers<[1], [0], [0], [1], [0, 0, 1, 1], [], []>} : vector<192x128xbf16>, vector<128x128xbf16>, vector<192x128xf32> -> vector<192x128xf32>
    %195 = arith.addf %190, %194 : vector<192x128xf32>
    %c240 = arith.constant 240 : index
    %c0_178 = arith.constant 0 : index
    %196 = vector.load %arg8[%c240, %c0_178] : memref<440x128xbf16, #tpu.memory_space<vmem>>, vector<192x128xbf16>
    %c10_179 = arith.constant 10 : index
    %c0_180 = arith.constant 0 : index
    %c0_181 = arith.constant 0 : index
    %197 = vector.load %arg5[%c10_179, %c0_180, %c0_181] : memref<16x128x128xbf16, #tpu.memory_space<vmem>>, vector<1x128x128xbf16>
    %198 = vector.shape_cast %197 : vector<1x128x128xbf16> to vector<128x128xbf16>
    %cst_182 = arith.constant dense<0.000000e+00> : vector<192x128xf32>
    %199 = tpu.matmul %196, %198, %cst_182 {dimension_numbers = #tpu.dot_dimension_numbers<[1], [0], [0], [1], [0, 0, 1, 1], [], []>} : vector<192x128xbf16>, vector<128x128xbf16>, vector<192x128xf32> -> vector<192x128xf32>
    %200 = arith.addf %195, %199 : vector<192x128xf32>
    %c241 = arith.constant 241 : index
    %c0_183 = arith.constant 0 : index
    %201 = vector.load %arg8[%c241, %c0_183] : memref<440x128xbf16, #tpu.memory_space<vmem>>, vector<192x128xbf16>
    %c11_184 = arith.constant 11 : index
    %c0_185 = arith.constant 0 : index
    %c0_186 = arith.constant 0 : index
    %202 = vector.load %arg5[%c11_184, %c0_185, %c0_186] : memref<16x128x128xbf16, #tpu.memory_space<vmem>>, vector<1x128x128xbf16>
    %203 = vector.shape_cast %202 : vector<1x128x128xbf16> to vector<128x128xbf16>
    %cst_187 = arith.constant dense<0.000000e+00> : vector<192x128xf32>
    %204 = tpu.matmul %201, %203, %cst_187 {dimension_numbers = #tpu.dot_dimension_numbers<[1], [0], [0], [1], [0, 0, 1, 1], [], []>} : vector<192x128xbf16>, vector<128x128xbf16>, vector<192x128xf32> -> vector<192x128xf32>
    %205 = arith.addf %200, %204 : vector<192x128xf32>
    %206 = vector.broadcast %24 : vector<1x128xf32> to vector<192x128xf32>
    %207 = arith.addf %205, %206 : vector<192x128xf32>
    %208 = arith.truncf %207 : vector<192x128xf32> to vector<192x128xbf16>
    %209 = vector.shape_cast %208 : vector<192x128xbf16> to vector<8x24x128xbf16>
    %210 = vector.extract_strided_slice %209 {offsets = [0, 0, 0], sizes = [8, 16, 128], strides = [1, 1, 1]} : vector<8x24x128xbf16> to vector<8x16x128xbf16>
    %c0_188 = arith.constant 0 : index
    %c8_189 = arith.constant 8 : index
    %c1_190 = arith.constant 1 : index
    %c0_191 = arith.constant 0 : index
    %c0_192 = arith.constant 0 : index
    %211 = vector.load %arg7[%c0_188, %c8_189, %c1_190, %c0_191, %c0_192] : memref<1x16x2x16x256xbf16, #tpu.memory_space<vmem>>, vector<1x8x1x16x128xbf16>
    %212 = vector.shape_cast %211 : vector<1x8x1x16x128xbf16> to vector<8x16x128xbf16>
    %213 = vector.shape_cast %210 : vector<8x16x128xbf16> to vector<1x8x1x16x128xbf16>
    tpu.vector_store %arg7[%c0_188, %c8_189, %c1_190, %c0_191, %c0_192], %213 {strides = array<i32>} : memref<1x16x2x16x256xbf16, #tpu.memory_space<vmem>>, vector<1x8x1x16x128xbf16>,
    %c217_193 = arith.constant 217 : index
    %c0_194 = arith.constant 0 : index
    %214 = vector.load %arg8[%c217_193, %c0_194] : memref<440x128xbf16, #tpu.memory_space<vmem>>, vector<192x128xbf16>
    %c12_195 = arith.constant 12 : index
    %c0_196 = arith.constant 0 : index
    %c0_197 = arith.constant 0 : index
    %215 = vector.load %arg5[%c12_195, %c0_196, %c0_197] : memref<16x128x128xbf16, #tpu.memory_space<vmem>>, vector<1x128x128xbf16>
    %216 = vector.shape_cast %215 : vector<1x128x128xbf16> to vector<128x128xbf16>
    %cst_198 = arith.constant dense<0.000000e+00> : vector<192x128xf32>
    %217 = tpu.matmul %214, %216, %cst_198 {dimension_numbers = #tpu.dot_dimension_numbers<[1], [0], [0], [1], [0, 0, 1, 1], [], []>} : vector<192x128xbf16>, vector<128x128xbf16>, vector<192x128xf32> -> vector<192x128xf32>
    %c218_199 = arith.constant 218 : index
    %c0_200 = arith.constant 0 : index
    %218 = vector.load %arg8[%c218_199, %c0_200] : memref<440x128xbf16, #tpu.memory_space<vmem>>, vector<192x128xbf16>
    %c13_201 = arith.constant 13 : index
    %c0_202 = arith.constant 0 : index
    %c0_203 = arith.constant 0 : index
    %219 = vector.load %arg5[%c13_201, %c0_202, %c0_203] : memref<16x128x128xbf16, #tpu.memory_space<vmem>>, vector<1x128x128xbf16>
    %220 = vector.shape_cast %219 : vector<1x128x128xbf16> to vector<128x128xbf16>
    %cst_204 = arith.constant dense<0.000000e+00> : vector<192x128xf32>
    %221 = tpu.matmul %218, %220, %cst_204 {dimension_numbers = #tpu.dot_dimension_numbers<[1], [0], [0], [1], [0, 0, 1, 1], [], []>} : vector<192x128xbf16>, vector<128x128xbf16>, vector<192x128xf32> -> vector<192x128xf32>
    %222 = arith.addf %217, %221 : vector<192x128xf32>
    %c241_205 = arith.constant 241 : index
    %c0_206 = arith.constant 0 : index
    %223 = vector.load %arg8[%c241_205, %c0_206] : memref<440x128xbf16, #tpu.memory_space<vmem>>, vector<192x128xbf16>
    %c14_207 = arith.constant 14 : index
    %c0_208 = arith.constant 0 : index
    %c0_209 = arith.constant 0 : index
    %224 = vector.load %arg5[%c14_207, %c0_208, %c0_209] : memref<16x128x128xbf16, #tpu.memory_space<vmem>>, vector<1x128x128xbf16>
    %225 = vector.shape_cast %224 : vector<1x128x128xbf16> to vector<128x128xbf16>
    %cst_210 = arith.constant dense<0.000000e+00> : vector<192x128xf32>
    %226 = tpu.matmul %223, %225, %cst_210 {dimension_numbers = #tpu.dot_dimension_numbers<[1], [0], [0], [1], [0, 0, 1, 1], [], []>} : vector<192x128xbf16>, vector<128x128xbf16>, vector<192x128xf32> -> vector<192x128xf32>
    %227 = arith.addf %222, %226 : vector<192x128xf32>
    %c242 = arith.constant 242 : index
    %c0_211 = arith.constant 0 : index
    %228 = vector.load %arg8[%c242, %c0_211] : memref<440x128xbf16, #tpu.memory_space<vmem>>, vector<192x128xbf16>
    %c15_212 = arith.constant 15 : index
    %c0_213 = arith.constant 0 : index
    %c0_214 = arith.constant 0 : index
    %229 = vector.load %arg5[%c15_212, %c0_213, %c0_214] : memref<16x128x128xbf16, #tpu.memory_space<vmem>>, vector<1x128x128xbf16>
    %230 = vector.shape_cast %229 : vector<1x128x128xbf16> to vector<128x128xbf16>
    %cst_215 = arith.constant dense<0.000000e+00> : vector<192x128xf32>
    %231 = tpu.matmul %228, %230, %cst_215 {dimension_numbers = #tpu.dot_dimension_numbers<[1], [0], [0], [1], [0, 0, 1, 1], [], []>} : vector<192x128xbf16>, vector<128x128xbf16>, vector<192x128xf32> -> vector<192x128xf32>
    %232 = arith.addf %227, %231 : vector<192x128xf32>
    %233 = vector.broadcast %24 : vector<1x128xf32> to vector<192x128xf32>
    %234 = arith.addf %232, %233 : vector<192x128xf32>
    %235 = arith.truncf %234 : vector<192x128xf32> to vector<192x128xbf16>
    %236 = vector.shape_cast %235 : vector<192x128xbf16> to vector<8x24x128xbf16>
    %237 = vector.extract_strided_slice %236 {offsets = [0, 0, 0], sizes = [8, 16, 128], strides = [1, 1, 1]} : vector<8x24x128xbf16> to vector<8x16x128xbf16>
    %c0_216 = arith.constant 0 : index
    %c8_217 = arith.constant 8 : index
    %c1_218 = arith.constant 1 : index
    %c0_219 = arith.constant 0 : index
    %c128_220 = arith.constant 128 : index
    %238 = vector.load %arg7[%c0_216, %c8_217, %c1_218, %c0_219, %c128_220] : memref<1x16x2x16x256xbf16, #tpu.memory_space<vmem>>, vector<1x8x1x16x128xbf16>
    %239 = vector.shape_cast %238 : vector<1x8x1x16x128xbf16> to vector<8x16x128xbf16>
    %240 = vector.shape_cast %237 : vector<8x16x128xbf16> to vector<1x8x1x16x128xbf16>
    tpu.vector_store %arg7[%c0_216, %c8_217, %c1_218, %c0_219, %c128_220], %240 {strides = array<i32>} : memref<1x16x2x16x256xbf16, #tpu.memory_space<vmem>>, vector<1x8x1x16x128xbf16>,
    return
  }
  func.func @transform_0(%arg0: i32, %arg1: i32) -> (i32, i32, i32, i32) {
    %c0_i32 = arith.constant 0 : i32
    %c0_i32_0 = arith.constant 0 : i32
    %c0_i32_1 = arith.constant 0 : i32
    return %arg0, %arg1, %c0_i32, %c0_i32_0 : i32, i32, i32, i32
  }
  func.func @transform_1(%arg0: i32, %arg1: i32) -> (i32, i32, i32, i32) {
    %c16_i32 = arith.constant 16 : i32
    %0 = arith.muli %arg1, %c16_i32 : i32
    %c1_i32 = arith.constant 1 : i32
    %1 = arith.subi %0, %c1_i32 : i32
    %c0_i32 = arith.constant 0 : i32
    %2 = arith.maxsi %1, %c0_i32 : i32
    %c0_i32_0 = arith.constant 0 : i32
    %c0_i32_1 = arith.constant 0 : i32
    %c0_i32_2 = arith.constant 0 : i32
    return %arg0, %2, %c0_i32_0, %c0_i32_1 : i32, i32, i32, i32
  }
  func.func @transform_2(%arg0: i32, %arg1: i32) -> (i32, i32, i32, i32) {
    %c16_i32 = arith.constant 16 : i32
    %0 = arith.muli %arg1, %c16_i32 : i32
    %c16_i32_0 = arith.constant 16 : i32
    %1 = arith.addi %0, %c16_i32_0 : i32
    %c15_i32 = arith.constant 15 : i32
    %2 = arith.minsi %1, %c15_i32 : i32
    %c0_i32 = arith.constant 0 : i32
    %c0_i32_1 = arith.constant 0 : i32
    %c0_i32_2 = arith.constant 0 : i32
    return %arg0, %2, %c0_i32, %c0_i32_1 : i32, i32, i32, i32
  }
  func.func @transform_3(%arg0: i32, %arg1: i32) -> (i32, i32, i32) {
    %c0_i32 = arith.constant 0 : i32
    %c0_i32_0 = arith.constant 0 : i32
    %c0_i32_1 = arith.constant 0 : i32
    %c0_i32_2 = arith.constant 0 : i32
    return %c0_i32, %c0_i32_0, %c0_i32_1 : i32, i32, i32
  }
  func.func @transform_4(%arg0: i32, %arg1: i32) -> (i32, i32) {
    %c0_i32 = arith.constant 0 : i32
    %c0_i32_0 = arith.constant 0 : i32
    %c0_i32_1 = arith.constant 0 : i32
    return %c0_i32, %c0_i32_0 : i32, i32
  }
  func.func @transform_5(%arg0: i32, %arg1: i32) -> (i32, i32, i32, i32, i32) {
    %c0_i32 = arith.constant 0 : i32
    %c0_i32_0 = arith.constant 0 : i32
    %c0_i32_1 = arith.constant 0 : i32
    %c0_i32_2 = arith.constant 0 : i32
    return %arg0, %arg1, %c0_i32, %c0_i32_0, %c0_i32_1 : i32, i32, i32, i32, i32
  }
}

</mosaic_0001>

<bundles_post_ra>
// kernel: upsample_forward.1
= control target key start
LH: loop header
LB: loop body
LE: loop exit
PB: predicated region body
PF: predicated region fallthrough
CT: control target
= control target key end

     0   :  { %s16033_s18 = smov 0   ;;  %s16035_s19 = smov 0   ;;  %s18733_s0 = inlined_call_operand.vmem [shape: bf16[2,16,24,128], index: 0, kind: input, shape index: {}, may-alias: {0,1,2}]   ;;  %s18734_s1 = inlined_call_operand.vmem [shape: bf16[2,16,24,128], index: 1, kind: input, shape index: {}, may-alias: {0,1,2}]   ;;  %s18735_s2 = inlined_call_operand.vmem [shape: bf16[2,16,24,128], index: 2, kind: input, shape index: {}, may-alias: {0,1,2}]   ;;  %s18736_s3 = inlined_call_operand.vmem [shape: bf16[16,128,128], index: 3, kind: input, shape index: {}]   ;;  %s18737_s4 = inlined_call_operand.vmem [shape: f32[1,128], index: 4, kind: input, shape index: {}]   ;;  %s18738_s5 = inlined_call_operand.vmem [shape: bf16[2,16,2,16,256], index: 5, kind: output, shape index: {}]  }
   0x1   :  { %s16037_s20 = smov 0  }
   0x2 LB: > { %s27_s21 = sadd.s32 1, %s15996_s19  ;;  %p12128_p0 = scmp.ge.s32.totalorder %s16000_s20, 1  ;;  %s16000_s20 = sphi %s16037_s20, %s15_s20   ;;  %s15996_s19 = sphi %s16035_s19, %s18740_s19   ;;  %s15992_s18 = sphi %s16033_s18, %s18739_s18  }
   0x3   : > { %p29_p1 = scmp.ge.s32.totalorder %s27_s21, 2  ;;  %p273_p2 = scmp.lt.s32.totalorder %s16000_s20, 3 }
   0x5   : > { %s18742_s21 = smov (%p29_p1, %s27_s21), 0  ;;  %p274_p3 = pnand %p12128_p0, %p273_p2 }
   0x6   : > { %v15453_v0 = vld [vmem:[%s18736_s3 + $0x40] sm:$0xff] (!%p274_p3)   ;;  %p338_p4 = scmp.lt.s32.totalorder (!%p274_p3), %s15992_s18, 1  ;;  %v15455_v2 = vld [vmem:[%s18736_s3 + $0x48] sm:$0xff] (!%p274_p3)   ;;  %v15457_v4 = vld [vmem:[%s18736_s3 + $0x50] sm:$0xff] (!%p274_p3)   ;;  %vm665_vm0 = vsmask.f32 (!%p274_p3), 7424 }
   0x7   : > { %277 = sbr.rel (%p274_p3) target bundleno = 1023 (0x3ff), region = 40  ;;  %v15454_v1 = vld [vmem:[%s18736_s3] sm:$0xff] (!%p274_p3)   ;;  %14145 = vmatprep.subr.bf16.mxu0 (!%p274_p3), %v15453_v0  ;;  %v15456_v3 = vld [vmem:[%s18736_s3 + $0x8] sm:$0xff] (!%p274_p3)   ;;  %v15458_v5 = vld [vmem:[%s18736_s3 + $0x10] sm:$0xff] (!%p274_p3)   ;;  %vm2117_vm1 = vcmask (!%p274_p3), 1046528  }
   0x8   : > { %14185 = vmatprep.subr.bf16.mxu1 (!%p274_p3), %v15454_v1  ;;  %14146 = vmatpush3.bf16.msra.mxu0 (!%p274_p3), %v15453_v0  ;;  %v15459_v6 = vld [vmem:[%s18736_s3 + $0x58] sm:$0xff] (!%p274_p3)   ;;  %v15461_v8 = vld [vmem:[%s18736_s3 + $0x60] sm:$0xff] (!%p274_p3)   ;;  %v15463_v10 = vld [vmem:[%s18736_s3 + $0x68] sm:$0xff] (!%p274_p3)  }
   0x9   : > { %14186 = vmatpush3.bf16.msra.mxu1 (!%p274_p3), %v15454_v1  ;;  %14147 = vmatprep.subr.bf16.mxu0 (!%p274_p3), %v15455_v2  ;;  %v15460_v7 = vld [vmem:[%s18736_s3 + $0x18] sm:$0xff] (!%p274_p3)   ;;  %v15462_v9 = vld [vmem:[%s18736_s3 + $0x20] sm:$0xff] (!%p274_p3)   ;;  %v15464_v14 = vld [vmem:[%s18736_s3 + $0x28] sm:$0xff] (!%p274_p3)  }
   0xa   : > { %14187 = vmatprep.subr.bf16.mxu1 (!%p274_p3), %v15456_v3  ;;  %v15465_v21 = vld [vmem:[%s18736_s3 + $0x70] sm:$0xff] (!%p274_p3)   ;;  %v15467_v25 = vld [vmem:[%s18736_s3 + $0x78] sm:$0xff] (!%p274_p3)   ;;  %v15472_v29 = vld [vmem:[%s18736_s3 + $0x80] sm:$0xff] (!%p274_p3)  }
   0xb   : > { %v15466_v22 = vld [vmem:[%s18736_s3 + $0x30] sm:$0xff] (!%p274_p3)   ;;  %v15468_v26 = vld [vmem:[%s18736_s3 + $0x38] sm:$0xff] (!%p274_p3)   ;;  %v15473_v31 = vld [vmem:[%s18736_s3 + $0xc0] sm:$0xff] (!%p274_p3)  }
   0xc   : > { %14148 = vmatpush3.bf16.msra.mxu0 (!%p274_p3), %v15455_v2  ;;  %v15477_v48 = vld [vmem:[%s18736_s3 + $0xc8] sm:$0xff] (!%p274_p3)   ;;  %v15479_v63 = vld [vmem:[%s18736_s3 + $0xd0] sm:$0xff] (!%p274_p3)  }
   0xd   : > { %14188 = vmatpush3.bf16.msra.mxu1 (!%p274_p3), %v15456_v3  ;;  %14149 = vmatprep.subr.bf16.mxu0 (!%p274_p3), %v15457_v4  ;;  %v15474_v53 = vld [vmem:[%s18736_s3 + $0x88] sm:$0xff] (!%p274_p3)   ;;  %v15478_v2 = vld [vmem:[%s18736_s3 + $0x90] sm:$0xff] (!%p274_p3)  }
   0xe   : > { %s18744_s18 = smov (!%p338_p4, %s15992_s18), 1  ;;  %14189 = vmatprep.subr.bf16.mxu1 %v15458_v5 }
   0xf   : > { %s16078_s13 = smul.u32 192, %s18744_s18  ;;  %s13363_s25 = sshll.u32 %s18744_s18, 9 }
  0x10   : > { %14150 = vmatpush3.bf16.msra.mxu0 %v15457_v4  ;;  %s16724_s8 = scalar_lea.vmem %s18738_s5, %s13363_s25 }
  0x11   : > { %14190 = vmatpush3.bf16.msra.mxu1 %v15458_v5  ;;  %14151 = vmatprep.subr.bf16.mxu0 %v15459_v6  ;;  %s360_s24 = scalar_lea.vmem %s18734_s1, %s16078_s13  ;;  %s16094_s27 = scalar_lea.vmem %s18733_s0, %s16078_s13 }
  0x12   : > { %14191 = vmatprep.subr.bf16.mxu1 %v15460_v7  ;;  %v394_v11 = vld [vmem:[%s360_s24] sm:$0xf]  ;;  %v395_v12 = vld [vmem:[%s360_s24 + $0x4] sm:$0xf]  ;;  %v396_v13 = vld [vmem:[%s360_s24 + $0x8] sm:$0xf] }
  0x13   : > { %v414_v15 = vmul.bf16 0.0, %v394_v11  ;;  %v415_v16 = vmul.bf16 0.0, %v395_v12  ;;  %v416_v17 = vmul.bf16 0.0, %v396_v13  ;;  %v443_v18 = vld [vmem:[%s16094_s27] sm:$0xff]   ;;  %v445_v19 = vld [vmem:[%s16094_s27 + $0x8] sm:$0xff]   ;;  %v447_v23 = vld [vmem:[%s16094_s27 + $0x10] sm:$0xff]  }
  0x14   : > { %14152 = vmatpush3.bf16.msra.mxu0 %v15459_v6  ;;  %491 = vst [vmem:[#allocation2 + $0xc] sm:$0xff] %v443_v18   ;;  %493 = vst [vmem:[#allocation2 + $0x14] sm:$0xff] %v445_v19   ;;  %v449_v24 = vld [vmem:[%s16094_s27 + $0x18] sm:$0xff]   ;;  %v451_v27 = vld [vmem:[%s16094_s27 + $0x20] sm:$0xff]   ;;  %s13362_s10 = sadd.s32 180, %s16078_s13 }
  0x15   : > { %14192 = vmatpush3.bf16.msra.mxu1 %v15460_v7  ;;  %14153 = vmatprep.subr.bf16.mxu0 %v15461_v8  ;;  %v13502_v20 = vcombine.low %v414_v15, %v415_v16  ;;  %442 = vst [vmem:[#allocation2 + $0x8] sm:$0xf] %v416_v17  ;;  %495 = vst [vmem:[#allocation2 + $0x1c] sm:$0xff] %v447_v23   ;;  %v453_v32 = vld [vmem:[%s16094_s27 + $0x28] sm:$0xff]   ;;  %v455_v54 = vld [vmem:[%s16094_s27 + $0x30] sm:$0xff]   ;;  %s17146_s14 = scalar_lea.vmem %s18735_s2, %s13362_s10 }
  0x16   : > { %14193 = vmatprep.subr.bf16.mxu1 %v15462_v9  ;;  %497 = vst [vmem:[#allocation2 + $0x24] sm:$0xff] %v449_v24   ;;  %499 = vst [vmem:[#allocation2 + $0x2c] sm:$0xff] %v451_v27   ;;  %v457_v59 = vld [vmem:[%s16094_s27 + $0x38] sm:$0xff]   ;;  %v459_v5 = vld [vmem:[%s16094_s27 + $0x40] sm:$0xff]  }
  0x17   : > { %13496 = vst [vmem:[#allocation2] sm:$0xff] %v13502_v20   ;;  %501 = vst [vmem:[#allocation2 + $0x34] sm:$0xff] %v453_v32   ;;  %v461_v6 = vld [vmem:[%s16094_s27 + $0x48] sm:$0xff]   ;;  %v15483_v7 = vld [vmem:[%s18736_s3 + $0xd8] sm:$0xff]  }
  0x18   : > { %14154 = vmatpush3.bf16.msra.mxu0 %v15461_v8  ;;  %503 = vst [vmem:[#allocation2 + $0x3c] sm:$0xff] %v455_v54   ;;  %505 = vst [vmem:[#allocation2 + $0x44] sm:$0xff] %v457_v59   ;;  %v15482_v12 = vld [vmem:[%s18736_s3 + $0x98] sm:$0xff]   ;;  %v15487_v17 = vld [vmem:[%s18736_s3 + $0xe0] sm:$0xff]  }
  0x19   : > { %14194 = vmatpush3.bf16.msra.mxu1 %v15462_v9  ;;  %14155 = vmatprep.subr.bf16.mxu0 %v15463_v10  ;;  %507 = vst [vmem:[#allocation2 + $0x4c] sm:$0xff] %v459_v5   ;;  %509 = vst [vmem:[#allocation2 + $0x54] sm:$0xff] %v461_v6   ;;  %v463_v19 = vld [vmem:[%s16094_s27 + $0x50] sm:$0xff]   ;;  %v15504_v54 = vld [vmem:[%s18736_s3 + $0x100] sm:$0xff]  }
  0x1a   : > { %14195 = vmatprep.subr.bf16.mxu1 %v15464_v14  ;;  %511 = vst [vmem:[#allocation2 + $0x5c] sm:$0xff] %v463_v19  }
  0x1b   : > { %v15471_v30 = vld [vmem:[#allocation2 + $0x10] sm:$0xff]  }
  0x1c   : > { %14156 = vmatpush3.bf16.msra.mxu0 %v15463_v10  ;;  %v15470_v28 = vld [vmem:[#allocation2 + $0x8] sm:$0xff]   ;;  %v682_v36 = vshll.u32 %v15471_v30, 16  ;;  %v15475_v37 = vld [vmem:[#allocation2 + $0x18] sm:$0xff]   ;;  %v686_v38 = vshrl.u32 %v15471_v30, 16 }
  0x1d   : > { %14196 = vmatpush3.bf16.msra.mxu1 %v15464_v14  ;;  %14157 = vmatprep.subr.bf16.mxu0 %v15465_v21  ;;  %v674_v34 = vshll.u32 %v15470_v28, 16  ;;  %v678_v35 = vshrl.u32 %v15470_v28, 16  ;;  %v15476_v42 = vld [vmem:[#allocation2 + $0x20] sm:$0xff]   ;;  %v690_v44 = vshll.u32 %v15475_v37, 16  ;;  %v16129_v51 = vld [vmem:[#allocation2 + $0x28] sm:$0xff]   ;;  %v694_v56 = vshrl.u32 %v15475_v37, 16 }
  0x1e   : > { %14197 = vmatprep.subr.bf16.mxu1 %v15466_v22  ;;  %v15469_v33 = vld [vmem:[#allocation2] sm:$0xff]   ;;  %v684_v43 = vrot.slane %v682_v36, 1  ;;  %v698_v47 = vshll.u32 %v15476_v42, 16  ;;  %v702_v57 = vshrl.u32 %v15476_v42, 16  ;;  %v706_v58 = vshll.u32 %v16129_v51, 16  ;;  %v15481_v0 = vld [vmem:[#allocation2 + $0x30] sm:$0xff]  }
  0x1f   : > { %v667_v39 = vshrl.u32 %v15469_v33, 16  ;;  %v669_v40 = vshll.u32 %v15469_v33, 16  ;;  %v676_v41 = vrot.slane %v674_v34, 1  ;;  %14201 = vmatprep.mubr.bf16.mxu1 %v15469_v33  ;;  %v692_v50 = vrot.slane %v690_v44, 1  ;;  %v15484_v9 = vld [vmem:[#allocation2 + $0x38] sm:$0xff]   ;;  %v15485_v16 = vld [vmem:[#allocation2 + $0x40] sm:$0xff]  }
  0x20   : > { %14158 = vmatpush3.bf16.msra.mxu0 %v15465_v21  ;;  %v688_v49 = vor.u32 %v686_v38, %v684_v43  ;;  %v700_v62 = vrot.slane %v698_v47, 1  ;;  %v708_v4 = vrot.slane %v706_v58, 1  ;;  %v714_v8 = vshll.u32 %v15481_v0, 16  ;;  %v15486_v21 = vld [vmem:[%s18736_s3 + $0xa0] sm:$0xff]   ;;  %v16164_v24 = vld [vmem:[#allocation2 + $0x48] sm:$0xff]   ;;  %v15493_v33 = vld [vmem:[%s18736_s3 + $0xf0] sm:$0xff]  }
  0x21   : > { %14198 = vmatpush3.bf16.msra.mxu1 %v15466_v22  ;;  %14159 = vmatprep.subr.bf16.mxu0 %v15467_v25  ;;  %v671_v45 = vrot.slane %v669_v40, 1  ;;  %v680_v46 = vor.u32 %v678_v35, %v676_v41  ;;  %v696_v1 = vor.u32 %v694_v56, %v692_v50  ;;  %v710_v11 = vshrl.u32 %v16129_v51, 16  ;;  %v15490_v35 = vld [vmem:[#allocation2 + $0x50] sm:$0xff]   ;;  %v15494_v40 = vld [vmem:[#allocation2 + $0x58] sm:$0xff]   ;;  %v15503_v58 = vld [vmem:[%s18736_s3 + $0x140] sm:$0xff]  }
  0x22   : > { %14199 = vmatprep.subr.bf16.mxu1 %v15468_v26  ;;  %v693_v61 = vsel %vm665_vm0, %v688_v49, %v692_v50  ;;  %v704_v3 = vor.u32 %v702_v57, %v700_v62  ;;  %v718_v14 = vshrl.u32 %v15481_v0, 16  ;;  %v722_v15 = vshll.u32 %v15484_v9, 16  ;;  %v15495_v50 = vld [vmem:[#allocation2 + $0x60] ss:$0 sps:$4 sm:$0x11]   ;;  %v15514_v19 = vld [vmem:[#allocation2 + $0x34] sm:$0xff]  }
  0x23   : > { %v672_v52 = vor.u32 %v671_v45, %v667_v39  ;;  %v685_v55 = vsel %vm665_vm0, %v680_v46, %v684_v43  ;;  %v701_v10 = vsel %vm665_vm0, %v696_v1, %v700_v62  ;;  %v716_v18 = vrot.slane %v714_v8, 1  ;;  %v15497_v43 = vld [vmem:[%s18736_s3 + $0xf8] sm:$0xff]  }
  0x24   : > { %14160 = vmatpush3.bf16.msra.mxu0 %v15467_v25  ;;  %v709_v13 = vsel %vm665_vm0, %v704_v3, %v708_v4  ;;  %v712_v20 = vor.u32 %v710_v11, %v708_v4  ;;  %v724_v23 = vrot.slane %v722_v15, 1  ;;  %v730_v25 = vshll.u32 %v15485_v16, 16  ;;  %v15496_v46 = vld [vmem:[%s18736_s3 + $0xb8] sm:$0xff]   ;;  %v15509_v15 = vld [vmem:[#allocation2 + $0x2c] sm:$0xff]  }
  0x25   : > { %14200 = vmatpush3.bf16.msra.mxu1 %v15468_v26  ;;  %14225 = vmatprep.subr.bf16.mxu0 %v15472_v29  ;;  %v677_v60 = vsel %vm665_vm0, %v672_v52, %v676_v41  ;;  %v720_v22 = vor.u32 %v718_v14, %v716_v18  ;;  %v15491_v26 = vld [vmem:[%s18736_s3 + $0xe8] sm:$0xff]   ;;  %v738_v32 = vshll.u32 %v16164_v24, 16  ;;  %v742_v45 = vshrl.u32 %v16164_v24, 16  ;;  %v15502_v62 = vld [vmem:[#allocation2 + $0x1c] sm:$0xff]  }
  0x26   : > { %14265 = vmatprep.subr.bf16.mxu1 %v15473_v31  ;;  %14161 = vmatprep.mubr.bf16.mxu0 %v677_v60  ;;  %v717_v27 = vsel %vm665_vm0, %v712_v20, %v716_v18  ;;  %v732_v34 = vrot.slane %v730_v25, 1  ;;  %v15499_v41 = vld [vmem:[#allocation2 + $0xc] sm:$0xff]   ;;  %v754_v49 = vshll.u32 %v15494_v40, 16  ;;  %v762_v1 = vshll.u32 %v15495_v50, 16 }
  0x27   : > { %14162 = vmatmul.mubr.bf16.vlgmr.msra.gmra.mrb[0].mxu0 %v685_v55  ;;  %v740_v39 = vrot.slane %v738_v32, 1  ;;  %v1566_v52 = vshll.u32 %v15499_v41, 16  ;;  %v1564_v59 = vshrl.u32 %v15499_v41, 16  ;;  %v1579_v6 = vshll.u32 %v15502_v62, 16  ;;  %v15510_v25 = vld [vmem:[%s18736_s3 + $0x108] sm:$0xff]  }
  0x28   : > { %14202 = vmatmul.mubr.bf16.vlgmr.msra.gmra.mrb[0].mxu1 %v15470_v28  ;;  %14226 = vmatpush3.bf16.msra.mxu0 %v15472_v29  ;;  %v726_v28 = vshrl.u32 %v15484_v9, 16  ;;  %v15488_v29 = vld [vmem:[%s18736_s3 + $0xa8] sm:$0xff]   ;;  %v756_v57 = vrot.slane %v754_v49, 1  ;;  %v764_v8 = vrot.slane %v762_v1, 1  ;;  %v467_v49 = vld [vmem:[%s16094_s27 + $0x60] sm:$0xf] }
  0x29   : > { %14266 = vmatpush3.bf16.msra.mxu1 %v15473_v31  ;;  %14205 = vmatprep.mubr.bf16.mxu1 %v15471_v30  ;;  %v725_v30 = vsel %vm665_vm0, %v720_v22, %v724_v23  ;;  %v734_v31 = vshrl.u32 %v15485_v16, 16  ;;  %v744_v55 = vor.u32 %v742_v45, %v740_v39  ;;  %v1568_v60 = vrot.slane %v1566_v52, 1  ;;  %v15501_v22 = vld [vmem:[#allocation2 + $0x14] sm:$0xff]   ;;  %v15505_v32 = vld [vmem:[%s18736_s3 + $0x148] sm:$0xff]   ;;  %515 = vst [vmem:[#allocation2 + $0x6c] sm:$0xf] %v467_v49 }
  0x2a   : > { %14267 = vmatprep.subr.bf16.mxu1 %v15477_v48  ;;  %14165 = vmatprep.mubr.bf16.mxu0 %v693_v61  ;;  %v728_v36 = vor.u32 %v726_v28, %v724_v23  ;;  %v1581_v14 = vrot.slane %v1579_v6, 1  ;;  %v15508_v41 = vld [vmem:[#allocation2 + $0x24] sm:$0xff]   ;;  %v15518_v45 = vld [vmem:[%s18736_s3 + $0x118] sm:$0xff]  }
  0x2b   : > { %14227 = vmatprep.subr.bf16.mxu0 %v15474_v53  ;;  %v736_v38 = vor.u32 %v734_v31, %v732_v34  ;;  %v1569_v4 = vor.u32 %v1568_v60, %v1564_v59  ;;  %v15516_v31 = vld [vmem:[#allocation2 + $0x3c] sm:$0xff]   ;;  %v15515_v59 = vld [vmem:[#allocation2 + $0x34] sm:$0xff]  }
  0x2c   : > { %14228 = vmatpush3.bf16.msra.mxu0 %v15474_v53  ;;  %v733_v44 = vsel %vm665_vm0, %v728_v36, %v732_v34  ;;  %v15512_v34 = vld [vmem:[%s18736_s3 + $0x110] sm:$0xff]   ;;  %v15529_v6 = vld [vmem:[#allocation2 + $0x5c] sm:$0xff]  }
  0x2d   : > { %14268 = vmatpush3.bf16.msra.mxu1 %v15477_v48  ;;  %14229 = vmatprep.subr.bf16.mxu0 %v15478_v2  ;;  %v741_v47 = vsel %vm665_vm0, %v736_v38, %v740_v39  ;;  %v750_v48 = vshrl.u32 %v15490_v35, 16  ;;  %v15511_v38 = vld [vmem:[%s18736_s3 + $0x150] sm:$0xff]   ;;  %v1607_v39 = vshrl.u32 %v15514_v19, 16 }
  0x2e   : > { %14269 = vmatprep.subr.bf16.mxu1 %v15479_v63 }
  0x2f   : > { %14166 = vmatmul.mubr.bf16.gmra.mrb[4].mxu0 %v701_v10  ;;  %v1583_v10 = vshrl.u32 %v15502_v62, 16  ;;  %v15523_v62 = vld [vmem:[%s18736_s3 + $0x160] sm:$0xff]  }
  0x30   : > { %14206 = vmatmul.mubr.bf16.gmra.mrb[4].mxu1 %v15475_v37  ;;  %14230 = vmatpush3.bf16.msra.mxu0 %v15478_v2  ;;  %v15492_v37 = vld [vmem:[%s18736_s3 + $0xb0] sm:$0xff]   ;;  %v15507_v2 = vld [vmem:[#allocation2 + $0x24] sm:$0xff]  }
  0x31   : > { %14209 = vmatprep.mubr.bf16.mxu1 %v15476_v42  ;;  %14270 = vmatpush3.bf16.msra.mxu1 %v15479_v63  ;;  %v746_v42 = vshll.u32 %v15490_v35, 16  ;;  %v1587_v11 = vshll.u32 %v15507_v2, 16  ;;  %v1585_v20 = vor.u32 %v1583_v10, %v1581_v14 }
  0x32   : > { %14271 = vmatprep.subr.bf16.mxu1 %v15483_v7  ;;  %14169 = vmatprep.mubr.bf16.mxu0 %v709_v13  ;;  %v15498_v13 = vld [vmem:[#allocation2 + $0xc] sm:$0xff]  }
  0x33   : > { %14231 = vmatprep.subr.bf16.mxu0 %v15482_v12  ;;  %v748_v53 = vrot.slane %v746_v42, 1  ;;  %v1589_v18 = vrot.slane %v1587_v11, 1 }
  0x34   : > { %14232 = vmatpush3.bf16.msra.mxu0 %v15482_v12 }
  0x35   : > { %14272 = vmatpush3.bf16.msra.mxu1 %v15483_v7  ;;  %14233 = vmatprep.subr.bf16.mxu0 %v15486_v21  ;;  %v752_v56 = vor.u32 %v750_v48, %v748_v53  ;;  %v749_v63 = vsel %vm665_vm0, %v744_v55, %v748_v53  ;;  %v1590_v28 = vsel %vm665_vm0, %v1585_v20, %v1589_v18  ;;  %v465_v48 = vld [vmem:[%s16094_s27 + $0x58] sm:$0xff]  }
  0x36   : > { %14273 = vmatprep.subr.bf16.mxu1 %v15487_v17  ;;  %513 = vst [vmem:[#allocation2 + $0x64] sm:$0xff] %v465_v48   ;;  %v15517_v53 = vld [vmem:[%s18736_s3 + $0x158] sm:$0xff]  }
  0x37   : > { %14170 = vmatmul.mubr.bf16.gmra.mrb[8].mxu0 %v717_v27  ;;  %v757_v3 = vsel %vm665_vm0, %v752_v56, %v756_v57  ;;  %v1603_v27 = vshll.u32 %v15514_v19, 16  ;;  %v15527_v56 = vld [vmem:[#allocation2 + $0x54] sm:$0xff]   ;;  %v15526_v19 = vld [vmem:[#allocation2 + $0x4c] sm:$0xff]  }
  0x38   : > { %14210 = vmatmul.mubr.bf16.gmra.mrb[8].mxu1 %v16129_v51  ;;  %14173 = vmatprep.mubr.bf16.mxu0 %v725_v30  ;;  %v15500_v51 = vld [vmem:[#allocation2 + $0x14] sm:$0xff]  }
  0x39   : > { %14213 = vmatprep.mubr.bf16.mxu1 %v15481_v0  ;;  %14274 = vmatpush3.bf16.msra.mxu1 %v15487_v17  ;;  %v1571_v61 = vshll.u32 %v15500_v51, 16  ;;  %v758_v0 = vshrl.u32 %v15494_v40, 16  ;;  %v1605_v36 = vrot.slane %v1603_v27, 1  ;;  %v15537_v27 = vld [vmem:[%s18736_s3 + $0x178] sm:$0xff]  }
  0x3a   : > { %14275 = vmatprep.subr.bf16.mxu1 %v15491_v26  ;;  %14234 = vmatpush3.bf16.msra.mxu0 %v15486_v21  ;;  %v1595_v21 = vshll.u32 %v15509_v15, 16 }
  0x3b   : > { %14235 = vmatprep.subr.bf16.mxu0 %v15488_v29  ;;  %v1573_v5 = vrot.slane %v1571_v61, 1  ;;  %v760_v7 = vor.u32 %v758_v0, %v756_v57  ;;  %v1609_v52 = vor.u32 %v1607_v39, %v1605_v36  ;;  %v15524_v57 = vld [vmem:[%s18736_s3 + $0x120] sm:$0xff]  }
  0x3c   : > { %v1597_v30 = vrot.slane %v1595_v21, 1  ;;  %v1647_v21 = vshrl.u32 %v15529_v6, 16  ;;  %v16268_v39 = vld [vmem:[%s18736_s3 + $0x180] sm:$0xff]  }
  0x3d   : > { %14276 = vmatpush3.bf16.msra.mxu1 %v15491_v26  ;;  %v1574_v12 = vsel %vm665_vm0, %v1569_v4, %v1573_v5  ;;  %v1599_v26 = vshrl.u32 %v15509_v15, 16  ;;  %v1643_v15 = vshll.u32 %v15529_v6, 16 }
  0x3e   : > { %14277 = vmatprep.subr.bf16.mxu1 %v15493_v33  ;;  %14236 = vmatpush3.bf16.msra.mxu0 %v15488_v29  ;;  %v15506_v29 = vld [vmem:[#allocation2 + $0x1c] sm:$0xff]  }
  0x3f   : > { %14237 = vmatprep.subr.bf16.mxu0 %v15492_v37  ;;  %14174 = vmatmul.mubr.bf16.gmra.mrb[12].mxu0 %v733_v44 }
  0x40   : > { %14214 = vmatmul.mubr.bf16.gmra.mrb[12].mxu1 %v15484_v9  ;;  %14177 = vmatprep.mubr.bf16.mxu0 %v741_v47  ;;  %v1575_v9 = vshrl.u32 %v15500_v51, 16  ;;  %v15522_v51 = vld [vmem:[#allocation2 + $0x4c] sm:$0xff]  }
  0x41   : > { %14217 = vmatprep.mubr.bf16.mxu1 %v15485_v16  ;;  %14278 = vmatpush3.bf16.msra.mxu1 %v15493_v33  ;;  %v765_v16 = vsel %vm665_vm0, %v760_v7, %v764_v8  ;;  %v1631_v1 = vshrl.u32 %v15522_v51, 16  ;;  %v15532_v8 = vld [vmem:[%s18736_s3 + $0x130] sm:$0xff]  }
  0x42   : > { %14279 = vmatprep.subr.bf16.mxu1 %v15497_v43  ;;  %14238 = vmatpush3.bf16.msra.mxu0 %v15492_v37  ;;  %v1577_v17 = vor.u32 %v1575_v9, %v1573_v5  ;;  %v15520_v37 = vld [vmem:[#allocation2 + $0x44] sm:$0xff]   ;;  %v1994_v9 = vld [vmem:[#allocation2] sm:$0xf] }
  0x43   : > { %14239 = vmatprep.subr.bf16.mxu0 %v15496_v46  ;;  %v1619_v47 = vshll.u32 %v15520_v37, 16  ;;  %v1623_v61 = vshrl.u32 %v15520_v37, 16  ;;  %v15525_v5 = vld [vmem:[%s18736_s3 + $0x168] sm:$0xff]  }
  0x44   : > { %v1582_v23 = vsel %vm665_vm0, %v1577_v17, %v1581_v14  ;;  %v1639_v14 = vshrl.u32 %v15527_v56, 16 }
  0x45   : > { %14280 = vmatpush3.bf16.msra.mxu1 %v15497_v43  ;;  %v15513_v43 = vld [vmem:[#allocation2 + $0x2c] sm:$0xff]   ;;  %v1621_v55 = vrot.slane %v1619_v47, 1 }
  0x46   : > { %14345 = vmatprep.subr.bf16.mxu1 %v15504_v54  ;;  %14240 = vmatpush3.bf16.msra.mxu0 %v15496_v46  ;;  %v1615_v46 = vshrl.u32 %v15516_v31, 16 }
  0x47   : > { %14305 = vmatprep.subr.bf16.mxu0 %v15503_v58  ;;  %14178 = vmatmul.mubr.bf16.gmra.mrb[16].mxu0 %v749_v63  ;;  %v15519_v63 = vld [vmem:[#allocation2 + $0x3c] sm:$0xff]   ;;  %v1625_v7 = vor.u32 %v1623_v61, %v1621_v55 }
  0x48   : > { %14218 = vmatmul.mubr.bf16.gmra.mrb[16].mxu1 %v16164_v24  ;;  %14181 = vmatprep.mubr.bf16.mxu0 %v757_v3  ;;  %v1591_v24 = vshrl.u32 %v15507_v2, 16  ;;  %v1635_v2 = vshll.u32 %v15527_v56, 16  ;;  %v15530_v3 = vld [vmem:[%s18736_s3 + $0x128] sm:$0xff]  }
  0x49   : > { %14221 = vmatprep.mubr.bf16.mxu1 %v15490_v35  ;;  %v1601_v35 = vor.u32 %v1599_v26, %v1597_v30  ;;  %v1645_v26 = vrot.slane %v1643_v15, 1  ;;  %v16294_v15 = vld [vmem:[#allocation2 + $0x30] sm:$0xff]  }
  0x4a   : > { %v1593_v33 = vor.u32 %v1591_v24, %v1589_v18  ;;  %v1637_v11 = vrot.slane %v1635_v2, 1  ;;  %v15521_v18 = vld [vmem:[#allocation2 + $0x44] sm:$0xff]   ;;  %v15536_v24 = vld [vmem:[#allocation2 + $0x6c] ss:$0 sps:$4 sm:$0x11]  }
  0x4b   : > { %v1606_v44 = vsel %vm665_vm0, %v1601_v35, %v1605_v36  ;;  %v1659_v37 = vshll.u32 %v15536_v24, 16 }
  0x4c   : > { %v1598_v42 = vsel %vm665_vm0, %v1593_v33, %v1597_v30  ;;  %v1649_v30 = vor.u32 %v1647_v21, %v1645_v26  ;;  %v16262_v33 = vld [vmem:[%s18736_s3 + $0x1c0] sm:$0xff]  }
  0x4d   : > { %v1661_v48 = vrot.slane %v1659_v37, 1 }
  0x4f   : > { %14182 = vmatmul.mubr.bf16.gmra.mrb[20].mxu0 %v765_v16  ;;  %v15531_v16 = vld [vmem:[%s18736_s3 + $0x170] sm:$0xff]  }
  0x50   : > { %14222 = vmatmul.mubr.bf16.gmra.mrb[20].mxu1 %v15494_v40  ;;  %14241 = vmatprep.mubr.bf16.mxu0 %v15498_v13  ;;  %v1611_v40 = vshll.u32 %v15516_v31, 16  ;;  %v16243_v13 = vld [vmem:[#allocation2 + $0x4] sm:$0xf] }
  0x51   : > { %14281 = vmatprep.mubr.bf16.mxu1 %v1574_v12  ;;  %v15534_v12 = vld [vmem:[#allocation2 + $0x64] sm:$0xff]  }
  0x52   : > { %v1613_v50 = vrot.slane %v1611_v40, 1  ;;  %v1655_v36 = vshrl.u32 %v15534_v12, 16 }
  0x54   : > { %v1614_v60 = vsel %vm665_vm0, %v1609_v52, %v1613_v50 }
  0x57   : > { %14242 = vmatmul.mubr.bf16.vlgmr.msra.gmra.mrb[24].mxu0 %v15501_v22  ;;  %v1651_v22 = vshll.u32 %v15534_v12, 16 }
  0x58   : > { %14282 = vmatmul.mubr.bf16.vlgmr.msra.gmra.mrb[24].mxu1 %v1582_v23  ;;  %14306 = vmatpush3.bf16.msra.mxu0 %v15503_v58  ;;  %v1627_v58 = vshll.u32 %v15522_v51, 16  ;;  %v12322_v23 = vcombine.low %v1994_v9, %v16243_v13  ;;  %v16275_v51 = vld [vmem:[#allocation2 + $0x18] sm:$0xff]  }
  0x59   : > { %14346 = vmatpush3.bf16.msra.mxu1 %v15504_v54  ;;  %14285 = vmatprep.mubr.bf16.mxu1 %v1590_v28  ;;  %v1617_v54 = vor.u32 %v1615_v46, %v1613_v50  ;;  %v1641_v28 = vor.u32 %v1639_v14, %v1637_v11  ;;  %v1653_v31 = vrot.slane %v1651_v22, 1  ;;  %v15542_v46 = vld [vmem:[#allocation2 + $0x10] sm:$0xff]   ;;  %v16304_v22 = vld [vmem:[#allocation2 + $0x38] sm:$0xff]  }
  0x5a   : > { %14347 = vmatprep.subr.bf16.mxu1 %v15510_v25  ;;  %14245 = vmatprep.mubr.bf16.mxu0 %v15506_v29  ;;  %v1629_v4 = vrot.slane %v1627_v58, 1  ;;  %v16257_v29 = vld [vmem:[#allocation2 + $0x8] sm:$0xff]   ;;  %v2355_v58 = vshrl.u32 %v15542_v46, 16 }
  0x5b   : > { %14307 = vmatprep.subr.bf16.mxu0 %v15505_v32  ;;  %v1622_v0 = vsel %vm665_vm0, %v1617_v54, %v1621_v55  ;;  %v1646_v35 = vsel %vm665_vm0, %v1641_v28, %v1645_v26  ;;  %v1654_v40 = vsel %vm665_vm0, %v1649_v30, %v1653_v31  ;;  %v1657_v47 = vor.u32 %v1655_v36, %v1653_v31 }
  0x5c   : > { %14308 = vmatpush3.bf16.msra.mxu0 %v15505_v32  ;;  %v1633_v10 = vor.u32 %v1631_v1, %v1629_v4  ;;  %v1630_v17 = vsel %vm665_vm0, %v1625_v7, %v1629_v4  ;;  %v2338_v32 = vshll.u32 %v12322_v23, 16  ;;  %v2119_v55 = vrot.slane %v16257_v29, 1 }
  0x5d   : > { %14348 = vmatpush3.bf16.msra.mxu1 %v15510_v25  ;;  %14309 = vmatprep.subr.bf16.mxu0 %v15511_v38  ;;  %v15538_v25 = vld [vmem:[%s18736_s3 + $0x138] sm:$0xff]   ;;  %v1662_v54 = vsel %vm665_vm0, %v1657_v47, %v1661_v48  ;;  %v2347_v56 = vshrl.u32 %v16257_v29, 16  ;;  %v2121_v4 = vrot.slane %v15542_v46, 1  ;;  %v2123_v7 = vrot.slane %v16275_v51, 1  ;;  %v15557_v48 = vld [vmem:[%s18736_s3 + $0x1a0] sm:$0xff]  }
  0x5e   : > { %14349 = vmatprep.subr.bf16.mxu1 %v15512_v34  ;;  %v1638_v20 = vsel %vm665_vm0, %v1633_v10, %v1637_v11  ;;  %v15548_v10 = vld [vmem:[%s18736_s3 + $0x1c8] sm:$0xff]   ;;  %v2387_v30 = vshrl.u32 %v16294_v15, 16  ;;  %v2391_v31 = vshll.u32 %v16304_v22, 16  ;;  %v2395_v47 = vshrl.u32 %v16304_v22, 16 }
  0x5f   : > { %14246 = vmatmul.mubr.bf16.gmra.mrb[28].mxu0 %v15508_v41  ;;  %v2340_v41 = vrot.slane %v2338_v32, 1  ;;  %v15554_v32 = vld [vmem:[%s18736_s3 + $0x1d8] sm:$0xff]  }
  0x60   : > { %14286 = vmatmul.mubr.bf16.gmra.mrb[28].mxu1 %v1598_v42  ;;  %14310 = vmatpush3.bf16.msra.mxu0 %v15511_v38  ;;  %v2336_v38 = vshrl.u32 %v12322_v23, 16  ;;  %v2343_v42 = vshll.u32 %v16257_v29, 16  ;;  %v15549_v23 = vld [vmem:[%s18736_s3 + $0x190] sm:$0xff]  }
  0x61   : > { %14289 = vmatprep.mubr.bf16.mxu1 %v1606_v44  ;;  %14350 = vmatpush3.bf16.msra.mxu1 %v15512_v34  ;;  %v2036_v34 = vld [vmem:[#allocation2] sm:$0xe] }
  0x62   : > { %14351 = vmatprep.subr.bf16.mxu1 %v15518_v45  ;;  %14249 = vmatprep.mubr.bf16.mxu0 %v15513_v43  ;;  %v15528_v43 = vld [vmem:[#allocation2 + $0x54] sm:$0xff]   ;;  %v15533_v44 = vld [vmem:[#allocation2 + $0x5c] sm:$0xff]   ;;  %v2341_v49 = vor.u32 %v2340_v41, %v2336_v38  ;;  %v2345_v50 = vrot.slane %v2343_v42, 1  ;;  %v16327_v41 = vld [vmem:[#allocation2 + $0x48] sm:$0xff]  }
  0x63   : > { %14311 = vmatprep.subr.bf16.mxu0 %v15517_v53  ;;  %v15553_v38 = vld [vmem:[%s18736_s3 + $0x198] sm:$0xff]   ;;  %v15558_v42 = vld [vmem:[%s18736_s3 + $0x1e0] sm:$0xff]  }
  0x64   : > { %14312 = vmatpush3.bf16.msra.mxu0 %v15517_v53  ;;  %v2351_v53 = vshll.u32 %v15542_v46, 16  ;;  %v2131_v46 = vrot.slane %v16304_v22, 1  ;;  %v16381_v22 = vld [vmem:[%s18736_s3 + $0x200] sm:$0xff]  }
  0x65   : > { %14352 = vmatpush3.bf16.msra.mxu1 %v15518_v45  ;;  %14313 = vmatprep.subr.bf16.mxu0 %v15523_v62  ;;  %v12301_v45 = vcombine.low %v2036_v34, %v16243_v13  ;;  %v2122_v13 = vsel %vm2117_vm1, %v2119_v55, %v2121_v4 }
  0x66   : > { %14353 = vmatprep.subr.bf16.mxu1 %v15524_v57  ;;  %v2353_v61 = vrot.slane %v2351_v53, 1  ;;  %v15562_v53 = vld [vmem:[%s18736_s3 + $0x1e8] sm:$0xff]  }
  0x67   : > { %14250 = vmatmul.mubr.bf16.gmra.mrb[32].mxu0 %v15515_v59  ;;  %v2118_v52 = vrot.slane %v12301_v45, 1  ;;  %v2359_v59 = vshll.u32 %v16275_v51, 16 }
  0x68   : > { %14290 = vmatmul.mubr.bf16.gmra.mrb[32].mxu1 %v1614_v60  ;;  %14253 = vmatprep.mubr.bf16.mxu0 %v15519_v63  ;;  %v15535_v60 = vld [vmem:[#allocation2 + $0x64] sm:$0xff]   ;;  %v2357_v1 = vor.u32 %v2355_v58, %v2353_v61 }
  0x69   : > { %14293 = vmatprep.mubr.bf16.mxu1 %v1622_v0  ;;  %14354 = vmatpush3.bf16.msra.mxu1 %v15524_v57  ;;  %v2346_v57 = vsel %vm665_vm0, %v2341_v49, %v2345_v50  ;;  %v2120_v63 = vsel %vm2117_vm1, %v2118_v52, %v2119_v55  ;;  %v2349_v0 = vor.u32 %v2347_v56, %v2345_v50  ;;  %v2361_v2 = vrot.slane %v2359_v59, 1  ;;  %v16343_v52 = vld [vmem:[#allocation2 + $0x50] sm:$0xff]  }
  0x6a   : > { %14355 = vmatprep.subr.bf16.mxu1 %v15530_v3  ;;  %14314 = vmatpush3.bf16.msra.mxu0 %v15523_v62  ;;  %v15547_v62 = vld [vmem:[#allocation2 + $0x20] sm:$0xff]  }
  0x6b   : > { %14315 = vmatprep.subr.bf16.mxu0 %v15525_v5  ;;  %v2354_v6 = vsel %vm665_vm0, %v2349_v0, %v2353_v61  ;;  %v2362_v9 = vsel %vm665_vm0, %v2357_v1, %v2361_v2  ;;  %v2371_v11 = vshrl.u32 %v15547_v62, 16  ;;  %v2125_v24 = vrot.slane %v15547_v62, 1 }
  0x6c   : > { %v2135_v61 = vrot.slane %v16327_v41, 1  ;;  %v2411_v0 = vshrl.u32 %v16327_v41, 16  ;;  %v2415_v1 = vshll.u32 %v16343_v52, 16 }
  0x6d   : > { %14356 = vmatpush3.bf16.msra.mxu1 %v15530_v3  ;;  %v16283_v3 = vld [vmem:[#allocation2 + $0x28] sm:$0xff]  }
  0x6e   : > { %14357 = vmatprep.subr.bf16.mxu1 %v15532_v8  ;;  %14316 = vmatpush3.bf16.msra.mxu0 %v15525_v5  ;;  %v2367_v5 = vshll.u32 %v15547_v62, 16  ;;  %v2375_v12 = vshll.u32 %v16283_v3, 16  ;;  %v2379_v28 = vshrl.u32 %v16283_v3, 16 }
  0x6f   : > { %14317 = vmatprep.subr.bf16.mxu0 %v15531_v16  ;;  %14254 = vmatmul.mubr.bf16.gmra.mrb[36].mxu0 %v15521_v18 }
  0x70   : > { %14294 = vmatmul.mubr.bf16.gmra.mrb[36].mxu1 %v1630_v17  ;;  %14257 = vmatprep.mubr.bf16.mxu0 %v15526_v19  ;;  %v2369_v14 = vrot.slane %v2367_v5, 1  ;;  %v2124_v17 = vsel %vm2117_vm1, %v2121_v4, %v2123_v7  ;;  %v15550_v19 = vld [vmem:[%s18736_s3 + $0x1d0] sm:$0xff]   ;;  %v2377_v21 = vrot.slane %v2375_v12, 1  ;;  %v2419_v4 = vshrl.u32 %v16343_v52, 16 }
  0x71   : > { %14297 = vmatprep.mubr.bf16.mxu1 %v1638_v20  ;;  %14358 = vmatpush3.bf16.msra.mxu1 %v15532_v8  ;;  %v2363_v8 = vshrl.u32 %v16275_v51, 16  ;;  %v2407_v51 = vshll.u32 %v16327_v41, 16  ;;  %v15572_v41 = vld [vmem:[#allocation2 + $0x1c] sm:$0xff]  }
  0x72   : > { %14359 = vmatprep.subr.bf16.mxu1 %v15538_v25  ;;  %14318 = vmatpush3.bf16.msra.mxu0 %v15531_v16  ;;  %v15545_v16 = vld [vmem:[%s18736_s3 + $0x188] sm:$0xff]   ;;  %v2373_v20 = vor.u32 %v2371_v11, %v2369_v14  ;;  %v2381_v37 = vor.u32 %v2379_v28, %v2377_v21  ;;  %v15568_v11 = vld [vmem:[%s18736_s3 + $0x1f8] sm:$0xff]  }
  0x73   : > { %14319 = vmatprep.subr.bf16.mxu0 %v15537_v27  ;;  %v2365_v18 = vor.u32 %v2363_v8, %v2361_v2  ;;  %v15563_v2 = vld [vmem:[%s18736_s3 + $0x1b0] sm:$0xff]  }
  0x74   : > { %v2378_v29 = vsel %vm665_vm0, %v2373_v20, %v2377_v21  ;;  %v3042_v20 = vld [vmem:[#allocation2 + $0xc] sm:$0xe]  ;;  %v2137_v21 = vrot.slane %v16343_v52, 1 }
  0x75   : > { %14360 = vmatpush3.bf16.msra.mxu1 %v15538_v25  ;;  %v2383_v25 = vshll.u32 %v16294_v15, 16  ;;  %v2370_v26 = vsel %vm665_vm0, %v2365_v18, %v2369_v14 }
  0x76   : > { %14425 = vmatprep.subr.bf16.mxu1 %v16262_v33  ;;  %14320 = vmatpush3.bf16.msra.mxu0 %v15537_v27  ;;  %v2127_v27 = vrot.slane %v16283_v3, 1  ;;  %v15564_v3 = vld [vmem:[%s18736_s3 + $0x1f0] sm:$0xff]  }
  0x77   : > { %14385 = vmatprep.subr.bf16.mxu0 %v16268_v39  ;;  %14258 = vmatmul.mubr.bf16.gmra.mrb[40].mxu0 %v15528_v43  ;;  %v2385_v34 = vrot.slane %v2383_v25, 1  ;;  %v2129_v43 = vrot.slane %v16294_v15, 1 }
  0x78   : > { %14298 = vmatmul.mubr.bf16.gmra.mrb[40].mxu1 %v1646_v35  ;;  %14261 = vmatprep.mubr.bf16.mxu0 %v15533_v44  ;;  %v16321_v35 = vld [vmem:[#allocation2 + $0x40] sm:$0xff]   ;;  %v2128_v36 = vsel %vm2117_vm1, %v2125_v24, %v2127_v27 }
  0x79   : > { %14301 = vmatprep.mubr.bf16.mxu1 %v1654_v40  ;;  %v2393_v40 = vrot.slane %v2391_v31, 1  ;;  %v2399_v44 = vshll.u32 %v16321_v35, 16  ;;  %v2386_v45 = vsel %vm665_vm0, %v2381_v37, %v2385_v34  ;;  %v2403_v50 = vshrl.u32 %v16321_v35, 16 }
  0x7a   : > { %v2133_v55 = vrot.slane %v16321_v35, 1  ;;  %v2132_v58 = vsel %vm2117_vm1, %v2129_v43, %v2131_v46 }
  0x7b   : > { %v2401_v56 = vrot.slane %v2399_v44, 1  ;;  %v2397_v59 = vor.u32 %v2395_v47, %v2393_v40 }
  0x7c   : > { %v2134_v12 = vsel %vm2117_vm1, %v2131_v46, %v2133_v55  ;;  %v2136_v14 = vsel %vm2117_vm1, %v2133_v55, %v2135_v61 }
  0x7d   : > { %v2405_v62 = vor.u32 %v2403_v50, %v2401_v56 }
  0x7f   : > { %14262 = vmatmul.mubr.bf16.gmra.mrb[44].mxu0 %v15535_v60  ;;  %v15559_v60 = vld [vmem:[%s18736_s3 + $0x1a8] sm:$0xff]  }
  0x80   : > { %14302 = vmatmul.mubr.bf16.gmra.mrb[44].mxu1 %v1662_v54  ;;  %14321 = vmatprep.mubr.bf16.mxu0 %v2120_v63  ;;  %v2130_v54 = vsel %vm2117_vm1, %v2127_v27, %v2129_v43  ;;  %v2409_v63 = vrot.slane %v2407_v51, 1  ;;  %v15576_v43 = vld [vmem:[#allocation2 + $0x24] sm:$0xff]  }
  0x81   : > { %14361 = vmatprep.mubr.bf16.mxu1 %v2346_v57  ;;  %v16350_v57 = vld [vmem:[#allocation2 + $0x58] sm:$0xff]   ;;  %v2753_v51 = vshll.u32 %v15576_v43, 16  ;;  %v3068_v55 = vrot.slane %v15576_v43, 1 }
  0x82   : > { %v2423_v5 = vshll.u32 %v16350_v57, 16  ;;  %v2410_v8 = vsel %vm665_vm0, %v2405_v62, %v2409_v63  ;;  %v2413_v15 = vor.u32 %v2411_v0, %v2409_v63  ;;  %v15578_v0 = vld [vmem:[%s18736_s3 + $0x208] sm:$0xff]  }
  0x87   : > { %14322 = vmatmul.mubr.bf16.vlgmr.msra.gmra.mrb[48].mxu0 %v2122_v13  ;;  %v2417_v13 = vrot.slane %v2415_v1, 1  ;;  %v15575_v1 = vld [vmem:[%s18736_s3 + $0x248] sm:$0xff]  }
  0x88   : > { %14362 = vmatmul.mubr.bf16.vlgmr.msra.gmra.mrb[48].mxu1 %v2354_v6  ;;  %14386 = vmatpush3.bf16.msra.mxu0 %v16268_v39  ;;  %v2389_v39 = vor.u32 %v2387_v30, %v2385_v34  ;;  %v2402_v6 = vsel %vm665_vm0, %v2397_v59, %v2401_v56  ;;  %v2755_v59 = vrot.slane %v2753_v51, 1 }
  0x89   : > { %14426 = vmatpush3.bf16.msra.mxu1 %v16262_v33  ;;  %14365 = vmatprep.mubr.bf16.mxu1 %v2362_v9  ;;  %v2126_v33 = vsel %vm2117_vm1, %v2123_v7, %v2125_v24  ;;  %v2624_v7 = vld [vmem:[#allocation2 + $0xc] sm:$0xf]  ;;  %v2625_v9 = vld [vmem:[#allocation2 + $0x10] sm:$0xf]  ;;  %v2427_v24 = vshrl.u32 %v16350_v57, 16  ;;  %v2418_v27 = vsel %vm665_vm0, %v2413_v15, %v2417_v13 }
  0x8a   : > { %14427 = vmatprep.subr.bf16.mxu1 %v15548_v10  ;;  %14325 = vmatprep.mubr.bf16.mxu0 %v2124_v17  ;;  %v2394_v49 = vsel %vm665_vm0, %v2389_v39, %v2393_v40  ;;  %v15567_v17 = vld [vmem:[%s18736_s3 + $0x1b8] sm:$0xff]   ;;  %v12347_v18 = vcombine.low %v2624_v7, %v2625_v9  ;;  %v12384_v31 = vcombine.low %v3042_v20, %v2625_v9  ;;  %v15580_v9 = vld [vmem:[%s18736_s3 + $0x210] sm:$0xff]  }
  0x8b   : > { %14387 = vmatprep.subr.bf16.mxu0 %v15545_v16 }
  0x8c   : > { %14388 = vmatpush3.bf16.msra.mxu0 %v15545_v16  ;;  %v2425_v16 = vrot.slane %v2423_v5, 1  ;;  %v2732_v28 = vshll.u32 %v12347_v18, 16  ;;  %v3063_v39 = vrot.slane %v12384_v31, 1  ;;  %v15586_v31 = vld [vmem:[#allocation2 + $0x4c] sm:$0xff]  }
  0x8d   : > { %14428 = vmatpush3.bf16.msra.mxu1 %v15548_v10  ;;  %14389 = vmatprep.subr.bf16.mxu0 %v15549_v23  ;;  %v15566_v10 = vld [vmem:[#allocation2 + $0x60] ss:$0 sps:$4 sm:$0x11]  }
  0x8e   : > { %14429 = vmatprep.subr.bf16.mxu1 %v15550_v19  ;;  %v2431_v25 = vshll.u32 %v15566_v10, 16  ;;  %v2429_v35 = vor.u32 %v2427_v24, %v2425_v16  ;;  %v2734_v37 = vrot.slane %v2732_v28, 1 }
  0x8f   : > { %14326 = vmatmul.mubr.bf16.gmra.mrb[52].mxu0 %v2126_v33 }
  0x90   : > { %14366 = vmatmul.mubr.bf16.gmra.mrb[52].mxu1 %v2370_v26  ;;  %14390 = vmatpush3.bf16.msra.mxu0 %v15549_v23  ;;  %v2139_v23 = vrot.slane %v16350_v57, 1  ;;  %v15570_v26 = vld [vmem:[#allocation2 + $0x14] sm:$0xff]   ;;  %v2433_v34 = vrot.slane %v2431_v25, 1  ;;  %v15577_v57 = vld [vmem:[#allocation2 + $0x2c] sm:$0xff]  }
  0x91   : > { %14369 = vmatprep.mubr.bf16.mxu1 %v2378_v29  ;;  %14430 = vmatpush3.bf16.msra.mxu1 %v15550_v19  ;;  %v2421_v19 = vor.u32 %v2419_v4, %v2417_v13  ;;  %v16389_v29 = vld [vmem:[%s18736_s3 + $0x240] sm:$0xff]   ;;  %v3064_v40 = vrot.slane %v15570_v26, 1  ;;  %v2741_v50 = vshrl.u32 %v15570_v26, 16  ;;  %v2757_v4 = vshrl.u32 %v15576_v43, 16  ;;  %v15583_v25 = vld [vmem:[%s18736_s3 + $0x258] sm:$0xff]  }
  0x92   : > { %14431 = vmatprep.subr.bf16.mxu1 %v15554_v32  ;;  %14329 = vmatprep.mubr.bf16.mxu0 %v2128_v36  ;;  %v2140_v33 = vsel %vm2117_vm1, %v2137_v21, %v2139_v23  ;;  %v2730_v36 = vshrl.u32 %v12347_v18, 16  ;;  %v2434_v44 = vsel %vm665_vm0, %v2429_v35, %v2433_v34  ;;  %v3070_v5 = vrot.slane %v15577_v57, 1  ;;  %v15585_v18 = vld [vmem:[#allocation2 + $0x44] sm:$0xff]  }
  0x93   : > { %14391 = vmatprep.subr.bf16.mxu0 %v15553_v38  ;;  %v2426_v30 = vsel %vm665_vm0, %v2421_v19, %v2425_v16  ;;  %v3065_v47 = vsel %vm2117_vm1, %v3063_v39, %v3064_v40  ;;  %v2765_v7 = vshrl.u32 %v15577_v57, 16  ;;  %v2759_v13 = vor.u32 %v2757_v4, %v2755_v59 }
  0x94   : > { %14392 = vmatpush3.bf16.msra.mxu0 %v15553_v38  ;;  %v2737_v38 = vshll.u32 %v15570_v26, 16  ;;  %v3071_v15 = vsel %vm2117_vm1, %v3068_v55, %v3070_v5  ;;  %v2785_v28 = vshll.u32 %v15585_v18, 16  ;;  %v2789_v43 = vshrl.u32 %v15585_v18, 16 }
  0x95   : > { %14432 = vmatpush3.bf16.msra.mxu1 %v15554_v32  ;;  %14393 = vmatprep.subr.bf16.mxu0 %v15557_v48  ;;  %v2138_v32 = vsel %vm2117_vm1, %v2135_v61, %v2137_v21 }
  0x96   : > { %14433 = vmatprep.subr.bf16.mxu1 %v15558_v42  ;;  %v2739_v46 = vrot.slane %v2737_v38, 1  ;;  %v16435_v38 = vld [vmem:[#allocation2 + $0x54] sm:$0xff]  }
  0x97   : > { %14330 = vmatmul.mubr.bf16.gmra.mrb[56].mxu0 %v2130_v54  ;;  %v2749_v54 = vshrl.u32 %v15572_v41, 16 }
  0x98   : > { %14370 = vmatmul.mubr.bf16.gmra.mrb[56].mxu1 %v2386_v45  ;;  %14333 = vmatprep.mubr.bf16.mxu0 %v2132_v58  ;;  %v2735_v45 = vor.u32 %v2734_v37, %v2730_v36  ;;  %v2743_v58 = vor.u32 %v2741_v50, %v2739_v46  ;;  %v2787_v36 = vrot.slane %v2785_v28, 1  ;;  %v15587_v37 = vld [vmem:[%s18736_s3 + $0x260] sm:$0xff]  }
  0x99   : > { %14373 = vmatprep.mubr.bf16.mxu1 %v2394_v49  ;;  %14434 = vmatpush3.bf16.msra.mxu1 %v15558_v42  ;;  %v2141_v42 = vrot.slane %v15566_v10, 1  ;;  %v15591_v50 = vld [vmem:[#allocation2 + $0x5c] sm:$0xff]  }
  0x9a   : > { %14435 = vmatprep.subr.bf16.mxu1 %v15562_v53  ;;  %14394 = vmatpush3.bf16.msra.mxu0 %v15557_v48  ;;  %v2745_v48 = vshll.u32 %v15572_v41, 16  ;;  %v2740_v52 = vsel %vm665_vm0, %v2735_v45, %v2739_v46  ;;  %v3078_v45 = vrot.slane %v15586_v31, 1  ;;  %v15589_v46 = vld [vmem:[%s18736_s3 + $0x268] sm:$0xff]   ;;  %v2813_v4 = vshrl.u32 %v15591_v50, 16 }
  0x9b   : > { %14395 = vmatprep.subr.bf16.mxu0 %v15559_v60  ;;  %v2142_v49 = vsel %vm2117_vm1, %v2139_v23, %v2141_v42 }
  0x9c   : > { %v2747_v56 = vrot.slane %v2745_v48, 1  ;;  %v2801_v48 = vshll.u32 %v16435_v38, 16 }
  0x9d   : > { %14436 = vmatpush3.bf16.msra.mxu1 %v15562_v53  ;;  %v3066_v53 = vrot.slane %v15572_v41, 1  ;;  %v15592_v41 = vld [vmem:[%s18736_s3 + $0x228] sm:$0xff]  }
  0x9e   : > { %14437 = vmatprep.subr.bf16.mxu1 %v15564_v3  ;;  %14396 = vmatpush3.bf16.msra.mxu0 %v15559_v60  ;;  %v15581_v60 = vld [vmem:[#allocation2 + $0x34] sm:$0xff]   ;;  %v2751_v62 = vor.u32 %v2749_v54, %v2747_v56  ;;  %v15595_v54 = vld [vmem:[#allocation2 + $0x64] sm:$0xff]  }
  0x9f   : > { %14397 = vmatprep.subr.bf16.mxu0 %v15563_v2  ;;  %14334 = vmatmul.mubr.bf16.gmra.mrb[60].mxu0 %v2134_v12  ;;  %v3067_v61 = vsel %vm2117_vm1, %v3064_v40, %v3066_v53  ;;  %v3069_v63 = vsel %vm2117_vm1, %v3066_v53, %v3068_v55  ;;  %v3072_v10 = vrot.slane %v15581_v60, 1  ;;  %v15582_v12 = vld [vmem:[#allocation2 + $0x3c] sm:$0xff]   ;;  %v2773_v20 = vshrl.u32 %v15581_v60, 16 }
  0xa0   : > { %14374 = vmatmul.mubr.bf16.gmra.mrb[60].mxu1 %v2402_v6  ;;  %14337 = vmatprep.mubr.bf16.mxu0 %v2136_v14  ;;  %v2756_v6 = vsel %vm665_vm0, %v2751_v62, %v2755_v59  ;;  %v15579_v14 = vld [vmem:[%s18736_s3 + $0x250] sm:$0xff]   ;;  %v2777_v21 = vshll.u32 %v15582_v12, 16  ;;  %v3074_v24 = vrot.slane %v15582_v12, 1  ;;  %v2793_v40 = vshll.u32 %v15586_v31, 16 }
  0xa1   : > { %14377 = vmatprep.mubr.bf16.mxu1 %v2410_v8  ;;  %14438 = vmatpush3.bf16.msra.mxu1 %v15564_v3  ;;  %v2748_v3 = vsel %vm665_vm0, %v2743_v58, %v2747_v56  ;;  %v2769_v8 = vshll.u32 %v15581_v60, 16  ;;  %v3073_v19 = vsel %vm2117_vm1, %v3070_v5, %v3072_v10  ;;  %v2791_v53 = vor.u32 %v2789_v43, %v2787_v36  ;;  %v15593_v58 = vld [vmem:[%s18736_s3 + $0x270] sm:$0xff]   ;;  %v15596_v5 = vld [vmem:[#allocation2 + $0x6c] ss:$0 sps:$4 sm:$0x11]  }
  0xa2   : > { %14439 = vmatprep.subr.bf16.mxu1 %v15568_v11  ;;  %14398 = vmatpush3.bf16.msra.mxu0 %v15563_v2  ;;  %v2761_v2 = vshll.u32 %v15577_v57, 16  ;;  %v3075_v34 = vsel %vm2117_vm1, %v3072_v10, %v3074_v24  ;;  %v2795_v51 = vrot.slane %v2793_v40, 1  ;;  %v2803_v57 = vrot.slane %v2801_v48, 1 }
  0xa3   : > { %14399 = vmatprep.subr.bf16.mxu0 %v15567_v17  ;;  %v2805_v60 = vshrl.u32 %v16435_v38, 16  ;;  %v3082_v62 = vrot.slane %v15591_v50, 1 }
  0xa5   : > { %14440 = vmatpush3.bf16.msra.mxu1 %v15568_v11  ;;  %v2763_v11 = vrot.slane %v2761_v2, 1  ;;  %v15599_v2 = vld [vmem:[#allocation2 + $0xc] sm:$0xff]   ;;  %v2807_v10 = vor.u32 %v2805_v60, %v2803_v57 }
  0xa6   : > { %14505 = vmatprep.subr.bf16.mxu1 %v16381_v22  ;;  %14400 = vmatpush3.bf16.msra.mxu0 %v15567_v17  ;;  %v2771_v17 = vrot.slane %v2769_v8, 1  ;;  %v3084_v8 = vrot.slane %v15595_v54, 1 }
  0xa7   : > { %14465 = vmatprep.subr.bf16.mxu0 %v16389_v29  ;;  %14338 = vmatmul.mubr.bf16.gmra.mrb[64].mxu0 %v2138_v32  ;;  %v2767_v16 = vor.u32 %v2765_v7, %v2763_v11  ;;  %v2764_v23 = vsel %vm665_vm0, %v2759_v13, %v2763_v11  ;;  %v15588_v32 = vld [vmem:[%s18736_s3 + $0x220] sm:$0xff]   ;;  %v3538_v13 = vshll.u32 %v15599_v2, 16 }
  0xa8   : > { %14378 = vmatmul.mubr.bf16.gmra.mrb[64].mxu1 %v2418_v27  ;;  %14341 = vmatprep.mubr.bf16.mxu0 %v2140_v33  ;;  %v2781_v27 = vshrl.u32 %v15582_v12, 16  ;;  %v2775_v33 = vor.u32 %v2773_v20, %v2771_v17  ;;  %v15600_v12 = vld [vmem:[#allocation2 + $0x14] sm:$0xff]   ;;  %v2821_v20 = vshrl.u32 %v15595_v54, 16 }
  0xa9   : > { %14381 = vmatprep.mubr.bf16.mxu1 %v2426_v30  ;;  %v2772_v26 = vsel %vm665_vm0, %v2767_v16, %v2771_v17  ;;  %v2779_v30 = vrot.slane %v2777_v21, 1  ;;  %v3085_v17 = vsel %vm2117_vm1, %v3082_v62, %v3084_v8  ;;  %v3086_v21 = vrot.slane %v15596_v5, 1 }
  0xab   : > { %v2783_v35 = vor.u32 %v2781_v27, %v2779_v30  ;;  %v2780_v42 = vsel %vm665_vm0, %v2775_v33, %v2779_v30  ;;  %v15601_v27 = vld [vmem:[#allocation2 + $0x1c] sm:$0xff]   ;;  %v3547_v33 = vshrl.u32 %v15600_v12, 16 }
  0xaf   : > { %14342 = vmatmul.mubr.bf16.gmra.mrb[68].mxu0 %v2142_v49  ;;  %v3080_v49 = vrot.slane %v16435_v38, 1 }
  0xb0   : > { %14382 = vmatmul.mubr.bf16.gmra.mrb[68].mxu1 %v2434_v44  ;;  %14401 = vmatprep.mubr.bf16.mxu0 %v2740_v52  ;;  %v2788_v44 = vsel %vm665_vm0, %v2783_v35, %v2787_v36  ;;  %v15594_v52 = vld [vmem:[%s18736_s3 + $0x230] sm:$0xff]  }
  0xb1   : > { %14441 = vmatprep.mubr.bf16.mxu1 %v3065_v47  ;;  %v2797_v47 = vshrl.u32 %v15586_v31, 16  ;;  %v3081_v59 = vsel %vm2117_vm1, %v3078_v45, %v3080_v49 }
  0xb3   : > { %v2799_v56 = vor.u32 %v2797_v47, %v2795_v51  ;;  %v15604_v47 = vld [vmem:[%s18736_s3 + $0x288] sm:$0xff]  }
  0xb7   : > { %14402 = vmatmul.mubr.bf16.vlgmr.msra.gmra.mrb[72].mxu0 %v2748_v3  ;;  %v2804_v3 = vsel %vm665_vm0, %v2799_v56, %v2803_v57  ;;  %v468_v56 = vld [vmem:[%s16094_s27 + $0x64] sm:$0xff]   ;;  %v470_v57 = vld [vmem:[%s16094_s27 + $0x6c] sm:$0xf] }
  0xb8   : > { %14442 = vmatmul.mubr.bf16.vlgmr.msra.gmra.mrb[72].mxu1 %v3067_v61  ;;  %14466 = vmatpush3.bf16.msra.mxu0 %v16389_v29  ;;  %v3076_v29 = vrot.slane %v15585_v18, 1  ;;  %v2809_v61 = vshll.u32 %v15591_v50, 16  ;;  %v2825_v18 = vshll.u32 %v15596_v5, 16  ;;  %v15609_v50 = vld [vmem:[%s18736_s3 + $0x2d0] sm:$0xff]   ;;  %516 = vst [vmem:[#allocation2 + $0x70] sm:$0xff] %v468_v56   ;;  %v16570_v56 = vld [vmem:[%s18736_s3 + $0x300] sm:$0xff]  }
  0xb9   : > { %14506 = vmatpush3.bf16.msra.mxu1 %v16381_v22  ;;  %14445 = vmatprep.mubr.bf16.mxu1 %v3069_v63  ;;  %v15584_v22 = vld [vmem:[%s18736_s3 + $0x218] sm:$0xff]   ;;  %518 = vst [vmem:[#allocation2 + $0x78] sm:$0xf] %v470_v57 }
  0xba   : > { %14507 = vmatprep.subr.bf16.mxu1 %v15578_v0  ;;  %14405 = vmatprep.mubr.bf16.mxu0 %v2756_v6  ;;  %v3077_v39 = vsel %vm2117_vm1, %v3074_v24, %v3076_v29  ;;  %v3079_v55 = vsel %vm2117_vm1, %v3076_v29, %v3078_v45  ;;  %v15598_v63 = vld [vmem:[%s18736_s3 + $0x238] sm:$0xff]   ;;  %v2811_v7 = vrot.slane %v2809_v61, 1  ;;  %v3540_v24 = vrot.slane %v3538_v13, 1 }
  0xbb   : > { %14467 = vmatprep.subr.bf16.mxu0 %v15575_v1  ;;  %v15597_v6 = vld [vmem:[%s18736_s3 + $0x278] sm:$0xff]   ;;  %v3087_v29 = vsel %vm2117_vm1, %v3084_v8, %v3086_v21 }
  0xbc   : > { %14468 = vmatpush3.bf16.msra.mxu0 %v15575_v1  ;;  %v2817_v1 = vshll.u32 %v15595_v54, 16  ;;  %v2815_v16 = vor.u32 %v2813_v4, %v2811_v7  ;;  %v15612_v4 = vld [vmem:[%s18736_s3 + $0x298] sm:$0xff]  }
  0xbd   : > { %14508 = vmatpush3.bf16.msra.mxu1 %v15578_v0  ;;  %14469 = vmatprep.subr.bf16.mxu0 %v15579_v14  ;;  %v2796_v0 = vsel %vm665_vm0, %v2791_v53, %v2795_v51 }
  0xbe   : > { %14509 = vmatprep.subr.bf16.mxu1 %v15580_v9  ;;  %v2819_v11 = vrot.slane %v2817_v1, 1 }
  0xbf   : > { %14406 = vmatmul.mubr.bf16.gmra.mrb[76].mxu0 %v2764_v23  ;;  %v3536_v23 = vshrl.u32 %v15599_v2, 16 }
  0xc0   : > { %14446 = vmatmul.mubr.bf16.gmra.mrb[76].mxu1 %v3071_v15  ;;  %14470 = vmatpush3.bf16.msra.mxu0 %v15579_v14  ;;  %v15602_v14 = vld [vmem:[%s18736_s3 + $0x280] sm:$0xff]   ;;  %v3083_v15 = vsel %vm2117_vm1, %v3080_v49, %v3082_v62  ;;  %v2823_v28 = vor.u32 %v2821_v20, %v2819_v11  ;;  %v15618_v20 = vld [vmem:[%s18736_s3 + $0x2a8] sm:$0xff]  }
  0xc1   : > { %14449 = vmatprep.mubr.bf16.mxu1 %v3073_v19  ;;  %14510 = vmatpush3.bf16.msra.mxu1 %v15580_v9  ;;  %v15603_v9 = vld [vmem:[%s18736_s3 + $0x2c0] sm:$0xff]   ;;  %v2812_v19 = vsel %vm665_vm0, %v2807_v10, %v2811_v7  ;;  %v3541_v30 = vor.u32 %v3540_v24, %v3536_v23  ;;  %v16509_v7 = vld [vmem:[#allocation2 + $0x4c] sm:$0xff]  }
  0xc2   : > { %14511 = vmatprep.subr.bf16.mxu1 %v15584_v22  ;;  %14409 = vmatprep.mubr.bf16.mxu0 %v2772_v26  ;;  %v2827_v26 = vrot.slane %v2825_v18, 1  ;;  %v16497_v62 = vld [vmem:[#allocation2 + $0x44] sm:$0xff]   ;;  %v3603_v21 = vshrl.u32 %v16509_v7, 16 }
  0xc3   : > { %14471 = vmatprep.subr.bf16.mxu0 %v15583_v25  ;;  %v15621_v18 = vld [vmem:[%s18736_s3 + $0x2e8] sm:$0xff]  }
  0xc4   : > { %14472 = vmatpush3.bf16.msra.mxu0 %v15583_v25  ;;  %v3543_v25 = vshll.u32 %v15600_v12, 16  ;;  %v2828_v35 = vsel %vm665_vm0, %v2823_v28, %v2827_v26  ;;  %v15623_v28 = vld [vmem:[%s18736_s3 + $0x2f0] sm:$0xff]  }
  0xc5   : > { %14512 = vmatpush3.bf16.msra.mxu1 %v15584_v22  ;;  %14473 = vmatprep.subr.bf16.mxu0 %v15587_v37  ;;  %v2820_v22 = vsel %vm665_vm0, %v2815_v16, %v2819_v11  ;;  %v16514_v11 = vld [vmem:[#allocation2 + $0x54] sm:$0xff]   ;;  %v16520_v16 = vld [vmem:[#allocation2 + $0x5c] sm:$0xff]  }
  0xc6   : > { %14513 = vmatprep.subr.bf16.mxu1 %v15588_v32  ;;  %v3545_v31 = vrot.slane %v3543_v25, 1 }
  0xc7   : > { %14410 = vmatmul.mubr.bf16.gmra.mrb[80].mxu0 %v2780_v42  ;;  %v16478_v42 = vld [vmem:[#allocation2 + $0x34] sm:$0xff]  }
  0xc8   : > { %14450 = vmatmul.mubr.bf16.gmra.mrb[80].mxu1 %v3075_v34  ;;  %14413 = vmatprep.mubr.bf16.mxu0 %v2788_v44  ;;  %v3551_v34 = vshll.u32 %v15601_v27, 16  ;;  %v3546_v36 = vsel %vm665_vm0, %v3541_v30, %v3545_v31  ;;  %v16538_v30 = vld [vmem:[#allocation2 + $0x64] sm:$0xff]  }
  0xc9   : > { %14453 = vmatprep.mubr.bf16.mxu1 %v3077_v39  ;;  %14514 = vmatpush3.bf16.msra.mxu1 %v15588_v32  ;;  %v15605_v32 = vld [vmem:[#allocation2 + $0x24] sm:$0xff]   ;;  %v15606_v39 = vld [vmem:[#allocation2 + $0x2c] sm:$0xff]  }
  0xca   : > { %14515 = vmatprep.subr.bf16.mxu1 %v15592_v41  ;;  %14474 = vmatpush3.bf16.msra.mxu0 %v15587_v37  ;;  %v3555_v37 = vshrl.u32 %v15601_v27, 16  ;;  %v3559_v38 = vshll.u32 %v15605_v32, 16  ;;  %v3553_v40 = vrot.slane %v3551_v34, 1  ;;  %v3567_v45 = vshll.u32 %v15606_v39, 16  ;;  %v15622_v34 = vld [vmem:[%s18736_s3 + $0x2b0] sm:$0xff]  }
  0xcb   : > { %14475 = vmatprep.subr.bf16.mxu0 %v15589_v46  ;;  %v3563_v49 = vshrl.u32 %v15605_v32, 16  ;;  %v3571_v51 = vshrl.u32 %v15606_v39, 16 }
  0xcc   : > { %v3557_v43 = vor.u32 %v3555_v37, %v3553_v40  ;;  %v3561_v44 = vrot.slane %v3559_v38, 1  ;;  %v3569_v54 = vrot.slane %v3567_v45, 1  ;;  %v3619_v45 = vshrl.u32 %v16520_v16, 16 }
  0xcd   : > { %14516 = vmatpush3.bf16.msra.mxu1 %v15592_v41  ;;  %v3549_v41 = vor.u32 %v3547_v33, %v3545_v31 }
  0xce   : > { %14517 = vmatprep.subr.bf16.mxu1 %v15594_v52  ;;  %14476 = vmatpush3.bf16.msra.mxu0 %v15589_v46  ;;  %v15607_v46 = vld [vmem:[%s18736_s3 + $0x2c8] sm:$0xff]   ;;  %v3562_v53 = vsel %vm665_vm0, %v3557_v43, %v3561_v44  ;;  %v3573_v60 = vor.u32 %v3571_v51, %v3569_v54  ;;  %v15626_v51 = vld [vmem:[%s18736_s3 + $0x2b8] sm:$0xff]  }
  0xcf   : > { %14477 = vmatprep.subr.bf16.mxu0 %v15593_v58  ;;  %14414 = vmatmul.mubr.bf16.gmra.mrb[84].mxu0 %v2796_v0  ;;  %v3554_v48 = vsel %vm665_vm0, %v3549_v41, %v3553_v40  ;;  %v15613_v0 = vld [vmem:[%s18736_s3 + $0x2d8] sm:$0xff]   ;;  %v3611_v40 = vshrl.u32 %v16514_v11, 16 }
  0xd0   : > { %14454 = vmatmul.mubr.bf16.gmra.mrb[84].mxu1 %v3079_v55  ;;  %14417 = vmatprep.mubr.bf16.mxu0 %v2804_v3  ;;  %v15611_v55 = vld [vmem:[#allocation2 + $0x3c] sm:$0xff]  }
  0xd1   : > { %14457 = vmatprep.mubr.bf16.mxu1 %v3081_v59  ;;  %14518 = vmatpush3.bf16.msra.mxu1 %v15594_v52  ;;  %v3575_v52 = vshll.u32 %v16478_v42, 16  ;;  %v15608_v59 = vld [vmem:[%s18736_s3 + $0x290] sm:$0xff]   ;;  %v3587_v5 = vshrl.u32 %v15611_v55, 16  ;;  %v15627_v41 = vld [vmem:[%s18736_s3 + $0x2f8] sm:$0xff]  }
  0xd2   : > { %14519 = vmatprep.subr.bf16.mxu1 %v15598_v63  ;;  %14478 = vmatpush3.bf16.msra.mxu0 %v15593_v58  ;;  %v3565_v58 = vor.u32 %v3563_v49, %v3561_v44 }
  0xd3   : > { %14479 = vmatprep.subr.bf16.mxu0 %v15597_v6  ;;  %v3577_v61 = vrot.slane %v3575_v52, 1 }
  0xd4   : > { %v3570_v1 = vsel %vm665_vm0, %v3565_v58, %v3569_v54 }
  0xd5   : > { %14520 = vmatpush3.bf16.msra.mxu1 %v15598_v63  ;;  %v3583_v63 = vshll.u32 %v15611_v55, 16  ;;  %v3578_v3 = vsel %vm665_vm0, %v3573_v60, %v3577_v61 }
  0xd6   : > { %14585 = vmatprep.subr.bf16.mxu1 %v15603_v9  ;;  %14480 = vmatpush3.bf16.msra.mxu0 %v15597_v6  ;;  %v3591_v6 = vshll.u32 %v16497_v62, 16 }
  0xd7   : > { %14545 = vmatprep.subr.bf16.mxu0 %v15602_v14  ;;  %14418 = vmatmul.mubr.bf16.gmra.mrb[88].mxu0 %v2812_v19  ;;  %v3585_v8 = vrot.slane %v3583_v63, 1  ;;  %v16576_v63 = vld [vmem:[%s18736_s3 + $0x340] sm:$0xff]  }
  0xd8   : > { %14458 = vmatmul.mubr.bf16.gmra.mrb[88].mxu1 %v3083_v15  ;;  %14421 = vmatprep.mubr.bf16.mxu0 %v2820_v22  ;;  %v3593_v13 = vrot.slane %v3591_v6, 1  ;;  %v3595_v15 = vshrl.u32 %v16497_v62, 16  ;;  %v3607_v22 = vshll.u32 %v16514_v11, 16  ;;  %v3627_v6 = vshrl.u32 %v16538_v30, 16 }
  0xd9   : > { %14461 = vmatprep.mubr.bf16.mxu1 %v3085_v17  ;;  %v3599_v17 = vshll.u32 %v16509_v7, 16 }
  0xda   : > { %v3597_v25 = vor.u32 %v3595_v15, %v3593_v13  ;;  %v3609_v33 = vrot.slane %v3607_v22, 1 }
  0xdb   : > { %v3601_v26 = vrot.slane %v3599_v17, 1 }
  0xdc   : > { %v3613_v58 = vor.u32 %v3611_v40, %v3609_v33 }
  0xdf   : > { %14422 = vmatmul.mubr.bf16.gmra.mrb[92].mxu0 %v2828_v35  ;;  %v16543_v35 = vld [vmem:[#allocation2 + $0x18] sm:$0xff]  }
  0xe0   : > { %14462 = vmatmul.mubr.bf16.gmra.mrb[92].mxu1 %v3087_v29  ;;  %14481 = vmatprep.mubr.bf16.mxu0 %v3546_v36  ;;  %v4435_v54 = vshll.u32 %v16543_v35, 16  ;;  %v4433_v60 = vshrl.u32 %v16543_v35, 16  ;;  %v15628_v35 = vld [vmem:[#allocation2 + $0x18] sm:$0xff]  }
  0xe1   : > { %14521 = vmatprep.mubr.bf16.mxu1 %v15599_v2  ;;  %v3579_v2 = vshrl.u32 %v16478_v42, 16 }
  0xe3   : > { %v3581_v10 = vor.u32 %v3579_v2, %v3577_v61  ;;  %v4437_v2 = vrot.slane %v4435_v54, 1 }
  0xe5   : > { %v3586_v19 = vsel %vm665_vm0, %v3581_v10, %v3585_v8  ;;  %v4438_v17 = vor.u32 %v4437_v2, %v4433_v60  ;;  %v15631_v60 = vld [vmem:[#allocation2 + $0x20] sm:$0xff]   ;;  %v15646_v2 = vld [vmem:[#allocation2 + $0x48] sm:$0xff]  }
  0xe7   : > { %14482 = vmatmul.mubr.bf16.vlgmr.msra.gmra.mrb[96].mxu0 %v3554_v48 }
  0xe8   : > { %14522 = vmatmul.mubr.bf16.vlgmr.msra.gmra.mrb[96].mxu1 %v15600_v12  ;;  %14546 = vmatpush3.bf16.msra.mxu0 %v15602_v14  ;;  %v3589_v12 = vor.u32 %v3587_v5, %v3585_v8  ;;  %v15616_v14 = vld [vmem:[%s18736_s3 + $0x2a0] sm:$0xff]  }
  0xe9   : > { %14586 = vmatpush3.bf16.msra.mxu1 %v15603_v9  ;;  %14525 = vmatprep.mubr.bf16.mxu1 %v15601_v27  ;;  %v15617_v9 = vld [vmem:[%s18736_s3 + $0x2e0] sm:$0xff]   ;;  %v3615_v27 = vshll.u32 %v16520_v16, 16 }
  0xea   : > { %14587 = vmatprep.subr.bf16.mxu1 %v15607_v46  ;;  %14485 = vmatprep.mubr.bf16.mxu0 %v3562_v53  ;;  %v3594_v23 = vsel %vm665_vm0, %v3589_v12, %v3593_v13  ;;  %v16564_v53 = vld [vmem:[#allocation2 + $0x20] sm:$0xff]   ;;  %v15632_v12 = vld [vmem:[#allocation2 + $0x28] sm:$0xff]  }
  0xeb   : > { %14547 = vmatprep.subr.bf16.mxu0 %v15604_v47  ;;  %v3617_v44 = vrot.slane %v3615_v27, 1 }
  0xec   : > { %14548 = vmatpush3.bf16.msra.mxu0 %v15604_v47 }
  0xed   : > { %14588 = vmatpush3.bf16.msra.mxu1 %v15607_v46  ;;  %14549 = vmatprep.subr.bf16.mxu0 %v15608_v59  ;;  %v3623_v46 = vshll.u32 %v16538_v30, 16  ;;  %v3618_v10 = vsel %vm665_vm0, %v3613_v58, %v3617_v44 }
  0xee   : > { %14589 = vmatprep.subr.bf16.mxu1 %v15609_v50 }
  0xef   : > { %14486 = vmatmul.mubr.bf16.gmra.mrb[100].mxu0 %v3570_v1 }
  0xf0   : > { %14526 = vmatmul.mubr.bf16.gmra.mrb[100].mxu1 %v15605_v32  ;;  %14550 = vmatpush3.bf16.msra.mxu0 %v15608_v59  ;;  %v3605_v32 = vor.u32 %v3603_v21, %v3601_v26  ;;  %v3625_v59 = vrot.slane %v3623_v46, 1 }
  0xf1   : > { %14529 = vmatprep.mubr.bf16.mxu1 %v15606_v39  ;;  %14590 = vmatpush3.bf16.msra.mxu1 %v15609_v50  ;;  %v3602_v39 = vsel %vm665_vm0, %v3597_v25, %v3601_v26  ;;  %v15625_v50 = vld [vmem:[#allocation2 + $0x6c] ss:$0 sps:$4 sm:$0x11]   ;;  %v4444_v25 = vshrl.u32 %v16564_v53, 16 }
  0xf2   : > { %14591 = vmatprep.subr.bf16.mxu1 %v15613_v0  ;;  %14489 = vmatprep.mubr.bf16.mxu0 %v3578_v3  ;;  %v3610_v49 = vsel %vm665_vm0, %v3605_v32, %v3609_v33  ;;  %v4440_v3 = vshll.u32 %v16564_v53, 16 }
  0xf3   : > { %14551 = vmatprep.subr.bf16.mxu0 %v15612_v4 }
  0xf4   : > { %14552 = vmatpush3.bf16.msra.mxu0 %v15612_v4 }
  0xf5   : > { %14592 = vmatpush3.bf16.msra.mxu1 %v15613_v0  ;;  %14553 = vmatprep.subr.bf16.mxu0 %v15616_v14 }
  0xf6   : > { %14593 = vmatprep.subr.bf16.mxu1 %v15617_v9 }
  0xf7   : > { %14490 = vmatmul.mubr.bf16.gmra.mrb[104].mxu0 %v3586_v19  ;;  %v15637_v19 = vld [vmem:[#allocation2 + $0x30] sm:$0xff]  }
  0xf8   : > { %14530 = vmatmul.mubr.bf16.gmra.mrb[104].mxu1 %v16478_v42  ;;  %14493 = vmatprep.mubr.bf16.mxu0 %v3594_v23  ;;  %v4448_v23 = vshll.u32 %v15632_v12, 16 }
  0xf9   : > { %14533 = vmatprep.mubr.bf16.mxu1 %v15611_v55  ;;  %14594 = vmatpush3.bf16.msra.mxu1 %v15617_v9 }
  0xfa   : > { %14595 = vmatprep.subr.bf16.mxu1 %v15621_v18  ;;  %14554 = vmatpush3.bf16.msra.mxu0 %v15616_v14  ;;  %v14163_v36 = vpop.f32.mrb[0].mxu0 }
  0xfb   : > { %v14203_v24 = vpop.f32.mrb[0].mxu1  ;;  %14555 = vmatprep.subr.bf16.mxu0 %v15618_v20  ;;  %v860_v38 = vpop.f32.mrb[1].mxu0  ;;  %v4450_v36 = vrot.slane %v4448_v23, 1 }
  0xfc   : > { %v1049_v29 = vpop.f32.mrb[1].mxu1  ;;  %v14164_v43 = vpop.f32.mrb[2].mxu0 }
  0xfd   : > { %v14204_v31 = vpop.f32.mrb[2].mxu1  ;;  %14596 = vmatpush3.bf16.msra.mxu1 %v15621_v18  ;;  %v16550_v42 = vadd.f32 %v1049_v29, %v860_v38  ;;  %v863_v48 = vpop.f32.mrb[3].mxu0  ;;  %v4442_v18 = vrot.slane %v4440_v3, 1  ;;  %v4456_v29 = vshll.u32 %v15637_v19, 16 }
  0xfe   : > { %v1052_v37 = vpop.f32.mrb[3].mxu1  ;;  %14597 = vmatprep.subr.bf16.mxu1 %v15623_v28  ;;  %14556 = vmatpush3.bf16.msra.mxu0 %v15618_v20  ;;  %v16555_v47 = vadd.f32 %v14204_v31, %v14164_v43 }
  0xff   : > { %14557 = vmatprep.subr.bf16.mxu0 %v15622_v34  ;;  %v16562_v52 = vadd.f32 %v1052_v37, %v863_v48  ;;  %14494 = vmatmul.mubr.bf16.gmra.mrb[108].mxu0 %v3602_v39  ;;  %v15639_v37 = vld [vmem:[#allocation2 + $0x38] sm:$0xff]   ;;  %v4446_v39 = vor.u32 %v4444_v25, %v4442_v18  ;;  %v4458_v43 = vrot.slane %v4456_v29, 1  ;;  %v4484_v25 = vshrl.u32 %v15646_v2, 16 }
 0x100   : > { %14534 = vmatmul.mubr.bf16.gmra.mrb[108].mxu1 %v16497_v62  ;;  %14497 = vmatprep.mubr.bf16.mxu0 %v3610_v49  ;;  %v3621_v62 = vor.u32 %v3619_v45, %v3617_v44  ;;  %v16600_v44 = vld [vmem:[#allocation2 + $0x40] sm:$0xff]   ;;  %v4464_v48 = vshll.u32 %v15639_v37, 16 }
 0x101   : > { %14537 = vmatprep.mubr.bf16.mxu1 %v16509_v7  ;;  %14598 = vmatpush3.bf16.msra.mxu1 %v15623_v28  ;;  %v3631_v7 = vshll.u32 %v15625_v50, 16  ;;  %v4443_v28 = vsel %vm665_vm0, %v4438_v17, %v4442_v18  ;;  %v4460_v50 = vshrl.u32 %v15637_v19, 16  ;;  %v4472_v58 = vshll.u32 %v16600_v44, 16  ;;  %v15641_v18 = vld [vmem:[%s18736_s3 + $0x350] sm:$0xff]  }
 0x102   : > { %14599 = vmatprep.subr.bf16.mxu1 %v15627_v41  ;;  %14558 = vmatpush3.bf16.msra.mxu0 %v15622_v34  ;;  %v14167_v0 = vpop.f32.mrb[4].mxu0  ;;  %v3626_v15 = vsel %vm665_vm0, %v3621_v62, %v3625_v59  ;;  %v4480_v19 = vshll.u32 %v15646_v2, 16  ;;  %v15660_v2 = vld [vmem:[%s18736_s3 + $0x328] sm:$0xff]  }
 0x103   : > { %v14207_v55 = vpop.f32.mrb[4].mxu1  ;;  %14559 = vmatprep.subr.bf16.mxu0 %v15626_v51  ;;  %v876_v5 = vpop.f32.mrb[5].mxu0  ;;  %v3633_v21 = vrot.slane %v3631_v7, 1  ;;  %v4462_v7 = vor.u32 %v4460_v50, %v4458_v43 }
 0x104   : > { %v1065_v57 = vpop.f32.mrb[5].mxu1  ;;  %v16579_v4 = vadd.f32 %v14207_v55, %v14167_v0  ;;  %v14168_v9 = vpop.f32.mrb[6].mxu0  ;;  %v15640_v55 = vld [vmem:[%s18736_s3 + $0x308] sm:$0xff]  }
 0x105   : > { %v14208_v61 = vpop.f32.mrb[6].mxu1  ;;  %14600 = vmatpush3.bf16.msra.mxu1 %v15627_v41  ;;  %v16583_v8 = vadd.f32 %v1065_v57, %v876_v5  ;;  %v879_v14 = vpop.f32.mrb[7].mxu0  ;;  %v4468_v57 = vshrl.u32 %v15639_v37, 16  ;;  %v15636_v0 = vld [vmem:[#allocation2 + $0x28] sm:$0xff]  }
 0x106   : > { %v1068_v1 = vpop.f32.mrb[7].mxu1  ;;  %14665 = vmatprep.subr.bf16.mxu1 %v16570_v56  ;;  %14560 = vmatpush3.bf16.msra.mxu0 %v15626_v51  ;;  %v16587_v13 = vadd.f32 %v14208_v61, %v14168_v9  ;;  %v15642_v9 = vld [vmem:[%s18736_s3 + $0x310] sm:$0xff]   ;;  %v4474_v14 = vrot.slane %v4472_v58, 1 }
 0x107   : > { %14625 = vmatprep.subr.bf16.mxu0 %v16576_v63  ;;  %14498 = vmatmul.mubr.bf16.gmra.mrb[112].mxu0 %v3618_v10  ;;  %v4466_v1 = vrot.slane %v4464_v48, 1  ;;  %v15653_v48 = vld [vmem:[%s18736_s3 + $0x360] sm:$0xff]  }
 0x108   : > { %14538 = vmatmul.mubr.bf16.gmra.mrb[112].mxu1 %v16514_v11  ;;  %14501 = vmatprep.mubr.bf16.mxu0 %v3626_v15  ;;  %v3629_v11 = vor.u32 %v3627_v6, %v3625_v59  ;;  %v15635_v6 = vld [vmem:[%s18736_s3 + $0x348] sm:$0xff]   ;;  %v16621_v15 = vld [vmem:[#allocation2 + $0x50] sm:$0xff]  }
 0x109   : > { %14541 = vmatprep.mubr.bf16.mxu1 %v16520_v16  ;;  %v4452_v16 = vshrl.u32 %v15632_v12, 16  ;;  %v4470_v12 = vor.u32 %v4468_v57, %v4466_v1 }
 0x10a   : > { %v14171_v26 = vpop.f32.mrb[8].mxu0  ;;  %v3634_v34 = vsel %vm665_vm0, %v3629_v11, %v3633_v21  ;;  %v15638_v21 = vld [vmem:[#allocation2 + $0x30] sm:$0xff]   ;;  %v4476_v11 = vshrl.u32 %v16600_v44, 16  ;;  %v4492_v44 = vshrl.u32 %v16621_v15, 16 }
 0x10b   : > { %v14211_v20 = vpop.f32.mrb[8].mxu1  ;;  %v892_v32 = vpop.f32.mrb[9].mxu0  ;;  %v4454_v41 = vor.u32 %v4452_v16, %v4450_v36  ;;  %v15648_v16 = vld [vmem:[%s18736_s3 + $0x318] sm:$0xff]  }
 0x10c   : > { %v1081_v22 = vpop.f32.mrb[9].mxu1  ;;  %v16594_v31 = vadd.f32 %v14211_v20, %v14171_v26  ;;  %v14172_v33 = vpop.f32.mrb[10].mxu0  ;;  %v4488_v26 = vshll.u32 %v16621_v15, 16 }
 0x10d   : > { %v14212_v24 = vpop.f32.mrb[10].mxu1  ;;  %v895_v38 = vpop.f32.mrb[11].mxu0  ;;  %v4459_v54 = vsel %vm665_vm0, %v4454_v41, %v4458_v43  ;;  %v4467_v22 = vsel %vm665_vm0, %v4462_v7, %v4466_v1  ;;  %v15643_v33 = vld [vmem:[#allocation2 + $0x38] sm:$0xff]  }
 0x10e   : > { %v1084_v27 = vpop.f32.mrb[11].mxu1  ;;  %v4490_v43 = vrot.slane %v4488_v26, 1 }
 0x10f   : > { %v16598_v40 = vadd.f32 %v1084_v27, %v895_v38  ;;  %14502 = vmatmul.mubr.bf16.gmra.mrb[116].mxu0 %v3634_v34  ;;  %v4482_v34 = vrot.slane %v4480_v19, 1  ;;  %v4478_v38 = vor.u32 %v4476_v11, %v4474_v14  ;;  %v16674_v11 = vld [vmem:[#allocation2 + $0x10] sm:$0xf] }
 0x110   : > { %14542 = vmatmul.mubr.bf16.gmra.mrb[116].mxu1 %v16538_v30  ;;  %14561 = vmatprep.mubr.bf16.mxu0 %v15628_v35  ;;  %v4451_v30 = vsel %vm665_vm0, %v4446_v39, %v4450_v36  ;;  %v15652_v35 = vld [vmem:[#allocation2 + $0x58] sm:$0xff]  }
 0x111   : > { %14601 = vmatprep.mubr.bf16.mxu1 %v4443_v28  ;;  %v15647_v39 = vld [vmem:[%s18736_s3 + $0x358] sm:$0xff]   ;;  %v4486_v41 = vor.u32 %v4484_v25, %v4482_v34  ;;  %v4496_v50 = vshll.u32 %v15652_v35, 16  ;;  %v15651_v25 = vld [vmem:[#allocation2 + $0x50] sm:$0xff]  }
 0x112   : > { %v14175_v51 = vpop.f32.mrb[12].mxu0 }
 0x113   : > { %v14215_v45 = vpop.f32.mrb[12].mxu1  ;;  %v908_v59 = vpop.f32.mrb[13].mxu0  ;;  %v4498_v7 = vrot.slane %v4496_v50, 1 }
 0x114   : > { %v1097_v46 = vpop.f32.mrb[13].mxu1  ;;  %v14176_v62 = vpop.f32.mrb[14].mxu0  ;;  %v16645_v45 = vld [vmem:[#allocation2 + $0x60] sm:$0xff]  }
 0x115   : > { %v14216_v49 = vpop.f32.mrb[14].mxu1  ;;  %v16608_v61 = vadd.f32 %v1097_v46, %v908_v59  ;;  %v911_v5 = vpop.f32.mrb[15].mxu0  ;;  %v4491_v59 = vsel %vm665_vm0, %v4486_v41, %v4490_v43 }
 0x116   : > { %v1100_v53 = vpop.f32.mrb[15].mxu1  ;;  %v16610_v3 = vadd.f32 %v14216_v49, %v14176_v62  ;;  %v15654_v49 = vld [vmem:[%s18736_s3 + $0x320] sm:$0xff]   ;;  %v4504_v62 = vshll.u32 %v16645_v45, 16 }
 0x117   : > { %v16619_v10 = vadd.f32 %v1100_v53, %v911_v5  ;;  %14562 = vmatmul.mubr.bf16.vlgmr.msra.gmra.mrb[120].mxu0 %v15631_v60  ;;  %v15645_v53 = vld [vmem:[#allocation2 + $0x40] sm:$0xff]   ;;  %v4500_v60 = vshrl.u32 %v15652_v35, 16  ;;  %v15656_v35 = vld [vmem:[#allocation2 + $0x58] sm:$0xff]  }
 0x118   : > { %14602 = vmatmul.mubr.bf16.vlgmr.msra.gmra.mrb[120].mxu1 %v4451_v30  ;;  %14626 = vmatpush3.bf16.msra.mxu0 %v16576_v63  ;;  %v4475_v63 = vsel %vm665_vm0, %v4470_v12, %v4474_v14  ;;  %v4494_v14 = vor.u32 %v4492_v44, %v4490_v43  ;;  %v4506_v19 = vrot.slane %v4504_v62, 1  ;;  %v16693_v44 = vld [vmem:[%s18737_s4] ss:$0 sm:$0xff] }
 0x119   : > { %14666 = vmatpush3.bf16.msra.mxu1 %v16570_v56  ;;  %14605 = vmatprep.mubr.bf16.mxu1 %v4459_v54  ;;  %v4483_v54 = vsel %vm665_vm0, %v4478_v38, %v4482_v34 }
 0x11a   : > { %14667 = vmatprep.subr.bf16.mxu1 %v15640_v55  ;;  %14565 = vmatprep.mubr.bf16.mxu0 %v15636_v0  ;;  %v14179_v23 = vpop.f32.mrb[16].mxu0  ;;  %v4499_v26 = vsel %vm665_vm0, %v4494_v14, %v4498_v7 }
 0x11b   : > { %v14219_v17 = vpop.f32.mrb[16].mxu1  ;;  %14627 = vmatprep.subr.bf16.mxu0 %v15635_v6  ;;  %v924_v28 = vpop.f32.mrb[17].mxu0 }
 0x11c   : > { %v1113_v56 = vpop.f32.mrb[17].mxu1  ;;  %v16631_v27 = vadd.f32 %v14219_v17, %v14179_v23  ;;  %v14180_v32 = vpop.f32.mrb[18].mxu0  ;;  %14628 = vmatpush3.bf16.msra.mxu0 %v15635_v6  ;;  %v15649_v6 = vld [vmem:[#allocation2 + $0x48] sm:$0xff]  }
 0x11d   : > { %v14220_v20 = vpop.f32.mrb[18].mxu1  ;;  %14668 = vmatpush3.bf16.msra.mxu1 %v15640_v55  ;;  %v16636_v29 = vadd.f32 %v1113_v56, %v924_v28  ;;  %v927_v37 = vpop.f32.mrb[19].mxu0  ;;  %14629 = vmatprep.subr.bf16.mxu0 %v15641_v18  ;;  %v16654_v55 = vld [vmem:[#allocation2 + $0x68] sm:$0xff]  }
 0x11e   : > { %v1116_v24 = vpop.f32.mrb[19].mxu1  ;;  %14669 = vmatprep.subr.bf16.mxu1 %v15642_v9  ;;  %v16638_v36 = vadd.f32 %v14220_v20, %v14180_v32  ;;  %v4512_v15 = vshll.u32 %v16654_v55, 16  ;;  %v4858_v17 = vld [vmem:[#allocation2 + $0xc] sm:$0xf]  ;;  %v16669_v20 = vld [vmem:[#allocation2 + $0x70] sm:$0xff]   ;;  %v4516_v32 = vshrl.u32 %v16654_v55, 16 }
 0x11f   : > { %14566 = vmatmul.mubr.bf16.gmra.mrb[124].mxu0 %v15638_v21  ;;  %v4508_v24 = vshrl.u32 %v16645_v45, 16  ;;  %v4520_v38 = vshll.u32 %v16669_v20, 16  ;;  %v16688_v41 = vcombine.low %v4858_v17, %v16674_v11  ;;  %v16695_v45 = vld [vmem:[#allocation2 + $0x78] ss:$0 sps:$4 sm:$0x11]   ;;  %v4524_v14 = vshrl.u32 %v16669_v20, 16 }
 0x120   : > { %14606 = vmatmul.mubr.bf16.gmra.mrb[124].mxu1 %v4467_v22  ;;  %14630 = vmatpush3.bf16.msra.mxu0 %v15641_v18  ;;  %v4502_v18 = vor.u32 %v4500_v60, %v4498_v7  ;;  %v15662_v22 = vld [vmem:[%s18736_s3 + $0x330] sm:$0xff]   ;;  %v4514_v28 = vrot.slane %v4512_v15, 1  ;;  %v16717_v7 = vld [vmem:[%s18736_s3 + $0x380] sm:$0xff]   ;;  %v4528_v15 = vshll.u32 %v16695_v45, 16 }
 0x121   : > { %14609 = vmatprep.mubr.bf16.mxu1 %v4475_v63  ;;  %14670 = vmatpush3.bf16.msra.mxu1 %v15642_v9  ;;  %v15655_v9 = vld [vmem:[%s18736_s3 + $0x368] sm:$0xff]  }
 0x122   : > { %14671 = vmatprep.subr.bf16.mxu1 %v15648_v16  ;;  %14569 = vmatprep.mubr.bf16.mxu0 %v15643_v33  ;;  %v14183_v57 = vpop.f32.mrb[20].mxu0  ;;  %v4507_v37 = vsel %vm665_vm0, %v4502_v18, %v4506_v19 }
 0x123   : > { %v14223_v46 = vpop.f32.mrb[20].mxu1  ;;  %14631 = vmatprep.subr.bf16.mxu0 %v15647_v39  ;;  %v940_v1 = vpop.f32.mrb[21].mxu0 }
 0x124   : > { %v1129_v30 = vpop.f32.mrb[21].mxu1  ;;  %v16658_v0 = vadd.f32 %v14223_v46, %v14183_v57  ;;  %v14184_v5 = vpop.f32.mrb[22].mxu0  ;;  %14632 = vmatpush3.bf16.msra.mxu0 %v15647_v39  ;;  %v15668_v39 = vld [vmem:[%s18736_s3 + $0x338] sm:$0xff]  }
 0x125   : > { %v14224_v51 = vpop.f32.mrb[22].mxu1  ;;  %14672 = vmatpush3.bf16.msra.mxu1 %v15648_v16  ;;  %v943_v12 = vpop.f32.mrb[23].mxu0  ;;  %14633 = vmatprep.subr.bf16.mxu0 %v15653_v48  ;;  %v15661_v16 = vld [vmem:[%s18736_s3 + $0x370] sm:$0xff]   ;;  %v15667_v30 = vld [vmem:[%s18736_s3 + $0x378] sm:$0xff]  }
 0x126   : > { %v1132_v58 = vpop.f32.mrb[23].mxu1  ;;  %14673 = vmatprep.subr.bf16.mxu1 %v15654_v49 }
 0x127   : > { %v16667_v56 = vadd.f32 %v1132_v58, %v943_v12  ;;  %14570 = vmatmul.mubr.bf16.gmra.mrb[128].mxu0 %v15645_v53  ;;  %v4518_v53 = vor.u32 %v4516_v32, %v4514_v28  ;;  %v4900_v58 = vld [vmem:[#allocation2 + $0xc] sm:$0xe] }
 0x128   : > { %14610 = vmatmul.mubr.bf16.gmra.mrb[128].mxu1 %v4483_v54  ;;  %14573 = vmatprep.mubr.bf16.mxu0 %v15649_v6  ;;  %v16702_v54 = vld [vmem:[#allocation2 + $0x14] sm:$0xff]   ;;  %v5199_v6 = vshrl.u32 %v16688_v41, 16 }
 0x129   : > { %14613 = vmatprep.mubr.bf16.mxu1 %v4491_v59  ;;  %14674 = vmatpush3.bf16.msra.mxu1 %v15654_v49  ;;  %v4510_v49 = vor.u32 %v4508_v24, %v4506_v19  ;;  %v5201_v59 = vshll.u32 %v16688_v41, 16  ;;  %v5206_v17 = vshll.u32 %v16702_v54, 16 }
 0x12a   : > { %14675 = vmatprep.subr.bf16.mxu1 %v15660_v2  ;;  %14634 = vmatpush3.bf16.msra.mxu0 %v15653_v48  ;;  %v14243_v33 = vpop.f32.mrb[24].mxu0 }
 0x12b   : > { %v14283_v21 = vpop.f32.mrb[24].mxu1  ;;  %14635 = vmatprep.subr.bf16.mxu0 %v15655_v9  ;;  %v1339_v43 = vpop.f32.mrb[25].mxu0  ;;  %v5208_v45 = vrot.slane %v5206_v17, 1 }
 0x12c   : > { %v1757_v23 = vpop.f32.mrb[25].mxu1  ;;  %v1434_v46 = vadd.f32 %v1339_v43, %v16550_v42  ;;  %v14244_v48 = vpop.f32.mrb[26].mxu0  ;;  %v4522_v42 = vrot.slane %v4520_v38, 1 }
 0x12d   : > { %v14284_v63 = vpop.f32.mrb[26].mxu1  ;;  %14676 = vmatpush3.bf16.msra.mxu1 %v15660_v2  ;;  %v1437_v50 = vadd.f32 %v14244_v48, %v16555_v47  ;;  %v1342_v51 = vpop.f32.mrb[27].mxu0  ;;  %v16709_v47 = vld [vmem:[%s18736_s3 + $0x3c0] sm:$0xff]  }
 0x12e   : > { %v1760_v34 = vpop.f32.mrb[27].mxu1  ;;  %14677 = vmatprep.subr.bf16.mxu1 %v15662_v22  ;;  %14636 = vmatpush3.bf16.msra.mxu0 %v15655_v9  ;;  %v1852_v55 = vadd.f32 %v1757_v23, %v1434_v46  ;;  %v1435_v57 = vadd.f32 %v1342_v51, %v16562_v52  ;;  %v4515_v52 = vsel %vm665_vm0, %v4510_v49, %v4514_v28  ;;  %v15658_v23 = vld [vmem:[#allocation2 + $0x60] sm:$0xff]   ;;  %v15663_v28 = vld [vmem:[#allocation2 + $0x68] sm:$0xff]   ;;  %v4982_v51 = vrot.slane %v16702_v54, 1 }
 0x12f   : > { %14637 = vmatprep.subr.bf16.mxu0 %v15661_v16  ;;  %v1855_v60 = vadd.f32 %v14284_v63, %v1437_v50  ;;  %14574 = vmatmul.mubr.bf16.gmra.mrb[132].mxu0 %v15651_v25  ;;  %v4523_v24 = vsel %vm665_vm0, %v4518_v53, %v4522_v42  ;;  %v5203_v63 = vrot.slane %v5201_v59, 1  ;;  %v5210_v53 = vshrl.u32 %v16702_v54, 16 }
 0x130   : > { %14614 = vmatmul.mubr.bf16.gmra.mrb[132].mxu1 %v4499_v26  ;;  %v1882_v1 = vadd.f32 %v16693_v44, %v1852_v55  ;;  %v1853_v2 = vadd.f32 %v1760_v34, %v1435_v57  ;;  %14577 = vmatprep.mubr.bf16.mxu0 %v15656_v35  ;;  %v16737_v35 = vld [vmem:[#allocation2 + $0x1c] sm:$0xff]  }
 0x131   : > { %14617 = vmatprep.mubr.bf16.mxu1 %v4507_v37  ;;  %14678 = vmatpush3.bf16.msra.mxu1 %v15662_v22  ;;  %v1885_v9 = vadd.f32 %v16693_v44, %v1855_v60  ;;  %v5204_v43 = vor.u32 %v5203_v63, %v5199_v6  ;;  %v5214_v55 = vshll.u32 %v16737_v35, 16  ;;  %v5218_v60 = vshrl.u32 %v16737_v35, 16  ;;  %v16755_v6 = vld [vmem:[#allocation2 + $0x2c] sm:$0xff]  }
 0x132   : > { %14679 = vmatprep.subr.bf16.mxu1 %v15668_v39  ;;  %14638 = vmatpush3.bf16.msra.mxu0 %v15661_v16  ;;  %v13364_v18 = vpack.c.bf16 %v1882_v1, %v1882_v1  ;;  %v1883_v19 = vadd.f32 %v16693_v44, %v1853_v2  ;;  %v14247_v21 = vpop.f32.mrb[28].mxu0  ;;  %v12607_v16 = vcombine.low %v4900_v58, %v16674_v11  ;;  %v4530_v11 = vrot.slane %v4528_v15, 1  ;;  %v15665_v15 = vld [vmem:[#allocation2 + $0x70] sm:$0xff]  }
 0x133   : > { %v14287_v62 = vpop.f32.mrb[28].mxu1  ;;  %14639 = vmatprep.subr.bf16.mxu0 %v15667_v30  ;;  %v13366_v25 = vpack.c.bf16 %v1885_v9, %v1885_v9  ;;  %v1440_v20 = vadd.f32 %v14247_v21, %v16579_v4  ;;  %v1355_v26 = vpop.f32.mrb[29].mxu0  ;;  %v5212_v63 = vor.u32 %v5210_v53, %v5208_v45  ;;  %v16787_v53 = vld [vmem:[%s18736_s3 + $0x388] sm:$0xff]  }
 0x134   : > { %v1773_v5 = vpop.f32.mrb[29].mxu1  ;;  %1978 = vst [vmem:[%s16724_s8] sm:$0xf] %v13364_v18  ;;  %v13365_v32 = vpack.c.bf16 %v1883_v19, %v1883_v19  ;;  %v1438_v33 = vadd.f32 %v1355_v26, %v16583_v8  ;;  %v14248_v34 = vpop.f32.mrb[30].mxu0  ;;  %v16743_v8 = vld [vmem:[#allocation2 + $0x24] sm:$0xff]   ;;  %v4984_v18 = vrot.slane %v16737_v35, 1  ;;  %v5216_v19 = vrot.slane %v5214_v55, 1 }
 0x135   : > { %v14288_v12 = vpop.f32.mrb[30].mxu1  ;;  %14680 = vmatpush3.bf16.msra.mxu1 %v15668_v39  ;;  %1980 = vst [vmem:[%s16724_s8 + $0x20] sm:$0xf] %v13366_v25  ;;  %v1858_v37 = vadd.f32 %v14287_v62, %v1440_v20  ;;  %v1441_v4 = vadd.f32 %v14248_v34, %v16587_v13  ;;  %v1358_v38 = vpop.f32.mrb[31].mxu0  ;;  %v4526_v39 = vor.u32 %v4524_v14, %v4522_v42  ;;  %v4986_v21 = vrot.slane %v16743_v8, 1 }
 0x136   : > { %v1776_v22 = vpop.f32.mrb[31].mxu1  ;;  %14745 = vmatprep.subr.bf16.mxu1 %v16709_v47  ;;  %14640 = vmatpush3.bf16.msra.mxu0 %v15667_v30  ;;  %1979 = vst [vmem:[%s16724_s8 + $0x8] sm:$0xf] %v13365_v32  ;;  %v1856_v41 = vadd.f32 %v1773_v5, %v1438_v33  ;;  %v4981_v30 = vrot.slane %v12607_v16, 1  ;;  %v5209_v5 = vsel %vm665_vm0, %v5204_v43, %v5208_v45  ;;  %v4988_v33 = vrot.slane %v16755_v6, 1  ;;  %v471_v43 = vld [vmem:[%s16094_s27 + $0x70] sm:$0xff]  }
 0x137   : > { %14705 = vmatprep.subr.bf16.mxu0 %v16717_v7  ;;  %v1888_v46 = vadd.f32 %v16693_v44, %v1858_v37  ;;  %v1859_v48 = vadd.f32 %v14288_v12, %v1441_v4  ;;  %14578 = vmatmul.mubr.bf16.gmra.mrb[136].mxu0 %v15658_v23  ;;  %v4531_v59 = vsel %vm665_vm0, %v4526_v39, %v4530_v11  ;;  %v5226_v37 = vshrl.u32 %v16743_v8, 16 }
 0x138   : > { %14618 = vmatmul.mubr.bf16.gmra.mrb[136].mxu1 %v4515_v52  ;;  %v1886_v13 = vadd.f32 %v16693_v44, %v1856_v41  ;;  %14581 = vmatprep.mubr.bf16.mxu0 %v15663_v28  ;;  %v5222_v52 = vshll.u32 %v16743_v8, 16  ;;  %v5220_v20 = vor.u32 %v5218_v60, %v5216_v19  ;;  %v5230_v28 = vshll.u32 %v16755_v6, 16  ;;  %519 = vst [vmem:[#allocation2 + $0x7c] sm:$0xff] %v471_v43  }
 0x139   : > { %14621 = vmatprep.mubr.bf16.mxu1 %v4523_v24  ;;  %v13368_v57 = vpack.c.bf16 %v1888_v46, %v1888_v46  ;;  %v1889_v42 = vadd.f32 %v16693_v44, %v1859_v48  ;;  %v4983_v24 = vsel %vm2117_vm1, %v4981_v30, %v4982_v51  ;;  %v5217_v39 = vsel %vm665_vm0, %v5212_v63, %v5216_v19  ;;  %v479_v63 = vld [vmem:[%s16094_s27 + $0x90] sm:$0xff]  }
 0x13a   : > { %v13367_v62 = vpack.c.bf16 %v1886_v13, %v1886_v13  ;;  %v14251_v1 = vpop.f32.mrb[32].mxu0  ;;  %v5224_v26 = vrot.slane %v5222_v52, 1  ;;  %v5234_v11 = vshrl.u32 %v16755_v6, 16  ;;  %v5232_v30 = vrot.slane %v5230_v28, 1  ;;  %v473_v13 = vld [vmem:[%s16094_s27 + $0x78] sm:$0xff]   ;;  %v475_v52 = vld [vmem:[%s16094_s27 + $0x80] sm:$0xff]  }
 0x13b   : > { %v14291_v49 = vpop.f32.mrb[32].mxu1  ;;  %1982 = vst [vmem:[%s16724_s8 + $0x40] sm:$0xf] %v13368_v57  ;;  %v13369_v9 = vpack.c.bf16 %v1889_v42, %v1889_v42  ;;  %v1444_v12 = vadd.f32 %v14251_v1, %v16594_v31  ;;  %v1371_v14 = vpop.f32.mrb[33].mxu0  ;;  %v16766_v31 = vld [vmem:[#allocation2 + $0x34] sm:$0xff]   ;;  %521 = vst [vmem:[#allocation2 + $0x84] sm:$0xff] %v473_v13  }
 0x13c   : > { %v1789_v50 = vpop.f32.mrb[33].mxu1  ;;  %1981 = vst [vmem:[%s16724_s8 + $0x28] sm:$0xf] %v13367_v62  ;;  %v14252_v17 = vpop.f32.mrb[34].mxu0  ;;  %v5238_v41 = vshll.u32 %v16766_v31, 16  ;;  %v4990_v55 = vrot.slane %v16766_v31, 1  ;;  %v5228_v60 = vor.u32 %v5226_v37, %v5224_v26  ;;  %v5236_v54 = vor.u32 %v5234_v11, %v5232_v30 }
 0x13d   : > { %v14292_v58 = vpop.f32.mrb[34].mxu1  ;;  %1983 = vst [vmem:[%s16724_s8 + $0x48] sm:$0xf] %v13369_v9  ;;  %v1862_v22 = vadd.f32 %v14291_v49, %v1444_v12  ;;  %v1374_v23 = vpop.f32.mrb[35].mxu0  ;;  %v5225_v49 = vsel %vm665_vm0, %v5220_v20, %v5224_v26  ;;  %v16797_v62 = vld [vmem:[%s18736_s3 + $0x3d0] sm:$0xff]   ;;  %v16799_v1 = vld [vmem:[#allocation2 + $0x3c] sm:$0xff]   ;;  %v4989_v17 = vsel %vm2117_vm1, %v4986_v21, %v4988_v33 }
 0x13e   : > { %v1792_v2 = vpop.f32.mrb[35].mxu1  ;;  %v1443_v25 = vadd.f32 %v1374_v23, %v16598_v40  ;;  %v15678_v40 = vld [vmem:[%s18736_s3 + $0x3c8] sm:$0xff]   ;;  %523 = vst [vmem:[#allocation2 + $0x8c] sm:$0xff] %v475_v52   ;;  %v5246_v8 = vshll.u32 %v16799_v1, 16  ;;  %527 = vst [vmem:[#allocation2 + $0x9c] sm:$0xff] %v479_v63   ;;  %v5250_v37 = vshrl.u32 %v16799_v1, 16 }
 0x13f   : > { %v1892_v16 = vadd.f32 %v16693_v44, %v1862_v22  ;;  %14582 = vmatmul.mubr.bf16.gmra.mrb[140].mxu0 %v15665_v15  ;;  %v477_v9 = vld [vmem:[%s16094_s27 + $0x88] sm:$0xff]   ;;  %v16848_v11 = vld [vmem:[%s18736_s3 + $0x398] sm:$0xff]  }
 0x140   : > { %14622 = vmatmul.mubr.bf16.gmra.mrb[140].mxu1 %v4531_v59  ;;  %v1861_v34 = vadd.f32 %v1792_v2, %v1443_v25  ;;  %14641 = vmatprep.mubr.bf16.mxu0 %v4983_v24  ;;  %v4985_v59 = vsel %vm2117_vm1, %v4982_v51, %v4984_v18  ;;  %v5240_v51 = vrot.slane %v5238_v41, 1  ;;  %v16810_v15 = vld [vmem:[#allocation2 + $0x44] sm:$0xff]   ;;  %525 = vst [vmem:[#allocation2 + $0x94] sm:$0xff] %v477_v9   ;;  %v16837_v28 = vld [vmem:[#allocation2 + $0x4c] sm:$0xff]   ;;  %v15684_v41 = vld [vmem:[%s18736_s3 + $0x3d8] sm:$0xff]  }
 0x141   : > { %14681 = vmatprep.mubr.bf16.mxu1 %v5209_v5  ;;  %v13371_v4 = vpack.c.bf16 %v1892_v16, %v1892_v16  ;;  %v5233_v24 = vsel %vm665_vm0, %v5228_v60, %v5232_v30  ;;  %v5254_v6 = vshll.u32 %v16810_v15, 16  ;;  %v483_v60 = vld [vmem:[%s16094_s27 + $0xa0] sm:$0xff]   ;;  %v5258_v52 = vshrl.u32 %v16810_v15, 16 }
 0x142   : > { %v1891_v45 = vadd.f32 %v16693_v44, %v1861_v34  ;;  %v14255_v46 = vpop.f32.mrb[36].mxu0  ;;  %v5241_v26 = vsel %vm665_vm0, %v5236_v54, %v5240_v51  ;;  %531 = vst [vmem:[#allocation2 + $0xac] sm:$0xff] %v483_v60   ;;  %v15687_v9 = vld [vmem:[%s18736_s3 + $0x3a0] sm:$0xff]  }
 0x143   : > { %v14295_v32 = vpop.f32.mrb[36].mxu1  ;;  %1985 = vst [vmem:[%s16724_s8 + $0x68] sm:$0xf] %v13371_v4  ;;  %v1387_v50 = vpop.f32.mrb[37].mxu0  ;;  %v16887_v63 = vld [vmem:[#allocation2 + $0x64] sm:$0xff]  }
 0x144   : > { %v1805_v35 = vpop.f32.mrb[37].mxu1  ;;  %v13370_v57 = vpack.c.bf16 %v1891_v45, %v1891_v45  ;;  %v1446_v42 = vadd.f32 %v1387_v50, %v16608_v61  ;;  %v14256_v58 = vpop.f32.mrb[38].mxu0  ;;  %v4987_v61 = vsel %vm2117_vm1, %v4984_v18, %v4986_v21  ;;  %v5242_v18 = vshrl.u32 %v16766_v31, 16  ;;  %v481_v21 = vld [vmem:[%s16094_s27 + $0x98] sm:$0xff]  }
 0x145   : > { %v14296_v38 = vpop.f32.mrb[38].mxu1  ;;  %v1449_v2 = vadd.f32 %v14256_v58, %v16610_v3  ;;  %v1390_v5 = vpop.f32.mrb[39].mxu0  ;;  %529 = vst [vmem:[#allocation2 + $0xa4] sm:$0xff] %v481_v21  }
 0x146   : > { %v1808_v48 = vpop.f32.mrb[39].mxu1  ;;  %1984 = vst [vmem:[%s16724_s8 + $0x60] sm:$0xf] %v13370_v57  ;;  %v1864_v12 = vadd.f32 %v1805_v35, %v1446_v42  ;;  %v1447_v14 = vadd.f32 %v1390_v5, %v16619_v10  ;;  %v16820_v10 = vld [vmem:[%s18736_s3 + $0x390] sm:$0xff]   ;;  %v5262_v57 = vshll.u32 %v16837_v28, 16 }
 0x147   : > { %v1867_v3 = vadd.f32 %v14296_v38, %v1449_v2  ;;  %14642 = vmatmul.mubr.bf16.vlgmr.msra.gmra.mrb[144].mxu0 %v4985_v59  ;;  %v4992_v38 = vrot.slane %v16799_v1, 1  ;;  %v5256_v59 = vrot.slane %v5254_v6, 1 }
 0x148   : > { %14682 = vmatmul.mubr.bf16.vlgmr.msra.gmra.mrb[144].mxu1 %v5217_v39  ;;  %v1894_v19 = vadd.f32 %v16693_v44, %v1864_v12  ;;  %v1865_v22 = vadd.f32 %v1808_v48, %v1447_v14  ;;  %14706 = vmatpush3.bf16.msra.mxu0 %v16717_v7  ;;  %v4991_v7 = vsel %vm2117_vm1, %v4988_v33, %v4990_v55  ;;  %v4994_v48 = vrot.slane %v16810_v15, 1 }
 0x149   : > { %14746 = vmatpush3.bf16.msra.mxu1 %v16709_v47  ;;  %14685 = vmatprep.mubr.bf16.mxu1 %v5225_v49  ;;  %v1897_v25 = vadd.f32 %v16693_v44, %v1867_v3  ;;  %v5244_v39 = vor.u32 %v5242_v18, %v5240_v51  ;;  %v16857_v49 = vld [vmem:[#allocation2 + $0x54] sm:$0xff]   ;;  %v485_v18 = vld [vmem:[%s16094_s27 + $0xa8] sm:$0xff]  }
 0x14a   : > { %14747 = vmatprep.subr.bf16.mxu1 %v15678_v40  ;;  %14645 = vmatprep.mubr.bf16.mxu0 %v4987_v61  ;;  %v13372_v16 = vpack.c.bf16 %v1894_v19, %v1894_v19  ;;  %v1895_v32 = vadd.f32 %v16693_v44, %v1865_v22  ;;  %v14259_v34 = vpop.f32.mrb[40].mxu0  ;;  %v15688_v61 = vld [vmem:[%s18736_s3 + $0x3e0] sm:$0xff]   ;;  %v5270_v12 = vshll.u32 %v16857_v49, 16  ;;  %533 = vst [vmem:[#allocation2 + $0xb4] sm:$0xff] %v485_v18  }
 0x14b   : > { %v14299_v47 = vpop.f32.mrb[40].mxu1  ;;  %14707 = vmatprep.subr.bf16.mxu0 %v16787_v53  ;;  %v1452_v33 = vadd.f32 %v14259_v34, %v16631_v27  ;;  %v1403_v4 = vpop.f32.mrb[41].mxu0  ;;  %v5248_v27 = vrot.slane %v5246_v8, 1  ;;  %v5266_v8 = vshrl.u32 %v16837_v28, 16  ;;  %v4995_v6 = vsel %vm2117_vm1, %v4992_v38, %v4994_v48  ;;  %v16958_v18 = vld [vmem:[#allocation2 + $0x20] sm:$0xff]  }
 0x14c   : > { %v1821_v23 = vpop.f32.mrb[41].mxu1  ;;  %1986 = vst [vmem:[%s16724_s8 + $0x80] sm:$0xf] %v13372_v16  ;;  %v13373_v43 = vpack.c.bf16 %v1895_v32, %v1895_v32  ;;  %v1450_v45 = vadd.f32 %v1403_v4, %v16636_v29  ;;  %v14260_v46 = vpop.f32.mrb[42].mxu0  ;;  %14708 = vmatpush3.bf16.msra.mxu0 %v16787_v53  ;;  %v4996_v29 = vrot.slane %v16837_v28, 1  ;;  %v16864_v53 = vld [vmem:[#allocation2 + $0x5c] sm:$0xff]  }
 0x14d   : > { %v14300_v20 = vpop.f32.mrb[42].mxu1  ;;  %14748 = vmatpush3.bf16.msra.mxu1 %v15678_v40  ;;  %v13374_v40 = vpack.c.bf16 %v1897_v25, %v1897_v25  ;;  %v1870_v30 = vadd.f32 %v14299_v47, %v1452_v33  ;;  %v1453_v13 = vadd.f32 %v14260_v46, %v16638_v36  ;;  %v1406_v50 = vpop.f32.mrb[43].mxu0  ;;  %14709 = vmatprep.subr.bf16.mxu0 %v16820_v10  ;;  %v4998_v32 = vrot.slane %v16857_v49, 1  ;;  %v5487_v46 = vld [vmem:[#allocation2 + $0x18] sm:$0xf]  ;;  %v16967_v28 = vld [vmem:[%s18736_s3] sm:$0xff]  }
 0x14e   : > { %v1824_v35 = vpop.f32.mrb[43].mxu1  ;;  %14749 = vmatprep.subr.bf16.mxu1 %v16797_v62  ;;  %1987 = vst [vmem:[%s16724_s8 + $0x88] sm:$0xf] %v13373_v43  ;;  %v1868_v42 = vadd.f32 %v1821_v23, %v1450_v45  ;;  %v5252_v58 = vor.u32 %v5250_v37, %v5248_v27  ;;  %v5272_v34 = vrot.slane %v5270_v12, 1  ;;  %v5000_v31 = vrot.slane %v16864_v53, 1  ;;  %v15693_v45 = vld [vmem:[%s18736_s3 + $0x3b0] sm:$0xff]  }
 0x14f   : > { %1988 = vst [vmem:[%s16724_s8 + $0xa0] sm:$0xf] %v13374_v40  ;;  %v1900_v2 = vadd.f32 %v16693_v44, %v1870_v30  ;;  %v1871_v36 = vadd.f32 %v14300_v20, %v1453_v13  ;;  %14646 = vmatmul.mubr.bf16.gmra.mrb[148].mxu0 %v4989_v17  ;;  %v5264_v17 = vrot.slane %v5262_v57, 1  ;;  %v5260_v40 = vor.u32 %v5258_v52, %v5256_v59  ;;  %v16920_v43 = vld [vmem:[#allocation2 + $0x6c] ss:$0 sps:$4 sm:$0x11]  }
 0x150   : > { %14686 = vmatmul.mubr.bf16.gmra.mrb[148].mxu1 %v5233_v24  ;;  %v1898_v54 = vadd.f32 %v16693_v44, %v1868_v42  ;;  %14710 = vmatpush3.bf16.msra.mxu0 %v16820_v10  ;;  %v5278_v10 = vshll.u32 %v16864_v53, 16  ;;  %v5257_v24 = vsel %vm665_vm0, %v5252_v58, %v5256_v59  ;;  %v5002_v13 = vrot.slane %v16887_v63, 1  ;;  %v16928_v50 = vld [vmem:[#allocation2 + $0x1c] sm:$0xf] }
 0x151   : > { %14689 = vmatprep.mubr.bf16.mxu1 %v5241_v26  ;;  %14750 = vmatpush3.bf16.msra.mxu1 %v16797_v62  ;;  %v5249_v62 = vsel %vm665_vm0, %v5244_v39, %v5248_v27  ;;  %v13376_v14 = vpack.c.bf16 %v1900_v2, %v1900_v2  ;;  %v1901_v3 = vadd.f32 %v16693_v44, %v1871_v36  ;;  %v15692_v26 = vld [vmem:[%s18736_s3 + $0x3e8] sm:$0xff]   ;;  %v5290_v59 = vshrl.u32 %v16887_v63, 16  ;;  %v15698_v52 = vld [vmem:[%s18736_s3 + $0x3f8] sm:$0xff]  }
 0x152   : > { %14751 = vmatprep.subr.bf16.mxu1 %v15684_v41  ;;  %14649 = vmatprep.mubr.bf16.mxu0 %v4991_v7  ;;  %v13375_v19 = vpack.c.bf16 %v1898_v54, %v1898_v54  ;;  %v14263_v22 = vpop.f32.mrb[44].mxu0  ;;  %v4993_v7 = vsel %vm2117_vm1, %v4990_v55, %v4992_v38  ;;  %v5274_v55 = vshrl.u32 %v16857_v49, 16  ;;  %v16913_v33 = vrot.slane %v5278_v10, 1  ;;  %v487_v54 = vld [vmem:[%s16094_s27 + $0xb0] sm:$0xff]  }
 0x153   : > { %v14303_v5 = vpop.f32.mrb[44].mxu1  ;;  %14711 = vmatprep.subr.bf16.mxu0 %v16848_v11  ;;  %1990 = vst [vmem:[%s16724_s8 + $0xc0] sm:$0xf] %v13376_v14  ;;  %v13377_v21 = vpack.c.bf16 %v1901_v3, %v1901_v3  ;;  %v1456_v25 = vadd.f32 %v14263_v22, %v16658_v0  ;;  %v1419_v20 = vpop.f32.mrb[45].mxu0  ;;  %v15689_v0 = vld [vmem:[%s18736_s3 + $0x3a8] sm:$0xff]   ;;  %v5268_v39 = vor.u32 %v5266_v8, %v5264_v17  ;;  %535 = vst [vmem:[#allocation2 + $0xbc] sm:$0xff] %v487_v54  }
 0x154   : > { %v1837_v51 = vpop.f32.mrb[45].mxu1  ;;  %1989 = vst [vmem:[%s16724_s8 + $0xa8] sm:$0xf] %v13375_v19  ;;  %v14264_v16 = vpop.f32.mrb[46].mxu0  ;;  %14712 = vmatpush3.bf16.msra.mxu0 %v16848_v11  ;;  %v15694_v11 = vld [vmem:[%s18736_s3 + $0x3f0] sm:$0xff]   ;;  %v5265_v58 = vsel %vm665_vm0, %v5260_v40, %v5264_v17  ;;  %v5294_v15 = vshll.u32 %v16920_v43, 16  ;;  %v4999_v17 = vsel %vm2117_vm1, %v4996_v29, %v4998_v32  ;;  %v5276_v10 = vor.u32 %v5274_v55, %v5272_v34 }
 0x155   : > { %v14304_v47 = vpop.f32.mrb[46].mxu1  ;;  %14752 = vmatpush3.bf16.msra.mxu1 %v15684_v41  ;;  %1991 = vst [vmem:[%s16724_s8 + $0xc8] sm:$0xf] %v13377_v21  ;;  %v1874_v35 = vadd.f32 %v14303_v5, %v1456_v25  ;;  %v1422_v37 = vpop.f32.mrb[47].mxu0  ;;  %14713 = vmatprep.subr.bf16.mxu0 %v15687_v9  ;;  %v5286_v41 = vshll.u32 %v16887_v63, 16  ;;  %v5273_v5 = vsel %vm665_vm0, %v5268_v39, %v5272_v34  ;;  %v16974_v20 = vld [vmem:[%s18736_s3 + $0x40] sm:$0xff]  }
 0x156   : > { %v1840_v23 = vpop.f32.mrb[47].mxu1  ;;  %14753 = vmatprep.subr.bf16.mxu1 %v15688_v61  ;;  %v1455_v4 = vadd.f32 %v1422_v37, %v16667_v56  ;;  %v5282_v56 = vshrl.u32 %v16864_v53, 16  ;;  %v5905_v19 = vld [vmem:[#allocation2 + $0x18] sm:$0xe]  ;;  %v5281_v25 = vsel %vm665_vm0, %v5276_v10, %v16913_v33  ;;  %v5600_v37 = vshll.u32 %v16958_v18, 16 }
 0x157   : > { %v1904_v1 = vadd.f32 %v16693_v44, %v1874_v35  ;;  %14650 = vmatmul.mubr.bf16.gmra.mrb[152].mxu0 %v4993_v7  ;;  %v5001_v35 = vsel %vm2117_vm1, %v4998_v32, %v5000_v31  ;;  %v5296_v32 = vrot.slane %v5294_v15, 1  ;;  %v5004_v53 = vrot.slane %v16920_v43, 1 }
 0x158   : > { %14690 = vmatmul.mubr.bf16.gmra.mrb[152].mxu1 %v5249_v62  ;;  %v1873_v27 = vadd.f32 %v1840_v23, %v1455_v4  ;;  %14653 = vmatprep.mubr.bf16.mxu0 %v4995_v6  ;;  %v4997_v62 = vsel %vm2117_vm1, %v4994_v48, %v4996_v29  ;;  %v12653_v48 = vcombine.low %v5487_v46, %v16928_v50  ;;  %v5604_v54 = vshrl.u32 %v16958_v18, 16 }
 0x159   : > { %14693 = vmatprep.mubr.bf16.mxu1 %v5257_v24  ;;  %14754 = vmatpush3.bf16.msra.mxu1 %v15688_v61  ;;  %v13379_v57 = vpack.c.bf16 %v1904_v1, %v1904_v1  ;;  %v5288_v61 = vrot.slane %v5286_v41, 1  ;;  %v5284_v23 = vor.u32 %v5282_v56, %v16913_v33  ;;  %v5003_v33 = vsel %vm2117_vm1, %v5000_v31, %v5002_v13  ;;  %v15702_v31 = vld [vmem:[#allocation2 + $0x28] sm:$0xff]  }
 0x15a   : > { %14755 = vmatprep.subr.bf16.mxu1 %v15692_v26  ;;  %14714 = vmatpush3.bf16.msra.mxu0 %v15687_v9  ;;  %v1903_v60 = vadd.f32 %v16693_v44, %v1873_v27  ;;  %v14323_v2 = vpop.f32.mrb[48].mxu0  ;;  %v15697_v44 = vld [vmem:[%s18736_s3 + $0x3b8] sm:$0xff]   ;;  %v5595_v8 = vshll.u32 %v12653_v48, 16  ;;  %v5602_v56 = vrot.slane %v5600_v37, 1  ;;  %v16999_v27 = vld [vmem:[#allocation2 + $0x30] sm:$0xff]   ;;  %v5608_v43 = vshll.u32 %v15702_v31, 16 }
 0x15b   : > { %v14363_v38 = vpop.f32.mrb[48].mxu1  ;;  %14715 = vmatprep.subr.bf16.mxu0 %v15689_v0  ;;  %1993 = vst [vmem:[%s16724_s8 + $0xe8] sm:$0xf] %v13379_v57  ;;  %v2237_v51 = vpop.f32.mrb[49].mxu0  ;;  %v5289_v16 = vsel %vm665_vm0, %v5284_v23, %v5288_v61  ;;  %v5292_v4 = vor.u32 %v5290_v59, %v5288_v61  ;;  %v5005_v61 = vsel %vm2117_vm1, %v5002_v13, %v5004_v53  ;;  %v5931_v15 = vrot.slane %v16999_v27, 1 }
 0x15c   : > { %v2529_v30 = vpop.f32.mrb[49].mxu1  ;;  %v13378_v9 = vpack.c.bf16 %v1903_v60, %v1903_v60  ;;  %v14324_v14 = vpop.f32.mrb[50].mxu0  ;;  %v5597_v41 = vrot.slane %v5595_v8, 1  ;;  %v5927_v38 = vrot.slane %v16958_v18, 1  ;;  %v5610_v13 = vrot.slane %v5608_v43, 1  ;;  %v17020_v8 = vld [vmem:[#allocation2 + $0x40] sm:$0xff]  }
 0x15d   : > { %v14364_v42 = vpop.f32.mrb[50].mxu1  ;;  %14756 = vmatpush3.bf16.msra.mxu1 %v15692_v26  ;;  %v16947_v12 = vadd.f32 %v2529_v30, %v2237_v51  ;;  %v2240_v47 = vpop.f32.mrb[51].mxu0  ;;  %v5929_v51 = vrot.slane %v15702_v31, 1  ;;  %v5620_v18 = vshrl.u32 %v16999_v27, 16 }
 0x15e   : > { %v2532_v36 = vpop.f32.mrb[51].mxu1  ;;  %14757 = vmatprep.subr.bf16.mxu1 %v15694_v11  ;;  %14716 = vmatpush3.bf16.msra.mxu0 %v15689_v0  ;;  %v16951_v3 = vadd.f32 %v14364_v42, %v14324_v14  ;;  %1992 = vst [vmem:[%s16724_s8 + $0xe0] sm:$0xf] %v13378_v9  ;;  %v12690_v0 = vcombine.low %v5905_v19, %v16928_v50  ;;  %v17002_v42 = vld [vmem:[#allocation2 + $0x38] sm:$0xff]   ;;  %v5612_v9 = vshrl.u32 %v15702_v31, 16  ;;  %v5636_v31 = vshrl.u32 %v17020_v8, 16 }
 0x15f   : > { %14717 = vmatprep.subr.bf16.mxu0 %v15693_v45  ;;  %v16961_v22 = vadd.f32 %v2532_v36, %v2240_v47  ;;  %14654 = vmatmul.mubr.bf16.gmra.mrb[156].mxu0 %v4997_v62  ;;  %v5297_v50 = vsel %vm665_vm0, %v5292_v4, %v5296_v32  ;;  %v5616_v62 = vshll.u32 %v16999_v27, 16  ;;  %v5933_v19 = vrot.slane %v17002_v42, 1  ;;  %v17051_v27 = vld [vmem:[#allocation2 + $0x50] sm:$0xff]  }
 0x160   : > { %14694 = vmatmul.mubr.bf16.gmra.mrb[156].mxu1 %v5265_v58  ;;  %14657 = vmatprep.mubr.bf16.mxu0 %v4999_v17  ;;  %v5926_v1 = vrot.slane %v12690_v0, 1  ;;  %v5606_v17 = vor.u32 %v5604_v54, %v5602_v56  ;;  %v5628_v4 = vshrl.u32 %v17002_v42, 16 }
 0x161   : > { %14697 = vmatprep.mubr.bf16.mxu1 %v5273_v5  ;;  %14758 = vmatpush3.bf16.msra.mxu1 %v15694_v11  ;;  %v5593_v11 = vshrl.u32 %v12653_v48, 16  ;;  %v5624_v48 = vshll.u32 %v17002_v42, 16  ;;  %v5618_v10 = vrot.slane %v5616_v62, 1  ;;  %v5934_v42 = vsel %vm2117_vm1, %v5931_v15, %v5933_v19  ;;  %v15713_v62 = vld [vmem:[%s18736_s3 + $0x58] sm:$0xff]  }
 0x162   : > { %14759 = vmatprep.subr.bf16.mxu1 %v15698_v52  ;;  %14718 = vmatpush3.bf16.msra.mxu0 %v15693_v45  ;;  %v14327_v7 = vpop.f32.mrb[52].mxu0  ;;  %v5928_v60 = vsel %vm2117_vm1, %v5926_v1, %v5927_v38 }
 0x163   : > { %v14367_v24 = vpop.f32.mrb[52].mxu1  ;;  %14719 = vmatprep.subr.bf16.mxu0 %v15697_v44  ;;  %v2253_v55 = vpop.f32.mrb[53].mxu0  ;;  %v5598_v57 = vor.u32 %v5597_v41, %v5593_v11  ;;  %v5632_v41 = vshll.u32 %v17020_v8, 16 }
 0x164   : > { %v2545_v29 = vpop.f32.mrb[53].mxu1  ;;  %v16978_v34 = vadd.f32 %v14367_v24, %v14327_v7  ;;  %v14328_v40 = vpop.f32.mrb[54].mxu0  ;;  %v5930_v24 = vsel %vm2117_vm1, %v5927_v38, %v5929_v51  ;;  %v5932_v7 = vsel %vm2117_vm1, %v5929_v51, %v5931_v15  ;;  %v15710_v38 = vld [vmem:[%s18736_s3 + $0x10] sm:$0xff]  }
 0x165   : > { %v14368_v21 = vpop.f32.mrb[54].mxu1  ;;  %14760 = vmatpush3.bf16.msra.mxu1 %v15698_v52  ;;  %v16987_v6 = vadd.f32 %v2545_v29, %v2253_v55  ;;  %v2256_v49 = vpop.f32.mrb[55].mxu0  ;;  %v5603_v52 = vsel %vm665_vm0, %v5598_v57, %v5602_v56  ;;  %v5614_v29 = vor.u32 %v5612_v9, %v5610_v13  ;;  %v15705_v55 = vld [vmem:[%s18736_s3 + $0x48] sm:$0xff]   ;;  %v5622_v56 = vor.u32 %v5620_v18, %v5618_v10 }
 0x166   : > { %v2548_v26 = vpop.f32.mrb[55].mxu1  ;;  %14825 = vmatprep.subr.bf16.mxu1 %v16967_v28  ;;  %14720 = vmatpush3.bf16.msra.mxu0 %v15697_v44  ;;  %v16994_v39 = vadd.f32 %v14368_v21, %v14328_v40  ;;  %v5652_v18 = vshrl.u32 %v17051_v27, 16 }
 0x167   : > { %14785 = vmatprep.subr.bf16.mxu0 %v16974_v20  ;;  %14658 = vmatmul.mubr.bf16.gmra.mrb[160].mxu0 %v5001_v35  ;;  %v5626_v26 = vrot.slane %v5624_v48, 1  ;;  %v17029_v35 = vld [vmem:[#allocation2 + $0x48] sm:$0xff]   ;;  %v5619_v11 = vsel %vm665_vm0, %v5614_v29, %v5618_v10  ;;  %v17076_v10 = vld [vmem:[#allocation2 + $0x60] sm:$0xff]  }
 0x168   : > { %14698 = vmatmul.mubr.bf16.gmra.mrb[160].mxu1 %v5281_v25  ;;  %14661 = vmatprep.mubr.bf16.mxu0 %v5003_v33  ;;  %v5611_v33 = vsel %vm665_vm0, %v5606_v17, %v5610_v13  ;;  %v5644_v48 = vshrl.u32 %v17029_v35, 16  ;;  %v15717_v29 = vld [vmem:[%s18736_s3 + $0x60] sm:$0xff]  }
 0x169   : > { %14701 = vmatprep.mubr.bf16.mxu1 %v5289_v16  ;;  %v15708_v16 = vld [vmem:[%s18736_s3 + $0x8] sm:$0xff]   ;;  %v5627_v51 = vsel %vm665_vm0, %v5622_v56, %v5626_v26 }
 0x16a   : > { %v14331_v58 = vpop.f32.mrb[56].mxu0  ;;  %v15719_v56 = vld [vmem:[%s18736_s3 + $0x68] sm:$0xff]  }
 0x16b   : > { %v14371_v45 = vpop.f32.mrb[56].mxu1  ;;  %v2269_v36 = vpop.f32.mrb[57].mxu0 }
 0x16c   : > { %v2561_v46 = vpop.f32.mrb[57].mxu1  ;;  %v17005_v2 = vadd.f32 %v14371_v45, %v14331_v58  ;;  %v14332_v5 = vpop.f32.mrb[58].mxu0  ;;  %v5935_v45 = vrot.slane %v17020_v8, 1  ;;  %v5630_v58 = vor.u32 %v5628_v4, %v5626_v26  ;;  %v15718_v8 = vld [vmem:[%s18736_s3 + $0x20] sm:$0xff]  }
 0x16d   : > { %v14372_v30 = vpop.f32.mrb[58].mxu1  ;;  %v2272_v44 = vpop.f32.mrb[59].mxu0  ;;  %v5640_v46 = vshll.u32 %v17029_v35, 16  ;;  %v17060_v5 = vld [vmem:[#allocation2 + $0x58] sm:$0xff]  }
 0x16e   : > { %v2564_v59 = vpop.f32.mrb[59].mxu1  ;;  %v5936_v43 = vsel %vm2117_vm1, %v5933_v19, %v5935_v45  ;;  %v5656_v19 = vshll.u32 %v17060_v5, 16 }
 0x16f   : > { %v17013_v14 = vadd.f32 %v2564_v59, %v2272_v44  ;;  %14662 = vmatmul.mubr.bf16.gmra.mrb[164].mxu0 %v5005_v61  ;;  %v5634_v59 = vrot.slane %v5632_v41, 1  ;;  %v5648_v44 = vshll.u32 %v17051_v27, 16  ;;  %v5642_v15 = vrot.slane %v5640_v46, 1 }
 0x170   : > { %14702 = vmatmul.mubr.bf16.gmra.mrb[164].mxu1 %v5297_v50  ;;  %14721 = vmatprep.mubr.bf16.mxu0 %v5603_v52  ;;  %v5937_v50 = vrot.slane %v17029_v35, 1  ;;  %v5660_v46 = vshrl.u32 %v17060_v5, 16 }
 0x171   : > { %14761 = vmatprep.mubr.bf16.mxu1 %v5928_v60  ;;  %v5635_v17 = vsel %vm665_vm0, %v5630_v58, %v5634_v59 }
 0x172   : > { %v14335_v21 = vpop.f32.mrb[60].mxu0 }
 0x173   : > { %v14375_v63 = vpop.f32.mrb[60].mxu1  ;;  %v2285_v0 = vpop.f32.mrb[61].mxu0 }
 0x174   : > { %v2577_v47 = vpop.f32.mrb[61].mxu1  ;;  %v14336_v40 = vpop.f32.mrb[62].mxu0  ;;  %v5939_v63 = vrot.slane %v17051_v27, 1  ;;  %v17131_v27 = vld [vmem:[%s18736_s3 + $0x78] sm:$0xff]  }
 0x175   : > { %v14376_v23 = vpop.f32.mrb[62].mxu1  ;;  %v17031_v37 = vadd.f32 %v2577_v47, %v2285_v0  ;;  %v2288_v32 = vpop.f32.mrb[63].mxu0  ;;  %v5646_v0 = vor.u32 %v5644_v48, %v5642_v15 }
 0x176   : > { %v2580_v25 = vpop.f32.mrb[63].mxu1  ;;  %v17035_v49 = vadd.f32 %v14376_v23, %v14336_v40 }
 0x177   : > { %v17040_v1 = vadd.f32 %v2580_v25, %v2288_v32  ;;  %14722 = vmatmul.mubr.bf16.vlgmr.msra.gmra.mrb[168].mxu0 %v5611_v33  ;;  %v5638_v25 = vor.u32 %v5636_v31, %v5634_v59  ;;  %v5940_v33 = vsel %vm2117_vm1, %v5937_v50, %v5939_v63  ;;  %v5668_v59 = vshrl.u32 %v17076_v10, 16 }
 0x178   : > { %14762 = vmatmul.mubr.bf16.vlgmr.msra.gmra.mrb[168].mxu1 %v5930_v24  ;;  %14786 = vmatpush3.bf16.msra.mxu0 %v16974_v20  ;;  %v15714_v20 = vld [vmem:[%s18736_s3 + $0x18] sm:$0xff]   ;;  %v5650_v24 = vrot.slane %v5648_v44, 1 }
 0x179   : > { %14826 = vmatpush3.bf16.msra.mxu1 %v16967_v28  ;;  %14765 = vmatprep.mubr.bf16.mxu1 %v5932_v7  ;;  %v15709_v28 = vld [vmem:[%s18736_s3 + $0x50] sm:$0xff]   ;;  %v17086_v7 = vld [vmem:[#allocation2 + $0x68] sm:$0xff]  }
 0x17a   : > { %14827 = vmatprep.subr.bf16.mxu1 %v15708_v16  ;;  %14725 = vmatprep.mubr.bf16.mxu0 %v5619_v11  ;;  %v14339_v60 = vpop.f32.mrb[64].mxu0  ;;  %v15722_v11 = vld [vmem:[%s18736_s3 + $0x28] sm:$0xff]   ;;  %v5651_v31 = vsel %vm665_vm0, %v5646_v0, %v5650_v24  ;;  %v5945_v44 = vrot.slane %v17086_v7, 1 }
 0x17b   : > { %v14379_v53 = vpop.f32.mrb[64].mxu1  ;;  %14787 = vmatprep.subr.bf16.mxu0 %v15705_v55  ;;  %v2301_v54 = vpop.f32.mrb[65].mxu0 }
 0x17c   : > { %v2593_v30 = vpop.f32.mrb[65].mxu1  ;;  %v17062_v61 = vadd.f32 %v14379_v53, %v14339_v60  ;;  %v14340_v9 = vpop.f32.mrb[66].mxu0  ;;  %14788 = vmatpush3.bf16.msra.mxu0 %v15705_v55  ;;  %v5664_v55 = vshll.u32 %v17076_v10, 16  ;;  %v5941_v53 = vrot.slane %v17060_v5, 1  ;;  %v15723_v60 = vld [vmem:[%s18736_s3 + $0x70] sm:$0xff]  }
 0x17d   : > { %v14380_v57 = vpop.f32.mrb[66].mxu1  ;;  %14828 = vmatpush3.bf16.msra.mxu1 %v15708_v16  ;;  %v17069_v52 = vadd.f32 %v2593_v30, %v2301_v54  ;;  %v2304_v47 = vpop.f32.mrb[67].mxu0  ;;  %14789 = vmatprep.subr.bf16.mxu0 %v15709_v28  ;;  %v5938_v16 = vsel %vm2117_vm1, %v5935_v45, %v5937_v50  ;;  %v5658_v45 = vrot.slane %v5656_v19, 1  ;;  %v5943_v50 = vrot.slane %v17076_v10, 1  ;;  %v17116_v5 = vld [vmem:[#allocation2 + $0x70] sm:$0xff]   ;;  %v489_v19 = vld [vmem:[%s16094_s27 + $0xb8] sm:$0xff]  }
 0x17e   : > { %v2596_v36 = vpop.f32.mrb[67].mxu1  ;;  %14829 = vmatprep.subr.bf16.mxu1 %v15710_v38  ;;  %v17073_v13 = vadd.f32 %v14380_v57, %v14340_v9  ;;  %v5672_v57 = vshll.u32 %v17086_v7, 16  ;;  %v5666_v58 = vrot.slane %v5664_v55, 1  ;;  %537 = vst [vmem:[#allocation2 + $0xc4] sm:$0xff] %v489_v19  }
 0x17f   : > { %14726 = vmatmul.mubr.bf16.gmra.mrb[172].mxu0 %v5627_v51  ;;  %v15724_v36 = vld [vmem:[%s18736_s3 + $0x30] sm:$0xff]   ;;  %v5942_v51 = vsel %vm2117_vm1, %v5939_v63, %v5941_v53  ;;  %v5944_v48 = vsel %vm2117_vm1, %v5941_v53, %v5943_v50  ;;  %v15728_v63 = vld [vmem:[%s18736_s3 + $0x38] sm:$0xff]  }
 0x180   : > { %14766 = vmatmul.mubr.bf16.gmra.mrb[172].mxu1 %v5934_v42  ;;  %14790 = vmatpush3.bf16.msra.mxu0 %v15709_v28  ;;  %v17125_v47 = vrot.slane %v5672_v57, 1  ;;  %v5946_v57 = vsel %vm2117_vm1, %v5943_v50, %v5945_v44 }
 0x181   : > { %14769 = vmatprep.mubr.bf16.mxu1 %v5936_v43  ;;  %14830 = vmatpush3.bf16.msra.mxu1 %v15710_v38  ;;  %v5643_v38 = vsel %vm665_vm0, %v5638_v25, %v5642_v15 }
 0x182   : > { %14831 = vmatprep.subr.bf16.mxu1 %v15714_v20  ;;  %14729 = vmatprep.mubr.bf16.mxu0 %v5635_v17  ;;  %v14343_v35 = vpop.f32.mrb[68].mxu0  ;;  %v5676_v17 = vshrl.u32 %v17086_v7, 16 }
 0x183   : > { %v14383_v23 = vpop.f32.mrb[68].mxu1  ;;  %14791 = vmatprep.subr.bf16.mxu0 %v15713_v62  ;;  %v2317_v32 = vpop.f32.mrb[69].mxu0 }
 0x184   : > { %v2609_v21 = vpop.f32.mrb[69].mxu1  ;;  %v17093_v4 = vadd.f32 %v14383_v23, %v14343_v35  ;;  %v14344_v41 = vpop.f32.mrb[70].mxu0  ;;  %14792 = vmatpush3.bf16.msra.mxu0 %v15713_v62  ;;  %v5662_v62 = vor.u32 %v5660_v46, %v5658_v45  ;;  %v5947_v35 = vrot.slane %v17116_v5, 1 }
 0x185   : > { %v14384_v26 = vpop.f32.mrb[70].mxu1  ;;  %14832 = vmatpush3.bf16.msra.mxu1 %v15714_v20  ;;  %v2320_v28 = vpop.f32.mrb[71].mxu0  ;;  %14793 = vmatprep.subr.bf16.mxu0 %v15717_v29  ;;  %v5654_v20 = vor.u32 %v5652_v18, %v5650_v24  ;;  %v17141_v21 = vld [vmem:[#allocation2 + $0x78] ss:$0 sps:$4 sm:$0x11]   ;;  %v17159_v41 = vld [vmem:[%s18736_s3 + $0xc0] sm:$0xff]  }
 0x186   : > { %v2612_v40 = vpop.f32.mrb[71].mxu1  ;;  %14833 = vmatprep.subr.bf16.mxu1 %v15718_v8  ;;  %v17150_v26 = vld [vmem:[#allocation2 + $0x60] sm:$0xff]   ;;  %v5948_v10 = vsel %vm2117_vm1, %v5945_v44, %v5947_v35  ;;  %v5688_v50 = vshll.u32 %v17141_v21, 16 }
 0x187   : > { %v17105_v30 = vadd.f32 %v2612_v40, %v2320_v28  ;;  %14730 = vmatmul.mubr.bf16.gmra.mrb[176].mxu0 %v5643_v38  ;;  %v5684_v28 = vshrl.u32 %v17116_v5, 16 }
 0x188   : > { %14770 = vmatmul.mubr.bf16.gmra.mrb[176].mxu1 %v5938_v16  ;;  %14733 = vmatprep.mubr.bf16.mxu0 %v5651_v31  ;;  %v417_v16 = vld [vmem:[%s17146_s14] sm:$0xf] }
 0x189   : > { %14773 = vmatprep.mubr.bf16.mxu1 %v5940_v33  ;;  %14834 = vmatpush3.bf16.msra.mxu1 %v15718_v8  ;;  %v5680_v8 = vshll.u32 %v17116_v5, 16  ;;  %v437_v40 = vmul.bf16 0.0, %v417_v16 }
 0x18a   : > { %14835 = vmatprep.subr.bf16.mxu1 %v15722_v11  ;;  %14794 = vmatpush3.bf16.msra.mxu0 %v15717_v29  ;;  %v14403_v9 = vpop.f32.mrb[72].mxu0  ;;  %v5659_v29 = vsel %vm665_vm0, %v5654_v20, %v5658_v45 }
 0x18b   : > { %v14443_v42 = vpop.f32.mrb[72].mxu1  ;;  %14795 = vmatprep.subr.bf16.mxu0 %v15719_v56  ;;  %v2923_v18 = vpop.f32.mrb[73].mxu0  ;;  %539 = vst [vmem:[#allocation2 + $0xcc] sm:$0xf] %v437_v40 }
 0x18c   : > { %v3182_v43 = vpop.f32.mrb[73].mxu1  ;;  %v3018_v23 = vadd.f32 %v2923_v18, %v16947_v12  ;;  %v14404_v24 = vpop.f32.mrb[74].mxu0  ;;  %v5667_v12 = vsel %vm665_vm0, %v5662_v62, %v5666_v58  ;;  %v17173_v42 = vld [vmem:[#allocation2 + $0x68] sm:$0xff]  }
 0x18d   : > { %v14444_v54 = vpop.f32.mrb[74].mxu1  ;;  %14836 = vmatpush3.bf16.msra.mxu1 %v15722_v11  ;;  %v3021_v25 = vadd.f32 %v14404_v24, %v16951_v3  ;;  %v2926_v7 = vpop.f32.mrb[75].mxu0  ;;  %v5670_v11 = vor.u32 %v5668_v59, %v5666_v58  ;;  %v5678_v3 = vor.u32 %v5676_v17, %v17125_v47  ;;  %v6399_v58 = vshll.u32 %v17150_v26, 16  ;;  %v17179_v59 = vld [vmem:[%s18736_s3 + $0x80] sm:$0xff]  }
 0x18e   : > { %v3185_v15 = vpop.f32.mrb[75].mxu1  ;;  %14837 = vmatprep.subr.bf16.mxu1 %v15724_v36  ;;  %14796 = vmatpush3.bf16.msra.mxu0 %v15719_v56  ;;  %v3277_v0 = vadd.f32 %v3182_v43, %v3018_v23  ;;  %v3019_v55 = vadd.f32 %v2926_v7, %v16961_v22  ;;  %v17164_v22 = vld [vmem:[%s18737_s4] ss:$0 sm:$0xff]  ;;  %v5682_v56 = vrot.slane %v5680_v8, 1  ;;  %v6404_v24 = vshll.u32 %v17173_v42, 16 }
 0x18f   : > { %14797 = vmatprep.subr.bf16.mxu0 %v15723_v60  ;;  %v3280_v33 = vadd.f32 %v14444_v54, %v3021_v25  ;;  %14734 = vmatmul.mubr.bf16.gmra.mrb[180].mxu0 %v5659_v29  ;;  %v5675_v9 = vsel %vm665_vm0, %v5670_v11, %v17125_v47  ;;  %v6401_v23 = vrot.slane %v6399_v58, 1  ;;  %v17201_v29 = vld [vmem:[#allocation2 + $0x70] sm:$0xff]  }
 0x190   : > { %14774 = vmatmul.mubr.bf16.gmra.mrb[180].mxu1 %v5942_v51  ;;  %v3301_v38 = vadd.f32 %v17164_v22, %v3277_v0  ;;  %v3278_v45 = vadd.f32 %v3185_v15, %v3019_v55  ;;  %14737 = vmatprep.mubr.bf16.mxu0 %v5667_v12  ;;  %v5949_v15 = vrot.slane %v17141_v21, 1  ;;  %v5683_v18 = vsel %vm665_vm0, %v5678_v3, %v5682_v56  ;;  %v17208_v0 = vld [vmem:[#allocation2 + $0x78] sm:$0xff]  }
 0x191   : > { %14777 = vmatprep.mubr.bf16.mxu1 %v5944_v48  ;;  %14838 = vmatpush3.bf16.msra.mxu1 %v15724_v36  ;;  %v3304_v31 = vadd.f32 %v17164_v22, %v3280_v33  ;;  %v5686_v7 = vor.u32 %v5684_v28, %v5682_v56  ;;  %v5690_v12 = vrot.slane %v5688_v50, 1  ;;  %v6406_v11 = vrot.slane %v6404_v24, 1 }
 0x192   : > { %14839 = vmatprep.subr.bf16.mxu1 %v15728_v63  ;;  %14798 = vmatpush3.bf16.msra.mxu0 %v15723_v60  ;;  %v13380_v60 = vpack.c.bf16 %v3301_v38, %v3301_v38  ;;  %v3302_v36 = vadd.f32 %v17164_v22, %v3278_v45  ;;  %v14407_v43 = vpop.f32.mrb[76].mxu0  ;;  %v5950_v16 = vsel %vm2117_vm1, %v5947_v35, %v5949_v15 }
 0x193   : > { %v14447_v32 = vpop.f32.mrb[76].mxu1  ;;  %14799 = vmatprep.subr.bf16.mxu0 %v17131_v27  ;;  %v13382_v54 = vpack.c.bf16 %v3304_v31, %v3304_v31  ;;  %v3024_v51 = vadd.f32 %v14407_v43, %v16978_v34  ;;  %v2939_v62 = vpop.f32.mrb[77].mxu0  ;;  %v6397_v34 = vshrl.u32 %v17150_v26, 16  ;;  %v5691_v31 = vsel %vm665_vm0, %v5686_v7, %v5690_v12 }
 0x194   : > { %v3198_v53 = vpop.f32.mrb[77].mxu1  ;;  %3397 = vst [vmem:[%s16724_s8 + $0x4] sm:$0xf] %v13380_v60  ;;  %v13381_v48 = vpack.c.bf16 %v3302_v36, %v3302_v36  ;;  %v3022_v44 = vadd.f32 %v2939_v62, %v16987_v6  ;;  %v14408_v17 = vpop.f32.mrb[78].mxu0  ;;  %v6416_v43 = vshrl.u32 %v17201_v29, 16 }
 0x195   : > { %v14448_v46 = vpop.f32.mrb[78].mxu1  ;;  %14840 = vmatpush3.bf16.msra.mxu1 %v15728_v63  ;;  %3399 = vst [vmem:[%s16724_s8 + $0x24] sm:$0xf] %v13382_v54  ;;  %v3283_v63 = vadd.f32 %v14447_v32, %v3024_v51  ;;  %v3025_v47 = vadd.f32 %v14408_v17, %v16994_v39  ;;  %v2942_v19 = vpop.f32.mrb[79].mxu0  ;;  %v6402_v32 = vor.u32 %v6401_v23, %v6397_v34  ;;  %v17224_v54 = vld [vmem:[#allocation2 + $0x80] sm:$0xff]   ;;  %v17226_v17 = vld [vmem:[#allocation2 + $0x88] sm:$0xff]  }
 0x196   : > { %v3201_v20 = vpop.f32.mrb[79].mxu1  ;;  %14905 = vmatprep.subr.bf16.mxu1 %v17159_v41  ;;  %14800 = vmatpush3.bf16.msra.mxu0 %v17131_v27  ;;  %3398 = vst [vmem:[%s16724_s8 + $0xc] sm:$0xf] %v13381_v48  ;;  %v3281_v6 = vadd.f32 %v3198_v53, %v3022_v44  ;;  %v6412_v53 = vshll.u32 %v17201_v29, 16  ;;  %v6428_v19 = vshll.u32 %v17224_v54, 16  ;;  %v6436_v12 = vshll.u32 %v17226_v17, 16 }
 0x197   : > { %14865 = vmatprep.subr.bf16.mxu0 %v17179_v59  ;;  %v3307_v8 = vadd.f32 %v17164_v22, %v3283_v63  ;;  %v3284_v27 = vadd.f32 %v14448_v46, %v3025_v47  ;;  %14738 = vmatmul.mubr.bf16.gmra.mrb[184].mxu0 %v5675_v9  ;;  %v6408_v46 = vshrl.u32 %v17173_v42, 16  ;;  %v6407_v36 = vsel %vm665_vm0, %v6402_v32, %v6406_v11  ;;  %v15737_v63 = vld [vmem:[%s18736_s3 + $0xc8] sm:$0xff]  }
 0x198   : > { %14778 = vmatmul.mubr.bf16.gmra.mrb[184].mxu1 %v5946_v57  ;;  %v3305_v25 = vadd.f32 %v17164_v22, %v3281_v6  ;;  %14741 = vmatprep.mubr.bf16.mxu0 %v5683_v18  ;;  %v6420_v57 = vshll.u32 %v17208_v0, 16  ;;  %v6414_v20 = vrot.slane %v6412_v53, 1  ;;  %v15738_v53 = vld [vmem:[%s18736_s3 + $0x90] sm:$0xff]  }
 0x199   : > { %14781 = vmatprep.mubr.bf16.mxu1 %v5948_v10  ;;  %v13384_v55 = vpack.c.bf16 %v3307_v8, %v3307_v8  ;;  %v3308_v40 = vadd.f32 %v17164_v22, %v3284_v27  ;;  %v6410_v9 = vor.u32 %v6408_v46, %v6406_v11  ;;  %v6424_v27 = vshrl.u32 %v17208_v0, 16 }
 0x19a   : > { %v13383_v3 = vpack.c.bf16 %v3305_v25, %v3305_v25  ;;  %v14411_v38 = vpop.f32.mrb[80].mxu0  ;;  %v6422_v15 = vrot.slane %v6420_v57, 1 }
 0x19b   : > { %v14451_v21 = vpop.f32.mrb[80].mxu1  ;;  %3401 = vst [vmem:[%s16724_s8 + $0x44] sm:$0xf] %v13384_v55  ;;  %v13385_v56 = vpack.c.bf16 %v3308_v40, %v3308_v40  ;;  %v3028_v5 = vadd.f32 %v14411_v38, %v17005_v2  ;;  %v2955_v28 = vpop.f32.mrb[81].mxu0  ;;  %v6415_v8 = vsel %vm665_vm0, %v6410_v9, %v6414_v20 }
 0x19c   : > { %v3214_v39 = vpop.f32.mrb[81].mxu1  ;;  %3400 = vst [vmem:[%s16724_s8 + $0x2c] sm:$0xf] %v13383_v3  ;;  %v14412_v35 = vpop.f32.mrb[82].mxu0  ;;  %v6426_v3 = vor.u32 %v6424_v27, %v6422_v15  ;;  %v6440_v28 = vshrl.u32 %v17226_v17, 16 }
 0x19d   : > { %v14452_v33 = vpop.f32.mrb[82].mxu1  ;;  %3402 = vst [vmem:[%s16724_s8 + $0x4c] sm:$0xf] %v13385_v56  ;;  %v3287_v58 = vadd.f32 %v14451_v21, %v3028_v5  ;;  %v2958_v60 = vpop.f32.mrb[83].mxu0  ;;  %v15734_v39 = vld [vmem:[%s18736_s3 + $0x88] sm:$0xff]   ;;  %v6438_v5 = vrot.slane %v6436_v12, 1 }
 0x19e   : > { %v3217_v45 = vpop.f32.mrb[83].mxu1  ;;  %v3027_v2 = vadd.f32 %v2958_v60, %v17013_v14  ;;  %v6430_v33 = vrot.slane %v6428_v19, 1 }
 0x19f   : > { %v3311_v10 = vadd.f32 %v17164_v22, %v3287_v58  ;;  %14742 = vmatmul.mubr.bf16.gmra.mrb[188].mxu0 %v5691_v31 }
 0x1a0   : > { %14782 = vmatmul.mubr.bf16.gmra.mrb[188].mxu1 %v5950_v16  ;;  %v3286_v51 = vadd.f32 %v3217_v45, %v3027_v2  ;;  %14801 = vmatprep.mubr.bf16.mxu0 %v6407_v36 }
 0x1a1   : > { %14841 = vmatprep.mubr.bf16.mxu1 %v17150_v26  ;;  %v13387_v48 = vpack.c.bf16 %v3311_v10, %v3311_v10  ;;  %v6418_v26 = vor.u32 %v6416_v43, %v6414_v20 }
 0x1a2   : > { %v3310_v14 = vadd.f32 %v17164_v22, %v3286_v51  ;;  %v14415_v18 = vpop.f32.mrb[84].mxu0  ;;  %v15742_v51 = vld [vmem:[%s18736_s3 + $0x98] sm:$0xff]  }
 0x1a3   : > { %v14455_v50 = vpop.f32.mrb[84].mxu1  ;;  %3404 = vst [vmem:[%s16724_s8 + $0x6c] sm:$0xf] %v13387_v48  ;;  %v2971_v47 = vpop.f32.mrb[85].mxu0  ;;  %v6423_v7 = vsel %vm665_vm0, %v6418_v26, %v6422_v15 }
 0x1a4   : > { %v3230_v62 = vpop.f32.mrb[85].mxu1  ;;  %v13386_v23 = vpack.c.bf16 %v3310_v14, %v3310_v14  ;;  %v3030_v24 = vadd.f32 %v2971_v47, %v17031_v37  ;;  %v14416_v6 = vpop.f32.mrb[86].mxu0  ;;  %v6432_v37 = vshrl.u32 %v17224_v54, 16  ;;  %v6431_v50 = vsel %vm665_vm0, %v6426_v3, %v6430_v33 }
 0x1a5   : > { %v14456_v44 = vpop.f32.mrb[86].mxu1  ;;  %v3033_v21 = vadd.f32 %v14416_v6, %v17035_v49  ;;  %v2974_v25 = vpop.f32.mrb[87].mxu0  ;;  %v15739_v49 = vld [vmem:[%s18736_s3 + $0xd0] sm:$0xff]   ;;  %v6442_v47 = vor.u32 %v6440_v28, %v6438_v5  ;;  %v17321_v28 = vld [vmem:[#allocation2 + $0xb8] sm:$0xff]  }
 0x1a6   : > { %v3233_v34 = vpop.f32.mrb[87].mxu1  ;;  %3403 = vst [vmem:[%s16724_s8 + $0x64] sm:$0xf] %v13386_v23  ;;  %v3031_v16 = vadd.f32 %v2974_v25, %v17040_v1  ;;  %v17256_v1 = vld [vmem:[#allocation2 + $0x98] sm:$0xff]   ;;  %v6434_v56 = vor.u32 %v6432_v37, %v6430_v33  ;;  %v15746_v23 = vld [vmem:[%s18736_s3 + $0xa0] sm:$0xff]  }
 0x1a7   : > { %v3292_v55 = vadd.f32 %v14456_v44, %v3033_v21  ;;  %14802 = vmatmul.mubr.bf16.vlgmr.msra.gmra.mrb[192].mxu0 %v6415_v8  ;;  %v17283_v44 = vld [vmem:[#allocation2 + $0xa0] sm:$0xff]   ;;  %v17294_v21 = vld [vmem:[#allocation2 + $0xa8] sm:$0xff]   ;;  %v6456_v33 = vshrl.u32 %v17256_v1, 16 }
 0x1a8   : > { %14842 = vmatmul.mubr.bf16.vlgmr.msra.gmra.mrb[192].mxu1 %v17173_v42  ;;  %v3289_v42 = vadd.f32 %v3230_v62, %v3030_v24  ;;  %v3290_v32 = vadd.f32 %v3233_v34, %v3031_v16  ;;  %14866 = vmatpush3.bf16.msra.mxu0 %v17179_v59  ;;  %v15743_v59 = vld [vmem:[%s18736_s3 + $0xd8] sm:$0xff]   ;;  %v6460_v37 = vshll.u32 %v17283_v44, 16  ;;  %v6464_v3 = vshrl.u32 %v17283_v44, 16 }
 0x1a9   : > { %14906 = vmatpush3.bf16.msra.mxu1 %v17159_v41  ;;  %14845 = vmatprep.mubr.bf16.mxu1 %v17201_v29  ;;  %v17252_v41 = vld [vmem:[#allocation2 + $0x90] sm:$0xff]   ;;  %v3316_v38 = vadd.f32 %v17164_v22, %v3292_v55 }
 0x1aa   : > { %14907 = vmatprep.subr.bf16.mxu1 %v15737_v63  ;;  %v3313_v29 = vadd.f32 %v17164_v22, %v3289_v42  ;;  %14805 = vmatprep.mubr.bf16.mxu0 %v6423_v7  ;;  %v3314_v31 = vadd.f32 %v17164_v22, %v3290_v32  ;;  %v14419_v46 = vpop.f32.mrb[88].mxu0  ;;  %v6444_v43 = vshll.u32 %v17252_v41, 16  ;;  %v6448_v48 = vshrl.u32 %v17252_v41, 16 }
 0x1ab   : > { %v14459_v40 = vpop.f32.mrb[88].mxu1  ;;  %14867 = vmatprep.subr.bf16.mxu0 %v15734_v39  ;;  %v13390_v58 = vpack.c.bf16 %v3316_v38, %v3316_v38  ;;  %v3036_v60 = vadd.f32 %v14419_v46, %v17062_v61  ;;  %v2987_v36 = vpop.f32.mrb[89].mxu0  ;;  %v6452_v61 = vshll.u32 %v17256_v1, 16  ;;  %v6468_v38 = vshll.u32 %v17294_v21, 16 }
 0x1ac   : > { %v3246_v11 = vpop.f32.mrb[89].mxu1  ;;  %v13388_v35 = vpack.c.bf16 %v3313_v29, %v3313_v29  ;;  %v13389_v2 = vpack.c.bf16 %v3314_v31, %v3314_v31  ;;  %v3034_v20 = vadd.f32 %v2987_v36, %v17069_v52  ;;  %v14420_v10 = vpop.f32.mrb[90].mxu0  ;;  %14868 = vmatpush3.bf16.msra.mxu0 %v15734_v39  ;;  %v6439_v52 = vsel %vm665_vm0, %v6434_v56, %v6438_v5  ;;  %v15753_v56 = vld [vmem:[%s18736_s3 + $0xf0] sm:$0xff]  }
 0x1ad   : > { %v14460_v45 = vpop.f32.mrb[90].mxu1  ;;  %14908 = vmatpush3.bf16.msra.mxu1 %v15737_v63  ;;  %3407 = vst [vmem:[%s16724_s8 + $0xa4] sm:$0xf] %v13390_v58  ;;  %v3295_v62 = vadd.f32 %v14459_v40, %v3036_v60  ;;  %v3037_v9 = vadd.f32 %v14420_v10, %v17073_v13  ;;  %v2990_v15 = vpop.f32.mrb[91].mxu0  ;;  %14869 = vmatprep.subr.bf16.mxu0 %v15738_v53  ;;  %v6446_v34 = vrot.slane %v6444_v43, 1  ;;  %v15747_v13 = vld [vmem:[%s18736_s3 + $0xe0] sm:$0xff]  }
 0x1ae   : > { %v3249_v57 = vpop.f32.mrb[91].mxu1  ;;  %14909 = vmatprep.subr.bf16.mxu1 %v15739_v49  ;;  %3405 = vst [vmem:[%s16724_s8 + $0x84] sm:$0xf] %v13388_v35  ;;  %3406 = vst [vmem:[%s16724_s8 + $0x8c] sm:$0xf] %v13389_v2  ;;  %v6454_v19 = vrot.slane %v6452_v61, 1 }
 0x1af   : > { %v3319_v26 = vadd.f32 %v17164_v22, %v3295_v62  ;;  %v3296_v14 = vadd.f32 %v14460_v45, %v3037_v9  ;;  %14806 = vmatmul.mubr.bf16.gmra.mrb[196].mxu0 %v6431_v50  ;;  %v6450_v27 = vor.u32 %v6448_v48, %v6446_v34  ;;  %v6447_v40 = vsel %vm665_vm0, %v6442_v47, %v6446_v34  ;;  %v15752_v36 = vld [vmem:[%s18736_s3 + $0xb0] sm:$0xff]  }
 0x1b0   : > { %14846 = vmatmul.mubr.bf16.gmra.mrb[196].mxu1 %v17208_v0  ;;  %v3293_v0 = vadd.f32 %v3246_v11, %v3034_v20  ;;  %14870 = vmatpush3.bf16.msra.mxu0 %v15738_v53  ;;  %v15748_v11 = vld [vmem:[%s18736_s3 + $0xa8] sm:$0xff]   ;;  %v6462_v45 = vrot.slane %v6460_v37, 1  ;;  %v17315_v53 = vld [vmem:[#allocation2 + $0xb0] sm:$0xff]   ;;  %v6458_v31 = vor.u32 %v6456_v33, %v6454_v19  ;;  %v6470_v60 = vrot.slane %v6468_v38, 1 }
 0x1b1   : > { %14849 = vmatprep.mubr.bf16.mxu1 %v17224_v54  ;;  %14910 = vmatpush3.bf16.msra.mxu1 %v15739_v49  ;;  %v13392_v24 = vpack.c.bf16 %v3319_v26, %v3319_v26  ;;  %v3320_v6 = vadd.f32 %v17164_v22, %v3296_v14  ;;  %v15751_v49 = vld [vmem:[%s18736_s3 + $0xe8] sm:$0xff]   ;;  %v6472_v10 = vshrl.u32 %v17294_v21, 16  ;;  %v6476_v50 = vshll.u32 %v17315_v53, 16  ;;  %v17334_v61 = vld [vmem:[#allocation2 + $0x74] sm:$0xff]  }
 0x1b2   : > { %14911 = vmatprep.subr.bf16.mxu1 %v15743_v59  ;;  %v3317_v54 = vadd.f32 %v17164_v22, %v3293_v0  ;;  %14809 = vmatprep.mubr.bf16.mxu0 %v6439_v52  ;;  %v14423_v39 = vpop.f32.mrb[92].mxu0  ;;  %v6466_v58 = vor.u32 %v6464_v3, %v6462_v45  ;;  %v6484_v9 = vshll.u32 %v17321_v28, 16  ;;  %v6463_v48 = vsel %vm665_vm0, %v6458_v31, %v6462_v45  ;;  %v15767_v38 = vld [vmem:[#allocation2 + $0x84] sm:$0xff]  }
 0x1b3   : > { %v14463_v18 = vpop.f32.mrb[92].mxu1  ;;  %14871 = vmatprep.subr.bf16.mxu0 %v15742_v51  ;;  %3409 = vst [vmem:[%s16724_s8 + $0xc4] sm:$0xf] %v13392_v24  ;;  %v13393_v12 = vpack.c.bf16 %v3320_v6, %v3320_v6  ;;  %v3040_v42 = vadd.f32 %v14423_v39, %v17093_v4  ;;  %v3003_v16 = vpop.f32.mrb[93].mxu0  ;;  %v6455_v4 = vsel %vm665_vm0, %v6450_v27, %v6454_v19  ;;  %v6480_v34 = vshrl.u32 %v17315_v53, 16 }
 0x1b4   : > { %v3262_v63 = vpop.f32.mrb[93].mxu1  ;;  %v13391_v25 = vpack.c.bf16 %v3317_v54, %v3317_v54  ;;  %v14424_v55 = vpop.f32.mrb[94].mxu0  ;;  %14872 = vmatpush3.bf16.msra.mxu0 %v15742_v51  ;;  %v15757_v51 = vld [vmem:[%s18736_s3 + $0xf8] sm:$0xff]   ;;  %v6478_v47 = vrot.slane %v6476_v50, 1  ;;  %v6474_v24 = vor.u32 %v6472_v10, %v6470_v60  ;;  %v6486_v6 = vrot.slane %v6484_v9, 1  ;;  %v15769_v50 = vld [vmem:[#allocation2 + $0x8c] sm:$0xff]  }
 0x1b5   : > { %v14464_v8 = vpop.f32.mrb[94].mxu1  ;;  %14912 = vmatpush3.bf16.msra.mxu1 %v15743_v59  ;;  %3410 = vst [vmem:[%s16724_s8 + $0xcc] sm:$0xf] %v13393_v12  ;;  %v3299_v29 = vadd.f32 %v14463_v18, %v3040_v42  ;;  %v3006_v32 = vpop.f32.mrb[95].mxu0  ;;  %14873 = vmatprep.subr.bf16.mxu0 %v15746_v23  ;;  %v6471_v18 = vsel %vm665_vm0, %v6466_v58, %v6470_v60  ;;  %v7299_v27 = vshll.u32 %v17334_v61, 16  ;;  %v17385_v9 = vld [vmem:[#allocation2 + $0x94] sm:$0xff]  }
 0x1b6   : > { %v3265_v7 = vpop.f32.mrb[95].mxu1  ;;  %14913 = vmatprep.subr.bf16.mxu1 %v15747_v13  ;;  %3408 = vst [vmem:[%s16724_s8 + $0xac] sm:$0xf] %v13391_v25  ;;  %v6482_v39 = vor.u32 %v6480_v34, %v6478_v47  ;;  %v6479_v33 = vsel %vm665_vm0, %v6474_v24, %v6478_v47  ;;  %v15761_v34 = vld [vmem:[#allocation2 + $0x74] sm:$0xff]   ;;  %v7327_v24 = vshrl.u32 %v15769_v50, 16 }
 0x1b7   : > { %14810 = vmatmul.mubr.bf16.gmra.mrb[200].mxu0 %v6447_v40  ;;  %v7301_v45 = vrot.slane %v7299_v27, 1  ;;  %v15776_v27 = vld [vmem:[#allocation2 + $0x9c] sm:$0xff]  }
 0x1b8   : > { %14850 = vmatmul.mubr.bf16.gmra.mrb[200].mxu1 %v17226_v17  ;;  %v3039_v17 = vadd.f32 %v3006_v32, %v17105_v30  ;;  %14813 = vmatprep.mubr.bf16.mxu0 %v6455_v4  ;;  %v17323_v30 = vld [vmem:[#allocation2 + $0x6c] sm:$0xff]   ;;  %v6487_v3 = vsel %vm665_vm0, %v6482_v39, %v6486_v6 }
 0x1b9   : > { %14853 = vmatprep.mubr.bf16.mxu1 %v17252_v41  ;;  %14914 = vmatpush3.bf16.msra.mxu1 %v15747_v13  ;;  %v3323_v41 = vadd.f32 %v17164_v22, %v3299_v29  ;;  %v7294_v0 = vshll.u32 %v17323_v30, 16  ;;  %v15756_v13 = vld [vmem:[%s18736_s3 + $0xb8] sm:$0xff]   ;;  %v7292_v19 = vshrl.u32 %v17323_v30, 16  ;;  %v6488_v29 = vshrl.u32 %v17321_v28, 16 }
 0x1ba   : > { %14915 = vmatprep.subr.bf16.mxu1 %v15751_v49  ;;  %v3298_v59 = vadd.f32 %v3265_v7, %v3039_v17  ;;  %14874 = vmatpush3.bf16.msra.mxu0 %v15746_v23  ;;  %v14483_v2 = vpop.f32.mrb[96].mxu0  ;;  %v17364_v7 = vld [vmem:[%s18736_s3 + $0x140] sm:$0xff]   ;;  %v7315_v30 = vshll.u32 %v15767_v38, 16 }
 0x1bb   : > { %v14523_v5 = vpop.f32.mrb[96].mxu1  ;;  %v13395_v46 = vpack.c.bf16 %v3323_v41, %v3323_v41  ;;  %14875 = vmatprep.subr.bf16.mxu0 %v15748_v11  ;;  %v3729_v62 = vpop.f32.mrb[97].mxu0  ;;  %v7296_v8 = vrot.slane %v7294_v0, 1 }
 0x1bc   : > { %v3918_v35 = vpop.f32.mrb[97].mxu1  ;;  %v3322_v43 = vadd.f32 %v17164_v22, %v3298_v59  ;;  %v14484_v52 = vpop.f32.mrb[98].mxu0  ;;  %v6490_v5 = vor.u32 %v6488_v29, %v6486_v6  ;;  %v7331_v6 = vshll.u32 %v17385_v9, 16 }
 0x1bd   : > { %v14524_v57 = vpop.f32.mrb[98].mxu1  ;;  %14916 = vmatpush3.bf16.msra.mxu1 %v15751_v49  ;;  %3412 = vst [vmem:[%s16724_s8 + $0xec] sm:$0xf] %v13395_v46  ;;  %v17338_v15 = vadd.f32 %v3918_v35, %v3729_v62  ;;  %v3732_v14 = vpop.f32.mrb[99].mxu0  ;;  %v15762_v49 = vld [vmem:[#allocation2 + $0x7c] sm:$0xff]   ;;  %v7297_v17 = vor.u32 %v7296_v8, %v7292_v19  ;;  %v7303_v35 = vshrl.u32 %v17334_v61, 16 }
 0x1be   : > { %v3921_v20 = vpop.f32.mrb[99].mxu1  ;;  %14917 = vmatprep.subr.bf16.mxu1 %v15753_v56  ;;  %v13394_v22 = vpack.c.bf16 %v3322_v43, %v3322_v43  ;;  %14876 = vmatpush3.bf16.msra.mxu0 %v15748_v11  ;;  %v17343_v26 = vadd.f32 %v14524_v57, %v14484_v52  ;;  %v7307_v41 = vshll.u32 %v15762_v49, 16  ;;  %v7311_v58 = vshrl.u32 %v15762_v49, 16  ;;  %v15766_v19 = vld [vmem:[#allocation2 + $0x7c] sm:$0xff]  }
 0x1bf   : > { %14877 = vmatprep.subr.bf16.mxu0 %v15752_v36  ;;  %v17352_v54 = vadd.f32 %v3921_v20, %v3732_v14  ;;  %14814 = vmatmul.mubr.bf16.gmra.mrb[204].mxu0 %v6463_v48  ;;  %v7305_v61 = vor.u32 %v7303_v35, %v7301_v45  ;;  %v7317_v62 = vrot.slane %v7315_v30, 1  ;;  %v7323_v14 = vshll.u32 %v15769_v50, 16  ;;  %v17419_v35 = vld [vmem:[#allocation2 + $0xac] sm:$0xff]  }
 0x1c0   : > { %14854 = vmatmul.mubr.bf16.gmra.mrb[204].mxu1 %v17256_v1  ;;  %3411 = vst [vmem:[%s16724_s8 + $0xe4] sm:$0xf] %v13394_v22  ;;  %v15755_v1 = vld [vmem:[#allocation2 + $0xc0] ss:$0 sps:$4 sm:$0x11]   ;;  %14817 = vmatprep.mubr.bf16.mxu0 %v6471_v18  ;;  %v7309_v43 = vrot.slane %v7307_v41, 1 }
 0x1c1   : > { %14857 = vmatprep.mubr.bf16.mxu1 %v17283_v44  ;;  %14918 = vmatpush3.bf16.msra.mxu1 %v15753_v56  ;;  %v17358_v44 = vld [vmem:[%s18736_s3 + $0x100] sm:$0xff]   ;;  %v6492_v32 = vshll.u32 %v15755_v1, 16  ;;  %v15770_v1 = vld [vmem:[%s18736_s3 + $0x108] sm:$0xff]   ;;  %v7325_v39 = vrot.slane %v7323_v14, 1 }
 0x1c2   : > { %14919 = vmatprep.subr.bf16.mxu1 %v15757_v51  ;;  %14878 = vmatpush3.bf16.msra.mxu0 %v15752_v36  ;;  %v14487_v37 = vpop.f32.mrb[100].mxu0  ;;  %v15758_v36 = vld [vmem:[#allocation2 + $0x6c] sm:$0xff]   ;;  %v7313_v22 = vor.u32 %v7311_v58, %v7309_v43  ;;  %v15768_v41 = vld [vmem:[#allocation2 + $0x84] sm:$0xff]  }
 0x1c3   : > { %v14527_v63 = vpop.f32.mrb[100].mxu1  ;;  %14879 = vmatprep.subr.bf16.mxu0 %v15756_v13  ;;  %v3745_v16 = vpop.f32.mrb[101].mxu0  ;;  %v6494_v59 = vrot.slane %v6492_v32, 1  ;;  %v7329_v29 = vor.u32 %v7327_v24, %v7325_v39  ;;  %v7333_v32 = vrot.slane %v7331_v6, 1  ;;  %v15773_v30 = vld [vmem:[#allocation2 + $0x8c] sm:$0xff]   ;;  %v7359_v24 = vshrl.u32 %v17419_v35, 16 }
 0x1c4   : > { %v3934_v23 = vpop.f32.mrb[101].mxu1  ;;  %v17366_v42 = vadd.f32 %v14527_v63, %v14487_v37  ;;  %v14488_v40 = vpop.f32.mrb[102].mxu0 }
 0x1c5   : > { %v14528_v25 = vpop.f32.mrb[102].mxu1  ;;  %14920 = vmatpush3.bf16.msra.mxu1 %v15757_v51  ;;  %v17369_v55 = vadd.f32 %v3934_v23, %v3745_v16  ;;  %v3748_v11 = vpop.f32.mrb[103].mxu0  ;;  %v6495_v10 = vsel %vm665_vm0, %v6490_v5, %v6494_v59  ;;  %v7318_v23 = vsel %vm665_vm0, %v7313_v22, %v7317_v62  ;;  %v15765_v16 = vld [vmem:[%s18736_s3 + $0x148] sm:$0xff]   ;;  %v7335_v5 = vshrl.u32 %v17385_v9, 16  ;;  %v15778_v59 = vld [vmem:[%s18736_s3 + $0x118] sm:$0xff]  }
 0x1c6   : > { %v3937_v12 = vpop.f32.mrb[103].mxu1  ;;  %14985 = vmatprep.subr.bf16.mxu1 %v17358_v44  ;;  %14880 = vmatpush3.bf16.msra.mxu0 %v15756_v13  ;;  %v17374_v4 = vadd.f32 %v14528_v25, %v14488_v40  ;;  %v7310_v13 = vsel %vm665_vm0, %v7305_v61, %v7309_v43  ;;  %v15772_v40 = vld [vmem:[%s18736_s3 + $0x110] sm:$0xff]   ;;  %v17406_v11 = vld [vmem:[#allocation2 + $0xa4] sm:$0xff]   ;;  %v15777_v61 = vld [vmem:[%s18736_s3 + $0x158] sm:$0xff]  }
 0x1c7   : > { %14945 = vmatprep.subr.bf16.mxu0 %v17364_v7  ;;  %14818 = vmatmul.mubr.bf16.gmra.mrb[208].mxu0 %v6479_v33 }
 0x1c8   : > { %14858 = vmatmul.mubr.bf16.gmra.mrb[208].mxu1 %v17294_v21  ;;  %14821 = vmatprep.mubr.bf16.mxu0 %v6487_v3 }
 0x1c9   : > { %14861 = vmatprep.mubr.bf16.mxu1 %v17315_v53  ;;  %v7302_v53 = vsel %vm665_vm0, %v7297_v17, %v7301_v45  ;;  %v15771_v45 = vld [vmem:[%s18736_s3 + $0x150] sm:$0xff]  }
 0x1ca   : > { %v14491_v46 = vpop.f32.mrb[104].mxu0 }
 0x1cb   : > { %v14531_v56 = vpop.f32.mrb[104].mxu1  ;;  %v3761_v60 = vpop.f32.mrb[105].mxu0 }
 0x1cc   : > { %v3950_v21 = vpop.f32.mrb[105].mxu1  ;;  %v17381_v2 = vadd.f32 %v14531_v56, %v14491_v46  ;;  %v14492_v20 = vpop.f32.mrb[106].mxu0  ;;  %v7334_v46 = vsel %vm665_vm0, %v7329_v29, %v7333_v32 }
 0x1cd   : > { %v14532_v31 = vpop.f32.mrb[106].mxu1  ;;  %v3764_v51 = vpop.f32.mrb[107].mxu0  ;;  %v17425_v20 = vld [vmem:[#allocation2 + $0xb4] sm:$0xff]  }
 0x1ce   : > { %v3953_v57 = vpop.f32.mrb[107].mxu1 }
 0x1cf   : > { %v17387_v52 = vadd.f32 %v3953_v57, %v3764_v51  ;;  %14822 = vmatmul.mubr.bf16.gmra.mrb[212].mxu0 %v6495_v10  ;;  %v7343_v57 = vshrl.u32 %v15776_v27, 16  ;;  %v7337_v51 = vor.u32 %v7335_v5, %v7333_v32 }
 0x1d0   : > { %14862 = vmatmul.mubr.bf16.gmra.mrb[212].mxu1 %v17321_v28  ;;  %14881 = vmatprep.mubr.bf16.mxu0 %v15758_v36  ;;  %v7319_v28 = vshrl.u32 %v15767_v38, 16  ;;  %v7339_v38 = vshll.u32 %v15776_v27, 16  ;;  %v15779_v27 = vld [vmem:[#allocation2 + $0x9c] sm:$0xff]  }
 0x1d1   : > { %14921 = vmatprep.mubr.bf16.mxu1 %v7302_v53  ;;  %v7347_v53 = vshll.u32 %v17406_v11, 16 }
 0x1d2   : > { %v14495_v63 = vpop.f32.mrb[108].mxu0  ;;  %v7321_v49 = vor.u32 %v7319_v28, %v7317_v62  ;;  %v7341_v60 = vrot.slane %v7339_v38, 1  ;;  %v7355_v62 = vshll.u32 %v17419_v35, 16  ;;  %v7363_v28 = vshll.u32 %v17425_v20, 16  ;;  %v15792_v35 = vld [vmem:[%s18736_s3 + $0x130] sm:$0xff]  }
 0x1d3   : > { %v14535_v48 = vpop.f32.mrb[108].mxu1  ;;  %v3777_v8 = vpop.f32.mrb[109].mxu0  ;;  %v15775_v63 = vld [vmem:[#allocation2 + $0x94] sm:$0xff]  }
 0x1d4   : > { %v3966_v0 = vpop.f32.mrb[109].mxu1  ;;  %v14496_v25 = vpop.f32.mrb[110].mxu0  ;;  %v7326_v21 = vsel %vm665_vm0, %v7321_v49, %v7325_v39  ;;  %v7345_v22 = vor.u32 %v7343_v57, %v7341_v60  ;;  %v7349_v48 = vrot.slane %v7347_v53, 1  ;;  %v7367_v39 = vshrl.u32 %v17425_v20, 16  ;;  %v15785_v49 = vld [vmem:[%s18736_s3 + $0x168] sm:$0xff]  }
 0x1d5   : > { %v14536_v18 = vpop.f32.mrb[110].mxu1  ;;  %v17395_v37 = vadd.f32 %v3966_v0, %v3777_v8  ;;  %v3780_v12 = vpop.f32.mrb[111].mxu0  ;;  %v17435_v0 = vld [vmem:[#allocation2 + $0xbc] sm:$0xff]  }
 0x1d6   : > { %v3969_v47 = vpop.f32.mrb[111].mxu1  ;;  %v17404_v33 = vadd.f32 %v14536_v18, %v14496_v25  ;;  %v15784_v18 = vld [vmem:[%s18736_s3 + $0x120] sm:$0xff]   ;;  %v7350_v25 = vsel %vm665_vm0, %v7345_v22, %v7349_v48  ;;  %v7375_v53 = vshrl.u32 %v17435_v0, 16  ;;  %v17482_v22 = vld [vmem:[#allocation2 + $0x68] sm:$0xff]  }
 0x1d7   : > { %v17408_v3 = vadd.f32 %v3969_v47, %v3780_v12  ;;  %14882 = vmatmul.mubr.bf16.vlgmr.msra.gmra.mrb[216].mxu0 %v15761_v34  ;;  %v7342_v47 = vsel %vm665_vm0, %v7337_v51, %v7341_v60  ;;  %v7371_v12 = vshll.u32 %v17435_v0, 16 }
 0x1d8   : > { %14922 = vmatmul.mubr.bf16.vlgmr.msra.gmra.mrb[216].mxu1 %v7310_v13  ;;  %14946 = vmatpush3.bf16.msra.mxu0 %v17364_v7  ;;  %v7351_v13 = vshrl.u32 %v17406_v11, 16  ;;  %v7365_v11 = vrot.slane %v7363_v28, 1 }
 0x1d9   : > { %14986 = vmatpush3.bf16.msra.mxu1 %v17358_v44  ;;  %14925 = vmatprep.mubr.bf16.mxu1 %v7318_v23  ;;  %v15783_v23 = vld [vmem:[%s18736_s3 + $0x160] sm:$0xff]  }
 0x1da   : > { %14987 = vmatprep.subr.bf16.mxu1 %v15770_v1  ;;  %14885 = vmatprep.mubr.bf16.mxu0 %v15766_v19  ;;  %v14499_v7 = vpop.f32.mrb[112].mxu0  ;;  %v7357_v19 = vrot.slane %v7355_v62, 1  ;;  %v7353_v38 = vor.u32 %v7351_v13, %v7349_v48  ;;  %v17480_v62 = vld [vmem:[#allocation2 + $0xcc] ss:$0 sps:$4 sm:$0x11]  }
 0x1db   : > { %v14539_v44 = vpop.f32.mrb[112].mxu1  ;;  %14947 = vmatprep.subr.bf16.mxu0 %v15765_v16  ;;  %v3793_v58 = vpop.f32.mrb[113].mxu0 }
 0x1dc   : > { %v3982_v17 = vpop.f32.mrb[113].mxu1  ;;  %v17423_v36 = vadd.f32 %v14539_v44, %v14499_v7  ;;  %v14500_v43 = vpop.f32.mrb[114].mxu0  ;;  %14948 = vmatpush3.bf16.msra.mxu0 %v15765_v16  ;;  %v7358_v57 = vsel %vm665_vm0, %v7353_v38, %v7357_v19 }
 0x1dd   : > { %v14540_v56 = vpop.f32.mrb[114].mxu1  ;;  %14988 = vmatpush3.bf16.msra.mxu1 %v15770_v1  ;;  %v17427_v10 = vadd.f32 %v3982_v17, %v3793_v58  ;;  %v3796_v50 = vpop.f32.mrb[115].mxu0  ;;  %14949 = vmatprep.subr.bf16.mxu0 %v15771_v45  ;;  %v17458_v17 = vld [vmem:[#allocation2 + $0xc4] sm:$0xff]  }
 0x1de   : > { %v3985_v31 = vpop.f32.mrb[115].mxu1  ;;  %14989 = vmatprep.subr.bf16.mxu1 %v15772_v40  ;;  %v17433_v9 = vadd.f32 %v14540_v56, %v14500_v43  ;;  %v17460_v56 = vld [vmem:[#allocation2 + $0x64] sm:$0xf]  ;;  %v7379_v20 = vshll.u32 %v17458_v17, 16  ;;  %v15798_v50 = vld [vmem:[%s18736_s3 + $0x138] sm:$0xff]  }
 0x1df   : > { %14886 = vmatmul.mubr.bf16.gmra.mrb[220].mxu0 %v15768_v41  ;;  %v7361_v41 = vor.u32 %v7359_v24, %v7357_v19  ;;  %v7373_v31 = vrot.slane %v7371_v12, 1 }
 0x1e0   : > { %14926 = vmatmul.mubr.bf16.gmra.mrb[220].mxu1 %v7326_v21  ;;  %14950 = vmatpush3.bf16.msra.mxu0 %v15771_v45  ;;  %v7717_v45 = vld [vmem:[#allocation2 + $0x60] sm:$0xf]  ;;  %v7381_v19 = vrot.slane %v7379_v20, 1 }
 0x1e1   : > { %14929 = vmatprep.mubr.bf16.mxu1 %v7334_v46  ;;  %14990 = vmatpush3.bf16.msra.mxu1 %v15772_v40  ;;  %v15790_v40 = vld [vmem:[%s18736_s3 + $0x128] sm:$0xff]   ;;  %v7366_v43 = vsel %vm665_vm0, %v7361_v41, %v7365_v11  ;;  %v17478_v51 = vcombine.low %v7717_v45, %v17460_v56  ;;  %v7377_v28 = vor.u32 %v7375_v53, %v7373_v31 }
 0x1e2   : > { %14991 = vmatprep.subr.bf16.mxu1 %v15778_v59  ;;  %14889 = vmatprep.mubr.bf16.mxu0 %v15773_v30  ;;  %v14503_v6 = vpop.f32.mrb[116].mxu0  ;;  %v15781_v46 = vld [vmem:[#allocation2 + $0xa4] sm:$0xff]  }
 0x1e3   : > { %v14543_v14 = vpop.f32.mrb[116].mxu1  ;;  %14951 = vmatprep.subr.bf16.mxu0 %v15777_v61  ;;  %v3809_v16 = vpop.f32.mrb[117].mxu0 }
 0x1e4   : > { %v3998_v34 = vpop.f32.mrb[117].mxu1  ;;  %v17456_v29 = vadd.f32 %v14543_v14, %v14503_v6  ;;  %v14504_v32 = vpop.f32.mrb[118].mxu0  ;;  %14952 = vmatpush3.bf16.msra.mxu0 %v15777_v61  ;;  %v15786_v14 = vld [vmem:[#allocation2 + $0xac] sm:$0xff]   ;;  %v8063_v6 = vshll.u32 %v17482_v22, 16  ;;  %v17509_v16 = vld [vmem:[%s18736_s3 + $0x180] sm:$0xff]  }
 0x1e5   : > { %v14544_v1 = vpop.f32.mrb[118].mxu1  ;;  %14992 = vmatpush3.bf16.msra.mxu1 %v15778_v59  ;;  %v3812_v44 = vpop.f32.mrb[119].mxu0  ;;  %14953 = vmatprep.subr.bf16.mxu0 %v15783_v23  ;;  %v15791_v59 = vld [vmem:[%s18736_s3 + $0x170] sm:$0xff]   ;;  %v7383_v32 = vshrl.u32 %v17458_v17, 16 }
 0x1e6   : > { %v4001_v8 = vpop.f32.mrb[119].mxu1  ;;  %14993 = vmatprep.subr.bf16.mxu1 %v15784_v18  ;;  %v15797_v1 = vld [vmem:[%s18736_s3 + $0x178] sm:$0xff]  }
 0x1e7   : > { %v17462_v21 = vadd.f32 %v4001_v8, %v3812_v44  ;;  %14890 = vmatmul.mubr.bf16.gmra.mrb[224].mxu0 %v15775_v63  ;;  %v17497_v8 = vld [vmem:[%s18736_s3 + $0x1c0] sm:$0xff]   ;;  %v8056_v44 = vshrl.u32 %v17478_v51, 16 }
 0x1e8   : > { %14930 = vmatmul.mubr.bf16.gmra.mrb[224].mxu1 %v7342_v47  ;;  %14893 = vmatprep.mubr.bf16.mxu0 %v15779_v27 }
 0x1e9   : > { %14933 = vmatprep.mubr.bf16.mxu1 %v7350_v25  ;;  %14994 = vmatpush3.bf16.msra.mxu1 %v15784_v18  ;;  %v7369_v18 = vor.u32 %v7367_v39, %v7365_v11  ;;  %v7387_v11 = vshll.u32 %v17480_v62, 16 }
 0x1ea   : > { %14995 = vmatprep.subr.bf16.mxu1 %v15790_v40  ;;  %14954 = vmatpush3.bf16.msra.mxu0 %v15783_v23  ;;  %v14563_v58 = vpop.f32.mrb[120].mxu0 }
 0x1eb   : > { %v14603_v5 = vpop.f32.mrb[120].mxu1  ;;  %14955 = vmatprep.subr.bf16.mxu0 %v15785_v49  ;;  %v4208_v61 = vpop.f32.mrb[121].mxu0  ;;  %v7374_v12 = vsel %vm665_vm0, %v7369_v18, %v7373_v31 }
 0x1ec   : > { %v4626_v7 = vpop.f32.mrb[121].mxu1  ;;  %v4303_v48 = vadd.f32 %v4208_v61, %v17338_v15  ;;  %v14564_v0 = vpop.f32.mrb[122].mxu0  ;;  %v8058_v15 = vshll.u32 %v17478_v51, 16  ;;  %v7385_v51 = vor.u32 %v7383_v32, %v7381_v19  ;;  %v7389_v61 = vrot.slane %v7387_v11, 1  ;;  %v17543_v32 = vld [vmem:[#allocation2 + $0x80] sm:$0xff]  }
 0x1ed   : > { %v14604_v30 = vpop.f32.mrb[122].mxu1  ;;  %14996 = vmatpush3.bf16.msra.mxu1 %v15790_v40  ;;  %v4306_v34 = vadd.f32 %v14564_v0, %v17343_v26  ;;  %v4211_v13 = vpop.f32.mrb[123].mxu0  ;;  %v17491_v26 = vld [vmem:[#allocation2 + $0x60] sm:$0xe]  ;;  %v17529_v0 = vld [vmem:[#allocation2 + $0x78] sm:$0xff]  }
 0x1ee   : > { %v4629_v60 = vpop.f32.mrb[123].mxu1  ;;  %14997 = vmatprep.subr.bf16.mxu1 %v15792_v35  ;;  %14956 = vmatpush3.bf16.msra.mxu0 %v15785_v49  ;;  %v4721_v63 = vadd.f32 %v4626_v7, %v4303_v48  ;;  %v4304_v47 = vadd.f32 %v4211_v13, %v17352_v54  ;;  %v17502_v54 = vld [vmem:[%s18737_s4] ss:$0 sm:$0xff]  ;;  %v8060_v7 = vrot.slane %v8058_v15, 1  ;;  %v8065_v48 = vrot.slane %v8063_v6, 1 }
 0x1ef   : > { %14957 = vmatprep.subr.bf16.mxu0 %v15791_v59  ;;  %v4724_v23 = vadd.f32 %v14604_v30, %v4306_v34  ;;  %14894 = vmatmul.mubr.bf16.gmra.mrb[228].mxu0 %v15781_v46  ;;  %v15793_v46 = vld [vmem:[#allocation2 + $0xbc] sm:$0xff]   ;;  %v7839_v13 = vrot.slane %v17482_v22, 1  ;;  %v7390_v15 = vsel %vm665_vm0, %v7385_v51, %v7389_v61 }
 0x1f0   : > { %14934 = vmatmul.mubr.bf16.gmra.mrb[228].mxu1 %v7358_v57  ;;  %v4745_v27 = vadd.f32 %v17502_v54, %v4721_v63  ;;  %v4722_v25 = vadd.f32 %v4629_v60, %v4304_v47  ;;  %14897 = vmatprep.mubr.bf16.mxu0 %v15786_v14  ;;  %v12913_v60 = vcombine.low %v17491_v26, %v17460_v56 }
 0x1f1   : > { %14937 = vmatprep.mubr.bf16.mxu1 %v7366_v43  ;;  %14998 = vmatpush3.bf16.msra.mxu1 %v15792_v35  ;;  %v4748_v49 = vadd.f32 %v17502_v54, %v4724_v23  ;;  %v7382_v35 = vsel %vm665_vm0, %v7377_v28, %v7381_v19  ;;  %v17523_v43 = vld [vmem:[#allocation2 + $0x70] sm:$0xff]   ;;  %v8061_v62 = vor.u32 %v8060_v7, %v8056_v44  ;;  %v8067_v28 = vshrl.u32 %v17482_v22, 16 }
 0x1f2   : > { %14999 = vmatprep.subr.bf16.mxu1 %v15798_v50  ;;  %14958 = vmatpush3.bf16.msra.mxu0 %v15791_v59  ;;  %v13396_v38 = vpack.c.bf16 %v4745_v27, %v4745_v27  ;;  %v4746_v45 = vadd.f32 %v17502_v54, %v4722_v25  ;;  %v14567_v41 = vpop.f32.mrb[124].mxu0  ;;  %v15788_v59 = vld [vmem:[#allocation2 + $0xb4] sm:$0xff]   ;;  %v7838_v23 = vrot.slane %v12913_v60, 1  ;;  %v15795_v27 = vld [vmem:[#allocation2 + $0xc4] sm:$0xff]   ;;  %v8079_v22 = vshll.u32 %v17529_v0, 16 }
 0x1f3   : > { %v14607_v24 = vpop.f32.mrb[124].mxu1  ;;  %14959 = vmatprep.subr.bf16.mxu0 %v15797_v1  ;;  %v13398_v31 = vpack.c.bf16 %v4748_v49, %v4748_v49  ;;  %v4309_v17 = vadd.f32 %v14567_v41, %v17366_v42  ;;  %v4224_v30 = vpop.f32.mrb[125].mxu0  ;;  %v8066_v25 = vsel %vm665_vm0, %v8061_v62, %v8065_v48  ;;  %v8091_v62 = vshrl.u32 %v17543_v32, 16 }
 0x1f4   : > { %v4642_v39 = vpop.f32.mrb[125].mxu1  ;;  %12559 = vst [vmem:[%s16724_s8 + $0x10] sm:$0xf] %v13396_v38  ;;  %v13397_v57 = vpack.c.bf16 %v4746_v45, %v4746_v45  ;;  %v4307_v53 = vadd.f32 %v4224_v30, %v17369_v55  ;;  %v14568_v58 = vpop.f32.mrb[126].mxu0  ;;  %v7840_v41 = vsel %vm2117_vm1, %v7838_v23, %v7839_v13  ;;  %v8081_v7 = vrot.slane %v8079_v22, 1 }
 0x1f5   : > { %v14608_v40 = vpop.f32.mrb[126].mxu1  ;;  %15000 = vmatpush3.bf16.msra.mxu1 %v15798_v50  ;;  %12561 = vst [vmem:[%s16724_s8 + $0x30] sm:$0xf] %v13398_v31  ;;  %v4727_v20 = vadd.f32 %v14607_v24, %v4309_v17  ;;  %v4310_v42 = vadd.f32 %v14568_v58, %v17374_v4  ;;  %v4227_v50 = vpop.f32.mrb[127].mxu0  ;;  %v17549_v31 = vld [vmem:[#allocation2 + $0x88] sm:$0xff]   ;;  %v8087_v58 = vshll.u32 %v17543_v32, 16 }
 0x1f6   : > { %v4645_v5 = vpop.f32.mrb[127].mxu1  ;;  %15065 = vmatprep.subr.bf16.mxu1 %v17497_v8  ;;  %14960 = vmatpush3.bf16.msra.mxu0 %v15797_v1  ;;  %12560 = vst [vmem:[%s16724_s8 + $0x18] sm:$0xf] %v13397_v57  ;;  %v4725_v55 = vadd.f32 %v4642_v39, %v4307_v53  ;;  %v8071_v1 = vshll.u32 %v17523_v43, 16  ;;  %v8075_v39 = vshrl.u32 %v17523_v43, 16  ;;  %v7841_v57 = vrot.slane %v17523_v43, 1 }
 0x1f7   : > { %15025 = vmatprep.subr.bf16.mxu0 %v17509_v16  ;;  %v4751_v56 = vadd.f32 %v17502_v54, %v4727_v20  ;;  %v4728_v14 = vadd.f32 %v14608_v40, %v4310_v42  ;;  %14898 = vmatmul.mubr.bf16.gmra.mrb[232].mxu0 %v15788_v59  ;;  %v8069_v5 = vor.u32 %v8067_v28, %v8065_v48  ;;  %v7843_v53 = vrot.slane %v17529_v0, 1  ;;  %v15808_v43 = vld [vmem:[%s18736_s3 + $0x1c8] sm:$0xff]  }
 0x1f8   : > { %14938 = vmatmul.mubr.bf16.gmra.mrb[232].mxu1 %v7374_v12  ;;  %v4749_v34 = vadd.f32 %v17502_v54, %v4725_v55  ;;  %14901 = vmatprep.mubr.bf16.mxu0 %v15793_v46  ;;  %v8073_v44 = vrot.slane %v8071_v1, 1  ;;  %v8083_v42 = vshrl.u32 %v17529_v0, 16  ;;  %v8095_v48 = vshll.u32 %v17549_v31, 16  ;;  %v17616_v0 = vld [vmem:[#allocation2 + $0xa8] sm:$0xff]  }
 0x1f9   : > { %14941 = vmatprep.mubr.bf16.mxu1 %v7382_v35  ;;  %v13400_v63 = vpack.c.bf16 %v4751_v56, %v4751_v56  ;;  %v4752_v47 = vadd.f32 %v17502_v54, %v4728_v14  ;;  %v15805_v14 = vld [vmem:[%s18736_s3 + $0x188] sm:$0xff]   ;;  %v7842_v1 = vsel %vm2117_vm1, %v7839_v13, %v7841_v57  ;;  %v7844_v23 = vsel %vm2117_vm1, %v7841_v57, %v7843_v53 }
 0x1fa   : > { %v13399_v24 = vpack.c.bf16 %v4749_v34, %v4749_v34  ;;  %v14571_v26 = vpop.f32.mrb[128].mxu0  ;;  %v8077_v35 = vor.u32 %v8075_v39, %v8073_v44  ;;  %v8074_v20 = vsel %vm665_vm0, %v8069_v5, %v8073_v44  ;;  %v8085_v13 = vor.u32 %v8083_v42, %v8081_v7 }
 0x1fb   : > { %v14611_v18 = vpop.f32.mrb[128].mxu1  ;;  %12563 = vst [vmem:[%s16724_s8 + $0x50] sm:$0xf] %v13400_v63  ;;  %v13401_v12 = vpack.c.bf16 %v4752_v47, %v4752_v47  ;;  %v4313_v49 = vadd.f32 %v14571_v26, %v17381_v2  ;;  %v4240_v40 = vpop.f32.mrb[129].mxu0  ;;  %v8089_v63 = vrot.slane %v8087_v58, 1  ;;  %v17575_v47 = vld [vmem:[%s18736_s3 + $0x1d0] sm:$0xff]  }
 0x1fc   : > { %v4658_v4 = vpop.f32.mrb[129].mxu1  ;;  %12562 = vst [vmem:[%s16724_s8 + $0x38] sm:$0xf] %v13399_v24  ;;  %v14572_v11 = vpop.f32.mrb[130].mxu0  ;;  %v8082_v55 = vsel %vm665_vm0, %v8077_v35, %v8081_v7  ;;  %v7847_v40 = vrot.slane %v17549_v31, 1 }
 0x1fd   : > { %v14612_v19 = vpop.f32.mrb[130].mxu1  ;;  %12564 = vst [vmem:[%s16724_s8 + $0x58] sm:$0xf] %v13401_v12  ;;  %v4731_v38 = vadd.f32 %v14611_v18, %v4313_v49  ;;  %v4243_v45 = vpop.f32.mrb[131].mxu0  ;;  %v17568_v18 = vld [vmem:[#allocation2 + $0x90] sm:$0xff]  }
 0x1fe   : > { %v4661_v6 = vpop.f32.mrb[131].mxu1  ;;  %v4312_v59 = vadd.f32 %v4243_v45, %v17387_v52  ;;  %v8103_v39 = vshll.u32 %v17568_v18, 16 }
 0x1ff   : > { %v4755_v2 = vadd.f32 %v17502_v54, %v4731_v38  ;;  %14902 = vmatmul.mubr.bf16.gmra.mrb[236].mxu0 %v15795_v27  ;;  %v8097_v27 = vrot.slane %v8095_v48, 1  ;;  %v8090_v38 = vsel %vm665_vm0, %v8085_v13, %v8089_v63 }
 0x200   : > { %14942 = vmatmul.mubr.bf16.gmra.mrb[236].mxu1 %v7390_v15  ;;  %v4730_v30 = vadd.f32 %v4661_v6, %v4312_v59  ;;  %14961 = vmatprep.mubr.bf16.mxu0 %v7840_v41  ;;  %v8093_v6 = vor.u32 %v8091_v62, %v8089_v63  ;;  %v8105_v58 = vrot.slane %v8103_v39, 1  ;;  %v17642_v39 = vld [vmem:[#allocation2 + $0xb0] sm:$0xff]  }
 0x201   : > { %15001 = vmatprep.mubr.bf16.mxu1 %v8066_v25  ;;  %v13403_v60 = vpack.c.bf16 %v4755_v2, %v4755_v2  ;;  %v17585_v25 = vld [vmem:[#allocation2 + $0x98] sm:$0xff]   ;;  %v17602_v2 = vld [vmem:[#allocation2 + $0xa0] sm:$0xff]  }
 0x202   : > { %v4754_v50 = vadd.f32 %v17502_v54, %v4730_v30  ;;  %v14575_v51 = vpop.f32.mrb[132].mxu0  ;;  %v8098_v35 = vsel %vm665_vm0, %v8093_v6, %v8097_v27  ;;  %v8111_v7 = vshll.u32 %v17585_v25, 16  ;;  %v8119_v48 = vshll.u32 %v17602_v2, 16 }
 0x203   : > { %v14615_v17 = vpop.f32.mrb[132].mxu1  ;;  %12566 = vst [vmem:[%s16724_s8 + $0x78] sm:$0xf] %v13403_v60  ;;  %v4256_v56 = vpop.f32.mrb[133].mxu0  ;;  %v15814_v60 = vld [vmem:[%s18736_s3 + $0x1d8] sm:$0xff]   ;;  %v7851_v63 = vrot.slane %v17585_v25, 1 }
 0x204   : > { %v4674_v46 = vpop.f32.mrb[133].mxu1  ;;  %v13402_v34 = vpack.c.bf16 %v4754_v50, %v4754_v50  ;;  %v4315_v4 = vadd.f32 %v4256_v56, %v17395_v37  ;;  %v14576_v28 = vpop.f32.mrb[134].mxu0  ;;  %v7845_v37 = vrot.slane %v17543_v32, 1  ;;  %v8099_v32 = vshrl.u32 %v17549_v31, 16  ;;  %v17664_v31 = vld [vmem:[#allocation2 + $0xb8] sm:$0xff]  }
 0x205   : > { %v14616_v52 = vpop.f32.mrb[134].mxu1  ;;  %v4318_v19 = vadd.f32 %v14576_v28, %v17404_v33  ;;  %v4259_v15 = vpop.f32.mrb[135].mxu0  ;;  %v8113_v62 = vrot.slane %v8111_v7, 1  ;;  %v7853_v13 = vrot.slane %v17602_v2, 1 }
 0x206   : > { %v4677_v61 = vpop.f32.mrb[135].mxu1  ;;  %12565 = vst [vmem:[%s16724_s8 + $0x70] sm:$0xf] %v13402_v34  ;;  %v4733_v24 = vadd.f32 %v4674_v46, %v4315_v4  ;;  %v4316_v26 = vadd.f32 %v4259_v15, %v17408_v3  ;;  %v15809_v3 = vld [vmem:[%s18736_s3 + $0x190] sm:$0xff]   ;;  %v7846_v57 = vsel %vm2117_vm1, %v7843_v53, %v7845_v37  ;;  %v7849_v34 = vrot.slane %v17568_v18, 1  ;;  %v15818_v4 = vld [vmem:[%s18736_s3 + $0x1e0] sm:$0xff]  }
 0x207   : > { %v4736_v33 = vadd.f32 %v14616_v52, %v4318_v19  ;;  %14962 = vmatmul.mubr.bf16.vlgmr.msra.gmra.mrb[240].mxu0 %v7842_v1  ;;  %v8127_v19 = vshll.u32 %v17616_v0, 16 }
 0x208   : > { %15002 = vmatmul.mubr.bf16.vlgmr.msra.gmra.mrb[240].mxu1 %v8074_v20  ;;  %v4757_v22 = vadd.f32 %v17502_v54, %v4733_v24  ;;  %v4734_v12 = vadd.f32 %v4677_v61, %v4316_v26  ;;  %15026 = vmatpush3.bf16.msra.mxu0 %v17509_v16  ;;  %v8107_v16 = vshrl.u32 %v17568_v18, 16  ;;  %v8101_v61 = vor.u32 %v8099_v32, %v8097_v27  ;;  %v15817_v24 = vld [vmem:[%s18736_s3 + $0x1a0] sm:$0xff]  }
 0x209   : > { %15066 = vmatpush3.bf16.msra.mxu1 %v17497_v8  ;;  %15005 = vmatprep.mubr.bf16.mxu1 %v8082_v55  ;;  %v4760_v11 = vadd.f32 %v17502_v54, %v4736_v33 }
 0x20a   : > { %15067 = vmatprep.subr.bf16.mxu1 %v15808_v43  ;;  %14965 = vmatprep.mubr.bf16.mxu0 %v7844_v23  ;;  %v13404_v45 = vpack.c.bf16 %v4757_v22, %v4757_v22  ;;  %v4758_v41 = vadd.f32 %v17502_v54, %v4734_v12  ;;  %v14579_v5 = vpop.f32.mrb[136].mxu0  ;;  %v8123_v22 = vshrl.u32 %v17602_v2, 16  ;;  %v15822_v12 = vld [vmem:[%s18736_s3 + $0x1e8] sm:$0xff]  }
 0x20b   : > { %v14619_v8 = vpop.f32.mrb[136].mxu1  ;;  %15027 = vmatprep.subr.bf16.mxu0 %v15805_v14  ;;  %v13406_v17 = vpack.c.bf16 %v4760_v11, %v4760_v11  ;;  %v4321_v30 = vadd.f32 %v14579_v5, %v17423_v36  ;;  %v4272_v46 = vpop.f32.mrb[137].mxu0  ;;  %v7848_v36 = vsel %vm2117_vm1, %v7845_v37, %v7847_v40  ;;  %v8106_v37 = vsel %vm665_vm0, %v8101_v61, %v8105_v58  ;;  %v15819_v11 = vld [vmem:[%s18736_s3 + $0x1a8] sm:$0xff]  }
 0x20c   : > { %v4690_v49 = vpop.f32.mrb[137].mxu1  ;;  %12567 = vst [vmem:[%s16724_s8 + $0x90] sm:$0xf] %v13404_v45  ;;  %v13405_v52 = vpack.c.bf16 %v4758_v41, %v4758_v41  ;;  %v4319_v20 = vadd.f32 %v4272_v46, %v17427_v10  ;;  %v14580_v42 = vpop.f32.mrb[138].mxu0  ;;  %15028 = vmatpush3.bf16.msra.mxu0 %v15805_v14  ;;  %v15813_v10 = vld [vmem:[%s18736_s3 + $0x198] sm:$0xff]   ;;  %v7857_v45 = vrot.slane %v17642_v39, 1 }
 0x20d   : > { %v14620_v44 = vpop.f32.mrb[138].mxu1  ;;  %15068 = vmatpush3.bf16.msra.mxu1 %v15808_v43  ;;  %12569 = vst [vmem:[%s16724_s8 + $0xb0] sm:$0xf] %v13406_v17  ;;  %v4739_v53 = vadd.f32 %v14619_v8, %v4321_v30  ;;  %v4322_v50 = vadd.f32 %v14580_v42, %v17433_v9  ;;  %v4275_v51 = vpop.f32.mrb[139].mxu0  ;;  %15029 = vmatprep.subr.bf16.mxu0 %v15809_v3  ;;  %v8121_v8 = vrot.slane %v8119_v48, 1  ;;  %v8129_v41 = vrot.slane %v8127_v19, 1 }
 0x20e   : > { %v4693_v59 = vpop.f32.mrb[139].mxu1  ;;  %15069 = vmatprep.subr.bf16.mxu1 %v17575_v47  ;;  %12568 = vst [vmem:[%s16724_s8 + $0x98] sm:$0xf] %v13405_v52  ;;  %v4737_v55 = vadd.f32 %v4690_v49, %v4319_v20  ;;  %v8109_v43 = vor.u32 %v8107_v16, %v8105_v58  ;;  %v7850_v16 = vsel %vm2117_vm1, %v7847_v40, %v7849_v34  ;;  %v8135_v30 = vshll.u32 %v17642_v39, 16  ;;  %v15824_v46 = vld [vmem:[%s18736_s3 + $0x1f0] sm:$0xff]  }
 0x20f   : > { %v4763_v56 = vadd.f32 %v17502_v54, %v4739_v53  ;;  %v4740_v14 = vadd.f32 %v14620_v44, %v4322_v50  ;;  %14966 = vmatmul.mubr.bf16.gmra.mrb[244].mxu0 %v7846_v57  ;;  %v7855_v44 = vrot.slane %v17616_v0, 1  ;;  %v8125_v17 = vor.u32 %v8123_v22, %v8121_v8  ;;  %v17676_v42 = vld [vmem:[#allocation2 + $0xc0] ss:$0 sps:$4 sm:$0x11]   ;;  %v17682_v48 = vld [vmem:[#allocation2 + $0x70] sm:$0xf] }
 0x210   : > { %15006 = vmatmul.mubr.bf16.gmra.mrb[244].mxu1 %v8090_v38  ;;  %v4761_v28 = vadd.f32 %v17502_v54, %v4737_v55  ;;  %15030 = vmatpush3.bf16.msra.mxu0 %v15809_v3  ;;  %v8114_v33 = vsel %vm665_vm0, %v8109_v43, %v8113_v62  ;;  %v8139_v52 = vshrl.u32 %v17642_v39, 16  ;;  %v8143_v51 = vshll.u32 %v17664_v31, 16 }
 0x211   : > { %15009 = vmatprep.mubr.bf16.mxu1 %v8098_v35  ;;  %15070 = vmatpush3.bf16.msra.mxu1 %v17575_v47  ;;  %v8115_v47 = vshrl.u32 %v17585_v25, 16  ;;  %v13408_v15 = vpack.c.bf16 %v4763_v56, %v4763_v56  ;;  %v4764_v18 = vadd.f32 %v17502_v54, %v4740_v14  ;;  %v7852_v35 = vsel %vm2117_vm1, %v7849_v34, %v7851_v63  ;;  %v15828_v34 = vld [vmem:[%s18736_s3 + $0x1f8] sm:$0xff]  }
 0x212   : > { %15071 = vmatprep.subr.bf16.mxu1 %v15814_v60  ;;  %14969 = vmatprep.mubr.bf16.mxu0 %v7848_v36  ;;  %v13407_v26 = vpack.c.bf16 %v4761_v28, %v4761_v28  ;;  %v14583_v6 = vpop.f32.mrb[140].mxu0  ;;  %v8130_v43 = vsel %vm665_vm0, %v8125_v17, %v8129_v41  ;;  %v7854_v14 = vsel %vm2117_vm1, %v7851_v63, %v7853_v13  ;;  %v8137_v25 = vrot.slane %v8135_v30, 1 }
 0x213   : > { %v14623_v9 = vpop.f32.mrb[140].mxu1  ;;  %15031 = vmatprep.subr.bf16.mxu0 %v15813_v10  ;;  %12571 = vst [vmem:[%s16724_s8 + $0xd0] sm:$0xf] %v13408_v15  ;;  %v13409_v49 = vpack.c.bf16 %v4764_v18, %v4764_v18  ;;  %v4325_v3 = vadd.f32 %v14583_v6, %v17456_v29  ;;  %v4288_v32 = vpop.f32.mrb[141].mxu0  ;;  %v8131_v29 = vshrl.u32 %v17616_v0, 16  ;;  %v8117_v7 = vor.u32 %v8115_v47, %v8113_v62  ;;  %v15827_v18 = vld [vmem:[%s18736_s3 + $0x1b8] sm:$0xff]  }
 0x214   : > { %v4706_v1 = vpop.f32.mrb[141].mxu1  ;;  %12570 = vst [vmem:[%s16724_s8 + $0xb8] sm:$0xf] %v13407_v26  ;;  %v14584_v38 = vpop.f32.mrb[142].mxu0  ;;  %15032 = vmatpush3.bf16.msra.mxu0 %v15813_v10  ;;  %v8344_v62 = vld [vmem:[#allocation2 + $0x6c] sm:$0xf] }
 0x215   : > { %v14624_v23 = vpop.f32.mrb[142].mxu1  ;;  %15072 = vmatpush3.bf16.msra.mxu1 %v15814_v60  ;;  %12572 = vst [vmem:[%s16724_s8 + $0xd8] sm:$0xf] %v13409_v49  ;;  %v4743_v5 = vadd.f32 %v14623_v9, %v4325_v3  ;;  %v4291_v59 = vpop.f32.mrb[143].mxu0  ;;  %15033 = vmatprep.subr.bf16.mxu0 %v15817_v24  ;;  %v15823_v60 = vld [vmem:[%s18736_s3 + $0x1b0] sm:$0xff]   ;;  %v8122_v50 = vsel %vm665_vm0, %v8117_v7, %v8121_v8  ;;  %v7859_v63 = vrot.slane %v17664_v31, 1 }
 0x216   : > { %v4709_v27 = vpop.f32.mrb[143].mxu1  ;;  %15073 = vmatprep.subr.bf16.mxu1 %v15818_v4  ;;  %v4324_v40 = vadd.f32 %v4291_v59, %v17462_v21  ;;  %v8133_v9 = vor.u32 %v8131_v29, %v8129_v41  ;;  %v8145_v19 = vrot.slane %v8143_v51, 1  ;;  %v8151_v15 = vshll.u32 %v17676_v42, 16  ;;  %v8761_v6 = vld [vmem:[#allocation2 + $0x6c] sm:$0xe]  ;;  %v17718_v8 = vld [vmem:[#allocation2 + $0x7c] sm:$0xff]  }
 0x217   : > { %v4767_v57 = vadd.f32 %v17502_v54, %v4743_v5  ;;  %14970 = vmatmul.mubr.bf16.gmra.mrb[248].mxu0 %v7850_v16  ;;  %v12959_v23 = vcombine.low %v8344_v62, %v17682_v48  ;;  %v8147_v49 = vshrl.u32 %v17664_v31, 16  ;;  %v17725_v32 = vld [vmem:[%s18736_s3 + $0x240] sm:$0xff]   ;;  %v12996_v41 = vcombine.low %v8761_v6, %v17682_v48  ;;  %v17770_v31 = vld [vmem:[#allocation2 + $0x94] sm:$0xff]  }
 0x218   : > { %15010 = vmatmul.mubr.bf16.gmra.mrb[248].mxu1 %v8106_v37  ;;  %v4742_v21 = vadd.f32 %v4709_v27, %v4324_v40  ;;  %14973 = vmatprep.mubr.bf16.mxu0 %v7852_v35  ;;  %v17716_v27 = vld [vmem:[%s18736_s3 + $0x200] sm:$0xff]   ;;  %v7858_v59 = vsel %vm2117_vm1, %v7855_v44, %v7857_v45  ;;  %v8153_v35 = vrot.slane %v8151_v15, 1  ;;  %v7860_v0 = vsel %vm2117_vm1, %v7857_v45, %v7859_v63 }
 0x219   : > { %15013 = vmatprep.mubr.bf16.mxu1 %v8114_v33  ;;  %15074 = vmatpush3.bf16.msra.mxu1 %v15818_v4  ;;  %v13411_v36 = vpack.c.bf16 %v4767_v57, %v4767_v57  ;;  %v8451_v3 = vshll.u32 %v12959_v23, 16  ;;  %v8449_v17 = vshrl.u32 %v12959_v23, 16 }
 0x21a   : > { %15075 = vmatprep.subr.bf16.mxu1 %v15822_v12  ;;  %15034 = vmatpush3.bf16.msra.mxu0 %v15817_v24  ;;  %v4766_v61 = vadd.f32 %v17502_v54, %v4742_v21  ;;  %v14643_v10 = vpop.f32.mrb[144].mxu0  ;;  %v7856_v54 = vsel %vm2117_vm1, %v7853_v13, %v7855_v44  ;;  %v8141_v13 = vor.u32 %v8139_v52, %v8137_v25  ;;  %v17711_v24 = vld [vmem:[#allocation2 + $0x74] sm:$0xff]   ;;  %v8781_v52 = vrot.slane %v12996_v41, 1 }
 0x21b   : > { %v14683_v58 = vpop.f32.mrb[144].mxu1  ;;  %15035 = vmatprep.subr.bf16.mxu0 %v15819_v11  ;;  %12574 = vst [vmem:[%s16724_s8 + $0xf8] sm:$0xf] %v13411_v36  ;;  %v5100_v56 = vpop.f32.mrb[145].mxu0  ;;  %v8456_v30 = vshll.u32 %v17711_v24, 16  ;;  %v8149_v44 = vor.u32 %v8147_v49, %v8145_v19  ;;  %v8782_v21 = vrot.slane %v17711_v24, 1 }
 0x21c   : > { %v5392_v20 = vpop.f32.mrb[145].mxu1  ;;  %v13410_v4 = vpack.c.bf16 %v4766_v61, %v4766_v61  ;;  %v14644_v1 = vpop.f32.mrb[146].mxu0  ;;  %v8146_v16 = vsel %vm665_vm0, %v8141_v13, %v8145_v19  ;;  %v7861_v36 = vrot.slane %v17676_v42, 1  ;;  %v8784_v42 = vrot.slane %v17718_v8, 1 }
 0x21d   : > { %v14684_v53 = vpop.f32.mrb[146].mxu1  ;;  %15076 = vmatpush3.bf16.msra.mxu1 %v15822_v12  ;;  %v17698_v28 = vadd.f32 %v5392_v20, %v5100_v56  ;;  %v5103_v2 = vpop.f32.mrb[147].mxu0  ;;  %v8138_v12 = vsel %vm665_vm0, %v8133_v9, %v8137_v25  ;;  %v8154_v39 = vsel %vm665_vm0, %v8149_v44, %v8153_v35  ;;  %v8458_v61 = vrot.slane %v8456_v30, 1  ;;  %v15840_v44 = vld [vmem:[%s18736_s3 + $0x210] sm:$0xff]  }
 0x21e   : > { %v5395_v55 = vpop.f32.mrb[147].mxu1  ;;  %15077 = vmatprep.subr.bf16.mxu1 %v15824_v46  ;;  %15036 = vmatpush3.bf16.msra.mxu0 %v15819_v11  ;;  %v17701_v47 = vadd.f32 %v14684_v53, %v14644_v1  ;;  %12573 = vst [vmem:[%s16724_s8 + $0xf0] sm:$0xf] %v13410_v4  ;;  %v8783_v48 = vsel %vm2117_vm1, %v8781_v52, %v8782_v21  ;;  %v17764_v1 = vld [vmem:[#allocation2 + $0x8c] sm:$0xff]   ;;  %v16002_v52 = vmov 0  }
 0x21f   : > { %15037 = vmatprep.subr.bf16.mxu0 %v15823_v60  ;;  %v17709_v37 = vadd.f32 %v5395_v55, %v5103_v2  ;;  %14974 = vmatmul.mubr.bf16.gmra.mrb[252].mxu0 %v7854_v14  ;;  %v7862_v9 = vsel %vm2117_vm1, %v7859_v63, %v7861_v36  ;;  %v8785_v13 = vsel %vm2117_vm1, %v8782_v21, %v8784_v42  ;;  %v8484_v35 = vshrl.u32 %v17764_v1, 16  ;;  %v15839_v36 = vld [vmem:[%s18736_s3 + $0x250] sm:$0xff]  }
 0x220   : > { %15014 = vmatmul.mubr.bf16.gmra.mrb[252].mxu1 %v8122_v50  ;;  %14977 = vmatprep.mubr.bf16.mxu0 %v7856_v54  ;;  %v17751_v50 = vld [vmem:[#allocation2 + $0x84] sm:$0xff]   ;;  %542 = vst [vmem:[#allocation2 + $0xd8] sm:$0xf] %v16002_v52 }
 0x221   : > { %15017 = vmatprep.mubr.bf16.mxu1 %v8130_v43  ;;  %15078 = vmatpush3.bf16.msra.mxu1 %v15824_v46  ;;  %v8464_v46 = vshll.u32 %v17718_v8, 16  ;;  %v8460_v43 = vshrl.u32 %v17711_v24, 16  ;;  %v8472_v4 = vshll.u32 %v17751_v50, 16  ;;  %v8786_v19 = vrot.slane %v17751_v50, 1 }
 0x222   : > { %15079 = vmatprep.subr.bf16.mxu1 %v15828_v34  ;;  %15038 = vmatpush3.bf16.msra.mxu0 %v15823_v60  ;;  %v14647_v11 = vpop.f32.mrb[148].mxu0  ;;  %v8453_v60 = vrot.slane %v8451_v3, 1  ;;  %v8788_v3 = vrot.slane %v17764_v1, 1 }
 0x223   : > { %v14687_v26 = vpop.f32.mrb[148].mxu1  ;;  %15039 = vmatprep.subr.bf16.mxu0 %v15827_v18  ;;  %v5116_v5 = vpop.f32.mrb[149].mxu0  ;;  %v8466_v62 = vrot.slane %v8464_v46, 1  ;;  %v8462_v23 = vor.u32 %v8460_v43, %v8458_v61  ;;  %v8474_v6 = vrot.slane %v8472_v4, 1  ;;  %v8787_v49 = vsel %vm2117_vm1, %v8784_v42, %v8786_v19  ;;  %v15835_v46 = vld [vmem:[%s18736_s3 + $0x248] sm:$0xff]  }
 0x224   : > { %v5408_v33 = vpop.f32.mrb[149].mxu1  ;;  %v17729_v29 = vadd.f32 %v14687_v26, %v14647_v11  ;;  %v14648_v40 = vpop.f32.mrb[150].mxu0  ;;  %v8454_v45 = vor.u32 %v8453_v60, %v8449_v17  ;;  %v15838_v11 = vld [vmem:[%s18736_s3 + $0x208] sm:$0xff]   ;;  %v8790_v60 = vrot.slane %v17770_v31, 1  ;;  %v8492_v43 = vshrl.u32 %v17770_v31, 16 }
 0x225   : > { %v14688_v22 = vpop.f32.mrb[150].mxu1  ;;  %15080 = vmatpush3.bf16.msra.mxu1 %v15828_v34  ;;  %v17737_v7 = vadd.f32 %v5408_v33, %v5116_v5  ;;  %v5119_v58 = vpop.f32.mrb[151].mxu0  ;;  %v8468_v34 = vshrl.u32 %v17718_v8, 16  ;;  %v8476_v33 = vshrl.u32 %v17751_v50, 16  ;;  %v8480_v8 = vshll.u32 %v17764_v1, 16 }
 0x226   : > { %v5411_v38 = vpop.f32.mrb[151].mxu1  ;;  %15145 = vmatprep.subr.bf16.mxu1 %v17716_v27  ;;  %15040 = vmatpush3.bf16.msra.mxu0 %v15827_v18  ;;  %v17741_v57 = vadd.f32 %v14688_v22, %v14648_v40  ;;  %v8459_v2 = vsel %vm665_vm0, %v8454_v45, %v8458_v61  ;;  %v17785_v40 = vld [vmem:[#allocation2 + $0x9c] sm:$0xff]   ;;  %v418_v45 = vld [vmem:[%s17146_s14 + $0x4] sm:$0xf]  ;;  %v419_v61 = vld [vmem:[%s17146_s14 + $0x8] sm:$0xf] }
 0x227   : > { %15105 = vmatprep.subr.bf16.mxu0 %v17725_v32  ;;  %14978 = vmatmul.mubr.bf16.gmra.mrb[0].mxu0 %v7858_v59  ;;  %v8470_v26 = vor.u32 %v8468_v34, %v8466_v62  ;;  %v8467_v59 = vsel %vm665_vm0, %v8462_v23, %v8466_v62  ;;  %v17809_v62 = vld [vmem:[#allocation2 + $0xa4] sm:$0xff]   ;;  %v8792_v23 = vrot.slane %v17785_v40, 1 }
 0x228   : > { %15018 = vmatmul.mubr.bf16.gmra.mrb[0].mxu1 %v8138_v12  ;;  %14981 = vmatprep.mubr.bf16.mxu0 %v7860_v0  ;;  %v8482_v0 = vrot.slane %v8480_v8, 1  ;;  %v8504_v8 = vshll.u32 %v17809_v62, 16 }
 0x229   : > { %15021 = vmatprep.mubr.bf16.mxu1 %v8146_v16  ;;  %v8488_v16 = vshll.u32 %v17770_v31, 16  ;;  %v8475_v58 = vsel %vm665_vm0, %v8470_v26, %v8474_v6 }
 0x22a   : > { %v14651_v10 = vpop.f32.mrb[152].mxu0 }
 0x22b   : > { %v14691_v20 = vpop.f32.mrb[152].mxu1  ;;  %v5132_v14 = vpop.f32.mrb[153].mxu0 }
 0x22c   : > { %v5424_v53 = vpop.f32.mrb[153].mxu1  ;;  %v17756_v56 = vadd.f32 %v14691_v20, %v14651_v10  ;;  %v14652_v54 = vpop.f32.mrb[154].mxu0  ;;  %v8478_v20 = vor.u32 %v8476_v33, %v8474_v6  ;;  %v438_v14 = vmul.bf16 0.0, %v418_v45  ;;  %v15843_v6 = vld [vmem:[%s18736_s3 + $0x258] sm:$0xff]   ;;  %v8500_v33 = vshrl.u32 %v17785_v40, 16  ;;  %v17859_v45 = vld [vmem:[#allocation2 + $0xc4] sm:$0xff]  }
 0x22d   : > { %v14692_v51 = vpop.f32.mrb[154].mxu1  ;;  %v5135_v25 = vpop.f32.mrb[155].mxu0  ;;  %v8490_v53 = vrot.slane %v8488_v16, 1 }
 0x22e   : > { %v5427_v55 = vpop.f32.mrb[155].mxu1  ;;  %v8486_v51 = vor.u32 %v8484_v35, %v8482_v0  ;;  %v8483_v1 = vsel %vm665_vm0, %v8478_v20, %v8482_v0 }
 0x22f   : > { %v17768_v15 = vadd.f32 %v5427_v55, %v5135_v25  ;;  %14982 = vmatmul.mubr.bf16.gmra.mrb[4].mxu0 %v7862_v9  ;;  %v8789_v55 = vsel %vm2117_vm1, %v8786_v19, %v8788_v3  ;;  %v8791_v9 = vsel %vm2117_vm1, %v8788_v3, %v8790_v60  ;;  %v15844_v25 = vld [vmem:[%s18736_s3 + $0x218] sm:$0xff]   ;;  %v8494_v16 = vor.u32 %v8492_v43, %v8490_v53 }
 0x230   : > { %15022 = vmatmul.mubr.bf16.gmra.mrb[4].mxu1 %v8154_v39  ;;  %15041 = vmatprep.mubr.bf16.mxu0 %v8459_v2  ;;  %v8496_v39 = vshll.u32 %v17785_v40, 16  ;;  %v8506_v40 = vrot.slane %v8504_v8, 1 }
 0x231   : > { %15081 = vmatprep.mubr.bf16.mxu1 %v8783_v48  ;;  %v17811_v48 = vld [vmem:[#allocation2 + $0xac] sm:$0xff]  }
 0x232   : > { %v14655_v22 = vpop.f32.mrb[156].mxu0  ;;  %v8796_v52 = vrot.slane %v17811_v48, 1  ;;  %v8516_v31 = vshrl.u32 %v17811_v48, 16 }
 0x233   : > { %v14695_v18 = vpop.f32.mrb[156].mxu1  ;;  %v5148_v38 = vpop.f32.mrb[157].mxu0  ;;  %v8794_v22 = vrot.slane %v17809_v62, 1 }
 0x234   : > { %v5440_v63 = vpop.f32.mrb[157].mxu1  ;;  %v14656_v5 = vpop.f32.mrb[158].mxu0 }
 0x235   : > { %v14696_v24 = vpop.f32.mrb[158].mxu1  ;;  %v17781_v41 = vadd.f32 %v5440_v63, %v5148_v38  ;;  %v5151_v30 = vpop.f32.mrb[159].mxu0  ;;  %v8491_v63 = vsel %vm665_vm0, %v8486_v51, %v8490_v53  ;;  %v17853_v53 = vld [vmem:[#allocation2 + $0xbc] sm:$0xff]  }
 0x236   : > { %v5443_v12 = vpop.f32.mrb[159].mxu1  ;;  %v17787_v17 = vadd.f32 %v14696_v24, %v14656_v5 }
 0x237   : > { %v17798_v21 = vadd.f32 %v5443_v12, %v5151_v30  ;;  %15042 = vmatmul.mubr.bf16.vlgmr.msra.gmra.mrb[8].mxu0 %v8467_v59  ;;  %v8512_v12 = vshll.u32 %v17811_v48, 16  ;;  %v8793_v59 = vsel %vm2117_vm1, %v8790_v60, %v8792_v23  ;;  %v8508_v30 = vshrl.u32 %v17809_v62, 16 }
 0x238   : > { %15082 = vmatmul.mubr.bf16.vlgmr.msra.gmra.mrb[8].mxu1 %v8785_v13  ;;  %15106 = vmatpush3.bf16.msra.mxu0 %v17725_v32  ;;  %v439_v32 = vmul.bf16 0.0, %v419_v61  ;;  %v8498_v13 = vrot.slane %v8496_v39, 1 }
 0x239   : > { %15146 = vmatpush3.bf16.msra.mxu1 %v17716_v27  ;;  %15085 = vmatprep.mubr.bf16.mxu1 %v8787_v49  ;;  %v17835_v49 = vld [vmem:[#allocation2 + $0xb4] sm:$0xff]  }
 0x23a   : > { %15147 = vmatprep.subr.bf16.mxu1 %v15838_v11  ;;  %15045 = vmatprep.mubr.bf16.mxu0 %v8475_v58  ;;  %v14659_v42 = vpop.f32.mrb[160].mxu0  ;;  %v13503_v2 = vcombine.low %v438_v14, %v439_v32  ;;  %v8502_v35 = vor.u32 %v8500_v33, %v8498_v13  ;;  %v8520_v60 = vshll.u32 %v17835_v49, 16  ;;  %v8499_v39 = vsel %vm665_vm0, %v8494_v16, %v8498_v13 }
 0x23b   : > { %v14699_v27 = vpop.f32.mrb[160].mxu1  ;;  %15107 = vmatprep.subr.bf16.mxu0 %v15835_v46  ;;  %v5164_v4 = vpop.f32.mrb[161].mxu0  ;;  %v8524_v48 = vshrl.u32 %v17835_v49, 16  ;;  %v8798_v14 = vrot.slane %v17835_v49, 1 }
 0x23c   : > { %v5456_v50 = vpop.f32.mrb[161].mxu1  ;;  %v17816_v34 = vadd.f32 %v14699_v27, %v14659_v42  ;;  %v14660_v18 = vpop.f32.mrb[162].mxu0  ;;  %15108 = vmatpush3.bf16.msra.mxu0 %v15835_v46  ;;  %13504 = vst [vmem:[#allocation2 + $0xd0] sm:$0xff] %v13503_v2   ;;  %v15847_v46 = vld [vmem:[%s18736_s3 + $0x260] sm:$0xff]   ;;  %v8522_v62 = vrot.slane %v8520_v60, 1  ;;  %v8800_v42 = vrot.slane %v17853_v53, 1 }
 0x23d   : > { %v14700_v10 = vpop.f32.mrb[162].mxu1  ;;  %15148 = vmatpush3.bf16.msra.mxu1 %v15838_v11  ;;  %v17822_v19 = vadd.f32 %v5456_v50, %v5164_v4  ;;  %v5167_v26 = vpop.f32.mrb[163].mxu0  ;;  %15109 = vmatprep.subr.bf16.mxu0 %v15839_v36  ;;  %v15848_v11 = vld [vmem:[%s18736_s3 + $0x220] sm:$0xff]   ;;  %v15852_v50 = vld [vmem:[%s18736_s3 + $0x228] sm:$0xff]   ;;  %v17902_v60 = vld [vmem:[#allocation2 + $0x74] sm:$0xff]  }
 0x23e   : > { %v5459_v54 = vpop.f32.mrb[163].mxu1  ;;  %15149 = vmatprep.subr.bf16.mxu1 %v15840_v44  ;;  %v17826_v24 = vadd.f32 %v14700_v10, %v14660_v18  ;;  %v8507_v10 = vsel %vm665_vm0, %v8502_v35, %v8506_v40  ;;  %v8797_v18 = vsel %vm2117_vm1, %v8794_v22, %v8796_v52 }
 0x23f   : > { %15046 = vmatmul.mubr.bf16.gmra.mrb[12].mxu0 %v8483_v1  ;;  %v8528_v54 = vshll.u32 %v17853_v53, 16  ;;  %v8510_v1 = vor.u32 %v8508_v30, %v8506_v40 }
 0x240   : > { %15086 = vmatmul.mubr.bf16.gmra.mrb[12].mxu1 %v8789_v55  ;;  %15110 = vmatpush3.bf16.msra.mxu0 %v15839_v36  ;;  %v8514_v36 = vrot.slane %v8512_v12, 1  ;;  %v15849_v55 = vld [vmem:[%s18736_s3 + $0x268] sm:$0xff]   ;;  %v8532_v12 = vshrl.u32 %v17853_v53, 16 }
 0x241   : > { %15089 = vmatprep.mubr.bf16.mxu1 %v8791_v9  ;;  %15150 = vmatpush3.bf16.msra.mxu1 %v15840_v44  ;;  %v8795_v44 = vsel %vm2117_vm1, %v8792_v23, %v8794_v22  ;;  %v15854_v9 = vld [vmem:[%s18736_s3 + $0x230] sm:$0xff]   ;;  %v8530_v8 = vrot.slane %v8528_v54, 1  ;;  %v15858_v22 = vld [vmem:[%s18736_s3 + $0x238] sm:$0xff]  }
 0x242   : > { %15151 = vmatprep.subr.bf16.mxu1 %v15844_v25  ;;  %15049 = vmatprep.mubr.bf16.mxu0 %v8491_v63  ;;  %v14663_v58 = vpop.f32.mrb[164].mxu0  ;;  %v8518_v63 = vor.u32 %v8516_v31, %v8514_v36  ;;  %v15853_v23 = vld [vmem:[%s18736_s3 + $0x270] sm:$0xff]  }
 0x243   : > { %v14703_v3 = vpop.f32.mrb[164].mxu1  ;;  %15111 = vmatprep.subr.bf16.mxu0 %v15843_v6  ;;  %v5180_v20 = vpop.f32.mrb[165].mxu0 }
 0x244   : > { %v5472_v38 = vpop.f32.mrb[165].mxu1  ;;  %v17851_v27 = vadd.f32 %v14703_v3, %v14663_v58  ;;  %v14664_v51 = vpop.f32.mrb[166].mxu0  ;;  %15112 = vmatpush3.bf16.msra.mxu0 %v15843_v6  ;;  %v8799_v6 = vsel %vm2117_vm1, %v8796_v52, %v8798_v14  ;;  %v8523_v30 = vsel %vm665_vm0, %v8518_v63, %v8522_v62  ;;  %v8802_v52 = vrot.slane %v17859_v45, 1  ;;  %v17907_v20 = vld [vmem:[%s18736_s3 + $0x2c0] sm:$0xff]  }
 0x245   : > { %v14704_v5 = vpop.f32.mrb[166].mxu1  ;;  %15152 = vmatpush3.bf16.msra.mxu1 %v15844_v25  ;;  %v5183_v61 = vpop.f32.mrb[167].mxu0  ;;  %15113 = vmatprep.subr.bf16.mxu0 %v15847_v46  ;;  %v8536_v25 = vshll.u32 %v17859_v45, 16  ;;  %v8515_v38 = vsel %vm665_vm0, %v8510_v1, %v8514_v36 }
 0x246   : > { %v5475_v0 = vpop.f32.mrb[167].mxu1  ;;  %15153 = vmatprep.subr.bf16.mxu1 %v15848_v11  ;;  %v8540_v5 = vshrl.u32 %v17859_v45, 16  ;;  %v8803_v49 = vsel %vm2117_vm1, %v8800_v42, %v8802_v52 }
 0x247   : > { %v17865_v43 = vadd.f32 %v5475_v0, %v5183_v61  ;;  %15050 = vmatmul.mubr.bf16.gmra.mrb[16].mxu0 %v8499_v39  ;;  %v17888_v16 = vrot.slane %v8536_v25, 1  ;;  %v8526_v0 = vor.u32 %v8524_v48, %v8522_v62  ;;  %v8534_v39 = vor.u32 %v8532_v12, %v8530_v8  ;;  %v17925_v48 = vld [vmem:[%s18736_s3 + $0x280] sm:$0xff]  }
 0x248   : > { %15090 = vmatmul.mubr.bf16.gmra.mrb[16].mxu1 %v8793_v59  ;;  %15053 = vmatprep.mubr.bf16.mxu0 %v8507_v10  ;;  %v17891_v59 = vld [vmem:[#allocation2 + $0x6c] sm:$0xff]   ;;  %v8801_v62 = vsel %vm2117_vm1, %v8798_v14, %v8800_v42  ;;  %v9259_v12 = vshll.u32 %v17902_v60, 16 }
 0x249   : > { %15093 = vmatprep.mubr.bf16.mxu1 %v8795_v44  ;;  %15154 = vmatpush3.bf16.msra.mxu1 %v15848_v11  ;;  %v17899_v44 = vld [vmem:[#allocation2 + $0xcc] ss:$0 sps:$4 sm:$0x11]   ;;  %v9254_v61 = vshll.u32 %v17891_v59, 16  ;;  %v8531_v1 = vsel %vm665_vm0, %v8526_v0, %v8530_v8  ;;  %v8539_v42 = vsel %vm665_vm0, %v8534_v39, %v17888_v16 }
 0x24a   : > { %15155 = vmatprep.subr.bf16.mxu1 %v15852_v50  ;;  %15114 = vmatpush3.bf16.msra.mxu0 %v15847_v46  ;;  %v14723_v13 = vpop.f32.mrb[168].mxu0  ;;  %v8544_v63 = vshll.u32 %v17899_v44, 16 }
 0x24b   : > { %v14763_v32 = vpop.f32.mrb[168].mxu1  ;;  %15115 = vmatprep.subr.bf16.mxu0 %v15849_v55  ;;  %v5786_v33 = vpop.f32.mrb[169].mxu0  ;;  %v9256_v8 = vrot.slane %v9254_v61, 1 }
 0x24c   : > { %v6045_v4 = vpop.f32.mrb[169].mxu1  ;;  %v5881_v3 = vadd.f32 %v5786_v33, %v17698_v28  ;;  %v14724_v11 = vpop.f32.mrb[170].mxu0  ;;  %v15857_v28 = vld [vmem:[%s18736_s3 + $0x278] sm:$0xff]  }
 0x24d   : > { %v14764_v2 = vpop.f32.mrb[170].mxu1  ;;  %15156 = vmatpush3.bf16.msra.mxu1 %v15852_v50  ;;  %v5884_v35 = vadd.f32 %v14724_v11, %v17701_v47  ;;  %v5789_v40 = vpop.f32.mrb[171].mxu0 }
 0x24e   : > { %v6048_v26 = vpop.f32.mrb[171].mxu1  ;;  %15157 = vmatprep.subr.bf16.mxu1 %v15854_v9  ;;  %15116 = vmatpush3.bf16.msra.mxu0 %v15849_v55  ;;  %v6140_v46 = vadd.f32 %v6045_v4, %v5881_v3  ;;  %v5882_v58 = vadd.f32 %v5789_v40, %v17709_v37  ;;  %v17912_v37 = vld [vmem:[%s18737_s4] ss:$0 sm:$0xff]  ;;  %v8542_v40 = vor.u32 %v8540_v5, %v17888_v16 }
 0x24f   : > { %15117 = vmatprep.subr.bf16.mxu0 %v15853_v23  ;;  %v6143_v31 = vadd.f32 %v14764_v2, %v5884_v35  ;;  %15054 = vmatmul.mubr.bf16.gmra.mrb[20].mxu0 %v8515_v38  ;;  %v17947_v38 = vld [vmem:[#allocation2 + $0x7c] sm:$0xff]  }
 0x250   : > { %15094 = vmatmul.mubr.bf16.gmra.mrb[20].mxu1 %v8797_v18  ;;  %v6164_v36 = vadd.f32 %v17912_v37, %v6140_v46  ;;  %v6141_v50 = vadd.f32 %v6048_v26, %v5882_v58  ;;  %15057 = vmatprep.mubr.bf16.mxu0 %v8523_v30  ;;  %v8804_v18 = vrot.slane %v17899_v44, 1  ;;  %v9267_v39 = vshll.u32 %v17947_v38, 16 }
 0x251   : > { %15097 = vmatprep.mubr.bf16.mxu1 %v8799_v6  ;;  %15158 = vmatpush3.bf16.msra.mxu1 %v15854_v9  ;;  %v6167_v10 = vadd.f32 %v17912_v37, %v6143_v31  ;;  %v9261_v31 = vrot.slane %v9259_v12, 1 }
 0x252   : > { %15159 = vmatprep.subr.bf16.mxu1 %v15858_v22  ;;  %15118 = vmatpush3.bf16.msra.mxu0 %v15853_v23  ;;  %v13412_v32 = vpack.c.bf16 %v6164_v36, %v6164_v36  ;;  %v6165_v54 = vadd.f32 %v17912_v37, %v6141_v50  ;;  %v14727_v9 = vpop.f32.mrb[172].mxu0  ;;  %v8805_v30 = vsel %vm2117_vm1, %v8802_v52, %v8804_v18  ;;  %v9263_v52 = vshrl.u32 %v17902_v60, 16 }
 0x253   : > { %v14767_v47 = vpop.f32.mrb[172].mxu1  ;;  %15119 = vmatprep.subr.bf16.mxu0 %v15857_v28  ;;  %v13414_v14 = vpack.c.bf16 %v6167_v10, %v6167_v10  ;;  %v5887_v25 = vadd.f32 %v14727_v9, %v17729_v29  ;;  %v5802_v2 = vpop.f32.mrb[173].mxu0  ;;  %v9252_v29 = vshrl.u32 %v17891_v59, 16 }
 0x254   : > { %v6061_v51 = vpop.f32.mrb[173].mxu1  ;;  %12715 = vst [vmem:[%s16724_s8 + $0x14] sm:$0xf] %v13412_v32  ;;  %v13413_v23 = vpack.c.bf16 %v6165_v54, %v6165_v54  ;;  %v5885_v13 = vadd.f32 %v5802_v2, %v17737_v7  ;;  %v14728_v53 = vpop.f32.mrb[174].mxu0 }
 0x255   : > { %v14768_v55 = vpop.f32.mrb[174].mxu1  ;;  %15160 = vmatpush3.bf16.msra.mxu1 %v15858_v22  ;;  %12717 = vst [vmem:[%s16724_s8 + $0x34] sm:$0xf] %v13414_v14  ;;  %v6146_v26 = vadd.f32 %v14767_v47, %v5887_v25  ;;  %v5888_v6 = vadd.f32 %v14728_v53, %v17741_v57  ;;  %v5805_v33 = vpop.f32.mrb[175].mxu0  ;;  %v9257_v44 = vor.u32 %v9256_v8, %v9252_v29  ;;  %v17955_v47 = vld [vmem:[#allocation2 + $0x84] sm:$0xff]   ;;  %v9269_v25 = vrot.slane %v9267_v39, 1 }
 0x256   : > { %v6064_v4 = vpop.f32.mrb[175].mxu1  ;;  %15225 = vmatprep.subr.bf16.mxu1 %v17907_v20  ;;  %15120 = vmatpush3.bf16.msra.mxu0 %v15857_v28  ;;  %12716 = vst [vmem:[%s16724_s8 + $0x1c] sm:$0xf] %v13413_v23  ;;  %v6144_v7 = vadd.f32 %v6061_v51, %v5885_v13  ;;  %v8546_v28 = vrot.slane %v8544_v63, 1  ;;  %v9265_v14 = vor.u32 %v9263_v52, %v9261_v31  ;;  %v17972_v63 = vld [vmem:[#allocation2 + $0x94] sm:$0xff]   ;;  %v9279_v12 = vshrl.u32 %v17955_v47, 16 }
 0x257   : > { %15185 = vmatprep.subr.bf16.mxu0 %v17925_v48  ;;  %v6170_v22 = vadd.f32 %v17912_v37, %v6146_v26  ;;  %v6147_v3 = vadd.f32 %v14768_v55, %v5888_v6  ;;  %15058 = vmatmul.mubr.bf16.gmra.mrb[24].mxu0 %v8531_v1  ;;  %v9271_v55 = vshrl.u32 %v17947_v38, 16  ;;  %v9262_v54 = vsel %vm665_vm0, %v9257_v44, %v9261_v31  ;;  %v17969_v4 = vld [vmem:[#allocation2 + $0x8c] sm:$0xff]   ;;  %v17998_v44 = vld [vmem:[#allocation2 + $0x9c] sm:$0xff]  }
 0x258   : > { %15098 = vmatmul.mubr.bf16.gmra.mrb[24].mxu1 %v8801_v62  ;;  %v6168_v35 = vadd.f32 %v17912_v37, %v6144_v7  ;;  %15061 = vmatprep.mubr.bf16.mxu0 %v8539_v42  ;;  %v8547_v10 = vsel %vm665_vm0, %v8542_v40, %v8546_v28  ;;  %v9283_v26 = vshll.u32 %v17969_v4, 16  ;;  %v15867_v6 = vld [vmem:[%s18736_s3 + $0x2c8] sm:$0xff]   ;;  %v9270_v8 = vsel %vm665_vm0, %v9265_v14, %v9269_v25 }
 0x259   : > { %15101 = vmatprep.mubr.bf16.mxu1 %v8803_v49  ;;  %v13416_v46 = vpack.c.bf16 %v6170_v22, %v6170_v22  ;;  %v6171_v58 = vadd.f32 %v17912_v37, %v6147_v3  ;;  %v9273_v13 = vor.u32 %v9271_v55, %v9269_v25  ;;  %v9295_v14 = vshrl.u32 %v17972_v63, 16 }
 0x25a   : > { %v13415_v36 = vpack.c.bf16 %v6168_v35, %v6168_v35  ;;  %v14731_v50 = vpop.f32.mrb[176].mxu0  ;;  %v9291_v35 = vshll.u32 %v17972_v63, 16 }
 0x25b   : > { %v14771_v11 = vpop.f32.mrb[176].mxu1  ;;  %12719 = vst [vmem:[%s16724_s8 + $0x54] sm:$0xf] %v13416_v46  ;;  %v13417_v45 = vpack.c.bf16 %v6171_v58, %v6171_v58  ;;  %v5891_v16 = vadd.f32 %v14731_v50, %v17756_v56  ;;  %v5818_v5 = vpop.f32.mrb[177].mxu0  ;;  %v9275_v56 = vshll.u32 %v17955_v47, 16  ;;  %v9285_v46 = vrot.slane %v9283_v26, 1 }
 0x25c   : > { %v6077_v57 = vpop.f32.mrb[177].mxu1  ;;  %12718 = vst [vmem:[%s16724_s8 + $0x3c] sm:$0xf] %v13415_v36  ;;  %v14732_v61 = vpop.f32.mrb[178].mxu0  ;;  %v9293_v50 = vrot.slane %v9291_v35, 1  ;;  %v15868_v5 = vld [vmem:[%s18736_s3 + $0x290] sm:$0xff]  }
 0x25d   : > { %v14772_v0 = vpop.f32.mrb[178].mxu1  ;;  %12720 = vst [vmem:[%s16724_s8 + $0x5c] sm:$0xf] %v13417_v45  ;;  %v6150_v62 = vadd.f32 %v14771_v11, %v5891_v16  ;;  %v5821_v32 = vpop.f32.mrb[179].mxu0  ;;  %v9277_v53 = vrot.slane %v9275_v56, 1  ;;  %v9287_v11 = vshrl.u32 %v17969_v4, 16 }
 0x25e   : > { %v6080_v51 = vpop.f32.mrb[179].mxu1  ;;  %v5890_v9 = vadd.f32 %v5821_v32, %v17768_v15  ;;  %v15873_v56 = vld [vmem:[%s18736_s3 + $0x2d8] sm:$0xff]  }
 0x25f   : > { %v6174_v1 = vadd.f32 %v17912_v37, %v6150_v62  ;;  %15062 = vmatmul.mubr.bf16.gmra.mrb[28].mxu0 %v8547_v10  ;;  %v9278_v28 = vsel %vm665_vm0, %v9273_v13, %v9277_v53  ;;  %v9281_v0 = vor.u32 %v9279_v12, %v9277_v53  ;;  %v18029_v13 = vld [vmem:[#allocation2 + $0xac] sm:$0xff]  }
 0x260   : > { %15102 = vmatmul.mubr.bf16.gmra.mrb[28].mxu1 %v8805_v30  ;;  %v6149_v2 = vadd.f32 %v6080_v51, %v5890_v9  ;;  %15121 = vmatprep.mubr.bf16.mxu0 %v9262_v54  ;;  %v15864_v30 = vld [vmem:[%s18736_s3 + $0x288] sm:$0xff]   ;;  %v9299_v54 = vshll.u32 %v17998_v44, 16 }
 0x261   : > { %15161 = vmatprep.mubr.bf16.mxu1 %v17891_v59  ;;  %v13419_v23 = vpack.c.bf16 %v6174_v1, %v6174_v1  ;;  %v18002_v51 = vld [vmem:[#allocation2 + $0xa4] sm:$0xff]   ;;  %v9286_v32 = vsel %vm665_vm0, %v9281_v0, %v9285_v46 }
 0x262   : > { %v6173_v15 = vadd.f32 %v17912_v37, %v6149_v2  ;;  %v14735_v42 = vpop.f32.mrb[180].mxu0 }
 0x263   : > { %v14775_v49 = vpop.f32.mrb[180].mxu1  ;;  %12722 = vst [vmem:[%s16724_s8 + $0x7c] sm:$0xf] %v13419_v23  ;;  %v5834_v33 = vpop.f32.mrb[181].mxu0  ;;  %v9303_v23 = vshrl.u32 %v17998_v44, 16  ;;  %v9301_v42 = vrot.slane %v9299_v54, 1 }
 0x264   : > { %v6093_v18 = vpop.f32.mrb[181].mxu1  ;;  %v13418_v7 = vpack.c.bf16 %v6173_v15, %v6173_v15  ;;  %v5893_v22 = vadd.f32 %v5834_v33, %v17781_v41  ;;  %v14736_v3 = vpop.f32.mrb[182].mxu0  ;;  %v18036_v33 = vld [vmem:[#allocation2 + $0xb4] sm:$0xff]  }
 0x265   : > { %v14776_v59 = vpop.f32.mrb[182].mxu1  ;;  %v5896_v57 = vadd.f32 %v14736_v3, %v17787_v17  ;;  %v5837_v40 = vpop.f32.mrb[183].mxu0  ;;  %v15869_v17 = vld [vmem:[%s18736_s3 + $0x2d0] sm:$0xff]   ;;  %v9323_v0 = vshll.u32 %v18036_v33, 16 }
 0x266   : > { %v6096_v29 = vpop.f32.mrb[183].mxu1  ;;  %12721 = vst [vmem:[%s16724_s8 + $0x74] sm:$0xf] %v13418_v7  ;;  %v6152_v41 = vadd.f32 %v6093_v18, %v5893_v22  ;;  %v9305_v22 = vor.u32 %v9303_v23, %v9301_v42 }
 0x267   : > { %v6155_v58 = vadd.f32 %v14776_v59, %v5896_v57  ;;  %15122 = vmatmul.mubr.bf16.vlgmr.msra.gmra.mrb[32].mxu0 %v9270_v8 }
 0x268   : > { %15162 = vmatmul.mubr.bf16.vlgmr.msra.gmra.mrb[32].mxu1 %v17902_v60  ;;  %v5894_v60 = vadd.f32 %v5837_v40, %v17798_v21  ;;  %v6176_v31 = vadd.f32 %v17912_v37, %v6152_v41  ;;  %15186 = vmatpush3.bf16.msra.mxu0 %v17925_v48  ;;  %v9289_v21 = vor.u32 %v9287_v11, %v9285_v46  ;;  %v15876_v11 = vld [vmem:[%s18736_s3 + $0x2a0] sm:$0xff]   ;;  %v15881_v46 = vld [vmem:[%s18736_s3 + $0x2e8] sm:$0xff]  }
 0x269   : > { %15226 = vmatpush3.bf16.msra.mxu1 %v17907_v20  ;;  %15165 = vmatprep.mubr.bf16.mxu1 %v17947_v38  ;;  %v6179_v45 = vadd.f32 %v17912_v37, %v6155_v58 }
 0x26a   : > { %15227 = vmatprep.subr.bf16.mxu1 %v15867_v6  ;;  %v6153_v36 = vadd.f32 %v6096_v29, %v5894_v60  ;;  %15125 = vmatprep.mubr.bf16.mxu0 %v9278_v28  ;;  %v13420_v52 = vpack.c.bf16 %v6176_v31, %v6176_v31  ;;  %v14739_v48 = vpop.f32.mrb[184].mxu0 }
 0x26b   : > { %v14779_v20 = vpop.f32.mrb[184].mxu1  ;;  %15187 = vmatprep.subr.bf16.mxu0 %v15864_v30  ;;  %v13422_v10 = vpack.c.bf16 %v6179_v45, %v6179_v45  ;;  %v5899_v55 = vadd.f32 %v14739_v48, %v17816_v34  ;;  %v5850_v62 = vpop.f32.mrb[185].mxu0  ;;  %v9294_v34 = vsel %vm665_vm0, %v9289_v21, %v9293_v50  ;;  %v9319_v21 = vshrl.u32 %v18029_v13, 16  ;;  %v18061_v45 = vld [vmem:[#allocation2 + $0xbc] sm:$0xff]  }
 0x26c   : > { %v6109_v38 = vpop.f32.mrb[185].mxu1  ;;  %v6177_v39 = vadd.f32 %v17912_v37, %v6153_v36  ;;  %12723 = vst [vmem:[%s16724_s8 + $0x94] sm:$0xf] %v13420_v52  ;;  %v5897_v1 = vadd.f32 %v5850_v62, %v17822_v19  ;;  %v14740_v49 = vpop.f32.mrb[186].mxu0  ;;  %15188 = vmatpush3.bf16.msra.mxu0 %v15864_v30  ;;  %v15872_v19 = vld [vmem:[%s18736_s3 + $0x298] sm:$0xff]   ;;  %v9315_v30 = vshll.u32 %v18029_v13, 16 }
 0x26d   : > { %v14780_v16 = vpop.f32.mrb[186].mxu1  ;;  %15228 = vmatpush3.bf16.msra.mxu1 %v15867_v6  ;;  %12725 = vst [vmem:[%s16724_s8 + $0xb4] sm:$0xf] %v13422_v10  ;;  %v6158_v25 = vadd.f32 %v14779_v20, %v5899_v55  ;;  %v5900_v2 = vadd.f32 %v14740_v49, %v17826_v24  ;;  %v5853_v18 = vpop.f32.mrb[187].mxu0  ;;  %15189 = vmatprep.subr.bf16.mxu0 %v15868_v5  ;;  %v9311_v20 = vshrl.u32 %v18002_v51, 16  ;;  %v18074_v49 = vld [vmem:[#allocation2 + $0x78] sm:$0xff]  }
 0x26e   : > { %v6112_v61 = vpop.f32.mrb[187].mxu1  ;;  %15229 = vmatprep.subr.bf16.mxu1 %v15869_v17  ;;  %v13421_v9 = vpack.c.bf16 %v6177_v39, %v6177_v39  ;;  %v6156_v59 = vadd.f32 %v6109_v38, %v5897_v1  ;;  %v9297_v6 = vor.u32 %v9295_v14, %v9293_v50  ;;  %v15878_v38 = vld [vmem:[%s18736_s3 + $0x2a8] sm:$0xff]   ;;  %v9317_v50 = vrot.slane %v9315_v30, 1  ;;  %v15887_v14 = vld [vmem:[%s18736_s3 + $0x2f8] sm:$0xff]  }
 0x26f   : > { %v6182_v53 = vadd.f32 %v17912_v37, %v6158_v25  ;;  %v6159_v24 = vadd.f32 %v14780_v16, %v5900_v2  ;;  %15126 = vmatmul.mubr.bf16.gmra.mrb[36].mxu0 %v9286_v32  ;;  %v18067_v61 = vld [vmem:[#allocation2 + $0xc4] sm:$0xff]   ;;  %v15882_v32 = vld [vmem:[%s18736_s3 + $0x2b0] sm:$0xff]   ;;  %v9331_v1 = vshll.u32 %v18061_v45, 16 }
 0x270   : > { %15166 = vmatmul.mubr.bf16.gmra.mrb[36].mxu1 %v17955_v47  ;;  %v9307_v47 = vshll.u32 %v18002_v51, 16  ;;  %12724 = vst [vmem:[%s16724_s8 + $0x9c] sm:$0xf] %v13421_v9  ;;  %v6180_v29 = vadd.f32 %v17912_v37, %v6156_v59  ;;  %15190 = vmatpush3.bf16.msra.mxu0 %v15868_v5  ;;  %v9302_v58 = vsel %vm665_vm0, %v9297_v6, %v9301_v42  ;;  %v18097_v42 = vld [vmem:[#allocation2 + $0x80] sm:$0xff]  }
 0x271   : > { %15169 = vmatprep.mubr.bf16.mxu1 %v17969_v4  ;;  %15230 = vmatpush3.bf16.msra.mxu1 %v15869_v17  ;;  %v15877_v4 = vld [vmem:[%s18736_s3 + $0x2e0] sm:$0xff]   ;;  %v13424_v8 = vpack.c.bf16 %v6182_v53, %v6182_v53  ;;  %v6183_v12 = vadd.f32 %v17912_v37, %v6159_v24  ;;  %v9321_v62 = vor.u32 %v9319_v21, %v9317_v50  ;;  %v9335_v53 = vshrl.u32 %v18061_v45, 16 }
 0x272   : > { %15231 = vmatprep.subr.bf16.mxu1 %v15873_v56  ;;  %15129 = vmatprep.mubr.bf16.mxu0 %v9294_v34  ;;  %v9309_v3 = vrot.slane %v9307_v47, 1  ;;  %v13423_v35 = vpack.c.bf16 %v6180_v29, %v6180_v29  ;;  %v14743_v57 = vpop.f32.mrb[188].mxu0  ;;  %v9339_v24 = vshll.u32 %v18067_v61, 16 }
 0x273   : > { %v14783_v15 = vpop.f32.mrb[188].mxu1  ;;  %15191 = vmatprep.subr.bf16.mxu0 %v15872_v19  ;;  %12727 = vst [vmem:[%s16724_s8 + $0xd4] sm:$0xf] %v13424_v8  ;;  %v13425_v28 = vpack.c.bf16 %v6183_v12, %v6183_v12  ;;  %v5903_v41 = vadd.f32 %v14743_v57, %v17851_v27  ;;  %v5866_v60 = vpop.f32.mrb[189].mxu0 }
 0x274   : > { %v6125_v26 = vpop.f32.mrb[189].mxu1  ;;  %12726 = vst [vmem:[%s16724_s8 + $0xbc] sm:$0xf] %v13423_v35  ;;  %v14744_v17 = vpop.f32.mrb[190].mxu0  ;;  %15192 = vmatpush3.bf16.msra.mxu0 %v15872_v19  ;;  %v9310_v36 = vsel %vm665_vm0, %v9305_v22, %v9309_v3  ;;  %v9313_v48 = vor.u32 %v9311_v20, %v9309_v3  ;;  %v9327_v19 = vshrl.u32 %v18036_v33, 16  ;;  %v9341_v3 = vrot.slane %v9339_v24, 1 }
 0x275   : > { %v14784_v7 = vpop.f32.mrb[190].mxu1  ;;  %15232 = vmatpush3.bf16.msra.mxu1 %v15873_v56  ;;  %12728 = vst [vmem:[%s16724_s8 + $0xdc] sm:$0xf] %v13425_v28  ;;  %v6162_v31 = vadd.f32 %v14783_v15, %v5903_v41  ;;  %v5869_v27 = vpop.f32.mrb[191].mxu0  ;;  %15193 = vmatprep.subr.bf16.mxu0 %v15876_v11  ;;  %v15886_v15 = vld [vmem:[%s18736_s3 + $0x2b8] sm:$0xff]   ;;  %v18103_v26 = vld [vmem:[%s18736_s3 + $0x300] sm:$0xff]  }
 0x276   : > { %v6128_v40 = vpop.f32.mrb[191].mxu1  ;;  %15233 = vmatprep.subr.bf16.mxu1 %v15877_v4  ;;  %v15885_v12 = vld [vmem:[#allocation2 + $0xcc] ss:$0 sps:$4 sm:$0x11]   ;;  %v10154_v28 = vshll.u32 %v18097_v42, 16  ;;  %v9343_v20 = vshrl.u32 %v18067_v61, 16 }
 0x277   : > { %v6186_v16 = vadd.f32 %v17912_v37, %v6162_v31  ;;  %15130 = vmatmul.mubr.bf16.gmra.mrb[40].mxu0 %v9302_v58  ;;  %v15891_v31 = vld [vmem:[#allocation2 + $0x88] sm:$0xff]  }
 0x278   : > { %15170 = vmatmul.mubr.bf16.gmra.mrb[40].mxu1 %v17972_v63  ;;  %v5902_v63 = vadd.f32 %v5869_v27, %v17865_v43  ;;  %15133 = vmatprep.mubr.bf16.mxu0 %v9310_v36  ;;  %v9325_v43 = vrot.slane %v9323_v0, 1  ;;  %v9347_v0 = vshll.u32 %v15885_v12, 16 }
 0x279   : > { %15173 = vmatprep.mubr.bf16.mxu1 %v17998_v44  ;;  %15234 = vmatpush3.bf16.msra.mxu1 %v15877_v4  ;;  %v15883_v44 = vld [vmem:[%s18736_s3 + $0x2f0] sm:$0xff]   ;;  %v13427_v10 = vpack.c.bf16 %v6186_v16, %v6186_v16  ;;  %v10149_v4 = vshll.u32 %v18074_v49, 16 }
 0x27a   : > { %15235 = vmatprep.subr.bf16.mxu1 %v15881_v46  ;;  %v6161_v52 = vadd.f32 %v6128_v40, %v5902_v63  ;;  %15194 = vmatpush3.bf16.msra.mxu0 %v15876_v11  ;;  %v14803_v56 = vpop.f32.mrb[192].mxu0  ;;  %v9326_v59 = vsel %vm665_vm0, %v9321_v62, %v9325_v43  ;;  %v9329_v8 = vor.u32 %v9327_v19, %v9325_v43  ;;  %v18108_v11 = vld [vmem:[%s18736_s3 + $0x340] sm:$0xff]   ;;  %v10147_v40 = vshrl.u32 %v18074_v49, 16 }
 0x27b   : > { %v14843_v5 = vpop.f32.mrb[192].mxu1  ;;  %15195 = vmatprep.subr.bf16.mxu0 %v15878_v38  ;;  %12730 = vst [vmem:[%s16724_s8 + $0xfc] sm:$0xf] %v13427_v10  ;;  %v6590_v34 = vpop.f32.mrb[193].mxu0  ;;  %v10151_v30 = vrot.slane %v10149_v4, 1  ;;  %v10156_v63 = vrot.slane %v10154_v28, 1 }
 0x27c   : > { %v6779_v39 = vpop.f32.mrb[193].mxu1  ;;  %v6185_v54 = vadd.f32 %v17912_v37, %v6161_v52  ;;  %v14804_v18 = vpop.f32.mrb[194].mxu0  ;;  %v9318_v37 = vsel %vm665_vm0, %v9313_v48, %v9317_v50  ;;  %v15897_v50 = vld [vmem:[#allocation2 + $0x90] sm:$0xff]   ;;  %v9345_v5 = vor.u32 %v9343_v20, %v9341_v3  ;;  %v10162_v52 = vshll.u32 %v15891_v31, 16 }
 0x27d   : > { %v14844_v55 = vpop.f32.mrb[194].mxu1  ;;  %15236 = vmatpush3.bf16.msra.mxu1 %v15881_v46  ;;  %v18080_v2 = vadd.f32 %v6779_v39, %v6590_v34  ;;  %v6593_v47 = vpop.f32.mrb[195].mxu0  ;;  %v10152_v21 = vor.u32 %v10151_v30, %v10147_v40  ;;  %v10158_v48 = vshrl.u32 %v18097_v42, 16  ;;  %v10170_v62 = vshll.u32 %v15897_v50, 16  ;;  %v15899_v34 = vld [vmem:[#allocation2 + $0x98] sm:$0xff]   ;;  %v15906_v30 = vld [vmem:[#allocation2 + $0xa8] sm:$0xff]  }
 0x27e   : > { %v6782_v9 = vpop.f32.mrb[195].mxu1  ;;  %15237 = vmatprep.subr.bf16.mxu1 %v15883_v44  ;;  %v13426_v25 = vpack.c.bf16 %v6185_v54, %v6185_v54  ;;  %15196 = vmatpush3.bf16.msra.mxu0 %v15878_v38  ;;  %v18085_v23 = vadd.f32 %v14844_v55, %v14804_v18  ;;  %v10164_v49 = vrot.slane %v10162_v52, 1  ;;  %v10178_v24 = vshll.u32 %v15899_v34, 16 }
 0x27f   : > { %15197 = vmatprep.subr.bf16.mxu0 %v15882_v32  ;;  %15134 = vmatmul.mubr.bf16.gmra.mrb[44].mxu0 %v9318_v37  ;;  %v10157_v55 = vsel %vm665_vm0, %v10152_v21, %v10156_v63  ;;  %v10172_v19 = vrot.slane %v10170_v62, 1  ;;  %v10174_v42 = vshrl.u32 %v15897_v50, 16 }
 0x280   : > { %15174 = vmatmul.mubr.bf16.gmra.mrb[44].mxu1 %v18002_v51  ;;  %12729 = vst [vmem:[%s16724_s8 + $0xf4] sm:$0xf] %v13426_v25  ;;  %v18095_v51 = vadd.f32 %v6782_v9, %v6593_v47  ;;  %15137 = vmatprep.mubr.bf16.mxu0 %v9326_v59  ;;  %v10160_v25 = vor.u32 %v10158_v48, %v10156_v63  ;;  %v18133_v47 = vld [vmem:[#allocation2 + $0xa0] sm:$0xff]   ;;  %v10180_v40 = vrot.slane %v10178_v24, 1  ;;  %v10194_v63 = vshll.u32 %v15906_v30, 16 }
 0x281   : > { %15177 = vmatprep.mubr.bf16.mxu1 %v18029_v13  ;;  %15238 = vmatpush3.bf16.msra.mxu1 %v15883_v44  ;;  %v9333_v13 = vrot.slane %v9331_v1, 1  ;;  %v9349_v44 = vrot.slane %v9347_v0, 1  ;;  %v15888_v1 = vld [vmem:[#allocation2 + $0x78] sm:$0xff]   ;;  %v10186_v12 = vshll.u32 %v18133_v47, 16  ;;  %v15902_v0 = vld [vmem:[%s18736_s3 + $0x310] sm:$0xff]  }
 0x282   : > { %15239 = vmatprep.subr.bf16.mxu1 %v15887_v14  ;;  %15198 = vmatpush3.bf16.msra.mxu0 %v15882_v32  ;;  %v14807_v35 = vpop.f32.mrb[196].mxu0 }
 0x283   : > { %v14847_v29 = vpop.f32.mrb[196].mxu1  ;;  %v9337_v22 = vor.u32 %v9335_v53, %v9333_v13  ;;  %15199 = vmatprep.subr.bf16.mxu0 %v15886_v15  ;;  %v6606_v60 = vpop.f32.mrb[197].mxu0  ;;  %v9334_v58 = vsel %vm665_vm0, %v9329_v8, %v9333_v13  ;;  %v9350_v9 = vsel %vm665_vm0, %v9345_v5, %v9349_v44  ;;  %v10182_v8 = vshrl.u32 %v15899_v34, 16 }
 0x284   : > { %v6795_v6 = vpop.f32.mrb[197].mxu1  ;;  %v18112_v41 = vadd.f32 %v14847_v29, %v14807_v35  ;;  %v14808_v17 = vpop.f32.mrb[198].mxu0  ;;  %v10190_v5 = vshrl.u32 %v18133_v47, 16  ;;  %v18176_v47 = vld [vmem:[#allocation2 + $0xc0] sm:$0xff]  }
 0x285   : > { %v14848_v7 = vpop.f32.mrb[198].mxu1  ;;  %15240 = vmatpush3.bf16.msra.mxu1 %v15887_v14  ;;  %v18115_v46 = vadd.f32 %v6795_v6, %v6606_v60  ;;  %v6609_v36 = vpop.f32.mrb[199].mxu0  ;;  %v9342_v38 = vsel %vm665_vm0, %v9337_v22, %v9341_v3  ;;  %v15900_v6 = vld [vmem:[%s18736_s3 + $0x308] sm:$0xff]   ;;  %v15892_v22 = vld [vmem:[#allocation2 + $0x80] sm:$0xff]  }
 0x286   : > { %v6798_v57 = vpop.f32.mrb[199].mxu1  ;;  %15305 = vmatprep.subr.bf16.mxu1 %v18103_v26  ;;  %15200 = vmatpush3.bf16.msra.mxu0 %v15886_v15  ;;  %v18120_v27 = vadd.f32 %v14848_v7, %v14808_v17  ;;  %v15895_v17 = vld [vmem:[%s18736_s3 + $0x348] sm:$0xff]   ;;  %v10188_v36 = vrot.slane %v10186_v12, 1 }
 0x287   : > { %15265 = vmatprep.subr.bf16.mxu0 %v18108_v11  ;;  %15138 = vmatmul.mubr.bf16.gmra.mrb[48].mxu0 %v9334_v58  ;;  %v15896_v57 = vld [vmem:[#allocation2 + $0x88] sm:$0xff]   ;;  %v10176_v58 = vor.u32 %v10174_v42, %v10172_v19 }
 0x288   : > { %15178 = vmatmul.mubr.bf16.gmra.mrb[48].mxu1 %v18036_v33  ;;  %15141 = vmatprep.mubr.bf16.mxu0 %v9342_v38  ;;  %v18154_v38 = vld [vmem:[#allocation2 + $0xb0] sm:$0xff]  }
 0x289   : > { %15181 = vmatprep.mubr.bf16.mxu1 %v18061_v45  ;;  %v10166_v45 = vshrl.u32 %v15891_v31, 16  ;;  %v10184_v31 = vor.u32 %v10182_v8, %v10180_v40  ;;  %v10202_v48 = vshll.u32 %v18154_v38, 16 }
 0x28a   : > { %v14811_v43 = vpop.f32.mrb[200].mxu0 }
 0x28b   : > { %v14851_v16 = vpop.f32.mrb[200].mxu1  ;;  %v6622_v54 = vpop.f32.mrb[201].mxu0  ;;  %v10168_v37 = vor.u32 %v10166_v45, %v10164_v49  ;;  %v15908_v45 = vld [vmem:[%s18736_s3 + $0x318] sm:$0xff]  }
 0x28c   : > { %v6811_v33 = vpop.f32.mrb[201].mxu1  ;;  %v18127_v32 = vadd.f32 %v14851_v16, %v14811_v43  ;;  %v14812_v56 = vpop.f32.mrb[202].mxu0  ;;  %v10181_v16 = vsel %vm665_vm0, %v10176_v58, %v10180_v40  ;;  %v15905_v40 = vld [vmem:[#allocation2 + $0xa0] sm:$0xff]  }
 0x28d   : > { %v14852_v39 = vpop.f32.mrb[202].mxu1  ;;  %v6625_v14 = vpop.f32.mrb[203].mxu0  ;;  %v10173_v13 = vsel %vm665_vm0, %v10168_v37, %v10172_v19  ;;  %v15901_v33 = vld [vmem:[%s18736_s3 + $0x350] sm:$0xff]   ;;  %v15903_v56 = vld [vmem:[#allocation2 + $0x98] sm:$0xff]   ;;  %v10204_v19 = vrot.slane %v10202_v48, 1 }
 0x28e   : > { %v6814_v10 = vpop.f32.mrb[203].mxu1  ;;  %v10189_v39 = vsel %vm665_vm0, %v10184_v31, %v10188_v36 }
 0x28f   : > { %v18131_v18 = vadd.f32 %v6814_v10, %v6625_v14  ;;  %15142 = vmatmul.mubr.bf16.gmra.mrb[52].mxu0 %v9350_v9  ;;  %v10196_v9 = vrot.slane %v10194_v63, 1  ;;  %v10192_v14 = vor.u32 %v10190_v5, %v10188_v36  ;;  %v15915_v36 = vld [vmem:[%s18736_s3 + $0x368] sm:$0xff]  }
 0x290   : > { %15182 = vmatmul.mubr.bf16.gmra.mrb[52].mxu1 %v18067_v61  ;;  %15201 = vmatprep.mubr.bf16.mxu0 %v15888_v1  ;;  %v10165_v61 = vsel %vm665_vm0, %v10160_v25, %v10164_v49  ;;  %v15912_v1 = vld [vmem:[#allocation2 + $0xb8] sm:$0xff]   ;;  %v10572_v5 = vld [vmem:[#allocation2 + $0x6c] sm:$0xf] }
 0x291   : > { %15241 = vmatprep.mubr.bf16.mxu1 %v10157_v55  ;;  %v15898_v55 = vld [vmem:[#allocation2 + $0x90] sm:$0xff]   ;;  %v15907_v25 = vld [vmem:[%s18736_s3 + $0x358] sm:$0xff]   ;;  %v10197_v42 = vsel %vm665_vm0, %v10192_v14, %v10196_v9  ;;  %v10214_v12 = vshrl.u32 %v15912_v1, 16 }
 0x292   : > { %v14815_v4 = vpop.f32.mrb[204].mxu0  ;;  %v15911_v14 = vld [vmem:[#allocation2 + $0xb0] sm:$0xff]  }
 0x293   : > { %v14855_v59 = vpop.f32.mrb[204].mxu1  ;;  %v6638_v7 = vpop.f32.mrb[205].mxu0  ;;  %v10206_v4 = vshrl.u32 %v18154_v38, 16 }
 0x294   : > { %v6827_v53 = vpop.f32.mrb[205].mxu1  ;;  %v14816_v35 = vpop.f32.mrb[206].mxu0 }
 0x295   : > { %v14856_v15 = vpop.f32.mrb[206].mxu1  ;;  %v18141_v3 = vadd.f32 %v6827_v53, %v6638_v7  ;;  %v6641_v60 = vpop.f32.mrb[207].mxu0  ;;  %v15914_v53 = vld [vmem:[%s18736_s3 + $0x320] sm:$0xff]   ;;  %v10218_v7 = vshll.u32 %v18176_v47, 16  ;;  %v10208_v31 = vor.u32 %v10206_v4, %v10204_v19  ;;  %v15927_v4 = vld [vmem:[%s18736_s3 + $0x378] sm:$0xff]  }
 0x296   : > { %v6830_v29 = vpop.f32.mrb[207].mxu1  ;;  %v18143_v28 = vadd.f32 %v14856_v15, %v14816_v35  ;;  %v10210_v15 = vshll.u32 %v15912_v1, 16 }
 0x297   : > { %v18149_v20 = vadd.f32 %v6830_v29, %v6641_v60  ;;  %15202 = vmatmul.mubr.bf16.vlgmr.msra.gmra.mrb[56].mxu0 %v15892_v22  ;;  %v15913_v29 = vld [vmem:[%s18736_s3 + $0x360] sm:$0xff]   ;;  %v15919_v22 = vld [vmem:[#allocation2 + $0xc8] sm:$0xff]  }
 0x298   : > { %15242 = vmatmul.mubr.bf16.vlgmr.msra.gmra.mrb[56].mxu1 %v10165_v61  ;;  %15266 = vmatpush3.bf16.msra.mxu0 %v18108_v11  ;;  %v10198_v11 = vshrl.u32 %v15906_v30, 16  ;;  %v15920_v30 = vld [vmem:[%s18736_s3 + $0x328] sm:$0xff]   ;;  %v10212_v58 = vrot.slane %v10210_v15, 1  ;;  %v10226_v63 = vshll.u32 %v15919_v22, 16 }
 0x299   : > { %15306 = vmatpush3.bf16.msra.mxu1 %v18103_v26  ;;  %15245 = vmatprep.mubr.bf16.mxu1 %v10173_v13 }
 0x29a   : > { %15307 = vmatprep.subr.bf16.mxu1 %v15900_v6  ;;  %15205 = vmatprep.mubr.bf16.mxu0 %v15896_v57  ;;  %v14819_v44 = vpop.f32.mrb[208].mxu0  ;;  %v10200_v37 = vor.u32 %v10198_v11, %v10196_v9  ;;  %v10213_v48 = vsel %vm665_vm0, %v10208_v31, %v10212_v58 }
 0x29b   : > { %v14859_v21 = vpop.f32.mrb[208].mxu1  ;;  %15267 = vmatprep.subr.bf16.mxu0 %v15895_v17  ;;  %v6654_v10 = vpop.f32.mrb[209].mxu0 }
 0x29c   : > { %v6843_v26 = vpop.f32.mrb[209].mxu1  ;;  %v18164_v43 = vadd.f32 %v14859_v21, %v14819_v44  ;;  %v14820_v54 = vpop.f32.mrb[210].mxu0  ;;  %15268 = vmatpush3.bf16.msra.mxu0 %v15895_v17  ;;  %v10205_v8 = vsel %vm665_vm0, %v10200_v37, %v10204_v19  ;;  %v15909_v17 = vld [vmem:[#allocation2 + $0xa8] sm:$0xff]   ;;  %v10216_v21 = vor.u32 %v10214_v12, %v10212_v58  ;;  %v18203_v44 = vld [vmem:[#allocation2 + $0x70] sm:$0xf]  ;;  %v15928_v37 = vld [vmem:[%s18736_s3 + $0x338] sm:$0xff]  }
 0x29d   : > { %v14860_v50 = vpop.f32.mrb[210].mxu1  ;;  %15308 = vmatpush3.bf16.msra.mxu1 %v15900_v6  ;;  %v18169_v62 = vadd.f32 %v6843_v26, %v6654_v10  ;;  %v6657_v34 = vpop.f32.mrb[211].mxu0  ;;  %15269 = vmatprep.subr.bf16.mxu0 %v15901_v33  ;;  %v10220_v26 = vrot.slane %v10218_v7, 1  ;;  %v15921_v10 = vld [vmem:[%s18736_s3 + $0x370] sm:$0xff]   ;;  %v18213_v1 = vcombine.low %v10572_v5, %v18203_v44  ;;  %v18230_v7 = vld [vmem:[%s18736_s3 + $0x3c0] sm:$0xff]  }
 0x29e   : > { %v6846_v52 = vpop.f32.mrb[211].mxu1  ;;  %15309 = vmatprep.subr.bf16.mxu1 %v15902_v0  ;;  %v18171_v49 = vadd.f32 %v14860_v50, %v14820_v54  ;;  %v18198_v50 = vld [vmem:[#allocation2 + $0xd0] sm:$0xff]  }
 0x29f   : > { %15206 = vmatmul.mubr.bf16.gmra.mrb[60].mxu0 %v15898_v55  ;;  %v10230_v55 = vshrl.u32 %v15919_v22, 16  ;;  %v10234_v9 = vshll.u32 %v18198_v50, 16  ;;  %v18235_v22 = vld [vmem:[%s18737_s4] ss:$0 sm:$0xff]  ;;  %v10238_v31 = vshrl.u32 %v18198_v50, 16 }
 0x2a0   : > { %15246 = vmatmul.mubr.bf16.gmra.mrb[60].mxu1 %v10181_v16  ;;  %15270 = vmatpush3.bf16.msra.mxu0 %v15901_v33  ;;  %v15922_v33 = vld [vmem:[%s18736_s3 + $0x330] sm:$0xff]  }
 0x2a1   : > { %15249 = vmatprep.mubr.bf16.mxu1 %v10189_v39  ;;  %15310 = vmatpush3.bf16.msra.mxu1 %v15902_v0  ;;  %v10222_v39 = vshrl.u32 %v18176_v47, 16 }
 0x2a2   : > { %15311 = vmatprep.subr.bf16.mxu1 %v15908_v45  ;;  %15209 = vmatprep.mubr.bf16.mxu0 %v15903_v56  ;;  %v14823_v13 = vpop.f32.mrb[212].mxu0  ;;  %v10221_v56 = vsel %vm665_vm0, %v10216_v21, %v10220_v26 }
 0x2a3   : > { %v14863_v59 = vpop.f32.mrb[212].mxu1  ;;  %15271 = vmatprep.subr.bf16.mxu0 %v15907_v25  ;;  %v6670_v57 = vpop.f32.mrb[213].mxu0 }
 0x2a4   : > { %v6859_v24 = vpop.f32.mrb[213].mxu1  ;;  %v18188_v35 = vadd.f32 %v14863_v59, %v14823_v13  ;;  %v14824_v60 = vpop.f32.mrb[214].mxu0  ;;  %15272 = vmatpush3.bf16.msra.mxu0 %v15907_v25  ;;  %v10228_v25 = vrot.slane %v10226_v63, 1  ;;  %v15916_v59 = vld [vmem:[#allocation2 + $0xb8] sm:$0xff]  }
 0x2a5   : > { %v14864_v61 = vpop.f32.mrb[214].mxu1  ;;  %15312 = vmatpush3.bf16.msra.mxu1 %v15908_v45  ;;  %v6673_v0 = vpop.f32.mrb[215].mxu0  ;;  %15273 = vmatprep.subr.bf16.mxu0 %v15913_v29  ;;  %v15926_v24 = vld [vmem:[#allocation2 + $0xd8] ss:$0 sps:$4 sm:$0x11]  }
 0x2a6   : > { %v6862_v6 = vpop.f32.mrb[215].mxu1  ;;  %15313 = vmatprep.subr.bf16.mxu1 %v15914_v53  ;;  %v10242_v60 = vshll.u32 %v15926_v24, 16 }
 0x2a7   : > { %v18196_v38 = vadd.f32 %v6862_v6, %v6673_v0  ;;  %15210 = vmatmul.mubr.bf16.gmra.mrb[64].mxu0 %v15905_v40  ;;  %v10236_v6 = vrot.slane %v10234_v9, 1 }
 0x2a8   : > { %15250 = vmatmul.mubr.bf16.gmra.mrb[64].mxu1 %v10197_v42  ;;  %15213 = vmatprep.mubr.bf16.mxu0 %v15909_v17  ;;  %v10232_v42 = vor.u32 %v10230_v55, %v10228_v25  ;;  %v10613_v17 = vld [vmem:[#allocation2 + $0x6c] sm:$0xe] }
 0x2a9   : > { %15253 = vmatprep.mubr.bf16.mxu1 %v10205_v8  ;;  %15314 = vmatpush3.bf16.msra.mxu1 %v15914_v53  ;;  %v10224_v53 = vor.u32 %v10222_v39, %v10220_v26  ;;  %v10913_v8 = vshll.u32 %v18213_v1, 16  ;;  %v18246_v26 = vld [vmem:[%s18736_s3 + $0x380] sm:$0xff]   ;;  %v13235_v9 = vcombine.low %v10613_v17, %v18203_v44 }
 0x2aa   : > { %15315 = vmatprep.subr.bf16.mxu1 %v15920_v30  ;;  %15274 = vmatpush3.bf16.msra.mxu0 %v15913_v29  ;;  %v14883_v45 = vpop.f32.mrb[216].mxu0  ;;  %v18223_v29 = vld [vmem:[#allocation2 + $0x74] sm:$0xff]  }
 0x2ab   : > { %v14923_v16 = vpop.f32.mrb[216].mxu1  ;;  %15275 = vmatprep.subr.bf16.mxu0 %v15915_v36  ;;  %v7068_v34 = vpop.f32.mrb[217].mxu0  ;;  %v10918_v21 = vshll.u32 %v18223_v29, 16  ;;  %v10915_v50 = vrot.slane %v10913_v8, 1 }
 0x2ac   : > { %v7485_v52 = vpop.f32.mrb[217].mxu1  ;;  %v7163_v19 = vadd.f32 %v7068_v34, %v18080_v2  ;;  %v14884_v47 = vpop.f32.mrb[218].mxu0 }
 0x2ad   : > { %v14924_v11 = vpop.f32.mrb[218].mxu1  ;;  %15316 = vmatpush3.bf16.msra.mxu1 %v15920_v30  ;;  %v7166_v15 = vadd.f32 %v14884_v47, %v18085_v23  ;;  %v7071_v61 = vpop.f32.mrb[219].mxu0  ;;  %v10229_v30 = vsel %vm665_vm0, %v10224_v53, %v10228_v25  ;;  %v10240_v25 = vor.u32 %v10238_v31, %v10236_v6  ;;  %v10920_v47 = vrot.slane %v10918_v21, 1  ;;  %v15925_v31 = vld [vmem:[#allocation2 + $0xd0] sm:$0xff]  }
 0x2ae   : > { %v7488_v54 = vpop.f32.mrb[219].mxu1  ;;  %15317 = vmatprep.subr.bf16.mxu1 %v15922_v33  ;;  %15276 = vmatpush3.bf16.msra.mxu0 %v15915_v36  ;;  %v7580_v13 = vadd.f32 %v7485_v52, %v7163_v19  ;;  %v7164_v2 = vadd.f32 %v7071_v61, %v18095_v51  ;;  %v10911_v36 = vshrl.u32 %v18213_v1, 16  ;;  %v10237_v52 = vsel %vm665_vm0, %v10232_v42, %v10236_v6  ;;  %v18255_v1 = vld [vmem:[#allocation2 + $0x7c] sm:$0xff]  }
 0x2af   : > { %15277 = vmatprep.subr.bf16.mxu0 %v15921_v10  ;;  %v7583_v12 = vadd.f32 %v14924_v11, %v7166_v15  ;;  %15214 = vmatmul.mubr.bf16.gmra.mrb[68].mxu0 %v15911_v14  ;;  %v10693_v61 = vrot.slane %v13235_v9, 1  ;;  %v10922_v42 = vshrl.u32 %v18223_v29, 16 }
 0x2b0   : > { %15254 = vmatmul.mubr.bf16.gmra.mrb[68].mxu1 %v10213_v48  ;;  %v7604_v51 = vadd.f32 %v18235_v22, %v7580_v13  ;;  %v7581_v57 = vadd.f32 %v7488_v54, %v7164_v2  ;;  %15217 = vmatprep.mubr.bf16.mxu0 %v15916_v59  ;;  %v10916_v19 = vor.u32 %v10915_v50, %v10911_v36  ;;  %v18261_v59 = vld [vmem:[#allocation2 + $0x84] sm:$0xff]   ;;  %v18275_v36 = vld [vmem:[#allocation2 + $0x8c] sm:$0xff]  }
 0x2b1   : > { %15257 = vmatprep.mubr.bf16.mxu1 %v10221_v56  ;;  %15318 = vmatpush3.bf16.msra.mxu1 %v15922_v33  ;;  %v7607_v58 = vadd.f32 %v18235_v22, %v7583_v12  ;;  %v15923_v56 = vld [vmem:[#allocation2 + $0xc8] sm:$0xff]   ;;  %v10694_v12 = vrot.slane %v18223_v29, 1  ;;  %v10924_v21 = vor.u32 %v10922_v42, %v10920_v47  ;;  %v10698_v9 = vrot.slane %v18261_v59, 1 }
 0x2b2   : > { %15319 = vmatprep.subr.bf16.mxu1 %v15928_v37  ;;  %15278 = vmatpush3.bf16.msra.mxu0 %v15921_v10  ;;  %v13428_v63 = vpack.c.bf16 %v7604_v51, %v7604_v51  ;;  %v7605_v16 = vadd.f32 %v18235_v22, %v7581_v57  ;;  %v14887_v33 = vpop.f32.mrb[220].mxu0  ;;  %v15918_v10 = vld [vmem:[#allocation2 + $0xc0] sm:$0xff]  }
 0x2b3   : > { %v14927_v23 = vpop.f32.mrb[220].mxu1  ;;  %15279 = vmatprep.subr.bf16.mxu0 %v15927_v4  ;;  %v13430_v39 = vpack.c.bf16 %v7607_v58, %v7607_v58  ;;  %v7169_v11 = vadd.f32 %v14887_v33, %v18112_v41  ;;  %v7084_v48 = vpop.f32.mrb[221].mxu0 }
 0x2b4   : > { %v7501_v40 = vpop.f32.mrb[221].mxu1  ;;  %12865 = vst [vmem:[%s16724_s8 + $0x100] sm:$0xf] %v13428_v63  ;;  %v13429_v55 = vpack.c.bf16 %v7605_v16, %v7605_v16  ;;  %v7167_v45 = vadd.f32 %v7084_v48, %v18115_v46  ;;  %v14888_v54 = vpop.f32.mrb[222].mxu0 }
 0x2b5   : > { %v14928_v0 = vpop.f32.mrb[222].mxu1  ;;  %15320 = vmatpush3.bf16.msra.mxu1 %v15928_v37  ;;  %12867 = vst [vmem:[%s16724_s8 + $0x120] sm:$0xf] %v13430_v39  ;;  %v7586_v34 = vadd.f32 %v14927_v23, %v7169_v11  ;;  %v7170_v41 = vadd.f32 %v14888_v54, %v18120_v27  ;;  %v7087_v14 = vpop.f32.mrb[223].mxu0  ;;  %v10244_v37 = vrot.slane %v10242_v60, 1  ;;  %v10934_v60 = vshll.u32 %v18261_v59, 16 }
 0x2b6   : > { %v7504_v5 = vpop.f32.mrb[223].mxu1  ;;  %15385 = vmatprep.subr.bf16.mxu1 %v18230_v7  ;;  %15280 = vmatpush3.bf16.msra.mxu0 %v15927_v4  ;;  %12866 = vst [vmem:[%s16724_s8 + $0x108] sm:$0xf] %v13429_v55  ;;  %v7584_v46 = vadd.f32 %v7501_v40, %v7167_v45  ;;  %v10926_v4 = vshll.u32 %v18255_v1, 16  ;;  %v10921_v40 = vsel %vm665_vm0, %v10916_v19, %v10920_v47  ;;  %v10696_v54 = vrot.slane %v18255_v1, 1 }
 0x2b7   : > { %15345 = vmatprep.subr.bf16.mxu0 %v18246_v26  ;;  %v7610_v44 = vadd.f32 %v18235_v22, %v7586_v34  ;;  %v7587_v53 = vadd.f32 %v14928_v0, %v7170_v41  ;;  %15218 = vmatmul.mubr.bf16.gmra.mrb[72].mxu0 %v15918_v10  ;;  %v10245_v8 = vsel %vm665_vm0, %v10240_v25, %v10244_v37  ;;  %v10936_v39 = vrot.slane %v10934_v60, 1 }
 0x2b8   : > { %15258 = vmatmul.mubr.bf16.gmra.mrb[72].mxu1 %v10229_v30  ;;  %v7608_v15 = vadd.f32 %v18235_v22, %v7584_v46  ;;  %15221 = vmatprep.mubr.bf16.mxu0 %v15923_v56  ;;  %v10930_v30 = vshrl.u32 %v18255_v1, 16  ;;  %v10928_v63 = vrot.slane %v10926_v4, 1  ;;  %v10695_v5 = vsel %vm2117_vm1, %v10693_v61, %v10694_v12  ;;  %v15938_v1 = vld [vmem:[%s18736_s3 + $0x3c8] sm:$0xff]   ;;  %v18302_v4 = vld [vmem:[#allocation2 + $0x9c] sm:$0xff]  }
 0x2b9   : > { %15261 = vmatprep.mubr.bf16.mxu1 %v10237_v52  ;;  %v13432_v13 = vpack.c.bf16 %v7610_v44, %v7610_v44  ;;  %v7611_v2 = vadd.f32 %v18235_v22, %v7587_v53  ;;  %v18280_v52 = vld [vmem:[#allocation2 + $0x94] sm:$0xff]   ;;  %v10942_v10 = vshll.u32 %v18275_v36, 16  ;;  %v10938_v41 = vshrl.u32 %v18261_v59, 16  ;;  %v18343_v59 = vld [vmem:[#allocation2 + $0xac] sm:$0xff]  }
 0x2ba   : > { %v13431_v23 = vpack.c.bf16 %v7608_v15, %v7608_v15  ;;  %v14891_v51 = vpop.f32.mrb[224].mxu0  ;;  %v10929_v56 = vsel %vm665_vm0, %v10924_v21, %v10928_v63  ;;  %v10946_v14 = vshrl.u32 %v18275_v36, 16  ;;  %v10950_v25 = vshll.u32 %v18280_v52, 16 }
 0x2bb   : > { %v14931_v24 = vpop.f32.mrb[224].mxu1  ;;  %12869 = vst [vmem:[%s16724_s8 + $0x140] sm:$0xf] %v13432_v13  ;;  %v13433_v17 = vpack.c.bf16 %v7611_v2, %v7611_v2  ;;  %v7173_v58 = vadd.f32 %v14891_v51, %v18127_v32  ;;  %v7100_v0 = vpop.f32.mrb[225].mxu0  ;;  %v10932_v32 = vor.u32 %v10930_v30, %v10928_v63  ;;  %v10944_v53 = vrot.slane %v10942_v10, 1 }
 0x2bc   : > { %v7517_v27 = vpop.f32.mrb[225].mxu1  ;;  %12868 = vst [vmem:[%s16724_s8 + $0x128] sm:$0xf] %v13431_v23  ;;  %v14892_v29 = vpop.f32.mrb[226].mxu0  ;;  %v10697_v61 = vsel %vm2117_vm1, %v10694_v12, %v10696_v54  ;;  %v10699_v42 = vsel %vm2117_vm1, %v10696_v54, %v10698_v9  ;;  %v10952_v12 = vrot.slane %v10950_v25, 1  ;;  %v10700_v30 = vrot.slane %v18275_v36, 1 }
 0x2bd   : > { %v14932_v6 = vpop.f32.mrb[226].mxu1  ;;  %12870 = vst [vmem:[%s16724_s8 + $0x148] sm:$0xf] %v13433_v17  ;;  %v7590_v16 = vadd.f32 %v14931_v24, %v7173_v58  ;;  %v7103_v33 = vpop.f32.mrb[227].mxu0  ;;  %v10937_v47 = vsel %vm665_vm0, %v10932_v32, %v10936_v39  ;;  %v10958_v0 = vshll.u32 %v18302_v4, 16  ;;  %v15939_v36 = vld [vmem:[%s18736_s3 + $0x390] sm:$0xff]  }
 0x2be   : > { %v7520_v57 = vpop.f32.mrb[227].mxu1  ;;  %v7172_v50 = vadd.f32 %v7103_v33, %v18131_v18  ;;  %v15935_v6 = vld [vmem:[%s18736_s3 + $0x388] sm:$0xff]   ;;  %v10954_v63 = vshrl.u32 %v18280_v52, 16  ;;  %v10962_v32 = vshrl.u32 %v18302_v4, 16 }
 0x2bf   : > { %v7614_v11 = vadd.f32 %v18235_v22, %v7590_v16  ;;  %15222 = vmatmul.mubr.bf16.gmra.mrb[76].mxu0 %v15925_v31 }
 0x2c0   : > { %15262 = vmatmul.mubr.bf16.gmra.mrb[76].mxu1 %v10245_v8  ;;  %v7589_v55 = vadd.f32 %v7520_v57, %v7172_v50  ;;  %15281 = vmatprep.mubr.bf16.mxu0 %v10695_v5  ;;  %v10948_v8 = vor.u32 %v10946_v14, %v10944_v53  ;;  %v18314_v57 = vld [vmem:[#allocation2 + $0xa4] sm:$0xff]   ;;  %v10956_v25 = vor.u32 %v10954_v63, %v10952_v12 }
 0x2c1   : > { %15321 = vmatprep.mubr.bf16.mxu1 %v10921_v40  ;;  %v13435_v34 = vpack.c.bf16 %v7614_v11, %v7614_v11 }
 0x2c2   : > { %v7613_v37 = vadd.f32 %v18235_v22, %v7589_v55  ;;  %v14895_v46 = vpop.f32.mrb[228].mxu0  ;;  %v10701_v55 = vsel %vm2117_vm1, %v10698_v9, %v10700_v30 }
 0x2c3   : > { %v14935_v48 = vpop.f32.mrb[228].mxu1  ;;  %12872 = vst [vmem:[%s16724_s8 + $0x168] sm:$0xf] %v13435_v34  ;;  %v7116_v44 = vpop.f32.mrb[229].mxu0 }
 0x2c4   : > { %v7533_v45 = vpop.f32.mrb[229].mxu1  ;;  %v13434_v24 = vpack.c.bf16 %v7613_v37, %v7613_v37  ;;  %v7175_v15 = vadd.f32 %v7116_v44, %v18141_v3  ;;  %v14896_v27 = vpop.f32.mrb[230].mxu0  ;;  %v10940_v3 = vor.u32 %v10938_v41, %v10936_v39  ;;  %v10966_v39 = vshll.u32 %v18314_v57, 16 }
 0x2c5   : > { %v14936_v18 = vpop.f32.mrb[230].mxu1  ;;  %v7178_v13 = vadd.f32 %v14896_v27, %v18143_v28  ;;  %v7119_v2 = vpop.f32.mrb[231].mxu0  ;;  %v15940_v28 = vld [vmem:[%s18736_s3 + $0x3d0] sm:$0xff]   ;;  %v10704_v27 = vrot.slane %v18302_v4, 1  ;;  %v15947_v4 = vld [vmem:[%s18736_s3 + $0x3a0] sm:$0xff]  }
 0x2c6   : > { %v7536_v19 = vpop.f32.mrb[231].mxu1  ;;  %12871 = vst [vmem:[%s16724_s8 + $0x160] sm:$0xf] %v13434_v24  ;;  %v7592_v23 = vadd.f32 %v7533_v45, %v7175_v15  ;;  %v7176_v51 = vadd.f32 %v7119_v2, %v18149_v20  ;;  %v10702_v20 = vrot.slane %v18280_v52, 1  ;;  %v10945_v21 = vsel %vm665_vm0, %v10940_v3, %v10944_v53  ;;  %v15944_v45 = vld [vmem:[%s18736_s3 + $0x3d8] sm:$0xff]   ;;  %v15948_v53 = vld [vmem:[%s18736_s3 + $0x3e0] sm:$0xff]  }
 0x2c7   : > { %15282 = vmatmul.mubr.bf16.vlgmr.msra.gmra.mrb[80].mxu0 %v10697_v61  ;;  %v10970_v61 = vshrl.u32 %v18314_v57, 16  ;;  %v15949_v52 = vld [vmem:[%s18736_s3 + $0x3a8] sm:$0xff]  }
 0x2c8   : > { %15322 = vmatmul.mubr.bf16.vlgmr.msra.gmra.mrb[80].mxu1 %v10929_v56  ;;  %v7616_v60 = vadd.f32 %v18235_v22, %v7592_v23  ;;  %v7593_v17 = vadd.f32 %v7536_v19, %v7176_v51  ;;  %15346 = vmatpush3.bf16.msra.mxu0 %v18246_v26  ;;  %v10953_v26 = vsel %vm665_vm0, %v10948_v8, %v10952_v12  ;;  %v10968_v19 = vrot.slane %v10966_v39, 1 }
 0x2c9   : > { %15386 = vmatpush3.bf16.msra.mxu1 %v18230_v7  ;;  %15325 = vmatprep.mubr.bf16.mxu1 %v10937_v47  ;;  %v7595_v7 = vadd.f32 %v14936_v18, %v7178_v13  ;;  %v10960_v18 = vrot.slane %v10958_v0, 1  ;;  %v18351_v47 = vld [vmem:[#allocation2 + $0xb4] sm:$0xff]   ;;  %v10706_v8 = vrot.slane %v18314_v57, 1  ;;  %v10708_v39 = vrot.slane %v18343_v59, 1 }
 0x2ca   : > { %15387 = vmatprep.subr.bf16.mxu1 %v15938_v1  ;;  %15285 = vmatprep.mubr.bf16.mxu0 %v10699_v42  ;;  %v13436_v16 = vpack.c.bf16 %v7616_v60, %v7616_v60  ;;  %v7617_v33 = vadd.f32 %v18235_v22, %v7593_v17  ;;  %v14899_v5 = vpop.f32.mrb[232].mxu0  ;;  %v10974_v42 = vshll.u32 %v18343_v59, 16  ;;  %v18421_v57 = vld [vmem:[#allocation2 + $0xcc] ss:$0 sps:$4 sm:$0x11]  }
 0x2cb   : > { %v14939_v40 = vpop.f32.mrb[232].mxu1  ;;  %v7619_v31 = vadd.f32 %v18235_v22, %v7595_v7  ;;  %15347 = vmatprep.subr.bf16.mxu0 %v15935_v6  ;;  %v7181_v48 = vadd.f32 %v14899_v5, %v18164_v43  ;;  %v7132_v10 = vpop.f32.mrb[233].mxu0  ;;  %v10703_v43 = vsel %vm2117_vm1, %v10700_v30, %v10702_v20  ;;  %v10964_v46 = vor.u32 %v10962_v32, %v10960_v18 }
 0x2cc   : > { %v7549_v58 = vpop.f32.mrb[233].mxu1  ;;  %12873 = vst [vmem:[%s16724_s8 + $0x180] sm:$0xf] %v13436_v16  ;;  %v13437_v54 = vpack.c.bf16 %v7617_v33, %v7617_v33  ;;  %v7179_v56 = vadd.f32 %v7132_v10, %v18169_v62  ;;  %v14900_v34 = vpop.f32.mrb[234].mxu0  ;;  %15348 = vmatpush3.bf16.msra.mxu0 %v15935_v6  ;;  %v15943_v62 = vld [vmem:[%s18736_s3 + $0x398] sm:$0xff]   ;;  %v10961_v3 = vsel %vm665_vm0, %v10956_v25, %v10960_v18  ;;  %v10978_v7 = vshrl.u32 %v18343_v59, 16 }
 0x2cd   : > { %v14940_v29 = vpop.f32.mrb[234].mxu1  ;;  %15388 = vmatpush3.bf16.msra.mxu1 %v15938_v1  ;;  %v13438_v11 = vpack.c.bf16 %v7619_v31, %v7619_v31  ;;  %v7598_v9 = vadd.f32 %v14939_v40, %v7181_v48  ;;  %v7182_v41 = vadd.f32 %v14900_v34, %v18171_v49  ;;  %v7135_v14 = vpop.f32.mrb[235].mxu0  ;;  %15349 = vmatprep.subr.bf16.mxu0 %v15939_v36  ;;  %v10982_v40 = vshll.u32 %v18351_v47, 16 }
 0x2ce   : > { %v7552_v50 = vpop.f32.mrb[235].mxu1  ;;  %15389 = vmatprep.subr.bf16.mxu1 %v15940_v28  ;;  %12874 = vst [vmem:[%s16724_s8 + $0x188] sm:$0xf] %v13437_v54  ;;  %v7596_v37 = vadd.f32 %v7549_v58, %v7179_v56  ;;  %v15952_v58 = vld [vmem:[%s18736_s3 + $0x3e8] sm:$0xff]   ;;  %v10705_v31 = vsel %vm2117_vm1, %v10702_v20, %v10704_v27  ;;  %v10707_v63 = vsel %vm2117_vm1, %v10704_v27, %v10706_v8  ;;  %v10986_v34 = vshrl.u32 %v18351_v47, 16 }
 0x2cf   : > { %12875 = vst [vmem:[%s16724_s8 + $0x1a0] sm:$0xf] %v13438_v11  ;;  %v7622_v1 = vadd.f32 %v18235_v22, %v7598_v9  ;;  %v7599_v44 = vadd.f32 %v14940_v29, %v7182_v41  ;;  %15286 = vmatmul.mubr.bf16.gmra.mrb[84].mxu0 %v10701_v55  ;;  %v10972_v29 = vor.u32 %v10970_v61, %v10968_v19  ;;  %v18388_v20 = vld [vmem:[#allocation2 + $0xc4] sm:$0xff]   ;;  %v10984_v5 = vrot.slane %v10982_v40, 1  ;;  %v15954_v11 = vld [vmem:[%s18736_s3 + $0x3f0] sm:$0xff]  }
 0x2d0   : > { %15326 = vmatmul.mubr.bf16.gmra.mrb[84].mxu1 %v10945_v21  ;;  %v7620_v24 = vadd.f32 %v18235_v22, %v7596_v37  ;;  %15350 = vmatpush3.bf16.msra.mxu0 %v15939_v36  ;;  %v10976_v21 = vrot.slane %v10974_v42, 1  ;;  %v18379_v36 = vld [vmem:[#allocation2 + $0xbc] sm:$0xff]   ;;  %v10998_v59 = vshll.u32 %v18388_v20, 16  ;;  %v11006_v40 = vshll.u32 %v18421_v57, 16 }
 0x2d1   : > { %15329 = vmatprep.mubr.bf16.mxu1 %v10953_v26  ;;  %15390 = vmatpush3.bf16.msra.mxu1 %v15940_v28  ;;  %v13440_v13 = vpack.c.bf16 %v7622_v1, %v7622_v1  ;;  %v7623_v2 = vadd.f32 %v18235_v22, %v7599_v44  ;;  %v10969_v28 = vsel %vm665_vm0, %v10964_v46, %v10968_v19  ;;  %v10994_v18 = vshrl.u32 %v18379_v36, 16  ;;  %v18407_v37 = vld [vmem:[#allocation2 + $0x7c] sm:$0xf] }
 0x2d2   : > { %15391 = vmatprep.subr.bf16.mxu1 %v15944_v45  ;;  %15289 = vmatprep.mubr.bf16.mxu0 %v10703_v43  ;;  %v13439_v12 = vpack.c.bf16 %v7620_v24, %v7620_v24  ;;  %v14903_v23 = vpop.f32.mrb[236].mxu0  ;;  %v10980_v33 = vor.u32 %v10978_v7, %v10976_v21  ;;  %v10977_v55 = vsel %vm665_vm0, %v10972_v29, %v10976_v21  ;;  %v15953_v43 = vld [vmem:[%s18736_s3 + $0x3b0] sm:$0xff]   ;;  %v15958_v1 = vld [vmem:[%s18736_s3 + $0x3f8] sm:$0xff]   ;;  %v11002_v7 = vshrl.u32 %v18388_v20, 16 }
 0x2d3   : > { %v14943_v49 = vpop.f32.mrb[236].mxu1  ;;  %15351 = vmatprep.subr.bf16.mxu0 %v15943_v62  ;;  %12877 = vst [vmem:[%s16724_s8 + $0x1c0] sm:$0xf] %v13440_v13  ;;  %v13441_v30 = vpack.c.bf16 %v7623_v2, %v7623_v2  ;;  %v7185_v60 = vadd.f32 %v14903_v23, %v18188_v35  ;;  %v7148_v17 = vpop.f32.mrb[237].mxu0  ;;  %v10709_v19 = vsel %vm2117_vm1, %v10706_v8, %v10708_v39  ;;  %v15957_v13 = vld [vmem:[%s18736_s3 + $0x3b8] sm:$0xff]   ;;  %v11000_v8 = vrot.slane %v10998_v59, 1 }
 0x2d4   : > { %v7565_v15 = vpop.f32.mrb[237].mxu1  ;;  %12876 = vst [vmem:[%s16724_s8 + $0x1a8] sm:$0xf] %v13439_v12  ;;  %v14904_v0 = vpop.f32.mrb[238].mxu0  ;;  %15352 = vmatpush3.bf16.msra.mxu0 %v15943_v62  ;;  %v10985_v25 = vsel %vm665_vm0, %v10980_v33, %v10984_v5  ;;  %v11199_v62 = vld [vmem:[#allocation2 + $0x78] sm:$0xf]  ;;  %v10988_v42 = vor.u32 %v10986_v34, %v10984_v5 }
 0x2d5   : > { %v14944_v6 = vpop.f32.mrb[238].mxu1  ;;  %15392 = vmatpush3.bf16.msra.mxu1 %v15944_v45  ;;  %12878 = vst [vmem:[%s16724_s8 + $0x1c8] sm:$0xf] %v13441_v30  ;;  %v7602_v35 = vadd.f32 %v14943_v49, %v7185_v60  ;;  %v7151_v26 = vpop.f32.mrb[239].mxu0  ;;  %15353 = vmatprep.subr.bf16.mxu0 %v15947_v4  ;;  %v10990_v45 = vshll.u32 %v18379_v36, 16  ;;  %v13281_v2 = vcombine.low %v11199_v62, %v18407_v37  ;;  %v10712_v12 = vrot.slane %v18379_v36, 1 }
 0x2d6   : > { %v7568_v51 = vpop.f32.mrb[239].mxu1  ;;  %15393 = vmatprep.subr.bf16.mxu1 %v15948_v53  ;;  %v7184_v16 = vadd.f32 %v7151_v26, %v18196_v38  ;;  %v10710_v38 = vrot.slane %v18351_v47, 1  ;;  %v11616_v23 = vld [vmem:[#allocation2 + $0x78] sm:$0xe]  ;;  %v18437_v17 = vld [vmem:[#allocation2 + $0x80] sm:$0xff]   ;;  %v11008_v33 = vrot.slane %v11006_v40, 1 }
 0x2d7   : > { %v7626_v50 = vadd.f32 %v18235_v22, %v7602_v35  ;;  %15290 = vmatmul.mubr.bf16.gmra.mrb[88].mxu0 %v10705_v31  ;;  %v10992_v15 = vrot.slane %v10990_v45, 1  ;;  %v13318_v21 = vcombine.low %v11616_v23, %v18407_v37  ;;  %v10716_v45 = vrot.slane %v18421_v57, 1 }
 0x2d8   : > { %15330 = vmatmul.mubr.bf16.gmra.mrb[88].mxu1 %v10961_v3  ;;  %v7601_v48 = vadd.f32 %v7568_v51, %v7184_v16  ;;  %15293 = vmatprep.mubr.bf16.mxu0 %v10707_v63  ;;  %v10711_v24 = vsel %vm2117_vm1, %v10708_v39, %v10710_v38  ;;  %v10713_v26 = vsel %vm2117_vm1, %v10710_v38, %v10712_v12 }
 0x2d9   : > { %15333 = vmatprep.mubr.bf16.mxu1 %v10969_v28  ;;  %15394 = vmatpush3.bf16.msra.mxu1 %v15948_v53  ;;  %v13443_v54 = vpack.c.bf16 %v7626_v50, %v7626_v50  ;;  %v10996_v3 = vor.u32 %v10994_v18, %v10992_v15  ;;  %v10714_v28 = vrot.slane %v18388_v20, 1  ;;  %v10993_v60 = vsel %vm665_vm0, %v10988_v42, %v10992_v15  ;;  %v15963_v18 = vld [vmem:[#allocation2 + $0x90] sm:$0xff]  }
 0x2da   : > { %15395 = vmatprep.subr.bf16.mxu1 %v15952_v58  ;;  %15354 = vmatpush3.bf16.msra.mxu0 %v15947_v4  ;;  %v7625_v9 = vadd.f32 %v18235_v22, %v7601_v48  ;;  %v14963_v41 = vpop.f32.mrb[240].mxu0  ;;  %v11004_v16 = vor.u32 %v11002_v7, %v11000_v8  ;;  %v11636_v47 = vrot.slane %v13318_v21, 1  ;;  %v11637_v48 = vrot.slane %v18437_v17, 1 }
 0x2db   : > { %v15003_v32 = vpop.f32.mrb[240].mxu1  ;;  %15355 = vmatprep.subr.bf16.mxu0 %v15949_v52  ;;  %12880 = vst [vmem:[%s16724_s8 + $0x1e8] sm:$0xf] %v13443_v54  ;;  %v7957_v46 = vpop.f32.mrb[241].mxu0  ;;  %v11001_v29 = vsel %vm665_vm0, %v10996_v3, %v11000_v8  ;;  %v10715_v20 = vsel %vm2117_vm1, %v10712_v12, %v10714_v28  ;;  %v11327_v15 = vshll.u32 %v15963_v18, 16 }
 0x2dc   : > { %v8249_v10 = vpop.f32.mrb[241].mxu1  ;;  %v13442_v44 = vpack.c.bf16 %v7625_v9, %v7625_v9  ;;  %v14964_v53 = vpop.f32.mrb[242].mxu0  ;;  %v11304_v32 = vshrl.u32 %v13281_v2, 16  ;;  %v11638_v41 = vsel %vm2117_vm1, %v11636_v47, %v11637_v48 }
 0x2dd   : > { %v15004_v56 = vpop.f32.mrb[242].mxu1  ;;  %15396 = vmatpush3.bf16.msra.mxu1 %v15952_v58  ;;  %v18416_v49 = vadd.f32 %v8249_v10, %v7957_v46  ;;  %v7960_v61 = vpop.f32.mrb[243].mxu0  ;;  %v11306_v58 = vshll.u32 %v13281_v2, 16  ;;  %v10717_v46 = vsel %vm2117_vm1, %v10714_v28, %v10716_v45  ;;  %v15964_v2 = vld [vmem:[#allocation2 + $0x98] sm:$0xff]   ;;  %v15965_v28 = vld [vmem:[#allocation2 + $0xa0] sm:$0xff]  }
 0x2de   : > { %v8252_v14 = vpop.f32.mrb[243].mxu1  ;;  %15397 = vmatprep.subr.bf16.mxu1 %v15954_v11  ;;  %15356 = vmatpush3.bf16.msra.mxu0 %v15949_v52  ;;  %v18423_v27 = vadd.f32 %v15004_v56, %v14964_v53  ;;  %12879 = vst [vmem:[%s16724_s8 + $0x1e0] sm:$0xf] %v13442_v44  ;;  %v11009_v56 = vsel %vm665_vm0, %v11004_v16, %v11008_v33  ;;  %v11643_v21 = vrot.slane %v15964_v2, 1  ;;  %v11343_v16 = vshll.u32 %v15965_v28, 16 }
 0x2df   : > { %15357 = vmatprep.subr.bf16.mxu0 %v15953_v43  ;;  %v18430_v6 = vadd.f32 %v8252_v14, %v7960_v61  ;;  %15294 = vmatmul.mubr.bf16.gmra.mrb[92].mxu0 %v10709_v19  ;;  %v11308_v39 = vrot.slane %v11306_v58, 1  ;;  %v11315_v19 = vshrl.u32 %v18437_v17, 16  ;;  %v11641_v61 = vrot.slane %v15963_v18, 1 }
 0x2e0   : > { %15334 = vmatmul.mubr.bf16.gmra.mrb[92].mxu1 %v10977_v55  ;;  %15297 = vmatprep.mubr.bf16.mxu0 %v10711_v24  ;;  %v15961_v55 = vld [vmem:[#allocation2 + $0x88] sm:$0xff]   ;;  %v11345_v45 = vrot.slane %v11343_v16, 1 }
 0x2e1   : > { %15337 = vmatprep.mubr.bf16.mxu1 %v10985_v25  ;;  %15398 = vmatpush3.bf16.msra.mxu1 %v15954_v11  ;;  %v11311_v11 = vshll.u32 %v18437_v17, 16  ;;  %v11309_v34 = vor.u32 %v11308_v39, %v11304_v32  ;;  %v11319_v62 = vshll.u32 %v15961_v55, 16  ;;  %v11639_v53 = vrot.slane %v15961_v55, 1 }
 0x2e2   : > { %15399 = vmatprep.subr.bf16.mxu1 %v15958_v1  ;;  %15358 = vmatpush3.bf16.msra.mxu0 %v15953_v43  ;;  %v14967_v0 = vpop.f32.mrb[244].mxu0  ;;  %v11323_v24 = vshrl.u32 %v15961_v55, 16  ;;  %v11335_v17 = vshll.u32 %v15964_v2, 16  ;;  %v11644_v55 = vsel %vm2117_vm1, %v11641_v61, %v11643_v21 }
 0x2e3   : > { %v15007_v4 = vpop.f32.mrb[244].mxu1  ;;  %15359 = vmatprep.subr.bf16.mxu0 %v15957_v13  ;;  %v7973_v35 = vpop.f32.mrb[245].mxu0  ;;  %v11313_v43 = vrot.slane %v11311_v11, 1  ;;  %v11640_v12 = vsel %vm2117_vm1, %v11637_v48, %v11639_v53  ;;  %v15966_v11 = vld [vmem:[#allocation2 + $0xa8] sm:$0xff]  }
 0x2e4   : > { %v8265_v51 = vpop.f32.mrb[245].mxu1  ;;  %v18441_v36 = vadd.f32 %v15007_v4, %v14967_v0  ;;  %v14968_v52 = vpop.f32.mrb[246].mxu0  ;;  %v11337_v39 = vrot.slane %v11335_v17, 1 }
 0x2e5   : > { %v15008_v30 = vpop.f32.mrb[246].mxu1  ;;  %15400 = vmatpush3.bf16.msra.mxu1 %v15958_v1  ;;  %v18446_v63 = vadd.f32 %v8265_v51, %v7973_v35  ;;  %v7976_v50 = vpop.f32.mrb[247].mxu0  ;;  %v11314_v44 = vsel %vm665_vm0, %v11309_v34, %v11313_v43  ;;  %v11317_v8 = vor.u32 %v11315_v19, %v11313_v43  ;;  %v11329_v51 = vrot.slane %v11327_v15, 1 }
 0x2e6   : > { %v8268_v31 = vpop.f32.mrb[247].mxu1  ;;  %15360 = vmatpush3.bf16.msra.mxu0 %v15957_v13  ;;  %v18449_v5 = vadd.f32 %v15008_v30, %v14968_v52  ;;  %v11321_v13 = vrot.slane %v11319_v62, 1  ;;  %v11642_v30 = vsel %vm2117_vm1, %v11639_v53, %v11641_v61  ;;  %v11645_v50 = vrot.slane %v15965_v28, 1 }
 0x2e7   : > { %15298 = vmatmul.mubr.bf16.gmra.mrb[96].mxu0 %v10713_v26  ;;  %v11355_v53 = vshrl.u32 %v15966_v11, 16 }
 0x2e8   : > { %15338 = vmatmul.mubr.bf16.gmra.mrb[96].mxu1 %v10993_v60  ;;  %15301 = vmatprep.mubr.bf16.mxu0 %v10715_v20  ;;  %v11325_v23 = vor.u32 %v11323_v24, %v11321_v13  ;;  %v11322_v31 = vsel %vm665_vm0, %v11317_v8, %v11321_v13  ;;  %v11339_v20 = vshrl.u32 %v15964_v2, 16  ;;  %v11646_v43 = vsel %vm2117_vm1, %v11643_v21, %v11645_v50  ;;  %v15968_v13 = vld [vmem:[#allocation2 + $0xb8] sm:$0xff]  }
 0x2e9   : > { %15341 = vmatprep.mubr.bf16.mxu1 %v11001_v29  ;;  %v11331_v29 = vshrl.u32 %v15963_v18, 16  ;;  %v11367_v17 = vshll.u32 %v15968_v13, 16 }
 0x2ea   : > { %v14971_v59 = vpop.f32.mrb[248].mxu0  ;;  %v11330_v52 = vsel %vm665_vm0, %v11325_v23, %v11329_v51 }
 0x2eb   : > { %v15011_v10 = vpop.f32.mrb[248].mxu1  ;;  %v7989_v25 = vpop.f32.mrb[249].mxu0  ;;  %v11333_v48 = vor.u32 %v11331_v29, %v11329_v51  ;;  %v18484_v51 = vld [vmem:[#allocation2 + $0xc0] sm:$0xff]  }
 0x2ec   : > { %v8281_v38 = vpop.f32.mrb[249].mxu1  ;;  %v18456_v14 = vadd.f32 %v15011_v10, %v14971_v59  ;;  %v14972_v37 = vpop.f32.mrb[250].mxu0  ;;  %v11375_v16 = vshll.u32 %v18484_v51, 16 }
 0x2ed   : > { %v15012_v54 = vpop.f32.mrb[250].mxu1  ;;  %v7992_v1 = vpop.f32.mrb[251].mxu0  ;;  %v11341_v38 = vor.u32 %v11339_v20, %v11337_v39  ;;  %v11338_v62 = vsel %vm665_vm0, %v11333_v48, %v11337_v39  ;;  %v11347_v37 = vshrl.u32 %v15965_v28, 16  ;;  %v11371_v20 = vshrl.u32 %v15968_v13, 16 }
 0x2ee   : > { %v8284_v9 = vpop.f32.mrb[251].mxu1  ;;  %v15967_v54 = vld [vmem:[#allocation2 + $0xb0] sm:$0xff]  }
 0x2ef   : > { %v18461_v57 = vadd.f32 %v8284_v9, %v7992_v1  ;;  %15302 = vmatmul.mubr.bf16.gmra.mrb[100].mxu0 %v10717_v46  ;;  %v11351_v9 = vshll.u32 %v15966_v11, 16  ;;  %v11647_v46 = vrot.slane %v15966_v11, 1  ;;  %v11359_v24 = vshll.u32 %v15967_v54, 16 }
 0x2f0   : > { %15342 = vmatmul.mubr.bf16.gmra.mrb[100].mxu1 %v11009_v56  ;;  %15361 = vmatprep.mubr.bf16.mxu0 %v11314_v44  ;;  %v11346_v44 = vsel %vm665_vm0, %v11341_v38, %v11345_v45  ;;  %v11649_v15 = vrot.slane %v15967_v54, 1  ;;  %v11363_v29 = vshrl.u32 %v15967_v54, 16  ;;  %v11369_v11 = vrot.slane %v11367_v17, 1 }
 0x2f1   : > { %15401 = vmatprep.mubr.bf16.mxu1 %v11638_v41  ;;  %v11361_v23 = vrot.slane %v11359_v24, 1  ;;  %v11377_v54 = vrot.slane %v11375_v16, 1 }
 0x2f2   : > { %v14975_v7 = vpop.f32.mrb[252].mxu0 }
 0x2f3   : > { %v15015_v42 = vpop.f32.mrb[252].mxu1  ;;  %v8005_v60 = vpop.f32.mrb[253].mxu0 }
 0x2f4   : > { %v8297_v3 = vpop.f32.mrb[253].mxu1  ;;  %v14976_v0 = vpop.f32.mrb[254].mxu0  ;;  %v11353_v42 = vrot.slane %v11351_v9, 1 }
 0x2f5   : > { %v15016_v4 = vpop.f32.mrb[254].mxu1  ;;  %v18465_v58 = vadd.f32 %v8297_v3, %v8005_v60  ;;  %v8008_v26 = vpop.f32.mrb[255].mxu0  ;;  %v11349_v3 = vor.u32 %v11347_v37, %v11345_v45  ;;  %v11373_v45 = vor.u32 %v11371_v20, %v11369_v11 }
 0x2f6   : > { %v8300_v40 = vpop.f32.mrb[255].mxu1  ;;  %v18468_v35 = vadd.f32 %v15016_v4, %v14976_v0  ;;  %v11648_v4 = vsel %vm2117_vm1, %v11645_v50, %v11647_v46 }
 0x2f7   : > { %v18471_v33 = vadd.f32 %v8300_v40, %v8008_v26  ;;  %15362 = vmatmul.mubr.bf16.vlgmr.msra.gmra.mrb[104].mxu0 %v11322_v31  ;;  %v11650_v40 = vsel %vm2117_vm1, %v11647_v46, %v11649_v15  ;;  %v11354_v31 = vsel %vm665_vm0, %v11349_v3, %v11353_v42 }
 0x2f8   : > { %15402 = vmatmul.mubr.bf16.vlgmr.msra.gmra.mrb[104].mxu1 %v11640_v12  ;;  %15365 = vmatprep.mubr.bf16.mxu0 %v11330_v52  ;;  %v11357_v12 = vor.u32 %v11355_v53, %v11353_v42  ;;  %v11651_v52 = vrot.slane %v15968_v13, 1 }
 0x2f9   : > { %15405 = vmatprep.mubr.bf16.mxu1 %v11642_v30 }
 0x2fa   : > { %v14979_v56 = vpop.f32.mrb[0].mxu0  ;;  %v11362_v26 = vsel %vm665_vm0, %v11357_v12, %v11361_v23  ;;  %v11652_v38 = vsel %vm2117_vm1, %v11649_v15, %v11651_v52  ;;  %v11378_v15 = vsel %vm665_vm0, %v11373_v45, %v11377_v54 }
 0x2fb   : > { %v15019_v32 = vpop.f32.mrb[0].mxu1  ;;  %v8021_v59 = vpop.f32.mrb[1].mxu0 }
 0x2fc   : > { %v8313_v47 = vpop.f32.mrb[1].mxu1  ;;  %v18475_v18 = vadd.f32 %v15019_v32, %v14979_v56  ;;  %v14980_v25 = vpop.f32.mrb[2].mxu0  ;;  %v11653_v32 = vrot.slane %v18484_v51, 1  ;;  %v18496_v56 = vld [vmem:[#allocation2 + $0xd0] sm:$0xff]  }
 0x2fd   : > { %v15020_v10 = vpop.f32.mrb[2].mxu1  ;;  %v18477_v41 = vadd.f32 %v8313_v47, %v8021_v59  ;;  %v8024_v1 = vpop.f32.mrb[3].mxu0  ;;  %v15970_v47 = vld [vmem:[#allocation2 + $0xc8] sm:$0xff]   ;;  %v11391_v42 = vshll.u32 %v18496_v56, 16  ;;  %v11657_v3 = vrot.slane %v18496_v56, 1 }
 0x2fe   : > { %v8316_v34 = vpop.f32.mrb[3].mxu1  ;;  %v18480_v19 = vadd.f32 %v15020_v10, %v14980_v25  ;;  %v11365_v10 = vor.u32 %v11363_v29, %v11361_v23  ;;  %v11654_v59 = vsel %vm2117_vm1, %v11651_v52, %v11653_v32  ;;  %v11379_v25 = vshrl.u32 %v18484_v51, 16 }
 0x2ff   : > { %15366 = vmatmul.mubr.bf16.gmra.mrb[108].mxu0 %v11338_v62  ;;  %v11383_v62 = vshll.u32 %v15970_v47, 16  ;;  %v11393_v17 = vrot.slane %v11391_v42, 1 }
 0x300   : > { %15406 = vmatmul.mubr.bf16.gmra.mrb[108].mxu1 %v11644_v55  ;;  %15369 = vmatprep.mubr.bf16.mxu0 %v11346_v44  ;;  %v11370_v1 = vsel %vm665_vm0, %v11365_v10, %v11369_v11  ;;  %v11655_v44 = vrot.slane %v15970_v47, 1 }
 0x301   : > { %15409 = vmatprep.mubr.bf16.mxu1 %v11646_v43  ;;  %v11385_v12 = vrot.slane %v11383_v62, 1 }
 0x302   : > { %v14983_v28 = vpop.f32.mrb[4].mxu0 }
 0x303   : > { %v15023_v61 = vpop.f32.mrb[4].mxu1  ;;  %v8037_v60 = vpop.f32.mrb[5].mxu0 }
 0x304   : > { %v8329_v2 = vpop.f32.mrb[5].mxu1  ;;  %v18487_v30 = vadd.f32 %v15023_v61, %v14983_v28  ;;  %v14984_v0 = vpop.f32.mrb[6].mxu0  ;;  %v11387_v61 = vshrl.u32 %v15970_v47, 16  ;;  %v15972_v28 = vld [vmem:[#allocation2 + $0xd8] ss:$0 sps:$4 sm:$0x11]   ;;  %v11656_v60 = vsel %vm2117_vm1, %v11653_v32, %v11655_v44 }
 0x305   : > { %v15024_v8 = vpop.f32.mrb[6].mxu1  ;;  %v8040_v21 = vpop.f32.mrb[7].mxu0  ;;  %v11659_v45 = vrot.slane %v15972_v28, 1 }
 0x306   : > { %v8332_v7 = vpop.f32.mrb[7].mxu1 }
 0x307   : > { %v18492_v50 = vadd.f32 %v8332_v7, %v8040_v21  ;;  %15370 = vmatmul.mubr.bf16.gmra.mrb[112].mxu0 %v11354_v31 }
 0x308   : > { %15410 = vmatmul.mubr.bf16.gmra.mrb[112].mxu1 %v11648_v4  ;;  %15373 = vmatprep.mubr.bf16.mxu0 %v11362_v26  ;;  %v11381_v4 = vor.u32 %v11379_v25, %v11377_v54  ;;  %v11658_v26 = vsel %vm2117_vm1, %v11655_v44, %v11657_v3 }
 0x309   : > { %15413 = vmatprep.mubr.bf16.mxu1 %v11650_v40 }
 0x30a   : > { %v15043_v34 = vpop.f32.mrb[8].mxu0 }
 0x30b   : > { %v15083_v39 = vpop.f32.mrb[8].mxu1  ;;  %v8642_v9 = vpop.f32.mrb[9].mxu0 }
 0x30c   : > { %v8900_v48 = vpop.f32.mrb[9].mxu1  ;;  %v8737_v37 = vadd.f32 %v8642_v9, %v18416_v49  ;;  %v15044_v46 = vpop.f32.mrb[10].mxu0  ;;  %v11386_v39 = vsel %vm665_vm0, %v11381_v4, %v11385_v12 }
 0x30d   : > { %v15084_v55 = vpop.f32.mrb[10].mxu1  ;;  %v8740_v53 = vadd.f32 %v15044_v46, %v18423_v27  ;;  %v8645_v24 = vpop.f32.mrb[11].mxu0 }
 0x30e   : > { %v8903_v43 = vpop.f32.mrb[11].mxu1  ;;  %v8995_v13 = vadd.f32 %v8900_v48, %v8737_v37  ;;  %v8738_v2 = vadd.f32 %v8645_v24, %v18430_v6  ;;  %v11389_v6 = vor.u32 %v11387_v61, %v11385_v12  ;;  %v11395_v48 = vshrl.u32 %v18496_v56, 16 }
 0x30f   : > { %v8998_v49 = vadd.f32 %v15084_v55, %v8740_v53  ;;  %15374 = vmatmul.mubr.bf16.gmra.mrb[116].mxu0 %v11370_v1  ;;  %v11660_v1 = vsel %vm2117_vm1, %v11657_v3, %v11659_v45 }
 0x310   : > { %15414 = vmatmul.mubr.bf16.gmra.mrb[116].mxu1 %v11652_v38  ;;  %v9019_v23 = vadd.f32 %v18235_v22, %v8995_v13  ;;  %v8996_v27 = vadd.f32 %v8903_v43, %v8738_v2  ;;  %15377 = vmatprep.mubr.bf16.mxu0 %v11378_v15  ;;  %v11397_v9 = vor.u32 %v11395_v48, %v11393_v17 }
 0x311   : > { %15417 = vmatprep.mubr.bf16.mxu1 %v11654_v59  ;;  %v9022_v7 = vadd.f32 %v18235_v22, %v8998_v49 }
 0x312   : > { %v13444_v0 = vpack.c.bf16 %v9019_v23, %v9019_v23  ;;  %v9020_v31 = vadd.f32 %v18235_v22, %v8996_v27  ;;  %v15047_v29 = vpop.f32.mrb[12].mxu0  ;;  %v11399_v22 = vshll.u32 %v15972_v28, 16 }
 0x313   : > { %v15087_v8 = vpop.f32.mrb[12].mxu1  ;;  %v13446_v52 = vpack.c.bf16 %v9022_v7, %v9022_v7  ;;  %v8743_v20 = vadd.f32 %v15047_v29, %v18441_v36  ;;  %v8658_v16 = vpop.f32.mrb[13].mxu0  ;;  %v11394_v36 = vsel %vm665_vm0, %v11389_v6, %v11393_v17 }
 0x314   : > { %v8916_v51 = vpop.f32.mrb[13].mxu1  ;;  %13021 = vst [vmem:[%s16724_s8 + $0x104] sm:$0xf] %v13444_v0  ;;  %v13445_v11 = vpack.c.bf16 %v9020_v31, %v9020_v31  ;;  %v8741_v32 = vadd.f32 %v8658_v16, %v18446_v63  ;;  %v15048_v47 = vpop.f32.mrb[14].mxu0  ;;  %v18524_v63 = vld [vmem:[%s18737_s4] ss:$0 sm:$0xff] }
 0x315   : > { %v15088_v40 = vpop.f32.mrb[14].mxu1  ;;  %13023 = vst [vmem:[%s16724_s8 + $0x124] sm:$0xf] %v13446_v52  ;;  %v9001_v10 = vadd.f32 %v15087_v8, %v8743_v20  ;;  %v8744_v55 = vadd.f32 %v15048_v47, %v18449_v5  ;;  %v8661_v38 = vpop.f32.mrb[15].mxu0  ;;  %v11401_v25 = vrot.slane %v11399_v22, 1 }
 0x316   : > { %v8919_v21 = vpop.f32.mrb[15].mxu1  ;;  %13022 = vst [vmem:[%s16724_s8 + $0x10c] sm:$0xf] %v13445_v11  ;;  %v8999_v54 = vadd.f32 %v8916_v51, %v8741_v32 }
 0x317   : > { %v9025_v34 = vadd.f32 %v18524_v63, %v9001_v10  ;;  %v9002_v56 = vadd.f32 %v15088_v40, %v8744_v55  ;;  %15378 = vmatmul.mubr.bf16.gmra.mrb[120].mxu0 %v11386_v39  ;;  %v11402_v2 = vsel %vm665_vm0, %v11397_v9, %v11401_v25 }
 0x318   : > { %15418 = vmatmul.mubr.bf16.gmra.mrb[120].mxu1 %v11656_v60  ;;  %v9023_v5 = vadd.f32 %v18524_v63, %v8999_v54  ;;  %15381 = vmatprep.mubr.bf16.mxu0 %v11394_v36 }
 0x319   : > { %15421 = vmatprep.mubr.bf16.mxu1 %v11658_v26  ;;  %v13448_v62 = vpack.c.bf16 %v9025_v34, %v9025_v34  ;;  %v9026_v37 = vadd.f32 %v18524_v63, %v9002_v56 }
 0x31a   : > { %v13447_v44 = vpack.c.bf16 %v9023_v5, %v9023_v5  ;;  %v15051_v53 = vpop.f32.mrb[16].mxu0 }
 0x31b   : > { %v15091_v43 = vpop.f32.mrb[16].mxu1  ;;  %13025 = vst [vmem:[%s16724_s8 + $0x144] sm:$0xf] %v13448_v62  ;;  %v13449_v15 = vpack.c.bf16 %v9026_v37, %v9026_v37  ;;  %v8747_v61 = vadd.f32 %v15051_v53, %v18456_v14  ;;  %v8674_v42 = vpop.f32.mrb[17].mxu0 }
 0x31c   : > { %v8932_v59 = vpop.f32.mrb[17].mxu1  ;;  %13024 = vst [vmem:[%s16724_s8 + $0x12c] sm:$0xf] %v13447_v44  ;;  %v15052_v13 = vpop.f32.mrb[18].mxu0 }
 0x31d   : > { %v15092_v46 = vpop.f32.mrb[18].mxu1  ;;  %13026 = vst [vmem:[%s16724_s8 + $0x14c] sm:$0xf] %v13449_v15  ;;  %v9005_v49 = vadd.f32 %v15091_v43, %v8747_v61  ;;  %v8677_v8 = vpop.f32.mrb[19].mxu0 }
 0x31e   : > { %v8935_v24 = vpop.f32.mrb[19].mxu1  ;;  %v8746_v4 = vadd.f32 %v8677_v8, %v18461_v57 }
 0x31f   : > { %v9029_v3 = vadd.f32 %v18524_v63, %v9005_v49  ;;  %15382 = vmatmul.mubr.bf16.gmra.mrb[124].mxu0 %v11402_v2 }
 0x320   : > { %15422 = vmatmul.mubr.bf16.gmra.mrb[124].mxu1 %v11660_v1  ;;  %v9004_v23 = vadd.f32 %v8935_v24, %v8746_v4 }
 0x321   : > { %v13451_v14 = vpack.c.bf16 %v9029_v3, %v9029_v3 }
 0x322   : > { %v9028_v28 = vadd.f32 %v18524_v63, %v9004_v23  ;;  %v15055_v7 = vpop.f32.mrb[20].mxu0 }
 0x323   : > { %v15095_v12 = vpop.f32.mrb[20].mxu1  ;;  %13028 = vst [vmem:[%s16724_s8 + $0x16c] sm:$0xf] %v13451_v14  ;;  %v8690_v60 = vpop.f32.mrb[21].mxu0 }
 0x324   : > { %v8948_v27 = vpop.f32.mrb[21].mxu1  ;;  %v13450_v6 = vpack.c.bf16 %v9028_v28, %v9028_v28  ;;  %v8749_v17 = vadd.f32 %v8690_v60, %v18465_v58  ;;  %v15056_v0 = vpop.f32.mrb[22].mxu0 }
 0x325   : > { %v15096_v51 = vpop.f32.mrb[22].mxu1  ;;  %v8752_v57 = vadd.f32 %v15056_v0, %v18468_v35  ;;  %v8693_v31 = vpop.f32.mrb[23].mxu0 }
 0x326   : > { %v8951_v40 = vpop.f32.mrb[23].mxu1  ;;  %13027 = vst [vmem:[%s16724_s8 + $0x164] sm:$0xf] %v13450_v6  ;;  %v9007_v29 = vadd.f32 %v8948_v27, %v8749_v17  ;;  %v8750_v21 = vadd.f32 %v8693_v31, %v18471_v33 }
 0x327   : > { %v9010_v26 = vadd.f32 %v15096_v51, %v8752_v57 }
 0x328   : > { %v9031_v20 = vadd.f32 %v18524_v63, %v9007_v29  ;;  %v9008_v16 = vadd.f32 %v8951_v40, %v8750_v21 }
 0x329   : > { %v9034_v11 = vadd.f32 %v18524_v63, %v9010_v26 }
 0x32a   : > { %v13452_v58 = vpack.c.bf16 %v9031_v20, %v9031_v20  ;;  %v9032_v35 = vadd.f32 %v18524_v63, %v9008_v16  ;;  %v15059_v47 = vpop.f32.mrb[24].mxu0 }
 0x32b   : > { %v15099_v52 = vpop.f32.mrb[24].mxu1  ;;  %v13454_v22 = vpack.c.bf16 %v9034_v11, %v9034_v11  ;;  %v8755_v10 = vadd.f32 %v15059_v47, %v18475_v18  ;;  %v8706_v33 = vpop.f32.mrb[25].mxu0 }
 0x32c   : > { %v8964_v39 = vpop.f32.mrb[25].mxu1  ;;  %13029 = vst [vmem:[%s16724_s8 + $0x184] sm:$0xf] %v13452_v58  ;;  %v13453_v55 = vpack.c.bf16 %v9032_v35, %v9032_v35  ;;  %v8753_v38 = vadd.f32 %v8706_v33, %v18477_v41  ;;  %v15060_v36 = vpop.f32.mrb[26].mxu0 }
 0x32d   : > { %v15100_v32 = vpop.f32.mrb[26].mxu1  ;;  %13031 = vst [vmem:[%s16724_s8 + $0x1a4] sm:$0xf] %v13454_v22  ;;  %v9013_v45 = vadd.f32 %v15099_v52, %v8755_v10  ;;  %v8756_v54 = vadd.f32 %v15060_v36, %v18480_v19  ;;  %v8709_v34 = vpop.f32.mrb[27].mxu0 }
 0x32e   : > { %v8967_v48 = vpop.f32.mrb[27].mxu1  ;;  %13030 = vst [vmem:[%s16724_s8 + $0x18c] sm:$0xf] %v13453_v55  ;;  %v9011_v56 = vadd.f32 %v8964_v39, %v8753_v38 }
 0x32f   : > { %v9037_v43 = vadd.f32 %v18524_v63, %v9013_v45  ;;  %v9014_v5 = vadd.f32 %v15100_v32, %v8756_v54 }
 0x330   : > { %v9035_v59 = vadd.f32 %v18524_v63, %v9011_v56 }
 0x331   : > { %v13456_v25 = vpack.c.bf16 %v9037_v43, %v9037_v43  ;;  %v9038_v41 = vadd.f32 %v18524_v63, %v9014_v5 }
 0x332   : > { %v13455_v37 = vpack.c.bf16 %v9035_v59, %v9035_v59  ;;  %v15063_v46 = vpop.f32.mrb[28].mxu0 }
 0x333   : > { %v15103_v18 = vpop.f32.mrb[28].mxu1  ;;  %13033 = vst [vmem:[%s16724_s8 + $0x1c4] sm:$0xf] %v13456_v25  ;;  %v13457_v19 = vpack.c.bf16 %v9038_v41, %v9038_v41  ;;  %v8759_v44 = vadd.f32 %v15063_v46, %v18487_v30  ;;  %v8722_v53 = vpop.f32.mrb[29].mxu0 }
 0x334   : > { %v8980_v9 = vpop.f32.mrb[29].mxu1  ;;  %13032 = vst [vmem:[%s16724_s8 + $0x1ac] sm:$0xf] %v13455_v37  ;;  %v15064_v24 = vpop.f32.mrb[30].mxu0 }
 0x335   : > { %v15104_v62 = vpop.f32.mrb[30].mxu1  ;;  %13034 = vst [vmem:[%s16724_s8 + $0x1cc] sm:$0xf] %v13457_v19  ;;  %v9017_v15 = vadd.f32 %v15103_v18, %v8759_v44  ;;  %v8725_v61 = vpop.f32.mrb[31].mxu0 }
 0x336   : > { %v8983_v1 = vpop.f32.mrb[31].mxu1  ;;  %v8758_v42 = vadd.f32 %v8725_v61, %v18492_v50 }
 0x337   : > { %v9041_v13 = vadd.f32 %v18524_v63, %v9017_v15 }
 0x338   : > { %v9016_v49 = vadd.f32 %v8983_v1, %v8758_v42 }
 0x339   : > { %v13459_v4 = vpack.c.bf16 %v9041_v13, %v9041_v13 }
 0x33a   : > { %v9040_v12 = vadd.f32 %v18524_v63, %v9016_v49  ;;  %v15123_v30 = vpop.f32.mrb[32].mxu0 }
 0x33b   : > { %v15163_v2 = vpop.f32.mrb[32].mxu1  ;;  %13036 = vst [vmem:[%s16724_s8 + $0x1ec] sm:$0xf] %v13459_v4  ;;  %v9445_v27 = vpop.f32.mrb[33].mxu0 }
 0x33c   : > { %v9634_v8 = vpop.f32.mrb[33].mxu1  ;;  %v13458_v14 = vpack.c.bf16 %v9040_v12, %v9040_v12  ;;  %v15124_v28 = vpop.f32.mrb[34].mxu0 }
 0x33d   : > { %v15164_v3 = vpop.f32.mrb[34].mxu1  ;;  %v18563_v51 = vadd.f32 %v9634_v8, %v9445_v27  ;;  %v9448_v50 = vpop.f32.mrb[35].mxu0 }
 0x33e   : > { %v9637_v23 = vpop.f32.mrb[35].mxu1  ;;  %v18565_v7 = vadd.f32 %v15164_v3, %v15124_v28  ;;  %13035 = vst [vmem:[%s16724_s8 + $0x1e4] sm:$0xf] %v13458_v14 }
 0x33f   : > { %v18568_v40 = vadd.f32 %v9637_v23, %v9448_v50 }
 0x342   : > { %v15127_v0 = vpop.f32.mrb[36].mxu0 }
 0x343   : > { %v15167_v60 = vpop.f32.mrb[36].mxu1  ;;  %v9461_v29 = vpop.f32.mrb[37].mxu0 }
 0x344   : > { %v9650_v6 = vpop.f32.mrb[37].mxu1  ;;  %v18570_v31 = vadd.f32 %v15167_v60, %v15127_v0  ;;  %v15128_v26 = vpop.f32.mrb[38].mxu0 }
 0x345   : > { %v15168_v17 = vpop.f32.mrb[38].mxu1  ;;  %v18572_v21 = vadd.f32 %v9650_v6, %v9461_v29  ;;  %v9464_v20 = vpop.f32.mrb[39].mxu0 }
 0x346   : > { %v9653_v57 = vpop.f32.mrb[39].mxu1  ;;  %v18574_v52 = vadd.f32 %v15168_v17, %v15128_v26 }
 0x34a   : > { %v15131_v32 = vpop.f32.mrb[40].mxu0 }
 0x34b   : > { %v15171_v16 = vpop.f32.mrb[40].mxu1  ;;  %v9477_v47 = vpop.f32.mrb[41].mxu0 }
 0x34c   : > { %v9666_v39 = vpop.f32.mrb[41].mxu1  ;;  %v18576_v35 = vadd.f32 %v15171_v16, %v15131_v32  ;;  %v15132_v48 = vpop.f32.mrb[42].mxu0 }
 0x34d   : > { %v15172_v11 = vpop.f32.mrb[42].mxu1  ;;  %v9480_v22 = vpop.f32.mrb[43].mxu0 }
 0x34e   : > { %v9669_v58 = vpop.f32.mrb[43].mxu1 }
 0x34f   : > { %v18578_v10 = vadd.f32 %v9669_v58, %v9480_v22 }
 0x352   : > { %v15135_v36 = vpop.f32.mrb[44].mxu0 }
 0x353   : > { %v15175_v33 = vpop.f32.mrb[44].mxu1  ;;  %v9493_v54 = vpop.f32.mrb[45].mxu0 }
 0x354   : > { %v9682_v55 = vpop.f32.mrb[45].mxu1  ;;  %v15136_v56 = vpop.f32.mrb[46].mxu0 }
 0x355   : > { %v15176_v38 = vpop.f32.mrb[46].mxu1  ;;  %v18580_v34 = vadd.f32 %v9682_v55, %v9493_v54  ;;  %v9496_v5 = vpop.f32.mrb[47].mxu0 }
 0x356   : > { %v9685_v45 = vpop.f32.mrb[47].mxu1  ;;  %v18582_v43 = vadd.f32 %v15176_v38, %v15136_v56 }
 0x357   : > { %v18584_v18 = vadd.f32 %v9685_v45, %v9496_v5 }
 0x35a   : > { %v15139_v41 = vpop.f32.mrb[48].mxu0 }
 0x35b   : > { %v15179_v59 = vpop.f32.mrb[48].mxu1  ;;  %v9509_v46 = vpop.f32.mrb[49].mxu0 }
 0x35c   : > { %v9698_v9 = vpop.f32.mrb[49].mxu1  ;;  %v18586_v37 = vadd.f32 %v15179_v59, %v15139_v41  ;;  %v15140_v19 = vpop.f32.mrb[50].mxu0 }
 0x35d   : > { %v15180_v25 = vpop.f32.mrb[50].mxu1  ;;  %v18588_v1 = vadd.f32 %v9698_v9, %v9509_v46  ;;  %v9512_v53 = vpop.f32.mrb[51].mxu0 }
 0x35e   : > { %v9701_v62 = vpop.f32.mrb[51].mxu1  ;;  %v18590_v44 = vadd.f32 %v15180_v25, %v15140_v19 }
 0x362   : > { %v15143_v42 = vpop.f32.mrb[52].mxu0 }
 0x363   : > { %v15183_v24 = vpop.f32.mrb[52].mxu1  ;;  %v9525_v49 = vpop.f32.mrb[53].mxu0 }
 0x364   : > { %v9714_v15 = vpop.f32.mrb[53].mxu1  ;;  %v18592_v2 = vadd.f32 %v15183_v24, %v15143_v42  ;;  %v15144_v8 = vpop.f32.mrb[54].mxu0 }
 0x365   : > { %v15184_v61 = vpop.f32.mrb[54].mxu1  ;;  %v9528_v4 = vpop.f32.mrb[55].mxu0 }
 0x366   : > { %v9717_v13 = vpop.f32.mrb[55].mxu1 }
 0x367   : > { %v18594_v3 = vadd.f32 %v9717_v13, %v9528_v4 }
 0x36a   : > { %v15203_v27 = vpop.f32.mrb[56].mxu0 }
 0x36b   : > { %v15243_v12 = vpop.f32.mrb[56].mxu1  ;;  %v9923_v28 = vpop.f32.mrb[57].mxu0 }
 0x36c   : > { %v10340_v30 = vpop.f32.mrb[57].mxu1  ;;  %v10018_v50 = vadd.f32 %v9923_v28, %v18563_v51  ;;  %v15204_v60 = vpop.f32.mrb[58].mxu0 }
 0x36d   : > { %v15244_v23 = vpop.f32.mrb[58].mxu1  ;;  %v10021_v6 = vadd.f32 %v15204_v60, %v18565_v7  ;;  %v9926_v17 = vpop.f32.mrb[59].mxu0 }
 0x36e   : > { %v10343_v14 = vpop.f32.mrb[59].mxu1  ;;  %v10435_v0 = vadd.f32 %v10340_v30, %v10018_v50  ;;  %v10019_v57 = vadd.f32 %v9926_v17, %v18568_v40 }
 0x36f   : > { %v10438_v29 = vadd.f32 %v15244_v23, %v10021_v6 }
 0x370   : > { %v10459_v20 = vadd.f32 %v18524_v63, %v10435_v0  ;;  %v10436_v16 = vadd.f32 %v10343_v14, %v10019_v57 }
 0x371   : > { %v10462_v11 = vadd.f32 %v18524_v63, %v10438_v29 }
 0x372   : > { %v13460_v51 = vpack.c.bf16 %v10459_v20, %v10459_v20  ;;  %v10460_v58 = vadd.f32 %v18524_v63, %v10436_v16  ;;  %v15207_v7 = vpop.f32.mrb[60].mxu0 }
 0x373   : > { %v15247_v26 = vpop.f32.mrb[60].mxu1  ;;  %v13462_v48 = vpack.c.bf16 %v10462_v11, %v10462_v11  ;;  %v10024_v22 = vadd.f32 %v15207_v7, %v18570_v31  ;;  %v9939_v40 = vpop.f32.mrb[61].mxu0 }
 0x374   : > { %v10356_v39 = vpop.f32.mrb[61].mxu1  ;;  %13187 = vst [vmem:[%s16724_s8 + $0x110] sm:$0xf] %v13460_v51  ;;  %v13461_v33 = vpack.c.bf16 %v10460_v58, %v10460_v58  ;;  %v10022_v55 = vadd.f32 %v9939_v40, %v18572_v21  ;;  %v15208_v38 = vpop.f32.mrb[62].mxu0 }
 0x375   : > { %v15248_v32 = vpop.f32.mrb[62].mxu1  ;;  %13189 = vst [vmem:[%s16724_s8 + $0x130] sm:$0xf] %v13462_v48  ;;  %v10441_v36 = vadd.f32 %v15247_v26, %v10024_v22  ;;  %v10025_v45 = vadd.f32 %v15208_v38, %v18574_v52  ;;  %v9942_v54 = vpop.f32.mrb[63].mxu0 }
 0x376   : > { %v10359_v47 = vpop.f32.mrb[63].mxu1  ;;  %13188 = vst [vmem:[%s16724_s8 + $0x118] sm:$0xf] %v13461_v33  ;;  %v10439_v56 = vadd.f32 %v10356_v39, %v10022_v55 }
 0x377   : > { %v10465_v5 = vadd.f32 %v18524_v63, %v10441_v36  ;;  %v10442_v59 = vadd.f32 %v15248_v32, %v10025_v45 }
 0x378   : > { %v10463_v9 = vadd.f32 %v18524_v63, %v10439_v56 }
 0x379   : > { %v13464_v41 = vpack.c.bf16 %v10465_v5, %v10465_v5  ;;  %v10466_v21 = vadd.f32 %v18524_v63, %v10442_v59 }
 0x37a   : > { %v13463_v46 = vpack.c.bf16 %v10463_v9, %v10463_v9  ;;  %v15211_v19 = vpop.f32.mrb[64].mxu0 }
 0x37b   : > { %v15251_v31 = vpop.f32.mrb[64].mxu1  ;;  %13191 = vst [vmem:[%s16724_s8 + $0x150] sm:$0xf] %v13464_v41  ;;  %v13465_v52 = vpack.c.bf16 %v10466_v21, %v10466_v21  ;;  %v10028_v24 = vadd.f32 %v15211_v19, %v18576_v35  ;;  %v9955_v15 = vpop.f32.mrb[65].mxu0 }
 0x37c   : > { %v10372_v25 = vpop.f32.mrb[65].mxu1  ;;  %13190 = vst [vmem:[%s16724_s8 + $0x138] sm:$0xf] %v13463_v46  ;;  %v15212_v61 = vpop.f32.mrb[66].mxu0 }
 0x37d   : > { %v15252_v62 = vpop.f32.mrb[66].mxu1  ;;  %13192 = vst [vmem:[%s16724_s8 + $0x158] sm:$0xf] %v13465_v52  ;;  %v10445_v42 = vadd.f32 %v15251_v31, %v10028_v24  ;;  %v9958_v13 = vpop.f32.mrb[67].mxu0 }
 0x37e   : > { %v10375_v53 = vpop.f32.mrb[67].mxu1  ;;  %v10027_v49 = vadd.f32 %v9958_v13, %v18578_v10 }
 0x37f   : > { %v10469_v8 = vadd.f32 %v18524_v63, %v10445_v42 }
 0x380   : > { %v10444_v12 = vadd.f32 %v10375_v53, %v10027_v49 }
 0x381   : > { %v13467_v23 = vpack.c.bf16 %v10469_v8, %v10469_v8 }
 0x382   : > { %v10468_v14 = vadd.f32 %v18524_v63, %v10444_v12  ;;  %v15215_v35 = vpop.f32.mrb[68].mxu0 }
 0x383   : > { %v15255_v4 = vpop.f32.mrb[68].mxu1  ;;  %13194 = vst [vmem:[%s16724_s8 + $0x178] sm:$0xf] %v13467_v23  ;;  %v9971_v50 = vpop.f32.mrb[69].mxu0 }
 0x384   : > { %v10388_v30 = vpop.f32.mrb[69].mxu1  ;;  %v13466_v60 = vpack.c.bf16 %v10468_v14, %v10468_v14  ;;  %v10030_v6 = vadd.f32 %v9971_v50, %v18580_v34  ;;  %v15216_v17 = vpop.f32.mrb[70].mxu0 }
 0x385   : > { %v15256_v27 = vpop.f32.mrb[70].mxu1  ;;  %v10033_v10 = vadd.f32 %v15216_v17, %v18582_v43  ;;  %v9974_v0 = vpop.f32.mrb[71].mxu0 }
 0x386   : > { %v10391_v28 = vpop.f32.mrb[71].mxu1  ;;  %13193 = vst [vmem:[%s16724_s8 + $0x170] sm:$0xf] %v13466_v60  ;;  %v10447_v57 = vadd.f32 %v10388_v30, %v10030_v6  ;;  %v10031_v29 = vadd.f32 %v9974_v0, %v18584_v18 }
 0x387   : > { %v10450_v26 = vadd.f32 %v15256_v27, %v10033_v10 }
 0x388   : > { %v10471_v16 = vadd.f32 %v18524_v63, %v10447_v57  ;;  %v10448_v39 = vadd.f32 %v10391_v28, %v10031_v29 }
 0x389   : > { %v10474_v32 = vadd.f32 %v18524_v63, %v10450_v26 }
 0x38a   : > { %v13468_v34 = vpack.c.bf16 %v10471_v16, %v10471_v16  ;;  %v10472_v43 = vadd.f32 %v18524_v63, %v10448_v39  ;;  %v15219_v58 = vpop.f32.mrb[72].mxu0 }
 0x38b   : > { %v15259_v20 = vpop.f32.mrb[72].mxu1  ;;  %v13470_v47 = vpack.c.bf16 %v10474_v32, %v10474_v32  ;;  %v10036_v48 = vadd.f32 %v15219_v58, %v18586_v37  ;;  %v9987_v18 = vpop.f32.mrb[73].mxu0 }
 0x38c   : > { %v10404_v11 = vpop.f32.mrb[73].mxu1  ;;  %13195 = vst [vmem:[%s16724_s8 + $0x190] sm:$0xf] %v13468_v34  ;;  %v13469_v22 = vpack.c.bf16 %v10472_v43, %v10472_v43  ;;  %v10034_v40 = vadd.f32 %v9987_v18, %v18588_v1  ;;  %v15220_v33 = vpop.f32.mrb[74].mxu0 }
 0x38d   : > { %v15260_v51 = vpop.f32.mrb[74].mxu1  ;;  %13197 = vst [vmem:[%s16724_s8 + $0x1b0] sm:$0xf] %v13470_v47  ;;  %v10453_v55 = vadd.f32 %v15259_v20, %v10036_v48  ;;  %v10037_v38 = vadd.f32 %v15220_v33, %v18590_v44  ;;  %v9990_v36 = vpop.f32.mrb[75].mxu0 }
 0x38e   : > { %v10407_v7 = vpop.f32.mrb[75].mxu1  ;;  %13196 = vst [vmem:[%s16724_s8 + $0x198] sm:$0xf] %v13469_v22  ;;  %v10451_v45 = vadd.f32 %v10404_v11, %v10034_v40 }
 0x38f   : > { %v10477_v54 = vadd.f32 %v18524_v63, %v10453_v55  ;;  %v10454_v56 = vadd.f32 %v15260_v51, %v10037_v38 }
 0x390   : > { %v10475_v5 = vadd.f32 %v18524_v63, %v10451_v45 }
 0x391   : > { %v13472_v31 = vpack.c.bf16 %v10477_v54, %v10477_v54  ;;  %v10478_v1 = vadd.f32 %v18524_v63, %v10454_v56 }
 0x392   : > { %v13471_v25 = vpack.c.bf16 %v10475_v5, %v10475_v5  ;;  %v15223_v41 = vpop.f32.mrb[76].mxu0 }
 0x393   : > { %v15263_v37 = vpop.f32.mrb[76].mxu1  ;;  %13199 = vst [vmem:[%s16724_s8 + $0x1d0] sm:$0xf] %v13472_v31  ;;  %v13473_v44 = vpack.c.bf16 %v10478_v1, %v10478_v1  ;;  %v10040_v62 = vadd.f32 %v15223_v41, %v18592_v2  ;;  %v10003_v46 = vpop.f32.mrb[77].mxu0 }
 0x394   : > { %v10420_v59 = vpop.f32.mrb[77].mxu1  ;;  %13198 = vst [vmem:[%s16724_s8 + $0x1b8] sm:$0xf] %v13471_v25  ;;  %v15224_v19 = vpop.f32.mrb[78].mxu0 }
 0x395   : > { %v15264_v9 = vpop.f32.mrb[78].mxu1  ;;  %13200 = vst [vmem:[%s16724_s8 + $0x1d8] sm:$0xf] %v13473_v44  ;;  %v10457_v53 = vadd.f32 %v15263_v37, %v10040_v62  ;;  %v10006_v52 = vpop.f32.mrb[79].mxu0 }
 0x396   : > { %v10423_v21 = vpop.f32.mrb[79].mxu1  ;;  %v10039_v24 = vadd.f32 %v10006_v52, %v18594_v3 }
 0x397   : > { %v10481_v15 = vadd.f32 %v18524_v63, %v10457_v53 }
 0x398   : > { %v10456_v42 = vadd.f32 %v10423_v21, %v10039_v24 }
 0x399   : > { %v13475_v49 = vpack.c.bf16 %v10481_v15, %v10481_v15 }
 0x39a   : > { %v10480_v4 = vadd.f32 %v18524_v63, %v10456_v42  ;;  %v15283_v2 = vpop.f32.mrb[80].mxu0 }
 0x39b   : > { %v15323_v61 = vpop.f32.mrb[80].mxu1  ;;  %13202 = vst [vmem:[%s16724_s8 + $0x1f8] sm:$0xf] %v13475_v49  ;;  %v10812_v30 = vpop.f32.mrb[81].mxu0 }
 0x39c   : > { %v11104_v13 = vpop.f32.mrb[81].mxu1  ;;  %v13474_v23 = vpack.c.bf16 %v10480_v4, %v10480_v4  ;;  %v15284_v14 = vpop.f32.mrb[82].mxu0 }
 0x39d   : > { %v15324_v8 = vpop.f32.mrb[82].mxu1  ;;  %v18643_v27 = vadd.f32 %v11104_v13, %v10812_v30  ;;  %v10815_v3 = vpop.f32.mrb[83].mxu0 }
 0x39e   : > { %v11107_v12 = vpop.f32.mrb[83].mxu1  ;;  %v18645_v35 = vadd.f32 %v15324_v8, %v15284_v14  ;;  %13201 = vst [vmem:[%s16724_s8 + $0x1f0] sm:$0xf] %v13474_v23 }
 0x39f   : > { %v18648_v28 = vadd.f32 %v11107_v12, %v10815_v3 }
 0x3a2   : > { %v15287_v17 = vpop.f32.mrb[84].mxu0 }
 0x3a3   : > { %v15327_v50 = vpop.f32.mrb[84].mxu1  ;;  %v10828_v57 = vpop.f32.mrb[85].mxu0 }
 0x3a4   : > { %v11120_v60 = vpop.f32.mrb[85].mxu1  ;;  %v18650_v0 = vadd.f32 %v15327_v50, %v15287_v17  ;;  %v15288_v26 = vpop.f32.mrb[86].mxu0 }
 0x3a5   : > { %v15328_v6 = vpop.f32.mrb[86].mxu1  ;;  %v18652_v29 = vadd.f32 %v11120_v60, %v10828_v57  ;;  %v10831_v16 = vpop.f32.mrb[87].mxu0 }
 0x3a6   : > { %v11123_v10 = vpop.f32.mrb[87].mxu1  ;;  %v18654_v20 = vadd.f32 %v15328_v6, %v15288_v26 }
 0x3aa   : > { %v15291_v51 = vpop.f32.mrb[88].mxu0 }
 0x3ab   : > { %v15331_v39 = vpop.f32.mrb[88].mxu1  ;;  %v10844_v58 = vpop.f32.mrb[89].mxu0 }
 0x3ac   : > { %v11136_v11 = vpop.f32.mrb[89].mxu1  ;;  %v18656_v43 = vadd.f32 %v15331_v39, %v15291_v51  ;;  %v15292_v7 = vpop.f32.mrb[90].mxu0 }
 0x3ad   : > { %v15332_v32 = vpop.f32.mrb[90].mxu1  ;;  %v10847_v47 = vpop.f32.mrb[91].mxu0 }
 0x3ae   : > { %v11139_v34 = vpop.f32.mrb[91].mxu1 }
 0x3af   : > { %v18658_v48 = vadd.f32 %v11139_v34, %v10847_v47 }
 0x3b2   : > { %v15295_v33 = vpop.f32.mrb[92].mxu0 }
 0x3b3   : > { %v15335_v18 = vpop.f32.mrb[92].mxu1  ;;  %v10860_v38 = vpop.f32.mrb[93].mxu0 }
 0x3b4   : > { %v11152_v22 = vpop.f32.mrb[93].mxu1  ;;  %v15296_v45 = vpop.f32.mrb[94].mxu0 }
 0x3b5   : > { %v15336_v40 = vpop.f32.mrb[94].mxu1  ;;  %v18660_v36 = vadd.f32 %v11152_v22, %v10860_v38  ;;  %v10863_v56 = vpop.f32.mrb[95].mxu0 }
 0x3b6   : > { %v11155_v55 = vpop.f32.mrb[95].mxu1  ;;  %v18662_v54 = vadd.f32 %v15336_v40, %v15296_v45 }
 0x3b7   : > { %v18664_v37 = vadd.f32 %v11155_v55, %v10863_v56 }
 0x3ba   : > { %v15299_v1 = vpop.f32.mrb[96].mxu0 }
 0x3bb   : > { %v15339_v5 = vpop.f32.mrb[96].mxu1  ;;  %v10876_v41 = vpop.f32.mrb[97].mxu0 }
 0x3bc   : > { %v11168_v59 = vpop.f32.mrb[97].mxu1  ;;  %v18666_v25 = vadd.f32 %v15339_v5, %v15299_v1  ;;  %v15300_v44 = vpop.f32.mrb[98].mxu0 }
 0x3bd   : > { %v15340_v31 = vpop.f32.mrb[98].mxu1  ;;  %v18668_v21 = vadd.f32 %v11168_v59, %v10876_v41  ;;  %v10879_v46 = vpop.f32.mrb[99].mxu0 }
 0x3be   : > { %v11171_v9 = vpop.f32.mrb[99].mxu1  ;;  %v18670_v62 = vadd.f32 %v15340_v31, %v15300_v44 }
 0x3c2   : > { %v15303_v24 = vpop.f32.mrb[100].mxu0 }
 0x3c3   : > { %v15343_v19 = vpop.f32.mrb[100].mxu1  ;;  %v10892_v42 = vpop.f32.mrb[101].mxu0 }
 0x3c4   : > { %v11184_v53 = vpop.f32.mrb[101].mxu1  ;;  %v18672_v61 = vadd.f32 %v15343_v19, %v15303_v24  ;;  %v15304_v13 = vpop.f32.mrb[102].mxu0 }
 0x3c5   : > { %v15344_v52 = vpop.f32.mrb[102].mxu1  ;;  %v10895_v49 = vpop.f32.mrb[103].mxu0 }
 0x3c6   : > { %v11187_v15 = vpop.f32.mrb[103].mxu1 }
 0x3c7   : > { %v18674_v8 = vadd.f32 %v11187_v15, %v10895_v49 }
 0x3ca   : > { %v15363_v30 = vpop.f32.mrb[104].mxu0 }
 0x3cb   : > { %v15403_v4 = vpop.f32.mrb[104].mxu1  ;;  %v11497_v14 = vpop.f32.mrb[105].mxu0 }
 0x3cc   : > { %v11755_v2 = vpop.f32.mrb[105].mxu1  ;;  %v11592_v3 = vadd.f32 %v11497_v14, %v18643_v27  ;;  %v15364_v50 = vpop.f32.mrb[106].mxu0 }
 0x3cd   : > { %v15404_v12 = vpop.f32.mrb[106].mxu1  ;;  %v11595_v60 = vadd.f32 %v15364_v50, %v18645_v35  ;;  %v11500_v6 = vpop.f32.mrb[107].mxu0 }
 0x3ce   : > { %v11758_v23 = vpop.f32.mrb[107].mxu1  ;;  %v11850_v17 = vadd.f32 %v11755_v2, %v11592_v3  ;;  %v11593_v10 = vadd.f32 %v11500_v6, %v18648_v28 }
 0x3cf   : > { %v11853_v57 = vadd.f32 %v15404_v12, %v11595_v60 }
 0x3d0   : > { %v11874_v16 = vadd.f32 %v18524_v63, %v11850_v17  ;;  %v11851_v39 = vadd.f32 %v11758_v23, %v11593_v10 }
 0x3d1   : > { %v11877_v32 = vadd.f32 %v18524_v63, %v11853_v57 }
 0x3d2   : > { %v13476_v27 = vpack.c.bf16 %v11874_v16, %v11874_v16  ;;  %v11875_v34 = vadd.f32 %v18524_v63, %v11851_v39  ;;  %v15367_v35 = vpop.f32.mrb[108].mxu0 }
 0x3d3   : > { %v15407_v26 = vpop.f32.mrb[108].mxu1  ;;  %v13478_v7 = vpack.c.bf16 %v11877_v32, %v11877_v32  ;;  %v11598_v47 = vadd.f32 %v15367_v35, %v18650_v0  ;;  %v11513_v28 = vpop.f32.mrb[109].mxu0 }
 0x3d4   : > { %v11771_v11 = vpop.f32.mrb[109].mxu1  ;;  %13343 = vst [vmem:[%s16724_s8 + $0x114] sm:$0xf] %v13476_v27  ;;  %v13477_v18 = vpack.c.bf16 %v11875_v34, %v11875_v34  ;;  %v11596_v22 = vadd.f32 %v11513_v28, %v18652_v29  ;;  %v15368_v40 = vpop.f32.mrb[110].mxu0 }
 0x3d5   : > { %v15408_v51 = vpop.f32.mrb[110].mxu1  ;;  %13345 = vst [vmem:[%s16724_s8 + $0x134] sm:$0xf] %v13478_v7  ;;  %v11856_v33 = vadd.f32 %v15407_v26, %v11598_v47  ;;  %v11599_v55 = vadd.f32 %v15368_v40, %v18654_v20  ;;  %v11516_v38 = vpop.f32.mrb[111].mxu0 }
 0x3d6   : > { %v11774_v58 = vpop.f32.mrb[111].mxu1  ;;  %13344 = vst [vmem:[%s16724_s8 + $0x11c] sm:$0xf] %v13477_v18  ;;  %v11854_v45 = vadd.f32 %v11771_v11, %v11596_v22 }
 0x3d7   : > { %v11880_v56 = vadd.f32 %v18524_v63, %v11856_v33  ;;  %v11857_v5 = vadd.f32 %v15408_v51, %v11599_v55 }
 0x3d8   : > { %v11878_v59 = vadd.f32 %v18524_v63, %v11854_v45 }
 0x3d9   : > { %v13480_v1 = vpack.c.bf16 %v11880_v56, %v11880_v56  ;;  %v11881_v29 = vadd.f32 %v18524_v63, %v11857_v5 }
 0x3da   : > { %v13479_v41 = vpack.c.bf16 %v11878_v59, %v11878_v59  ;;  %v15371_v44 = vpop.f32.mrb[112].mxu0 }
 0x3db   : > { %v15411_v0 = vpop.f32.mrb[112].mxu1  ;;  %13347 = vst [vmem:[%s16724_s8 + $0x154] sm:$0xf] %v13480_v1  ;;  %v13481_v20 = vpack.c.bf16 %v11881_v29, %v11881_v29  ;;  %v11602_v19 = vadd.f32 %v15371_v44, %v18656_v43  ;;  %v11529_v53 = vpop.f32.mrb[113].mxu0 }
 0x3dc   : > { %v11787_v31 = vpop.f32.mrb[113].mxu1  ;;  %13346 = vst [vmem:[%s16724_s8 + $0x13c] sm:$0xf] %v13479_v41  ;;  %v15372_v52 = vpop.f32.mrb[114].mxu0 }
 0x3dd   : > { %v15412_v9 = vpop.f32.mrb[114].mxu1  ;;  %13348 = vst [vmem:[%s16724_s8 + $0x15c] sm:$0xf] %v13481_v20  ;;  %v11860_v24 = vadd.f32 %v15411_v0, %v11602_v19  ;;  %v11532_v15 = vpop.f32.mrb[115].mxu0 }
 0x3de   : > { %v11790_v46 = vpop.f32.mrb[115].mxu1  ;;  %v11601_v42 = vadd.f32 %v11532_v15, %v18658_v48 }
 0x3df   : > { %v11884_v13 = vadd.f32 %v18524_v63, %v11860_v24 }
 0x3e0   : > { %v11859_v4 = vadd.f32 %v11790_v46, %v11601_v42 }
 0x3e1   : > { %v13483_v12 = vpack.c.bf16 %v11884_v13, %v11884_v13 }
 0x3e2   : > { %v11883_v23 = vadd.f32 %v18524_v63, %v11859_v4  ;;  %v15375_v43 = vpop.f32.mrb[116].mxu0 }
 0x3e3   : > { %v15415_v49 = vpop.f32.mrb[116].mxu1  ;;  %13350 = vst [vmem:[%s16724_s8 + $0x17c] sm:$0xf] %v13483_v12  ;;  %v11545_v3 = vpop.f32.mrb[117].mxu0 }
 0x3e4   : > { %v11803_v2 = vpop.f32.mrb[117].mxu1  ;;  %v13482_v50 = vpack.c.bf16 %v11883_v23, %v11883_v23  ;;  %v11604_v60 = vadd.f32 %v11545_v3, %v18660_v36  ;;  %v15376_v6 = vpop.f32.mrb[118].mxu0 }
 0x3e5   : > { %v15416_v30 = vpop.f32.mrb[118].mxu1  ;;  %v11607_v48 = vadd.f32 %v15376_v6, %v18662_v54  ;;  %v11548_v17 = vpop.f32.mrb[119].mxu0 }
 0x3e6   : > { %v11806_v14 = vpop.f32.mrb[119].mxu1  ;;  %13349 = vst [vmem:[%s16724_s8 + $0x174] sm:$0xf] %v13482_v50  ;;  %v11862_v10 = vadd.f32 %v11803_v2, %v11604_v60  ;;  %v11605_v57 = vadd.f32 %v11548_v17, %v18664_v37 }
 0x3e7   : > { %v11865_v26 = vadd.f32 %v15416_v30, %v11607_v48 }
 0x3e8   : > { %v11886_v39 = vadd.f32 %v18524_v63, %v11862_v10  ;;  %v11863_v11 = vadd.f32 %v11806_v14, %v11605_v57 }
 0x3e9   : > { %v11889_v51 = vadd.f32 %v18524_v63, %v11865_v26 }
 0x3ea   : > { %v13484_v36 = vpack.c.bf16 %v11886_v39, %v11886_v39  ;;  %v11887_v54 = vadd.f32 %v18524_v63, %v11863_v11  ;;  %v15379_v34 = vpop.f32.mrb[120].mxu0 }
 0x3eb   : > { %v15419_v16 = vpop.f32.mrb[120].mxu1  ;;  %v13486_v58 = vpack.c.bf16 %v11889_v51, %v11889_v51  ;;  %v11610_v7 = vadd.f32 %v15379_v34, %v18666_v25  ;;  %v11561_v37 = vpop.f32.mrb[121].mxu0 }
 0x3ec   : > { %v11819_v32 = vpop.f32.mrb[121].mxu1  ;;  %13351 = vst [vmem:[%s16724_s8 + $0x194] sm:$0xf] %v13484_v36  ;;  %v13485_v47 = vpack.c.bf16 %v11887_v54, %v11887_v54  ;;  %v11608_v28 = vadd.f32 %v11561_v37, %v18668_v21  ;;  %v15380_v18 = vpop.f32.mrb[122].mxu0 }
 0x3ed   : > { %v15420_v27 = vpop.f32.mrb[122].mxu1  ;;  %13353 = vst [vmem:[%s16724_s8 + $0x1b4] sm:$0xf] %v13486_v58  ;;  %v11868_v22 = vadd.f32 %v15419_v16, %v11610_v7  ;;  %v11611_v40 = vadd.f32 %v15380_v18, %v18670_v62  ;;  %v11564_v33 = vpop.f32.mrb[123].mxu0 }
 0x3ee   : > { %v11822_v35 = vpop.f32.mrb[123].mxu1  ;;  %13352 = vst [vmem:[%s16724_s8 + $0x19c] sm:$0xf] %v13485_v47  ;;  %v11866_v55 = vadd.f32 %v11819_v32, %v11608_v28 }
 0x3ef   : > { %v11892_v38 = vadd.f32 %v18524_v63, %v11868_v22  ;;  %v11869_v45 = vadd.f32 %v15420_v27, %v11611_v40 }
 0x3f0   : > { %v11890_v56 = vadd.f32 %v18524_v63, %v11866_v55 }
 0x3f1   : > { %v13488_v0 = vpack.c.bf16 %v11892_v38, %v11892_v38  ;;  %v11893_v21 = vadd.f32 %v18524_v63, %v11869_v45 }
 0x3f2   : > { %v13487_v31 = vpack.c.bf16 %v11890_v56, %v11890_v56  ;;  %v15383_v1 = vpop.f32.mrb[124].mxu0 }
 0x3f3   : > { %v15423_v25 = vpop.f32.mrb[124].mxu1  ;;  %13355 = vst [vmem:[%s16724_s8 + $0x1d4] sm:$0xf] %v13488_v0  ;;  %v13489_v29 = vpack.c.bf16 %v11893_v21, %v11893_v21  ;;  %v11614_v9 = vadd.f32 %v15383_v1, %v18672_v61  ;;  %v11577_v41 = vpop.f32.mrb[125].mxu0 }
 0x3f4   : > { %v11835_v5 = vpop.f32.mrb[125].mxu1  ;;  %13354 = vst [vmem:[%s16724_s8 + $0x1bc] sm:$0xf] %v13487_v31  ;;  %v15384_v44 = vpop.f32.mrb[126].mxu0 }
 0x3f5   : > { %v15424_v59 = vpop.f32.mrb[126].mxu1  ;;  %13356 = vst [vmem:[%s16724_s8 + $0x1dc] sm:$0xf] %v13489_v29  ;;  %v11872_v46 = vadd.f32 %v15423_v25, %v11614_v9  ;;  %v11580_v20 = vpop.f32.mrb[127].mxu0 }
 0x3f6   : > { %v11838_v62 = vpop.f32.mrb[127].mxu1  ;;  %v11613_v19 = vadd.f32 %v11580_v20, %v18674_v8 }
 0x3f7   : > { %v11896_v53 = vadd.f32 %v18524_v63, %v11872_v46 }
 0x3f8   : > { %v11871_v52 = vadd.f32 %v11838_v62, %v11613_v19 }
 0x3f9   : > { %v13491_v24 = vpack.c.bf16 %v11896_v53, %v11896_v53 }
 0x3fa   : > { %v11895_v15 = vadd.f32 %v18524_v63, %v11871_v52 }
 0x3fb   : > { %13358 = vst [vmem:[%s16724_s8 + $0x1fc] sm:$0xf] %v13491_v24 }
 0x3fc   : > { %v13490_v42 = vpack.c.bf16 %v11895_v15, %v11895_v15 }
 0x3fe   : > { %13357 = vst [vmem:[%s16724_s8 + $0x1f4] sm:$0xf] %v13490_v42 }
 0x3ff PF: > { %s15_s20 = sadd.s32 1, %s16000_s20   ;;  %s18739_s18 = smov %s15996_s19 }
 0x400   : > { %p12_p5 = scmp.ge.s32.totalorder %s15_s20, 4   ;;  %s18740_s19 = smov %s18742_s21 }
 0x402   :  { %14 = sbr.rel (!%p12_p5) target bundleno = 2 (0x2), region = 94 }

</bundles_post_ra>
